<compile_context>
chip_gen: v7x
topology: tpu7x:2x2x1
jax: 0.10.0
libtpu: 0.0.40
codegen_flags: <defaults>
</compile_context>

<pallas_src>
import math

import jax
import jax.numpy as jnp
from jax.experimental import pallas as pl
from jax.experimental.pallas import tpu as pltpu

# ---- model hyper-parameters (from the PyTorch module defaults) ----
D_MODEL = 64
N_HEAD = 4
HEAD_DIM = D_MODEL // N_HEAD
D_FF = 128
NUM_LAYERS = 2
OUTPUT_DIM = 6
LN_EPS = 1e-5
FC_PAD = 128  # logits padded to a full 128-lane slab (lane-dense stores)


# --------------------------------------------------------------------------
# In-kernel building blocks
# --------------------------------------------------------------------------
def _layer_norm(x, g, b):
    mu = jnp.mean(x, axis=-1, keepdims=True)
    var = jnp.mean(jnp.square(x - mu), axis=-1, keepdims=True)
    return (x - mu) * jax.lax.rsqrt(var + LN_EPS) * g + b


def _encoder_layer_body(x2d, mask3, refs, bt, S):
    """One post-norm TransformerEncoderLayer on (bt*S, D) activations."""
    (w_in, b_in, wo, bo, ln1_g, ln1_b, w1, b1, w2, b2, ln2_g, ln2_b) = refs

    # ---- packed QKV projection on all Bt*S rows at once (q already pre-scaled) ----
    qkv = jnp.dot(x2d, w_in[...], preferred_element_type=jnp.float32) + b_in[...]
    q = qkv[:, :D_MODEL].reshape(bt, S, D_MODEL)
    k = qkv[:, D_MODEL:2 * D_MODEL].reshape(bt, S, D_MODEL)
    v = qkv[:, 2 * D_MODEL:].reshape(bt, S, D_MODEL)

    # ---- per-head attention, batched over the Bt rows ----
    heads = []
    for h in range(N_HEAD):
        sl = slice(h * HEAD_DIM, (h + 1) * HEAD_DIM)
        s = jnp.einsum('bqd,bkd->bqk', q[:, :, sl], k[:, :, sl],
                       preferred_element_type=jnp.float32)
        s = s + mask3                                    # (bt,1,S) broadcasts over q
        s = s - jnp.max(s, axis=-1, keepdims=True)
        p = jnp.exp(s)
        p = p * pl.reciprocal(jnp.sum(p, axis=-1, keepdims=True), approx=True)
        heads.append(jnp.einsum('bqk,bkd->bqd', p, v[:, :, sl],
                                preferred_element_type=jnp.float32))

    # concat heads -> one full-K output projection
    attn = jnp.concatenate(heads, axis=-1).reshape(bt * S, D_MODEL)
    attn = jnp.dot(attn, wo[...], preferred_element_type=jnp.float32) + bo[...]

    # ---- residual + LayerNorm 1 (norm_first=False => post-norm) ----
    y = _layer_norm(x2d + attn, ln1_g[...], ln1_b[...])

    # ---- feed-forward (ReLU) ----
    hid = jnp.maximum(
        jnp.dot(y, w1[...], preferred_element_type=jnp.float32) + b1[...], 0.0)
    ff = jnp.dot(hid, w2[...], preferred_element_type=jnp.float32) + b2[...]

    # ---- residual + LayerNorm 2 ----
    return _layer_norm(y + ff, ln2_g[...], ln2_b[...])


# --------------------------------------------------------------------------
# Fused pallas_call: [both encoder layers + final fc] per batch tile
# --------------------------------------------------------------------------
def fused_transformer(x, mask_add, layers_prepped, fc_w_pad, fc_b_pad, bt):
    """x: (B_pad,S,D) f32, mask_add: (B_pad,1,S) f32 -> padded logits (B_pad, FC_PAD)."""
    B_pad, S, D = x.shape
    n_tiles = B_pad // bt
    flat_params = [w for lp in layers_prepped for w in lp] + [fc_w_pad, fc_b_pad]

    def kernel(x_ref, mask_ref, *refs):
        o_ref = refs[-1]
        p_refs = refs[:-1]
        layer_refs = [p_refs[l * 12:(l + 1) * 12] for l in range(NUM_LAYERS)]
        fc_w_ref = p_refs[NUM_LAYERS * 12]
        fc_b_ref = p_refs[NUM_LAYERS * 12 + 1]

        x2d = x_ref[...].reshape(bt * S, D)              # (Bt*S, D)
        mask3 = mask_ref[...]                            # (Bt, 1, S)

        for l in range(NUM_LAYERS):                      # unrolled, weights VMEM-resident
            x2d = _encoder_layer_body(x2d, mask3, layer_refs[l], bt, S)

        # classifier on the CLS (position 0) row of every sequence
        cls = x2d.reshape(bt, S, D)[:, 0, :]             # (Bt, D)
        o_ref[...] = (jnp.dot(cls, fc_w_ref[...], preferred_element_type=jnp.float32)
                      + fc_b_ref[...])                   # (Bt, 128) unmasked stores

    def weight_spec(arr):
        nd = arr.ndim
        return pl.BlockSpec(arr.shape, lambda b, _n=nd: (0,) * _n)

    in_specs = [
        pl.BlockSpec((bt, S, D), lambda b: (b, 0, 0)),   # activations
        pl.BlockSpec((bt, 1, S), lambda b: (b, 0, 0)),   # additive key mask
    ] + [weight_spec(p) for p in flat_params]

    return pl.pallas_call(
        kernel,
        grid=(n_tiles,),
        in_specs=in_specs,
        out_specs=pl.BlockSpec((bt, FC_PAD), lambda b: (b, 0)),
        out_shape=jax.ShapeDtypeStruct((B_pad, FC_PAD), jnp.float32),
        compiler_params=pltpu.CompilerParams(dimension_semantics=("parallel",)),
    )(x, mask_add, *flat_params)


# --------------------------------------------------------------------------
# Parameter construction (deterministic, xavier-uniform for matrices)
# --------------------------------------------------------------------------
def xavier_uniform(key, shape):
    fan_out, fan_in = shape
    a = math.sqrt(6.0 / (fan_in + fan_out))
    return jax.random.uniform(key, shape, jnp.float32, -a, a)


def init_params(key, vocab_size):
    keys = jax.random.split(key, 2 + 4 * NUM_LAYERS)
    params = {}
    params["embedding"] = xavier_uniform(keys[0], (vocab_size, D_MODEL))
    params["fc_w"] = xavier_uniform(keys[1], (OUTPUT_DIM, D_MODEL))
    params["fc_b"] = jnp.zeros((OUTPUT_DIM,), jnp.float32)

    layers = []
    for l in range(NUM_LAYERS):
        k0, k1, k2, k3 = keys[2 + 4 * l: 6 + 4 * l]
        w_in = xavier_uniform(k0, (3 * D_MODEL, D_MODEL))      # PyTorch in_proj layout
        b_in = jnp.zeros((1, 3 * D_MODEL), jnp.float32)
        wo = xavier_uniform(k1, (D_MODEL, D_MODEL))
        bo = jnp.zeros((1, D_MODEL), jnp.float32)
        ln1_g = jnp.ones((1, D_MODEL), jnp.float32)
        ln1_b = jnp.zeros((1, D_MODEL), jnp.float32)
        w1 = xavier_uniform(k2, (D_FF, D_MODEL))
        b1 = jnp.zeros((1, D_FF), jnp.float32)
        w2 = xavier_uniform(k3, (D_MODEL, D_FF))
        b2 = jnp.zeros((1, D_MODEL), jnp.float32)
        ln2_g = jnp.ones((1, D_MODEL), jnp.float32)
        ln2_b = jnp.zeros((1, D_MODEL), jnp.float32)
        layers.append((w_in, b_in, wo, bo, ln1_g, ln1_b,
                       w1, b1, w2, b2, ln2_g, ln2_b))
    params["layers"] = layers
    return params


def _prep_layer_params(p):
    """Pre-transpose to x@W layout and pre-fold the 1/sqrt(head_dim) scale into q."""
    (w_in, b_in, wo, bo, ln1_g, ln1_b, w1, b1, w2, b2, ln2_g, ln2_b) = p
    scale = 1.0 / math.sqrt(HEAD_DIM)
    w_in_t = w_in.T                                           # (D, 3D)
    w_in_t = w_in_t.at[:, :D_MODEL].multiply(scale)           # scale the q columns
    b_in_s = b_in.at[:, :D_MODEL].multiply(scale)
    return (w_in_t, b_in_s, wo.T, bo, ln1_g, ln1_b,
            w1.T, b1, w2.T, b2, ln2_g, ln2_b)


def make_positional_encoding(seq_len, d_model):
    pos = jnp.arange(seq_len, dtype=jnp.float32)[:, None]
    div = jnp.exp(jnp.arange(0, d_model, 2, dtype=jnp.float32)
                  * (-math.log(10000.0) / d_model))
    pe = jnp.zeros((seq_len, d_model), jnp.float32)
    pe = pe.at[:, 0::2].set(jnp.sin(pos * div))
    pe = pe.at[:, 1::2].set(jnp.cos(pos * div))
    return pe


# --------------------------------------------------------------------------
# Full forward pass
# --------------------------------------------------------------------------
def forward(params, source, attention_mask):
    B, S = source.shape
    # embedding * sqrt(d_model) + positional encoding (dropout = identity in eval)
    emb = params["embedding"][source] * math.sqrt(D_MODEL)           # (B, S, D)
    x = (emb + make_positional_encoding(S, D_MODEL)[None, :, :]).astype(jnp.float32)

    # src_key_padding_mask = ~attention_mask : True means "ignore this key"
    mask_add = jnp.where(attention_mask, 0.0, -1e30).astype(jnp.float32)[:, None, :]

    # batch tile: aim Bt*S >= 256 rows (fills the 256-wide MXU on v6e/v7x; >=128 on
    # v5e), Bt a multiple of 8 (sublanes), capped by the padded batch.
    bt = max(8, ((-(-256 // S)) + 7) // 8 * 8)
    bt = min(bt, ((B + 7) // 8) * 8)
    n_tiles = -(-B // bt)
    B_pad = n_tiles * bt
    if B_pad != B:
        x = jnp.pad(x, ((0, B_pad - B), (0, 0), (0, 0)))
        mask_add = jnp.pad(mask_add, ((0, B_pad - B), (0, 0), (0, 0)))  # pad rows: valid keys

    layers_prepped = [_prep_layer_params(p) for p in params["layers"]]
    fc_w_pad = jnp.zeros((D_MODEL, FC_PAD), jnp.float32).at[:, :OUTPUT_DIM].set(
        params["fc_w"].T)
    fc_b_pad = jnp.zeros((1, FC_PAD), jnp.float32).at[0, :OUTPUT_DIM].set(
        params["fc_b"])

    logits_pad = fused_transformer(x, mask_add, layers_prepped, fc_w_pad, fc_b_pad, bt)
    return logits_pad[:B, :OUTPUT_DIM]
    # TODO(synk): training-mode dropout (p=0.5 pos-encoder / p=0.1 layer) intentionally
    # omitted (eval/inference semantics).


if __name__ == "__main__":
    key = jax.random.PRNGKey(0)
    k_param, k_src = jax.random.split(key)

    B, S, VOCAB = 2, 8, 100
    params = init_params(k_param, VOCAB)

    source = jax.random.randint(k_src, (B, S), 0, VOCAB, dtype=jnp.int32)
    attention_mask = jnp.array(
        [[True] * S,
         [True] * (S - 2) + [False] * 2],
        dtype=bool,
    )

    out = forward(params, source, attention_mask)
    out = jax.block_until_ready(out)
    assert out.shape == (B, OUTPUT_DIM)
    assert bool(jnp.all(jnp.isfinite(out)))
    print("KERNEL_OK")
</pallas_src>

<mosaic_0001>
module attributes {stable_mosaic.version = 11 : i64} {
  func.func @kernel(%arg0: i32, %arg1: memref<8x8x64xf32, #tpu.memory_space<vmem>>, %arg2: memref<8x1x8xf32, #tpu.memory_space<vmem>>, %arg3: memref<64x192xf32, #tpu.memory_space<vmem>>, %arg4: memref<1x192xf32, #tpu.memory_space<vmem>>, %arg5: memref<64x64xf32, #tpu.memory_space<vmem>>, %arg6: memref<1x64xf32, #tpu.memory_space<vmem>>, %arg7: memref<1x64xf32, #tpu.memory_space<vmem>>, %arg8: memref<1x64xf32, #tpu.memory_space<vmem>>, %arg9: memref<64x128xf32, #tpu.memory_space<vmem>>, %arg10: memref<1x128xf32, #tpu.memory_space<vmem>>, %arg11: memref<128x64xf32, #tpu.memory_space<vmem>>, %arg12: memref<1x64xf32, #tpu.memory_space<vmem>>, %arg13: memref<1x64xf32, #tpu.memory_space<vmem>>, %arg14: memref<1x64xf32, #tpu.memory_space<vmem>>, %arg15: memref<64x192xf32, #tpu.memory_space<vmem>>, %arg16: memref<1x192xf32, #tpu.memory_space<vmem>>, %arg17: memref<64x64xf32, #tpu.memory_space<vmem>>, %arg18: memref<1x64xf32, #tpu.memory_space<vmem>>, %arg19: memref<1x64xf32, #tpu.memory_space<vmem>>, %arg20: memref<1x64xf32, #tpu.memory_space<vmem>>, %arg21: memref<64x128xf32, #tpu.memory_space<vmem>>, %arg22: memref<1x128xf32, #tpu.memory_space<vmem>>, %arg23: memref<128x64xf32, #tpu.memory_space<vmem>>, %arg24: memref<1x64xf32, #tpu.memory_space<vmem>>, %arg25: memref<1x64xf32, #tpu.memory_space<vmem>>, %arg26: memref<1x64xf32, #tpu.memory_space<vmem>>, %arg27: memref<64x128xf32, #tpu.memory_space<vmem>>, %arg28: memref<1x128xf32, #tpu.memory_space<vmem>>, %arg29: memref<8x128xf32, #tpu.memory_space<vmem>>) attributes {dimension_semantics = [#tpu.dimension_semantics<parallel>], iteration_bounds = array<i64: 1>, scalar_prefetch = 0 : i64, scratch_operands = 0 : i64, tpu.core_type = #tpu.core_type<tc>, window_params = [{transform_indices = @transform_0, window_bounds = array<i64: 8, 8, 64>}, {transform_indices = @transform_1, window_bounds = array<i64: 8, 1, 8>}, {pipeline_mode = #tpu.pipeline_mode<synchronous>, transform_indices = @transform_2, window_bounds = array<i64: 64, 192>}, {pipeline_mode = #tpu.pipeline_mode<synchronous>, transform_indices = @transform_3, window_bounds = array<i64: 1, 192>}, {pipeline_mode = #tpu.pipeline_mode<synchronous>, transform_indices = @transform_4, window_bounds = array<i64: 64, 64>}, {pipeline_mode = #tpu.pipeline_mode<synchronous>, transform_indices = @transform_5, window_bounds = array<i64: 1, 64>}, {pipeline_mode = #tpu.pipeline_mode<synchronous>, transform_indices = @transform_6, window_bounds = array<i64: 1, 64>}, {pipeline_mode = #tpu.pipeline_mode<synchronous>, transform_indices = @transform_7, window_bounds = array<i64: 1, 64>}, {pipeline_mode = #tpu.pipeline_mode<synchronous>, transform_indices = @transform_8, window_bounds = array<i64: 64, 128>}, {pipeline_mode = #tpu.pipeline_mode<synchronous>, transform_indices = @transform_9, window_bounds = array<i64: 1, 128>}, {pipeline_mode = #tpu.pipeline_mode<synchronous>, transform_indices = @transform_10, window_bounds = array<i64: 128, 64>}, {pipeline_mode = #tpu.pipeline_mode<synchronous>, transform_indices = @transform_11, window_bounds = array<i64: 1, 64>}, {pipeline_mode = #tpu.pipeline_mode<synchronous>, transform_indices = @transform_12, window_bounds = array<i64: 1, 64>}, {pipeline_mode = #tpu.pipeline_mode<synchronous>, transform_indices = @transform_13, window_bounds = array<i64: 1, 64>}, {pipeline_mode = #tpu.pipeline_mode<synchronous>, transform_indices = @transform_14, window_bounds = array<i64: 64, 192>}, {pipeline_mode = #tpu.pipeline_mode<synchronous>, transform_indices = @transform_15, window_bounds = array<i64: 1, 192>}, {pipeline_mode = #tpu.pipeline_mode<synchronous>, transform_indices = @transform_16, window_bounds = array<i64: 64, 64>}, {pipeline_mode = #tpu.pipeline_mode<synchronous>, transform_indices = @transform_17, window_bounds = array<i64: 1, 64>}, {pipeline_mode = #tpu.pipeline_mode<synchronous>, transform_indices = @transform_18, window_bounds = array<i64: 1, 64>}, {pipeline_mode = #tpu.pipeline_mode<synchronous>, transform_indices = @transform_19, window_bounds = array<i64: 1, 64>}, {pipeline_mode = #tpu.pipeline_mode<synchronous>, transform_indices = @transform_20, window_bounds = array<i64: 64, 128>}, {pipeline_mode = #tpu.pipeline_mode<synchronous>, transform_indices = @transform_21, window_bounds = array<i64: 1, 128>}, {pipeline_mode = #tpu.pipeline_mode<synchronous>, transform_indices = @transform_22, window_bounds = array<i64: 128, 64>}, {pipeline_mode = #tpu.pipeline_mode<synchronous>, transform_indices = @transform_23, window_bounds = array<i64: 1, 64>}, {pipeline_mode = #tpu.pipeline_mode<synchronous>, transform_indices = @transform_24, window_bounds = array<i64: 1, 64>}, {pipeline_mode = #tpu.pipeline_mode<synchronous>, transform_indices = @transform_25, window_bounds = array<i64: 1, 64>}, {pipeline_mode = #tpu.pipeline_mode<synchronous>, transform_indices = @transform_26, window_bounds = array<i64: 64, 128>}, {pipeline_mode = #tpu.pipeline_mode<synchronous>, transform_indices = @transform_27, window_bounds = array<i64: 1, 128>}, {transform_indices = @transform_28, window_bounds = array<i64: 8, 128>}]} {
    %c0 = arith.constant 0 : index
    %c0_0 = arith.constant 0 : index
    %c0_1 = arith.constant 0 : index
    %0 = vector.load %arg1[%c0, %c0_0, %c0_1] : memref<8x8x64xf32, #tpu.memory_space<vmem>>, vector<8x8x64xf32>
    %1 = vector.shape_cast %0 : vector<8x8x64xf32> to vector<64x64xf32>
    %c0_2 = arith.constant 0 : index
    %c0_3 = arith.constant 0 : index
    %c0_4 = arith.constant 0 : index
    %2 = vector.load %arg2[%c0_2, %c0_3, %c0_4] : memref<8x1x8xf32, #tpu.memory_space<vmem>>, vector<8x1x8xf32>
    %c0_5 = arith.constant 0 : index
    %c0_6 = arith.constant 0 : index
    %3 = vector.load %arg3[%c0_5, %c0_6] : memref<64x192xf32, #tpu.memory_space<vmem>>, vector<64x192xf32>
    %cst = arith.constant dense<0.000000e+00> : vector<64x192xf32>
    %4 = tpu.matmul %1, %3, %cst {dimension_numbers = #tpu.dot_dimension_numbers<[1], [0], [0], [1], [0, 0, 1, 1], [], []>} : vector<64x64xf32>, vector<64x192xf32>, vector<64x192xf32> -> vector<64x192xf32>
    %c0_7 = arith.constant 0 : index
    %c0_8 = arith.constant 0 : index
    %5 = vector.load %arg4[%c0_7, %c0_8] : memref<1x192xf32, #tpu.memory_space<vmem>>, vector<1x192xf32>
    %6 = vector.broadcast %5 : vector<1x192xf32> to vector<64x192xf32>
    %7 = arith.addf %4, %6 : vector<64x192xf32>
    %8 = vector.extract_strided_slice %7 {offsets = [0, 0], sizes = [64, 64], strides = [1, 1]} : vector<64x192xf32> to vector<64x64xf32>
    %9 = vector.shape_cast %8 : vector<64x64xf32> to vector<8x8x64xf32>
    %10 = vector.extract_strided_slice %7 {offsets = [0, 64], sizes = [64, 64], strides = [1, 1]} : vector<64x192xf32> to vector<64x64xf32>
    %11 = vector.shape_cast %10 : vector<64x64xf32> to vector<8x8x64xf32>
    %12 = vector.extract_strided_slice %7 {offsets = [0, 128], sizes = [64, 64], strides = [1, 1]} : vector<64x192xf32> to vector<64x64xf32>
    %13 = vector.shape_cast %12 : vector<64x64xf32> to vector<8x8x64xf32>
    %14 = vector.extract_strided_slice %9 {offsets = [0, 0, 0], sizes = [8, 8, 16], strides = [1, 1, 1]} : vector<8x8x64xf32> to vector<8x8x16xf32>
    %15 = vector.extract_strided_slice %11 {offsets = [0, 0, 0], sizes = [8, 8, 16], strides = [1, 1, 1]} : vector<8x8x64xf32> to vector<8x8x16xf32>
    "tpu.trace_start"() <{level = 10 : i32, message = "bqd,bkd->bqk"}> : () -> ()
    %cst_9 = arith.constant dense<0.000000e+00> : vector<8x8x8xf32>
    %16 = tpu.matmul %14, %15, %cst_9 {dimension_numbers = #tpu.dot_dimension_numbers<[2], [2], [1], [1], [0, 0, 0, 1, 1, 1], [0], [0]>} : vector<8x8x16xf32>, vector<8x8x16xf32>, vector<8x8x8xf32> -> vector<8x8x8xf32>
    "tpu.trace_stop"() : () -> ()
    %17 = vector.broadcast %2 : vector<8x1x8xf32> to vector<8x8x8xf32>
    %18 = arith.addf %16, %17 : vector<8x8x8xf32>
    %cst_10 = arith.constant dense<0xFF800000> : vector<8x8xf32>
    %19 = vector.multi_reduction <maximumf>, %18, %cst_10 [2] : vector<8x8x8xf32> to vector<8x8xf32>
    %20 = vector.shape_cast %19 : vector<8x8xf32> to vector<8x8x1xf32>
    %21 = vector.broadcast %20 : vector<8x8x1xf32> to vector<8x8x8xf32>
    %22 = arith.subf %18, %21 : vector<8x8x8xf32>
    %23 = math.exp %22 : vector<8x8x8xf32>
    %cst_11 = arith.constant dense<0.000000e+00> : vector<8x8xf32>
    %24 = vector.multi_reduction <add>, %23, %cst_11 [2] : vector<8x8x8xf32> to vector<8x8xf32>
    %25 = vector.shape_cast %24 : vector<8x8xf32> to vector<8x8x1xf32>
    %26 = tpu.reciprocal %25 {approx = true} : vector<8x8x1xf32> -> vector<8x8x1xf32>
    %27 = vector.broadcast %26 : vector<8x8x1xf32> to vector<8x8x8xf32>
    %28 = arith.mulf %23, %27 : vector<8x8x8xf32>
    %29 = vector.extract_strided_slice %13 {offsets = [0, 0, 0], sizes = [8, 8, 16], strides = [1, 1, 1]} : vector<8x8x64xf32> to vector<8x8x16xf32>
    "tpu.trace_start"() <{level = 10 : i32, message = "bqk,bkd->bqd"}> : () -> ()
    %cst_12 = arith.constant dense<0.000000e+00> : vector<8x8x16xf32>
    %30 = tpu.matmul %28, %29, %cst_12 {dimension_numbers = #tpu.dot_dimension_numbers<[2], [1], [1], [2], [0, 0, 0, 1, 1, 2], [0], [0]>} : vector<8x8x8xf32>, vector<8x8x16xf32>, vector<8x8x16xf32> -> vector<8x8x16xf32>
    "tpu.trace_stop"() : () -> ()
    %31 = vector.extract_strided_slice %9 {offsets = [0, 0, 16], sizes = [8, 8, 16], strides = [1, 1, 1]} : vector<8x8x64xf32> to vector<8x8x16xf32>
    %32 = vector.extract_strided_slice %11 {offsets = [0, 0, 16], sizes = [8, 8, 16], strides = [1, 1, 1]} : vector<8x8x64xf32> to vector<8x8x16xf32>
    "tpu.trace_start"() <{level = 10 : i32, message = "bqd,bkd->bqk"}> : () -> ()
    %cst_13 = arith.constant dense<0.000000e+00> : vector<8x8x8xf32>
    %33 = tpu.matmul %31, %32, %cst_13 {dimension_numbers = #tpu.dot_dimension_numbers<[2], [2], [1], [1], [0, 0, 0, 1, 1, 1], [0], [0]>} : vector<8x8x16xf32>, vector<8x8x16xf32>, vector<8x8x8xf32> -> vector<8x8x8xf32>
    "tpu.trace_stop"() : () -> ()
    %34 = vector.broadcast %2 : vector<8x1x8xf32> to vector<8x8x8xf32>
    %35 = arith.addf %33, %34 : vector<8x8x8xf32>
    %cst_14 = arith.constant dense<0xFF800000> : vector<8x8xf32>
    %36 = vector.multi_reduction <maximumf>, %35, %cst_14 [2] : vector<8x8x8xf32> to vector<8x8xf32>
    %37 = vector.shape_cast %36 : vector<8x8xf32> to vector<8x8x1xf32>
    %38 = vector.broadcast %37 : vector<8x8x1xf32> to vector<8x8x8xf32>
    %39 = arith.subf %35, %38 : vector<8x8x8xf32>
    %40 = math.exp %39 : vector<8x8x8xf32>
    %cst_15 = arith.constant dense<0.000000e+00> : vector<8x8xf32>
    %41 = vector.multi_reduction <add>, %40, %cst_15 [2] : vector<8x8x8xf32> to vector<8x8xf32>
    %42 = vector.shape_cast %41 : vector<8x8xf32> to vector<8x8x1xf32>
    %43 = tpu.reciprocal %42 {approx = true} : vector<8x8x1xf32> -> vector<8x8x1xf32>
    %44 = vector.broadcast %43 : vector<8x8x1xf32> to vector<8x8x8xf32>
    %45 = arith.mulf %40, %44 : vector<8x8x8xf32>
    %46 = vector.extract_strided_slice %13 {offsets = [0, 0, 16], sizes = [8, 8, 16], strides = [1, 1, 1]} : vector<8x8x64xf32> to vector<8x8x16xf32>
    "tpu.trace_start"() <{level = 10 : i32, message = "bqk,bkd->bqd"}> : () -> ()
    %cst_16 = arith.constant dense<0.000000e+00> : vector<8x8x16xf32>
    %47 = tpu.matmul %45, %46, %cst_16 {dimension_numbers = #tpu.dot_dimension_numbers<[2], [1], [1], [2], [0, 0, 0, 1, 1, 2], [0], [0]>} : vector<8x8x8xf32>, vector<8x8x16xf32>, vector<8x8x16xf32> -> vector<8x8x16xf32>
    "tpu.trace_stop"() : () -> ()
    %48 = vector.extract_strided_slice %9 {offsets = [0, 0, 32], sizes = [8, 8, 16], strides = [1, 1, 1]} : vector<8x8x64xf32> to vector<8x8x16xf32>
    %49 = vector.extract_strided_slice %11 {offsets = [0, 0, 32], sizes = [8, 8, 16], strides = [1, 1, 1]} : vector<8x8x64xf32> to vector<8x8x16xf32>
    "tpu.trace_start"() <{level = 10 : i32, message = "bqd,bkd->bqk"}> : () -> ()
    %cst_17 = arith.constant dense<0.000000e+00> : vector<8x8x8xf32>
    %50 = tpu.matmul %48, %49, %cst_17 {dimension_numbers = #tpu.dot_dimension_numbers<[2], [2], [1], [1], [0, 0, 0, 1, 1, 1], [0], [0]>} : vector<8x8x16xf32>, vector<8x8x16xf32>, vector<8x8x8xf32> -> vector<8x8x8xf32>
    "tpu.trace_stop"() : () -> ()
    %51 = vector.broadcast %2 : vector<8x1x8xf32> to vector<8x8x8xf32>
    %52 = arith.addf %50, %51 : vector<8x8x8xf32>
    %cst_18 = arith.constant dense<0xFF800000> : vector<8x8xf32>
    %53 = vector.multi_reduction <maximumf>, %52, %cst_18 [2] : vector<8x8x8xf32> to vector<8x8xf32>
    %54 = vector.shape_cast %53 : vector<8x8xf32> to vector<8x8x1xf32>
    %55 = vector.broadcast %54 : vector<8x8x1xf32> to vector<8x8x8xf32>
    %56 = arith.subf %52, %55 : vector<8x8x8xf32>
    %57 = math.exp %56 : vector<8x8x8xf32>
    %cst_19 = arith.constant dense<0.000000e+00> : vector<8x8xf32>
    %58 = vector.multi_reduction <add>, %57, %cst_19 [2] : vector<8x8x8xf32> to vector<8x8xf32>
    %59 = vector.shape_cast %58 : vector<8x8xf32> to vector<8x8x1xf32>
    %60 = tpu.reciprocal %59 {approx = true} : vector<8x8x1xf32> -> vector<8x8x1xf32>
    %61 = vector.broadcast %60 : vector<8x8x1xf32> to vector<8x8x8xf32>
    %62 = arith.mulf %57, %61 : vector<8x8x8xf32>
    %63 = vector.extract_strided_slice %13 {offsets = [0, 0, 32], sizes = [8, 8, 16], strides = [1, 1, 1]} : vector<8x8x64xf32> to vector<8x8x16xf32>
    "tpu.trace_start"() <{level = 10 : i32, message = "bqk,bkd->bqd"}> : () -> ()
    %cst_20 = arith.constant dense<0.000000e+00> : vector<8x8x16xf32>
    %64 = tpu.matmul %62, %63, %cst_20 {dimension_numbers = #tpu.dot_dimension_numbers<[2], [1], [1], [2], [0, 0, 0, 1, 1, 2], [0], [0]>} : vector<8x8x8xf32>, vector<8x8x16xf32>, vector<8x8x16xf32> -> vector<8x8x16xf32>
    "tpu.trace_stop"() : () -> ()
    %65 = vector.extract_strided_slice %9 {offsets = [0, 0, 48], sizes = [8, 8, 16], strides = [1, 1, 1]} : vector<8x8x64xf32> to vector<8x8x16xf32>
    %66 = vector.extract_strided_slice %11 {offsets = [0, 0, 48], sizes = [8, 8, 16], strides = [1, 1, 1]} : vector<8x8x64xf32> to vector<8x8x16xf32>
    "tpu.trace_start"() <{level = 10 : i32, message = "bqd,bkd->bqk"}> : () -> ()
    %cst_21 = arith.constant dense<0.000000e+00> : vector<8x8x8xf32>
    %67 = tpu.matmul %65, %66, %cst_21 {dimension_numbers = #tpu.dot_dimension_numbers<[2], [2], [1], [1], [0, 0, 0, 1, 1, 1], [0], [0]>} : vector<8x8x16xf32>, vector<8x8x16xf32>, vector<8x8x8xf32> -> vector<8x8x8xf32>
    "tpu.trace_stop"() : () -> ()
    %68 = vector.broadcast %2 : vector<8x1x8xf32> to vector<8x8x8xf32>
    %69 = arith.addf %67, %68 : vector<8x8x8xf32>
    %cst_22 = arith.constant dense<0xFF800000> : vector<8x8xf32>
    %70 = vector.multi_reduction <maximumf>, %69, %cst_22 [2] : vector<8x8x8xf32> to vector<8x8xf32>
    %71 = vector.shape_cast %70 : vector<8x8xf32> to vector<8x8x1xf32>
    %72 = vector.broadcast %71 : vector<8x8x1xf32> to vector<8x8x8xf32>
    %73 = arith.subf %69, %72 : vector<8x8x8xf32>
    %74 = math.exp %73 : vector<8x8x8xf32>
    %cst_23 = arith.constant dense<0.000000e+00> : vector<8x8xf32>
    %75 = vector.multi_reduction <add>, %74, %cst_23 [2] : vector<8x8x8xf32> to vector<8x8xf32>
    %76 = vector.shape_cast %75 : vector<8x8xf32> to vector<8x8x1xf32>
    %77 = tpu.reciprocal %76 {approx = true} : vector<8x8x1xf32> -> vector<8x8x1xf32>
    %78 = vector.broadcast %77 : vector<8x8x1xf32> to vector<8x8x8xf32>
    %79 = arith.mulf %74, %78 : vector<8x8x8xf32>
    %80 = vector.extract_strided_slice %13 {offsets = [0, 0, 48], sizes = [8, 8, 16], strides = [1, 1, 1]} : vector<8x8x64xf32> to vector<8x8x16xf32>
    "tpu.trace_start"() <{level = 10 : i32, message = "bqk,bkd->bqd"}> : () -> ()
    %cst_24 = arith.constant dense<0.000000e+00> : vector<8x8x16xf32>
    %81 = tpu.matmul %79, %80, %cst_24 {dimension_numbers = #tpu.dot_dimension_numbers<[2], [1], [1], [2], [0, 0, 0, 1, 1, 2], [0], [0]>} : vector<8x8x8xf32>, vector<8x8x16xf32>, vector<8x8x16xf32> -> vector<8x8x16xf32>
    "tpu.trace_stop"() : () -> ()
    %82 = tpu.concatenate %30, %47, %64, %81 in 2 : vector<8x8x16xf32>, vector<8x8x16xf32>, vector<8x8x16xf32>, vector<8x8x16xf32> -> vector<8x8x64xf32>
    %83 = vector.shape_cast %82 : vector<8x8x64xf32> to vector<64x64xf32>
    %c0_25 = arith.constant 0 : index
    %c0_26 = arith.constant 0 : index
    %84 = vector.load %arg5[%c0_25, %c0_26] : memref<64x64xf32, #tpu.memory_space<vmem>>, vector<64x64xf32>
    %cst_27 = arith.constant dense<0.000000e+00> : vector<64x64xf32>
    %85 = tpu.matmul %83, %84, %cst_27 {dimension_numbers = #tpu.dot_dimension_numbers<[1], [0], [0], [1], [0, 0, 1, 1], [], []>} : vector<64x64xf32>, vector<64x64xf32>, vector<64x64xf32> -> vector<64x64xf32>
    %c0_28 = arith.constant 0 : index
    %c0_29 = arith.constant 0 : index
    %86 = vector.load %arg6[%c0_28, %c0_29] : memref<1x64xf32, #tpu.memory_space<vmem>>, vector<1x64xf32>
    %87 = vector.broadcast %86 : vector<1x64xf32> to vector<64x64xf32>
    %88 = arith.addf %85, %87 : vector<64x64xf32>
    %89 = arith.addf %1, %88 : vector<64x64xf32>
    %c0_30 = arith.constant 0 : index
    %c0_31 = arith.constant 0 : index
    %90 = vector.load %arg7[%c0_30, %c0_31] : memref<1x64xf32, #tpu.memory_space<vmem>>, vector<1x64xf32>
    %c0_32 = arith.constant 0 : index
    %c0_33 = arith.constant 0 : index
    %91 = vector.load %arg8[%c0_32, %c0_33] : memref<1x64xf32, #tpu.memory_space<vmem>>, vector<1x64xf32>
    %cst_34 = arith.constant dense<0.000000e+00> : vector<64xf32>
    %92 = vector.multi_reduction <add>, %89, %cst_34 [1] : vector<64x64xf32> to vector<64xf32>
    %93 = vector.shape_cast %92 : vector<64xf32> to vector<64x1xf32>
    %cst_35 = arith.constant 6.400000e+01 : f32
    %94 = vector.broadcast %cst_35 : f32 to vector<64x1xf32>
    %95 = arith.divf %93, %94 : vector<64x1xf32>
    %96 = vector.broadcast %95 : vector<64x1xf32> to vector<64x64xf32>
    %97 = arith.subf %89, %96 : vector<64x64xf32>
    %98 = arith.mulf %97, %97 : vector<64x64xf32>
    %cst_36 = arith.constant dense<0.000000e+00> : vector<64xf32>
    %99 = vector.multi_reduction <add>, %98, %cst_36 [1] : vector<64x64xf32> to vector<64xf32>
    %100 = vector.shape_cast %99 : vector<64xf32> to vector<64x1xf32>
    %cst_37 = arith.constant 6.400000e+01 : f32
    %101 = vector.broadcast %cst_37 : f32 to vector<64x1xf32>
    %102 = arith.divf %100, %101 : vector<64x1xf32>
    %103 = vector.broadcast %95 : vector<64x1xf32> to vector<64x64xf32>
    %104 = arith.subf %89, %103 : vector<64x64xf32>
    %cst_38 = arith.constant 9.99999974E-6 : f32
    %105 = vector.broadcast %cst_38 : f32 to vector<64x1xf32>
    %106 = arith.addf %102, %105 : vector<64x1xf32>
    %107 = math.rsqrt %106 : vector<64x1xf32>
    %108 = vector.broadcast %107 : vector<64x1xf32> to vector<64x64xf32>
    %109 = arith.mulf %104, %108 : vector<64x64xf32>
    %110 = vector.broadcast %90 : vector<1x64xf32> to vector<64x64xf32>
    %111 = arith.mulf %109, %110 : vector<64x64xf32>
    %112 = vector.broadcast %91 : vector<1x64xf32> to vector<64x64xf32>
    %113 = arith.addf %111, %112 : vector<64x64xf32>
    %c0_39 = arith.constant 0 : index
    %c0_40 = arith.constant 0 : index
    %114 = vector.load %arg9[%c0_39, %c0_40] : memref<64x128xf32, #tpu.memory_space<vmem>>, vector<64x128xf32>
    %cst_41 = arith.constant dense<0.000000e+00> : vector<64x128xf32>
    %115 = tpu.matmul %113, %114, %cst_41 {dimension_numbers = #tpu.dot_dimension_numbers<[1], [0], [0], [1], [0, 0, 1, 1], [], []>} : vector<64x64xf32>, vector<64x128xf32>, vector<64x128xf32> -> vector<64x128xf32>
    %c0_42 = arith.constant 0 : index
    %c0_43 = arith.constant 0 : index
    %116 = vector.load %arg10[%c0_42, %c0_43] : memref<1x128xf32, #tpu.memory_space<vmem>>, vector<1x128xf32>
    %117 = vector.broadcast %116 : vector<1x128xf32> to vector<64x128xf32>
    %118 = arith.addf %115, %117 : vector<64x128xf32>
    %cst_44 = arith.constant 0.000000e+00 : f32
    %119 = vector.broadcast %cst_44 : f32 to vector<64x128xf32>
    %120 = arith.maximumf %118, %119 : vector<64x128xf32>
    %c0_45 = arith.constant 0 : index
    %c0_46 = arith.constant 0 : index
    %121 = vector.load %arg11[%c0_45, %c0_46] : memref<128x64xf32, #tpu.memory_space<vmem>>, vector<128x64xf32>
    %cst_47 = arith.constant dense<0.000000e+00> : vector<64x64xf32>
    %122 = tpu.matmul %120, %121, %cst_47 {dimension_numbers = #tpu.dot_dimension_numbers<[1], [0], [0], [1], [0, 0, 1, 1], [], []>} : vector<64x128xf32>, vector<128x64xf32>, vector<64x64xf32> -> vector<64x64xf32>
    %c0_48 = arith.constant 0 : index
    %c0_49 = arith.constant 0 : index
    %123 = vector.load %arg12[%c0_48, %c0_49] : memref<1x64xf32, #tpu.memory_space<vmem>>, vector<1x64xf32>
    %124 = vector.broadcast %123 : vector<1x64xf32> to vector<64x64xf32>
    %125 = arith.addf %122, %124 : vector<64x64xf32>
    %126 = arith.addf %113, %125 : vector<64x64xf32>
    %c0_50 = arith.constant 0 : index
    %c0_51 = arith.constant 0 : index
    %127 = vector.load %arg13[%c0_50, %c0_51] : memref<1x64xf32, #tpu.memory_space<vmem>>, vector<1x64xf32>
    %c0_52 = arith.constant 0 : index
    %c0_53 = arith.constant 0 : index
    %128 = vector.load %arg14[%c0_52, %c0_53] : memref<1x64xf32, #tpu.memory_space<vmem>>, vector<1x64xf32>
    %cst_54 = arith.constant dense<0.000000e+00> : vector<64xf32>
    %129 = vector.multi_reduction <add>, %126, %cst_54 [1] : vector<64x64xf32> to vector<64xf32>
    %130 = vector.shape_cast %129 : vector<64xf32> to vector<64x1xf32>
    %cst_55 = arith.constant 6.400000e+01 : f32
    %131 = vector.broadcast %cst_55 : f32 to vector<64x1xf32>
    %132 = arith.divf %130, %131 : vector<64x1xf32>
    %133 = vector.broadcast %132 : vector<64x1xf32> to vector<64x64xf32>
    %134 = arith.subf %126, %133 : vector<64x64xf32>
    %135 = arith.mulf %134, %134 : vector<64x64xf32>
    %cst_56 = arith.constant dense<0.000000e+00> : vector<64xf32>
    %136 = vector.multi_reduction <add>, %135, %cst_56 [1] : vector<64x64xf32> to vector<64xf32>
    %137 = vector.shape_cast %136 : vector<64xf32> to vector<64x1xf32>
    %cst_57 = arith.constant 6.400000e+01 : f32
    %138 = vector.broadcast %cst_57 : f32 to vector<64x1xf32>
    %139 = arith.divf %137, %138 : vector<64x1xf32>
    %140 = vector.broadcast %132 : vector<64x1xf32> to vector<64x64xf32>
    %141 = arith.subf %126, %140 : vector<64x64xf32>
    %cst_58 = arith.constant 9.99999974E-6 : f32
    %142 = vector.broadcast %cst_58 : f32 to vector<64x1xf32>
    %143 = arith.addf %139, %142 : vector<64x1xf32>
    %144 = math.rsqrt %143 : vector<64x1xf32>
    %145 = vector.broadcast %144 : vector<64x1xf32> to vector<64x64xf32>
    %146 = arith.mulf %141, %145 : vector<64x64xf32>
    %147 = vector.broadcast %127 : vector<1x64xf32> to vector<64x64xf32>
    %148 = arith.mulf %146, %147 : vector<64x64xf32>
    %149 = vector.broadcast %128 : vector<1x64xf32> to vector<64x64xf32>
    %150 = arith.addf %148, %149 : vector<64x64xf32>
    %c0_59 = arith.constant 0 : index
    %c0_60 = arith.constant 0 : index
    %151 = vector.load %arg15[%c0_59, %c0_60] : memref<64x192xf32, #tpu.memory_space<vmem>>, vector<64x192xf32>
    %cst_61 = arith.constant dense<0.000000e+00> : vector<64x192xf32>
    %152 = tpu.matmul %150, %151, %cst_61 {dimension_numbers = #tpu.dot_dimension_numbers<[1], [0], [0], [1], [0, 0, 1, 1], [], []>} : vector<64x64xf32>, vector<64x192xf32>, vector<64x192xf32> -> vector<64x192xf32>
    %c0_62 = arith.constant 0 : index
    %c0_63 = arith.constant 0 : index
    %153 = vector.load %arg16[%c0_62, %c0_63] : memref<1x192xf32, #tpu.memory_space<vmem>>, vector<1x192xf32>
    %154 = vector.broadcast %153 : vector<1x192xf32> to vector<64x192xf32>
    %155 = arith.addf %152, %154 : vector<64x192xf32>
    %156 = vector.extract_strided_slice %155 {offsets = [0, 0], sizes = [64, 64], strides = [1, 1]} : vector<64x192xf32> to vector<64x64xf32>
    %157 = vector.shape_cast %156 : vector<64x64xf32> to vector<8x8x64xf32>
    %158 = vector.extract_strided_slice %155 {offsets = [0, 64], sizes = [64, 64], strides = [1, 1]} : vector<64x192xf32> to vector<64x64xf32>
    %159 = vector.shape_cast %158 : vector<64x64xf32> to vector<8x8x64xf32>
    %160 = vector.extract_strided_slice %155 {offsets = [0, 128], sizes = [64, 64], strides = [1, 1]} : vector<64x192xf32> to vector<64x64xf32>
    %161 = vector.shape_cast %160 : vector<64x64xf32> to vector<8x8x64xf32>
    %162 = vector.extract_strided_slice %157 {offsets = [0, 0, 0], sizes = [8, 8, 16], strides = [1, 1, 1]} : vector<8x8x64xf32> to vector<8x8x16xf32>
    %163 = vector.extract_strided_slice %159 {offsets = [0, 0, 0], sizes = [8, 8, 16], strides = [1, 1, 1]} : vector<8x8x64xf32> to vector<8x8x16xf32>
    "tpu.trace_start"() <{level = 10 : i32, message = "bqd,bkd->bqk"}> : () -> ()
    %cst_64 = arith.constant dense<0.000000e+00> : vector<8x8x8xf32>
    %164 = tpu.matmul %162, %163, %cst_64 {dimension_numbers = #tpu.dot_dimension_numbers<[2], [2], [1], [1], [0, 0, 0, 1, 1, 1], [0], [0]>} : vector<8x8x16xf32>, vector<8x8x16xf32>, vector<8x8x8xf32> -> vector<8x8x8xf32>
    "tpu.trace_stop"() : () -> ()
    %165 = vector.broadcast %2 : vector<8x1x8xf32> to vector<8x8x8xf32>
    %166 = arith.addf %164, %165 : vector<8x8x8xf32>
    %cst_65 = arith.constant dense<0xFF800000> : vector<8x8xf32>
    %167 = vector.multi_reduction <maximumf>, %166, %cst_65 [2] : vector<8x8x8xf32> to vector<8x8xf32>
    %168 = vector.shape_cast %167 : vector<8x8xf32> to vector<8x8x1xf32>
    %169 = vector.broadcast %168 : vector<8x8x1xf32> to vector<8x8x8xf32>
    %170 = arith.subf %166, %169 : vector<8x8x8xf32>
    %171 = math.exp %170 : vector<8x8x8xf32>
    %cst_66 = arith.constant dense<0.000000e+00> : vector<8x8xf32>
    %172 = vector.multi_reduction <add>, %171, %cst_66 [2] : vector<8x8x8xf32> to vector<8x8xf32>
    %173 = vector.shape_cast %172 : vector<8x8xf32> to vector<8x8x1xf32>
    %174 = tpu.reciprocal %173 {approx = true} : vector<8x8x1xf32> -> vector<8x8x1xf32>
    %175 = vector.broadcast %174 : vector<8x8x1xf32> to vector<8x8x8xf32>
    %176 = arith.mulf %171, %175 : vector<8x8x8xf32>
    %177 = vector.extract_strided_slice %161 {offsets = [0, 0, 0], sizes = [8, 8, 16], strides = [1, 1, 1]} : vector<8x8x64xf32> to vector<8x8x16xf32>
    "tpu.trace_start"() <{level = 10 : i32, message = "bqk,bkd->bqd"}> : () -> ()
    %cst_67 = arith.constant dense<0.000000e+00> : vector<8x8x16xf32>
    %178 = tpu.matmul %176, %177, %cst_67 {dimension_numbers = #tpu.dot_dimension_numbers<[2], [1], [1], [2], [0, 0, 0, 1, 1, 2], [0], [0]>} : vector<8x8x8xf32>, vector<8x8x16xf32>, vector<8x8x16xf32> -> vector<8x8x16xf32>
    "tpu.trace_stop"() : () -> ()
    %179 = vector.extract_strided_slice %157 {offsets = [0, 0, 16], sizes = [8, 8, 16], strides = [1, 1, 1]} : vector<8x8x64xf32> to vector<8x8x16xf32>
    %180 = vector.extract_strided_slice %159 {offsets = [0, 0, 16], sizes = [8, 8, 16], strides = [1, 1, 1]} : vector<8x8x64xf32> to vector<8x8x16xf32>
    "tpu.trace_start"() <{level = 10 : i32, message = "bqd,bkd->bqk"}> : () -> ()
    %cst_68 = arith.constant dense<0.000000e+00> : vector<8x8x8xf32>
    %181 = tpu.matmul %179, %180, %cst_68 {dimension_numbers = #tpu.dot_dimension_numbers<[2], [2], [1], [1], [0, 0, 0, 1, 1, 1], [0], [0]>} : vector<8x8x16xf32>, vector<8x8x16xf32>, vector<8x8x8xf32> -> vector<8x8x8xf32>
    "tpu.trace_stop"() : () -> ()
    %182 = vector.broadcast %2 : vector<8x1x8xf32> to vector<8x8x8xf32>
    %183 = arith.addf %181, %182 : vector<8x8x8xf32>
    %cst_69 = arith.constant dense<0xFF800000> : vector<8x8xf32>
    %184 = vector.multi_reduction <maximumf>, %183, %cst_69 [2] : vector<8x8x8xf32> to vector<8x8xf32>
    %185 = vector.shape_cast %184 : vector<8x8xf32> to vector<8x8x1xf32>
    %186 = vector.broadcast %185 : vector<8x8x1xf32> to vector<8x8x8xf32>
    %187 = arith.subf %183, %186 : vector<8x8x8xf32>
    %188 = math.exp %187 : vector<8x8x8xf32>
    %cst_70 = arith.constant dense<0.000000e+00> : vector<8x8xf32>
    %189 = vector.multi_reduction <add>, %188, %cst_70 [2] : vector<8x8x8xf32> to vector<8x8xf32>
    %190 = vector.shape_cast %189 : vector<8x8xf32> to vector<8x8x1xf32>
    %191 = tpu.reciprocal %190 {approx = true} : vector<8x8x1xf32> -> vector<8x8x1xf32>
    %192 = vector.broadcast %191 : vector<8x8x1xf32> to vector<8x8x8xf32>
    %193 = arith.mulf %188, %192 : vector<8x8x8xf32>
    %194 = vector.extract_strided_slice %161 {offsets = [0, 0, 16], sizes = [8, 8, 16], strides = [1, 1, 1]} : vector<8x8x64xf32> to vector<8x8x16xf32>
    "tpu.trace_start"() <{level = 10 : i32, message = "bqk,bkd->bqd"}> : () -> ()
    %cst_71 = arith.constant dense<0.000000e+00> : vector<8x8x16xf32>
    %195 = tpu.matmul %193, %194, %cst_71 {dimension_numbers = #tpu.dot_dimension_numbers<[2], [1], [1], [2], [0, 0, 0, 1, 1, 2], [0], [0]>} : vector<8x8x8xf32>, vector<8x8x16xf32>, vector<8x8x16xf32> -> vector<8x8x16xf32>
    "tpu.trace_stop"() : () -> ()
    %196 = vector.extract_strided_slice %157 {offsets = [0, 0, 32], sizes = [8, 8, 16], strides = [1, 1, 1]} : vector<8x8x64xf32> to vector<8x8x16xf32>
    %197 = vector.extract_strided_slice %159 {offsets = [0, 0, 32], sizes = [8, 8, 16], strides = [1, 1, 1]} : vector<8x8x64xf32> to vector<8x8x16xf32>
    "tpu.trace_start"() <{level = 10 : i32, message = "bqd,bkd->bqk"}> : () -> ()
    %cst_72 = arith.constant dense<0.000000e+00> : vector<8x8x8xf32>
    %198 = tpu.matmul %196, %197, %cst_72 {dimension_numbers = #tpu.dot_dimension_numbers<[2], [2], [1], [1], [0, 0, 0, 1, 1, 1], [0], [0]>} : vector<8x8x16xf32>, vector<8x8x16xf32>, vector<8x8x8xf32> -> vector<8x8x8xf32>
    "tpu.trace_stop"() : () -> ()
    %199 = vector.broadcast %2 : vector<8x1x8xf32> to vector<8x8x8xf32>
    %200 = arith.addf %198, %199 : vector<8x8x8xf32>
    %cst_73 = arith.constant dense<0xFF800000> : vector<8x8xf32>
    %201 = vector.multi_reduction <maximumf>, %200, %cst_73 [2] : vector<8x8x8xf32> to vector<8x8xf32>
    %202 = vector.shape_cast %201 : vector<8x8xf32> to vector<8x8x1xf32>
    %203 = vector.broadcast %202 : vector<8x8x1xf32> to vector<8x8x8xf32>
    %204 = arith.subf %200, %203 : vector<8x8x8xf32>
    %205 = math.exp %204 : vector<8x8x8xf32>
    %cst_74 = arith.constant dense<0.000000e+00> : vector<8x8xf32>
    %206 = vector.multi_reduction <add>, %205, %cst_74 [2] : vector<8x8x8xf32> to vector<8x8xf32>
    %207 = vector.shape_cast %206 : vector<8x8xf32> to vector<8x8x1xf32>
    %208 = tpu.reciprocal %207 {approx = true} : vector<8x8x1xf32> -> vector<8x8x1xf32>
    %209 = vector.broadcast %208 : vector<8x8x1xf32> to vector<8x8x8xf32>
    %210 = arith.mulf %205, %209 : vector<8x8x8xf32>
    %211 = vector.extract_strided_slice %161 {offsets = [0, 0, 32], sizes = [8, 8, 16], strides = [1, 1, 1]} : vector<8x8x64xf32> to vector<8x8x16xf32>
    "tpu.trace_start"() <{level = 10 : i32, message = "bqk,bkd->bqd"}> : () -> ()
    %cst_75 = arith.constant dense<0.000000e+00> : vector<8x8x16xf32>
    %212 = tpu.matmul %210, %211, %cst_75 {dimension_numbers = #tpu.dot_dimension_numbers<[2], [1], [1], [2], [0, 0, 0, 1, 1, 2], [0], [0]>} : vector<8x8x8xf32>, vector<8x8x16xf32>, vector<8x8x16xf32> -> vector<8x8x16xf32>
    "tpu.trace_stop"() : () -> ()
    %213 = vector.extract_strided_slice %157 {offsets = [0, 0, 48], sizes = [8, 8, 16], strides = [1, 1, 1]} : vector<8x8x64xf32> to vector<8x8x16xf32>
    %214 = vector.extract_strided_slice %159 {offsets = [0, 0, 48], sizes = [8, 8, 16], strides = [1, 1, 1]} : vector<8x8x64xf32> to vector<8x8x16xf32>
    "tpu.trace_start"() <{level = 10 : i32, message = "bqd,bkd->bqk"}> : () -> ()
    %cst_76 = arith.constant dense<0.000000e+00> : vector<8x8x8xf32>
    %215 = tpu.matmul %213, %214, %cst_76 {dimension_numbers = #tpu.dot_dimension_numbers<[2], [2], [1], [1], [0, 0, 0, 1, 1, 1], [0], [0]>} : vector<8x8x16xf32>, vector<8x8x16xf32>, vector<8x8x8xf32> -> vector<8x8x8xf32>
    "tpu.trace_stop"() : () -> ()
    %216 = vector.broadcast %2 : vector<8x1x8xf32> to vector<8x8x8xf32>
    %217 = arith.addf %215, %216 : vector<8x8x8xf32>
    %cst_77 = arith.constant dense<0xFF800000> : vector<8x8xf32>
    %218 = vector.multi_reduction <maximumf>, %217, %cst_77 [2] : vector<8x8x8xf32> to vector<8x8xf32>
    %219 = vector.shape_cast %218 : vector<8x8xf32> to vector<8x8x1xf32>
    %220 = vector.broadcast %219 : vector<8x8x1xf32> to vector<8x8x8xf32>
    %221 = arith.subf %217, %220 : vector<8x8x8xf32>
    %222 = math.exp %221 : vector<8x8x8xf32>
    %cst_78 = arith.constant dense<0.000000e+00> : vector<8x8xf32>
    %223 = vector.multi_reduction <add>, %222, %cst_78 [2] : vector<8x8x8xf32> to vector<8x8xf32>
    %224 = vector.shape_cast %223 : vector<8x8xf32> to vector<8x8x1xf32>
    %225 = tpu.reciprocal %224 {approx = true} : vector<8x8x1xf32> -> vector<8x8x1xf32>
    %226 = vector.broadcast %225 : vector<8x8x1xf32> to vector<8x8x8xf32>
    %227 = arith.mulf %222, %226 : vector<8x8x8xf32>
    %228 = vector.extract_strided_slice %161 {offsets = [0, 0, 48], sizes = [8, 8, 16], strides = [1, 1, 1]} : vector<8x8x64xf32> to vector<8x8x16xf32>
    "tpu.trace_start"() <{level = 10 : i32, message = "bqk,bkd->bqd"}> : () -> ()
    %cst_79 = arith.constant dense<0.000000e+00> : vector<8x8x16xf32>
    %229 = tpu.matmul %227, %228, %cst_79 {dimension_numbers = #tpu.dot_dimension_numbers<[2], [1], [1], [2], [0, 0, 0, 1, 1, 2], [0], [0]>} : vector<8x8x8xf32>, vector<8x8x16xf32>, vector<8x8x16xf32> -> vector<8x8x16xf32>
    "tpu.trace_stop"() : () -> ()
    %230 = tpu.concatenate %178, %195, %212, %229 in 2 : vector<8x8x16xf32>, vector<8x8x16xf32>, vector<8x8x16xf32>, vector<8x8x16xf32> -> vector<8x8x64xf32>
    %231 = vector.shape_cast %230 : vector<8x8x64xf32> to vector<64x64xf32>
    %c0_80 = arith.constant 0 : index
    %c0_81 = arith.constant 0 : index
    %232 = vector.load %arg17[%c0_80, %c0_81] : memref<64x64xf32, #tpu.memory_space<vmem>>, vector<64x64xf32>
    %cst_82 = arith.constant dense<0.000000e+00> : vector<64x64xf32>
    %233 = tpu.matmul %231, %232, %cst_82 {dimension_numbers = #tpu.dot_dimension_numbers<[1], [0], [0], [1], [0, 0, 1, 1], [], []>} : vector<64x64xf32>, vector<64x64xf32>, vector<64x64xf32> -> vector<64x64xf32>
    %c0_83 = arith.constant 0 : index
    %c0_84 = arith.constant 0 : index
    %234 = vector.load %arg18[%c0_83, %c0_84] : memref<1x64xf32, #tpu.memory_space<vmem>>, vector<1x64xf32>
    %235 = vector.broadcast %234 : vector<1x64xf32> to vector<64x64xf32>
    %236 = arith.addf %233, %235 : vector<64x64xf32>
    %237 = arith.addf %150, %236 : vector<64x64xf32>
    %c0_85 = arith.constant 0 : index
    %c0_86 = arith.constant 0 : index
    %238 = vector.load %arg19[%c0_85, %c0_86] : memref<1x64xf32, #tpu.memory_space<vmem>>, vector<1x64xf32>
    %c0_87 = arith.constant 0 : index
    %c0_88 = arith.constant 0 : index
    %239 = vector.load %arg20[%c0_87, %c0_88] : memref<1x64xf32, #tpu.memory_space<vmem>>, vector<1x64xf32>
    %cst_89 = arith.constant dense<0.000000e+00> : vector<64xf32>
    %240 = vector.multi_reduction <add>, %237, %cst_89 [1] : vector<64x64xf32> to vector<64xf32>
    %241 = vector.shape_cast %240 : vector<64xf32> to vector<64x1xf32>
    %cst_90 = arith.constant 6.400000e+01 : f32
    %242 = vector.broadcast %cst_90 : f32 to vector<64x1xf32>
    %243 = arith.divf %241, %242 : vector<64x1xf32>
    %244 = vector.broadcast %243 : vector<64x1xf32> to vector<64x64xf32>
    %245 = arith.subf %237, %244 : vector<64x64xf32>
    %246 = arith.mulf %245, %245 : vector<64x64xf32>
    %cst_91 = arith.constant dense<0.000000e+00> : vector<64xf32>
    %247 = vector.multi_reduction <add>, %246, %cst_91 [1] : vector<64x64xf32> to vector<64xf32>
    %248 = vector.shape_cast %247 : vector<64xf32> to vector<64x1xf32>
    %cst_92 = arith.constant 6.400000e+01 : f32
    %249 = vector.broadcast %cst_92 : f32 to vector<64x1xf32>
    %250 = arith.divf %248, %249 : vector<64x1xf32>
    %251 = vector.broadcast %243 : vector<64x1xf32> to vector<64x64xf32>
    %252 = arith.subf %237, %251 : vector<64x64xf32>
    %cst_93 = arith.constant 9.99999974E-6 : f32
    %253 = vector.broadcast %cst_93 : f32 to vector<64x1xf32>
    %254 = arith.addf %250, %253 : vector<64x1xf32>
    %255 = math.rsqrt %254 : vector<64x1xf32>
    %256 = vector.broadcast %255 : vector<64x1xf32> to vector<64x64xf32>
    %257 = arith.mulf %252, %256 : vector<64x64xf32>
    %258 = vector.broadcast %238 : vector<1x64xf32> to vector<64x64xf32>
    %259 = arith.mulf %257, %258 : vector<64x64xf32>
    %260 = vector.broadcast %239 : vector<1x64xf32> to vector<64x64xf32>
    %261 = arith.addf %259, %260 : vector<64x64xf32>
    %c0_94 = arith.constant 0 : index
    %c0_95 = arith.constant 0 : index
    %262 = vector.load %arg21[%c0_94, %c0_95] : memref<64x128xf32, #tpu.memory_space<vmem>>, vector<64x128xf32>
    %cst_96 = arith.constant dense<0.000000e+00> : vector<64x128xf32>
    %263 = tpu.matmul %261, %262, %cst_96 {dimension_numbers = #tpu.dot_dimension_numbers<[1], [0], [0], [1], [0, 0, 1, 1], [], []>} : vector<64x64xf32>, vector<64x128xf32>, vector<64x128xf32> -> vector<64x128xf32>
    %c0_97 = arith.constant 0 : index
    %c0_98 = arith.constant 0 : index
    %264 = vector.load %arg22[%c0_97, %c0_98] : memref<1x128xf32, #tpu.memory_space<vmem>>, vector<1x128xf32>
    %265 = vector.broadcast %264 : vector<1x128xf32> to vector<64x128xf32>
    %266 = arith.addf %263, %265 : vector<64x128xf32>
    %cst_99 = arith.constant 0.000000e+00 : f32
    %267 = vector.broadcast %cst_99 : f32 to vector<64x128xf32>
    %268 = arith.maximumf %266, %267 : vector<64x128xf32>
    %c0_100 = arith.constant 0 : index
    %c0_101 = arith.constant 0 : index
    %269 = vector.load %arg23[%c0_100, %c0_101] : memref<128x64xf32, #tpu.memory_space<vmem>>, vector<128x64xf32>
    %cst_102 = arith.constant dense<0.000000e+00> : vector<64x64xf32>
    %270 = tpu.matmul %268, %269, %cst_102 {dimension_numbers = #tpu.dot_dimension_numbers<[1], [0], [0], [1], [0, 0, 1, 1], [], []>} : vector<64x128xf32>, vector<128x64xf32>, vector<64x64xf32> -> vector<64x64xf32>
    %c0_103 = arith.constant 0 : index
    %c0_104 = arith.constant 0 : index
    %271 = vector.load %arg24[%c0_103, %c0_104] : memref<1x64xf32, #tpu.memory_space<vmem>>, vector<1x64xf32>
    %272 = vector.broadcast %271 : vector<1x64xf32> to vector<64x64xf32>
    %273 = arith.addf %270, %272 : vector<64x64xf32>
    %274 = arith.addf %261, %273 : vector<64x64xf32>
    %c0_105 = arith.constant 0 : index
    %c0_106 = arith.constant 0 : index
    %275 = vector.load %arg25[%c0_105, %c0_106] : memref<1x64xf32, #tpu.memory_space<vmem>>, vector<1x64xf32>
    %c0_107 = arith.constant 0 : index
    %c0_108 = arith.constant 0 : index
    %276 = vector.load %arg26[%c0_107, %c0_108] : memref<1x64xf32, #tpu.memory_space<vmem>>, vector<1x64xf32>
    %cst_109 = arith.constant dense<0.000000e+00> : vector<64xf32>
    %277 = vector.multi_reduction <add>, %274, %cst_109 [1] : vector<64x64xf32> to vector<64xf32>
    %278 = vector.shape_cast %277 : vector<64xf32> to vector<64x1xf32>
    %cst_110 = arith.constant 6.400000e+01 : f32
    %279 = vector.broadcast %cst_110 : f32 to vector<64x1xf32>
    %280 = arith.divf %278, %279 : vector<64x1xf32>
    %281 = vector.broadcast %280 : vector<64x1xf32> to vector<64x64xf32>
    %282 = arith.subf %274, %281 : vector<64x64xf32>
    %283 = arith.mulf %282, %282 : vector<64x64xf32>
    %cst_111 = arith.constant dense<0.000000e+00> : vector<64xf32>
    %284 = vector.multi_reduction <add>, %283, %cst_111 [1] : vector<64x64xf32> to vector<64xf32>
    %285 = vector.shape_cast %284 : vector<64xf32> to vector<64x1xf32>
    %cst_112 = arith.constant 6.400000e+01 : f32
    %286 = vector.broadcast %cst_112 : f32 to vector<64x1xf32>
    %287 = arith.divf %285, %286 : vector<64x1xf32>
    %288 = vector.broadcast %280 : vector<64x1xf32> to vector<64x64xf32>
    %289 = arith.subf %274, %288 : vector<64x64xf32>
    %cst_113 = arith.constant 9.99999974E-6 : f32
    %290 = vector.broadcast %cst_113 : f32 to vector<64x1xf32>
    %291 = arith.addf %287, %290 : vector<64x1xf32>
    %292 = math.rsqrt %291 : vector<64x1xf32>
    %293 = vector.broadcast %292 : vector<64x1xf32> to vector<64x64xf32>
    %294 = arith.mulf %289, %293 : vector<64x64xf32>
    %295 = vector.broadcast %275 : vector<1x64xf32> to vector<64x64xf32>
    %296 = arith.mulf %294, %295 : vector<64x64xf32>
    %297 = vector.broadcast %276 : vector<1x64xf32> to vector<64x64xf32>
    %298 = arith.addf %296, %297 : vector<64x64xf32>
    %299 = vector.shape_cast %298 : vector<64x64xf32> to vector<8x8x64xf32>
    %300 = vector.extract_strided_slice %299 {offsets = [0, 0, 0], sizes = [8, 1, 64], strides = [1, 1, 1]} : vector<8x8x64xf32> to vector<8x1x64xf32>
    %301 = vector.shape_cast %300 : vector<8x1x64xf32> to vector<8x64xf32>
    %c0_114 = arith.constant 0 : index
    %c0_115 = arith.constant 0 : index
    %302 = vector.load %arg27[%c0_114, %c0_115] : memref<64x128xf32, #tpu.memory_space<vmem>>, vector<64x128xf32>
    %cst_116 = arith.constant dense<0.000000e+00> : vector<8x128xf32>
    %303 = tpu.matmul %301, %302, %cst_116 {dimension_numbers = #tpu.dot_dimension_numbers<[1], [0], [0], [1], [0, 0, 1, 1], [], []>} : vector<8x64xf32>, vector<64x128xf32>, vector<8x128xf32> -> vector<8x128xf32>
    %c0_117 = arith.constant 0 : index
    %c0_118 = arith.constant 0 : index
    %304 = vector.load %arg28[%c0_117, %c0_118] : memref<1x128xf32, #tpu.memory_space<vmem>>, vector<1x128xf32>
    %305 = vector.broadcast %304 : vector<1x128xf32> to vector<8x128xf32>
    %306 = arith.addf %303, %305 : vector<8x128xf32>
    %c0_119 = arith.constant 0 : index
    %c0_120 = arith.constant 0 : index
    %307 = vector.load %arg29[%c0_119, %c0_120] : memref<8x128xf32, #tpu.memory_space<vmem>>, vector<8x128xf32>
    tpu.vector_store %arg29[%c0_119, %c0_120], %306 {strides = array<i32>} : memref<8x128xf32, #tpu.memory_space<vmem>>, vector<8x128xf32>,
    return
  }
  func.func @transform_0(%arg0: i32) -> (i32, i32, i32) {
    %c0_i32 = arith.constant 0 : i32
    %c0_i32_0 = arith.constant 0 : i32
    %c0_i32_1 = arith.constant 0 : i32
    return %arg0, %c0_i32, %c0_i32_0 : i32, i32, i32
  }
  func.func @transform_1(%arg0: i32) -> (i32, i32, i32) {
    %c0_i32 = arith.constant 0 : i32
    %c0_i32_0 = arith.constant 0 : i32
    %c0_i32_1 = arith.constant 0 : i32
    return %arg0, %c0_i32, %c0_i32_0 : i32, i32, i32
  }
  func.func @transform_2(%arg0: i32) -> (i32, i32) {
    %c0_i32 = arith.constant 0 : i32
    %c0_i32_0 = arith.constant 0 : i32
    %c0_i32_1 = arith.constant 0 : i32
    return %c0_i32, %c0_i32_0 : i32, i32
  }
  func.func @transform_3(%arg0: i32) -> (i32, i32) {
    %c0_i32 = arith.constant 0 : i32
    %c0_i32_0 = arith.constant 0 : i32
    %c0_i32_1 = arith.constant 0 : i32
    return %c0_i32, %c0_i32_0 : i32, i32
  }
  func.func @transform_4(%arg0: i32) -> (i32, i32) {
    %c0_i32 = arith.constant 0 : i32
    %c0_i32_0 = arith.constant 0 : i32
    %c0_i32_1 = arith.constant 0 : i32
    return %c0_i32, %c0_i32_0 : i32, i32
  }
  func.func @transform_5(%arg0: i32) -> (i32, i32) {
    %c0_i32 = arith.constant 0 : i32
    %c0_i32_0 = arith.constant 0 : i32
    %c0_i32_1 = arith.constant 0 : i32
    return %c0_i32, %c0_i32_0 : i32, i32
  }
  func.func @transform_6(%arg0: i32) -> (i32, i32) {
    %c0_i32 = arith.constant 0 : i32
    %c0_i32_0 = arith.constant 0 : i32
    %c0_i32_1 = arith.constant 0 : i32
    return %c0_i32, %c0_i32_0 : i32, i32
  }
  func.func @transform_7(%arg0: i32) -> (i32, i32) {
    %c0_i32 = arith.constant 0 : i32
    %c0_i32_0 = arith.constant 0 : i32
    %c0_i32_1 = arith.constant 0 : i32
    return %c0_i32, %c0_i32_0 : i32, i32
  }
  func.func @transform_8(%arg0: i32) -> (i32, i32) {
    %c0_i32 = arith.constant 0 : i32
    %c0_i32_0 = arith.constant 0 : i32
    %c0_i32_1 = arith.constant 0 : i32
    return %c0_i32, %c0_i32_0 : i32, i32
  }
  func.func @transform_9(%arg0: i32) -> (i32, i32) {
    %c0_i32 = arith.constant 0 : i32
    %c0_i32_0 = arith.constant 0 : i32
    %c0_i32_1 = arith.constant 0 : i32
    return %c0_i32, %c0_i32_0 : i32, i32
  }
  func.func @transform_10(%arg0: i32) -> (i32, i32) {
    %c0_i32 = arith.constant 0 : i32
    %c0_i32_0 = arith.constant 0 : i32
    %c0_i32_1 = arith.constant 0 : i32
    return %c0_i32, %c0_i32_0 : i32, i32
  }
  func.func @transform_11(%arg0: i32) -> (i32, i32) {
    %c0_i32 = arith.constant 0 : i32
    %c0_i32_0 = arith.constant 0 : i32
    %c0_i32_1 = arith.constant 0 : i32
    return %c0_i32, %c0_i32_0 : i32, i32
  }
  func.func @transform_12(%arg0: i32) -> (i32, i32) {
    %c0_i32 = arith.constant 0 : i32
    %c0_i32_0 = arith.constant 0 : i32
    %c0_i32_1 = arith.constant 0 : i32
    return %c0_i32, %c0_i32_0 : i32, i32
  }
  func.func @transform_13(%arg0: i32) -> (i32, i32) {
    %c0_i32 = arith.constant 0 : i32
    %c0_i32_0 = arith.constant 0 : i32
    %c0_i32_1 = arith.constant 0 : i32
    return %c0_i32, %c0_i32_0 : i32, i32
  }
  func.func @transform_14(%arg0: i32) -> (i32, i32) {
    %c0_i32 = arith.constant 0 : i32
    %c0_i32_0 = arith.constant 0 : i32
    %c0_i32_1 = arith.constant 0 : i32
    return %c0_i32, %c0_i32_0 : i32, i32
  }
  func.func @transform_15(%arg0: i32) -> (i32, i32) {
    %c0_i32 = arith.constant 0 : i32
    %c0_i32_0 = arith.constant 0 : i32
    %c0_i32_1 = arith.constant 0 : i32
    return %c0_i32, %c0_i32_0 : i32, i32
  }
  func.func @transform_16(%arg0: i32) -> (i32, i32) {
    %c0_i32 = arith.constant 0 : i32
    %c0_i32_0 = arith.constant 0 : i32
    %c0_i32_1 = arith.constant 0 : i32
    return %c0_i32, %c0_i32_0 : i32, i32
  }
  func.func @transform_17(%arg0: i32) -> (i32, i32) {
    %c0_i32 = arith.constant 0 : i32
    %c0_i32_0 = arith.constant 0 : i32
    %c0_i32_1 = arith.constant 0 : i32
    return %c0_i32, %c0_i32_0 : i32, i32
  }
  func.func @transform_18(%arg0: i32) -> (i32, i32) {
    %c0_i32 = arith.constant 0 : i32
    %c0_i32_0 = arith.constant 0 : i32
    %c0_i32_1 = arith.constant 0 : i32
    return %c0_i32, %c0_i32_0 : i32, i32
  }
  func.func @transform_19(%arg0: i32) -> (i32, i32) {
    %c0_i32 = arith.constant 0 : i32
    %c0_i32_0 = arith.constant 0 : i32
    %c0_i32_1 = arith.constant 0 : i32
    return %c0_i32, %c0_i32_0 : i32, i32
  }
  func.func @transform_20(%arg0: i32) -> (i32, i32) {
    %c0_i32 = arith.constant 0 : i32
    %c0_i32_0 = arith.constant 0 : i32
    %c0_i32_1 = arith.constant 0 : i32
    return %c0_i32, %c0_i32_0 : i32, i32
  }
  func.func @transform_21(%arg0: i32) -> (i32, i32) {
    %c0_i32 = arith.constant 0 : i32
    %c0_i32_0 = arith.constant 0 : i32
    %c0_i32_1 = arith.constant 0 : i32
    return %c0_i32, %c0_i32_0 : i32, i32
  }
  func.func @transform_22(%arg0: i32) -> (i32, i32) {
    %c0_i32 = arith.constant 0 : i32
    %c0_i32_0 = arith.constant 0 : i32
    %c0_i32_1 = arith.constant 0 : i32
    return %c0_i32, %c0_i32_0 : i32, i32
  }
  func.func @transform_23(%arg0: i32) -> (i32, i32) {
    %c0_i32 = arith.constant 0 : i32
    %c0_i32_0 = arith.constant 0 : i32
    %c0_i32_1 = arith.constant 0 : i32
    return %c0_i32, %c0_i32_0 : i32, i32
  }
  func.func @transform_24(%arg0: i32) -> (i32, i32) {
    %c0_i32 = arith.constant 0 : i32
    %c0_i32_0 = arith.constant 0 : i32
    %c0_i32_1 = arith.constant 0 : i32
    return %c0_i32, %c0_i32_0 : i32, i32
  }
  func.func @transform_25(%arg0: i32) -> (i32, i32) {
    %c0_i32 = arith.constant 0 : i32
    %c0_i32_0 = arith.constant 0 : i32
    %c0_i32_1 = arith.constant 0 : i32
    return %c0_i32, %c0_i32_0 : i32, i32
  }
  func.func @transform_26(%arg0: i32) -> (i32, i32) {
    %c0_i32 = arith.constant 0 : i32
    %c0_i32_0 = arith.constant 0 : i32
    %c0_i32_1 = arith.constant 0 : i32
    return %c0_i32, %c0_i32_0 : i32, i32
  }
  func.func @transform_27(%arg0: i32) -> (i32, i32) {
    %c0_i32 = arith.constant 0 : i32
    %c0_i32_0 = arith.constant 0 : i32
    %c0_i32_1 = arith.constant 0 : i32
    return %c0_i32, %c0_i32_0 : i32, i32
  }
  func.func @transform_28(%arg0: i32) -> (i32, i32) {
    %c0_i32 = arith.constant 0 : i32
    %c0_i32_0 = arith.constant 0 : i32
    return %arg0, %c0_i32 : i32, i32
  }
}

</mosaic_0001>

<bundles_post_ra>
// kernel: tpu_custom_call.1
= control target key start
LH: loop header
LB: loop body
LE: loop exit
PB: predicated region body
PF: predicated region fallthrough
CT: control target
= control target key end

     0   :  { %s18370_s0 = inlined_call_operand.vmem [shape: f32[8,8,64], index: 0, kind: input, shape index: {}]   ;;  %s18371_s1 = inlined_call_operand.hbm [shape: f32[8,1,8], index: 1, kind: input, shape index: {}]   ;;  %s18372_s2 = inlined_call_operand.vmem [shape: f32[64,192], index: 2, kind: input, shape index: {}]   ;;  %s18373_s3 = inlined_call_operand.vmem [shape: f32[1,192], index: 3, kind: input, shape index: {}]   ;;  %s18374_s4 = inlined_call_operand.hbm [shape: f32[64,64], index: 4, kind: input, shape index: {}]   ;;  %s18375_s5 = inlined_call_operand.hbm [shape: f32[1,64], index: 5, kind: input, shape index: {}]   ;;  %s18376_s6 = inlined_call_operand.hbm [shape: f32[1,64], index: 6, kind: input, shape index: {}]   ;;  %s18377_s7 = inlined_call_operand.hbm [shape: f32[1,64], index: 7, kind: input, shape index: {}]   ;;  %s18378_s8 = inlined_call_operand.hbm [shape: f32[64,128], index: 8, kind: input, shape index: {}]   ;;  %s18379_s9 = inlined_call_operand.hbm [shape: f32[1,128], index: 9, kind: input, shape index: {}]   ;;  %s18380_s10 = inlined_call_operand.vmem [shape: f32[128,64], index: 10, kind: input, shape index: {}]   ;;  %s18381_s11 = inlined_call_operand.hbm [shape: f32[1,64], index: 11, kind: input, shape index: {}]   ;;  %s18382_s12 = inlined_call_operand.hbm [shape: f32[1,64], index: 12, kind: input, shape index: {}]   ;;  %s18383_s13 = inlined_call_operand.hbm [shape: f32[1,64], index: 13, kind: input, shape index: {}]   ;;  %s18384_s14 = inlined_call_operand.vmem [shape: f32[64,192], index: 14, kind: input, shape index: {}]   ;;  %s18385_s15 = inlined_call_operand.vmem [shape: f32[1,192], index: 15, kind: input, shape index: {}]   ;;  %s18386_s16 = inlined_call_operand.hbm [shape: f32[64,64], index: 16, kind: input, shape index: {}]   ;;  %s18387_s17 = inlined_call_operand.hbm [shape: f32[1,64], index: 17, kind: input, shape index: {}]   ;;  %s18388_s18 = inlined_call_operand.hbm [shape: f32[1,64], index: 18, kind: input, shape index: {}]   ;;  %s18389_s19 = inlined_call_operand.hbm [shape: f32[1,64], index: 19, kind: input, shape index: {}]   ;;  %s18390_s20 = inlined_call_operand.vmem [shape: f32[64,128], index: 20, kind: input, shape index: {}]   ;;  %s18391_s21 = inlined_call_operand.vmem [shape: f32[1,128], index: 21, kind: input, shape index: {}]   ;;  %s18392_s22 = inlined_call_operand.vmem [shape: f32[128,64], index: 22, kind: input, shape index: {}]   ;;  %s18393_s23 = inlined_call_operand.vmem [shape: f32[1,64], index: 23, kind: input, shape index: {}]   ;;  %s18394_s24 = inlined_call_operand.vmem [shape: f32[1,64], index: 24, kind: input, shape index: {}]   ;;  %s18395_s25 = inlined_call_operand.vmem [shape: f32[1,64], index: 25, kind: input, shape index: {}]   ;;  %s18396_s26 = inlined_call_operand.hbm [shape: f32[64,128], index: 26, kind: input, shape index: {}]   ;;  %s18397_s27 = inlined_call_operand.vmem [shape: f32[1,128], index: 27, kind: input, shape index: {}]   ;;  %s18398_s28 = inlined_call_operand.hbm [shape: f32[8,128], index: 28, kind: output, shape index: {}]  }
   0x1   :  { %18426 = sst [smem:[#allocation52_spill]] %s18370_s0 }
   0x2   :  { %18427 = sst [smem:[#allocation53_spill]] %s18371_s1 }
   0x3   :  { %18428 = sst [smem:[#allocation54_spill]] %s18372_s2 }
   0x4   :  { %18429 = sst [smem:[#allocation55_spill]] %s18373_s3 }
   0x5   :  { %18430 = sst [smem:[#allocation56_spill]] %s18374_s4 }
   0x6   :  { %18431 = sst [smem:[#allocation57_spill]] %s18375_s5 }
   0x7   :  { %18432 = sst [smem:[#allocation58_spill]] %s18376_s6 }
   0x8   :  { %18433 = sst [smem:[#allocation59_spill]] %s18377_s7 }
   0x9   :  { %18434 = sst [smem:[#allocation60_spill]] %s18378_s8 }
   0xa   :  { %18435 = sst [smem:[#allocation61_spill]] %s18379_s9 }
   0xb   :  { %18436 = sst [smem:[#allocation62_spill]] %s18380_s10 }
   0xc   :  { %18437 = sst [smem:[#allocation63_spill]] %s18381_s11 }
   0xd   :  { %18438 = sst [smem:[#allocation64_spill]] %s18382_s12 }
   0xe   :  { %18439 = sst [smem:[#allocation65_spill]] %s18395_s25 }
   0xf   :  { %18440 = sst [smem:[#allocation66_spill]] %s18397_s27 }
  0x10   :  { %18441 = sst [smem:[#allocation67_spill]] %s18398_s28 }
  0x11   :  { %33 = vsyncpa [#allocation3], 0 }
  0x12   :  { %34 = vsyncpa [#allocation6], 0 }
  0x13   :  { %35 = vsyncpa [#allocation9], 0 }
  0x14   :  { %36 = vsyncpa [#allocation12], 0 }
  0x15   :  { %37 = vsyncpa [#allocation15], 0 }
  0x16   :  { %38 = vsyncpa [#allocation18], 0 }
  0x17   :  { %39 = vsyncpa [#allocation21], 0 }
  0x18   :  { %40 = vsyncpa [#allocation24], 0 }
  0x19   :  { %41 = vsyncpa [#allocation4], 0  ;;  %s15403_s8 = smov [#allocation5]   ;;  %s18442_s3 = sld [smem:[#allocation56_spill]] }
  0x1a   :  { %s65_s5 = sshll.u32 %s15403_s8, 4  ;;  %s66_s5 = int_to_ptr.vmem [resolvable:$true] %s65_s5 }
  0x1f   :  { %s15033_s6 = scalar_lea.hbm %s18442_s3, 1024 }
  0x20   :  { %p15034_p0 = scmp.ne.s32.totalorder %s18442_s3, %s15033_s6  ;;  %p15037_p1 = scmp.lt.u32.totalorder %s15033_s6, %s18442_s3 }
  0x22   :  { %p15039_p2 = pnand %p15037_p1, %p15034_p0 }
  0x24   :  { %15042 = shalt.err (!%p15039_p2)
}
  0x25   :  { %s15043_s2 = scalar_lea.vmem %s66_s5, 1024  ;;  %p15048_p4 = scmp.lt.s32.totalorder %s66_s5, %s66_s5 }
  0x26   :  { %p15044_p3 = scmp.ne.s32.totalorder %s66_s5, %s15043_s2  ;;  %p15049_p5 = scmp.lt.s32.totalorder %s15043_s2, %s15043_s2 }
  0x28   :  { %p15050_p6 = por %p15049_p5, %p15048_p4 }
  0x2a   :  { %p15051_p7 = pnand %p15050_p6, %p15044_p3 }
  0x2c   :  { %15054 = shalt.err (!%p15051_p7)
}
  0x2d   :  { %s15404_s7 = smov 128   ;;  %s15405_s12 = smov 8  }
  0x2e   :  { %71 = dma.hbm_to_vmem [thread:$0]  %s18442_s3, 1024, %s66_s5, [#allocation6], %s15404_s7, %s15404_s7, %s15405_s12  }
  0x2f   :  { %s15406_s8 = smov [#allocation8]   ;;  %s15407_s30 = smov [#allocation11]  }
  0x30   :  { %s88_s9 = sshll.u32 %s15406_s8, 4  ;;  %s107_s6 = sshll.u32 %s15407_s30, 4  ;;  %s89_s9 = int_to_ptr.vmem [resolvable:$true] %s88_s9  ;;  %s108_s6 = int_to_ptr.vmem [resolvable:$true] %s107_s6 }
  0x31   :  { %s18443_s11 = sld [smem:[#allocation58_spill]] }
  0x37   :  { %s15055_s29 = scalar_lea.hbm %s18443_s11, 16 }
  0x38   :  { %p15056_p8 = scmp.ne.s32.totalorder %s18443_s11, %s15055_s29  ;;  %p15059_p9 = scmp.lt.u32.totalorder %s15055_s29, %s18443_s11 }
  0x3a   :  { %p15061_p10 = pnand %p15059_p9, %p15056_p8 }
  0x3c   :  { %15064 = shalt.err (!%p15061_p10)
}
  0x3d   :  { %s15065_s5 = scalar_lea.vmem %s89_s9, 16  ;;  %s15069_s3 = scalar_lea.vmem %s89_s9, 32 }
  0x3e   :  { %p15066_p11 = scmp.ne.s32.totalorder %s89_s9, %s15065_s5  ;;  %p15070_p12 = scmp.lt.s32.totalorder %s89_s9, %s89_s9 }
  0x3f   :  { %p15071_p13 = scmp.lt.s32.totalorder %s15069_s3, %s15065_s5 }
  0x41   :  { %p15072_p0 = por %p15071_p13, %p15070_p12 }
  0x43   :  { %p15073_p1 = pnand %p15072_p0, %p15066_p11 }
  0x45   :  { %15076 = shalt.err (!%p15073_p1)
}
  0x46   :  { %91 = dma.hbm_to_vmem [thread:$0]  %s18443_s11, 16, %s89_s9, [#allocation9]  }
  0x47   :  { %s18444_s30 = sld [smem:[#allocation60_spill]] }
  0x4d   :  { %s15077_s25 = scalar_lea.hbm %s18444_s30, 1024 }
  0x4e   :  { %p15078_p2 = scmp.ne.s32.totalorder %s18444_s30, %s15077_s25  ;;  %p15081_p3 = scmp.lt.u32.totalorder %s15077_s25, %s18444_s30 }
  0x50   :  { %p15083_p4 = pnand %p15081_p3, %p15078_p2 }
  0x52   :  { %15086 = shalt.err (!%p15083_p4)
}
  0x53   :  { %s15087_s2 = scalar_lea.vmem %s108_s6, 1024  ;;  %p15092_p6 = scmp.lt.s32.totalorder %s108_s6, %s108_s6 }
  0x54   :  { %p15088_p5 = scmp.ne.s32.totalorder %s108_s6, %s15087_s2  ;;  %p15093_p7 = scmp.lt.s32.totalorder %s15087_s2, %s15087_s2 }
  0x56   :  { %p15094_p8 = por %p15093_p7, %p15092_p6 }
  0x58   :  { %p15095_p9 = pnand %p15094_p8, %p15088_p5 }
  0x5a   :  { %15098 = shalt.err (!%p15095_p9)
}
  0x5b   :  { %113 = dma.hbm_to_vmem [thread:$0]  %s18444_s30, 1024, %s108_s6, [#allocation12], %s15404_s7, %s15404_s7, %s15405_s12  }
  0x5c   :  { %s15408_s5 = smov [#allocation14]   ;;  %s15409_s1 = smov [#allocation17]  }
  0x5d   :  { %s132_s3 = sshll.u32 %s15408_s5, 4  ;;  %s152_s4 = sshll.u32 %s15409_s1, 4  ;;  %s133_s3 = int_to_ptr.vmem [resolvable:$true] %s132_s3  ;;  %s153_s4 = int_to_ptr.vmem [resolvable:$true] %s152_s4 }
  0x5e   :  { %s18445_s25 = sld [smem:[#allocation63_spill]] }
  0x64   :  { %s15099_s27 = scalar_lea.hbm %s18445_s25, 16 }
  0x65   :  { %p15100_p10 = scmp.ne.s32.totalorder %s18445_s25, %s15099_s27  ;;  %p15103_p11 = scmp.lt.u32.totalorder %s15099_s27, %s18445_s25 }
  0x67   :  { %p15105_p12 = pnand %p15103_p11, %p15100_p10 }
  0x69   :  { %15108 = shalt.err (!%p15105_p12)
}
  0x6a   :  { %s15109_s6 = scalar_lea.vmem %s133_s3, 16  ;;  %s15113_s30 = scalar_lea.vmem %s133_s3, 32 }
  0x6b   :  { %p15110_p13 = scmp.ne.s32.totalorder %s133_s3, %s15109_s6  ;;  %p15114_p0 = scmp.lt.s32.totalorder %s133_s3, %s133_s3 }
  0x6c   :  { %p15115_p1 = scmp.lt.s32.totalorder %s15113_s30, %s15109_s6 }
  0x6e   :  { %p15116_p2 = por %p15115_p1, %p15114_p0 }
  0x70   :  { %p15117_p3 = pnand %p15116_p2, %p15110_p13 }
  0x72   :  { %15120 = shalt.err (!%p15117_p3)
}
  0x73   :  { %135 = dma.hbm_to_vmem [thread:$0]  %s18445_s25, 16, %s133_s3, [#allocation15]  }
  0x74   :  { %s15121_s28 = scalar_lea.hbm %s18383_s13, 16 }
  0x75   :  { %p15122_p4 = scmp.ne.s32.totalorder %s18383_s13, %s15121_s28  ;;  %p15125_p5 = scmp.lt.u32.totalorder %s15121_s28, %s18383_s13 }
  0x77   :  { %p15127_p6 = pnand %p15125_p5, %p15122_p4 }
  0x79   :  { %15130 = shalt.err (!%p15127_p6)
}
  0x7a   :  { %s15131_s29 = scalar_lea.vmem %s153_s4, 16  ;;  %s15135_s2 = scalar_lea.vmem %s153_s4, 32 }
  0x7b   :  { %p15132_p7 = scmp.ne.s32.totalorder %s153_s4, %s15131_s29  ;;  %p15136_p8 = scmp.lt.s32.totalorder %s153_s4, %s153_s4 }
  0x7c   :  { %p15137_p9 = scmp.lt.s32.totalorder %s15135_s2, %s15131_s29 }
  0x7e   :  { %p15138_p10 = por %p15137_p9, %p15136_p8 }
  0x80   :  { %p15139_p11 = pnand %p15138_p10, %p15132_p7 }
  0x82   :  { %15142 = shalt.err (!%p15139_p11)
}
  0x83   :  { %155 = dma.hbm_to_vmem [thread:$0]  %s18383_s13, 16, %s153_s4, [#allocation18]  }
  0x84   :  { %s15410_s6 = smov [#allocation20]   ;;  %s15411_s9 = smov [#allocation23]  }
  0x85   :  { %s178_s30 = sshll.u32 %s15410_s6, 4  ;;  %s198_s11 = sshll.u32 %s15411_s9, 4  ;;  %s179_s30 = int_to_ptr.vmem [resolvable:$true] %s178_s30  ;;  %s199_s11 = int_to_ptr.vmem [resolvable:$true] %s198_s11 }
  0x86   :  { %s15143_s28 = scalar_lea.hbm %s18387_s17, 16 }
  0x87   :  { %p15144_p12 = scmp.ne.s32.totalorder %s18387_s17, %s15143_s28  ;;  %p15147_p13 = scmp.lt.u32.totalorder %s15143_s28, %s18387_s17 }
  0x89   :  { %p15149_p0 = pnand %p15147_p13, %p15144_p12 }
  0x8b   :  { %15152 = shalt.err (!%p15149_p0)
}
  0x8c   :  { %s15153_s13 = scalar_lea.vmem %s179_s30, 16  ;;  %s15157_s4 = scalar_lea.vmem %s179_s30, 32 }
  0x8d   :  { %p15154_p1 = scmp.ne.s32.totalorder %s179_s30, %s15153_s13  ;;  %p15158_p2 = scmp.lt.s32.totalorder %s179_s30, %s179_s30 }
  0x8e   :  { %p15159_p3 = scmp.lt.s32.totalorder %s15157_s4, %s15153_s13 }
  0x90   :  { %p15160_p4 = por %p15159_p3, %p15158_p2 }
  0x92   :  { %p15161_p5 = pnand %p15160_p4, %p15154_p1 }
  0x94   :  { %15164 = shalt.err (!%p15161_p5)
}
  0x95   :  { %181 = dma.hbm_to_vmem [thread:$0]  %s18387_s17, 16, %s179_s30, [#allocation21]  }
  0x96   :  { %s15165_s6 = scalar_lea.hbm %s18389_s19, 16 }
  0x97   :  { %p15166_p6 = scmp.ne.s32.totalorder %s18389_s19, %s15165_s6  ;;  %p15169_p7 = scmp.lt.u32.totalorder %s15165_s6, %s18389_s19 }
  0x99   :  { %p15171_p8 = pnand %p15169_p7, %p15166_p6 }
  0x9b   :  { %15174 = shalt.err (!%p15171_p8)
}
  0x9c   :  { %s15175_s8 = scalar_lea.vmem %s199_s11, 16  ;;  %s15179_s27 = scalar_lea.vmem %s199_s11, 32 }
  0x9d   :  { %p15176_p9 = scmp.ne.s32.totalorder %s199_s11, %s15175_s8  ;;  %p15180_p10 = scmp.lt.s32.totalorder %s199_s11, %s199_s11 }
  0x9e   :  { %p15181_p11 = scmp.lt.s32.totalorder %s15179_s27, %s15175_s8 }
  0xa0   :  { %p15182_p12 = por %p15181_p11, %p15180_p10 }
  0xa2   :  { %p15183_p13 = pnand %p15182_p12, %p15176_p9 }
  0xa4   :  { %15186 = shalt.err (!%p15183_p13)
}
  0xa5   :  { %201 = dma.hbm_to_vmem [thread:$0]  %s18389_s19, 16, %s199_s11, [#allocation24]  }
  0xa6   :  { %s15412_s10 = smov [#allocation2]   ;;  %s18446_s29 = sld [smem:[#allocation53_spill]] }
  0xa7   :  { %s49_s0 = sshll.u32 %s15412_s10, 4  ;;  %s50_s0 = int_to_ptr.vmem [resolvable:$true] %s49_s0 }
  0xac   :  { %s15187_s2 = scalar_lea.hbm %s18446_s29, 128 }
  0xad   :  { %p15188_p0 = scmp.ne.s32.totalorder %s18446_s29, %s15187_s2  ;;  %p15191_p1 = scmp.lt.u32.totalorder %s15187_s2, %s18446_s29 }
  0xaf   :  { %p15193_p2 = pnand %p15191_p1, %p15188_p0 }
  0xb1   :  { %15196 = shalt.err (!%p15193_p2)
}
  0xb2   :  { %s15197_s5 = scalar_lea.vmem %s50_s0, 128  ;;  %p15202_p4 = scmp.lt.s32.totalorder %s50_s0, %s50_s0 }
  0xb3   :  { %p15198_p3 = scmp.ne.s32.totalorder %s50_s0, %s15197_s5  ;;  %p15203_p5 = scmp.lt.s32.totalorder %s15197_s5, %s15197_s5 }
  0xb5   :  { %p15204_p6 = por %p15203_p5, %p15202_p4 }
  0xb7   :  { %p15205_p7 = pnand %p15204_p6, %p15198_p3 }
  0xb9   :  { %15208 = shalt.err (!%p15205_p7)
}
  0xba   :  { %s15413_s19 = smov 16   ;;  %s15414_s11 = smov 1  }
  0xbb   :  { %55 = dma.hbm_to_vmem [thread:$0]  %s18446_s29, 128, %s50_s0, [#allocation3], %s15413_s19, %s15413_s19, %s15414_s11  }
  0xbc   :  { %s15415_s8 = smov [#allocation7]   ;;  %s15416_s17 = smov [#allocation10]  }
  0xbd   :  { %s78_s27 = sshll.u32 %s15415_s8, 4  ;;  %s98_s30 = sshll.u32 %s15416_s17, 4  ;;  %s79_s27 = int_to_ptr.vmem [resolvable:$true] %s78_s27  ;;  %s99_s30 = int_to_ptr.vmem [resolvable:$true] %s98_s30 }
  0xbe   :  { %s18447_s4 = sld [smem:[#allocation57_spill]] }
  0xc4   :  { %s15209_s2 = scalar_lea.hbm %s18447_s4, 16 }
  0xc5   :  { %p15210_p8 = scmp.ne.s32.totalorder %s18447_s4, %s15209_s2  ;;  %p15213_p9 = scmp.lt.u32.totalorder %s15209_s2, %s18447_s4 }
  0xc7   :  { %p15215_p10 = pnand %p15213_p9, %p15210_p8 }
  0xc9   :  { %15218 = shalt.err (!%p15215_p10)
}
  0xca   :  { %s15219_s0 = scalar_lea.vmem %s79_s27, 16  ;;  %s15223_s29 = scalar_lea.vmem %s79_s27, 32 }
  0xcb   :  { %p15220_p11 = scmp.ne.s32.totalorder %s79_s27, %s15219_s0  ;;  %p15224_p12 = scmp.lt.s32.totalorder %s79_s27, %s79_s27 }
  0xcc   :  { %p15225_p13 = scmp.lt.s32.totalorder %s15223_s29, %s15219_s0 }
  0xce   :  { %p15226_p0 = por %p15225_p13, %p15224_p12 }
  0xd0   :  { %p15227_p1 = pnand %p15226_p0, %p15220_p11 }
  0xd2   :  { %15230 = shalt.err (!%p15227_p1)
}
  0xd3   :  { %81 = dma.hbm_to_vmem [thread:$0]  %s18447_s4, 16, %s79_s27, [#allocation6]  }
  0xd4   :  { %s18448_s8 = sld [smem:[#allocation59_spill]] }
  0xda   :  { %s15231_s17 = scalar_lea.hbm %s18448_s8, 16 }
  0xdb   :  { %p15232_p2 = scmp.ne.s32.totalorder %s18448_s8, %s15231_s17  ;;  %p15235_p3 = scmp.lt.u32.totalorder %s15231_s17, %s18448_s8 }
  0xdd   :  { %p15237_p4 = pnand %p15235_p3, %p15232_p2 }
  0xdf   :  { %15240 = shalt.err (!%p15237_p4)
}
  0xe0   :  { %s15241_s25 = scalar_lea.vmem %s99_s30, 16  ;;  %s15245_s6 = scalar_lea.vmem %s99_s30, 32 }
  0xe1   :  { %p15242_p5 = scmp.ne.s32.totalorder %s99_s30, %s15241_s25  ;;  %p15246_p6 = scmp.lt.s32.totalorder %s99_s30, %s99_s30 }
  0xe2   :  { %p15247_p7 = scmp.lt.s32.totalorder %s15245_s6, %s15241_s25 }
  0xe4   :  { %p15248_p8 = por %p15247_p7, %p15246_p6 }
  0xe6   :  { %p15249_p9 = pnand %p15248_p8, %p15242_p5 }
  0xe8   :  { %15252 = shalt.err (!%p15249_p9)
}
  0xe9   :  { %101 = dma.hbm_to_vmem [thread:$0]  %s18448_s8, 16, %s99_s30, [#allocation9]  }
  0xea   :  { %s15417_s9 = smov [#allocation13]   ;;  %s15418_s29 = smov [#allocation16]  }
  0xeb   :  { %s120_s0 = sshll.u32 %s15417_s9, 4  ;;  %s142_s5 = sshll.u32 %s15418_s29, 4  ;;  %s121_s0 = int_to_ptr.vmem [resolvable:$true] %s120_s0  ;;  %s143_s5 = int_to_ptr.vmem [resolvable:$true] %s142_s5 }
  0xec   :  { %s18449_s28 = sld [smem:[#allocation61_spill]] }
  0xf2   :  { %s15253_s17 = scalar_lea.hbm %s18449_s28, 16 }
  0xf3   :  { %p15254_p10 = scmp.ne.s32.totalorder %s18449_s28, %s15253_s17  ;;  %p15257_p11 = scmp.lt.u32.totalorder %s15253_s17, %s18449_s28 }
  0xf5   :  { %p15259_p12 = pnand %p15257_p11, %p15254_p10 }
  0xf7   :  { %15262 = shalt.err (!%p15259_p12)
}
  0xf8   :  { %s15263_s30 = scalar_lea.vmem %s121_s0, 16  ;;  %s15267_s8 = scalar_lea.vmem %s121_s0, 32 }
  0xf9   :  { %p15264_p13 = scmp.ne.s32.totalorder %s121_s0, %s15263_s30  ;;  %p15268_p0 = scmp.lt.s32.totalorder %s121_s0, %s121_s0 }
  0xfa   :  { %p15269_p1 = scmp.lt.s32.totalorder %s15267_s8, %s15263_s30 }
  0xfc   :  { %p15270_p2 = por %p15269_p1, %p15268_p0 }
  0xfe   :  { %p15271_p3 = pnand %p15270_p2, %p15264_p13 }
 0x100   :  { %15274 = shalt.err (!%p15271_p3)
}
 0x101   :  { %123 = dma.hbm_to_vmem [thread:$0]  %s18449_s28, 16, %s121_s0, [#allocation12]  }
 0x102   :  { %s18450_s9 = sld [smem:[#allocation64_spill]] }
 0x108   :  { %s15275_s29 = scalar_lea.hbm %s18450_s9, 16 }
 0x109   :  { %p15276_p4 = scmp.ne.s32.totalorder %s18450_s9, %s15275_s29  ;;  %p15279_p5 = scmp.lt.u32.totalorder %s15275_s29, %s18450_s9 }
 0x10b   :  { %p15281_p6 = pnand %p15279_p5, %p15276_p4 }
 0x10d   :  { %15284 = shalt.err (!%p15281_p6)
}
 0x10e   :  { %s15285_s13 = scalar_lea.vmem %s143_s5, 16  ;;  %s15289_s2 = scalar_lea.vmem %s143_s5, 32 }
 0x10f   :  { %p15286_p7 = scmp.ne.s32.totalorder %s143_s5, %s15285_s13  ;;  %p15290_p8 = scmp.lt.s32.totalorder %s143_s5, %s143_s5 }
 0x110   :  { %p15291_p9 = scmp.lt.s32.totalorder %s15289_s2, %s15285_s13 }
 0x112   :  { %p15292_p10 = por %p15291_p9, %p15290_p8 }
 0x114   :  { %p15293_p11 = pnand %p15292_p10, %p15286_p7 }
 0x116   :  { %15296 = shalt.err (!%p15293_p11)
}
 0x117   :  { %145 = dma.hbm_to_vmem [thread:$0]  %s18450_s9, 16, %s143_s5, [#allocation15]  }
 0x118   :  { %s15419_s3 = smov [#allocation19]   ;;  %s15420_s8 = smov [#allocation22]  }
 0x119   :  { %s165_s30 = sshll.u32 %s15419_s3, 4  ;;  %s188_s25 = sshll.u32 %s15420_s8, 4  ;;  %s166_s30 = int_to_ptr.vmem [resolvable:$true] %s165_s30  ;;  %s189_s25 = int_to_ptr.vmem [resolvable:$true] %s188_s25 }
 0x11a   :  { %s15297_s4 = scalar_lea.hbm %s18386_s16, 1024 }
 0x11b   :  { %p15298_p12 = scmp.ne.s32.totalorder %s18386_s16, %s15297_s4  ;;  %p15301_p13 = scmp.lt.u32.totalorder %s15297_s4, %s18386_s16 }
 0x11d   :  { %p15303_p0 = pnand %p15301_p13, %p15298_p12 }
 0x11f   :  { %15306 = shalt.err (!%p15303_p0)
}
 0x120   :  { %s15307_s5 = scalar_lea.vmem %s166_s30, 1024  ;;  %p15312_p2 = scmp.lt.s32.totalorder %s166_s30, %s166_s30 }
 0x121   :  { %p15308_p1 = scmp.ne.s32.totalorder %s166_s30, %s15307_s5  ;;  %p15313_p3 = scmp.lt.s32.totalorder %s15307_s5, %s15307_s5 }
 0x123   :  { %p15314_p4 = por %p15313_p3, %p15312_p2 }
 0x125   :  { %p15315_p5 = pnand %p15314_p4, %p15308_p1 }
 0x127   :  { %15318 = shalt.err (!%p15315_p5)
}
 0x128   :  { %171 = dma.hbm_to_vmem [thread:$0]  %s18386_s16, 1024, %s166_s30, [#allocation18], %s15404_s7, %s15404_s7, %s15405_s12  }
 0x129   :  { %s15319_s0 = scalar_lea.hbm %s18388_s18, 16 }
 0x12a   :  { %p15320_p6 = scmp.ne.s32.totalorder %s18388_s18, %s15319_s0  ;;  %p15323_p7 = scmp.lt.u32.totalorder %s15319_s0, %s18388_s18 }
 0x12c   :  { %p15325_p8 = pnand %p15323_p7, %p15320_p6 }
 0x12e   :  { %15328 = shalt.err (!%p15325_p8)
}
 0x12f   :  { %s15329_s27 = scalar_lea.vmem %s189_s25, 16  ;;  %s15333_s4 = scalar_lea.vmem %s189_s25, 32 }
 0x130   :  { %p15330_p9 = scmp.ne.s32.totalorder %s189_s25, %s15329_s27  ;;  %p15334_p10 = scmp.lt.s32.totalorder %s189_s25, %s189_s25 }
 0x131   :  { %p15335_p11 = scmp.lt.s32.totalorder %s15333_s4, %s15329_s27 }
 0x133   :  { %p15336_p12 = por %p15335_p11, %p15334_p10 }
 0x135   :  { %p15337_p13 = pnand %p15336_p12, %p15330_p9 }
 0x137   :  { %15340 = shalt.err (!%p15337_p13)
}
 0x138   :  { %191 = dma.hbm_to_vmem [thread:$0]  %s18388_s18, 16, %s189_s25, [#allocation21]  }
 0x139   :  { %s15421_s29 = smov [#allocation25]   ;;  %s15341_s5 = scalar_lea.hbm %s18396_s26, 1024 }
 0x13a   :  { %s219_s11 = sshll.u32 %s15421_s29, 4  ;;  %p15342_p0 = scmp.ne.s32.totalorder %s18396_s26, %s15341_s5  ;;  %s220_s11 = int_to_ptr.vmem [resolvable:$true] %s219_s11 }
 0x13b   :  { %p15345_p1 = scmp.lt.u32.totalorder %s15341_s5, %s18396_s26 }
 0x13d   :  { %p15347_p2 = pnand %p15345_p1, %p15342_p0 }
 0x13f   :  { %15350 = shalt.err (!%p15347_p2)
}
 0x140   :  { %s15351_s0 = scalar_lea.vmem %s220_s11, 1024  ;;  %p15356_p4 = scmp.lt.s32.totalorder %s220_s11, %s220_s11 }
 0x141   :  { %p15352_p3 = scmp.ne.s32.totalorder %s220_s11, %s15351_s0  ;;  %p15357_p5 = scmp.lt.s32.totalorder %s15351_s0, %s15351_s0 }
 0x143   :  { %p15358_p6 = por %p15357_p5, %p15356_p4 }
 0x145   :  { %p15359_p7 = pnand %p15358_p6, %p15352_p3 }
 0x147   :  { %15362 = shalt.err (!%p15359_p7)
}
 0x148   :  { %225 = dma.hbm_to_vmem [thread:$0]  %s18396_s26, 1024, %s220_s11, [#allocation24], %s15404_s7, %s15404_s7, %s15405_s12  }
 0x149   :  { %15385 = dma.done.wait [#allocation3], 128  }
 0x14a   :  { %15386 = vsyncadd [#allocation3], 4294967168 }
 0x14b   :  { %15387 = dma.done.wait [#allocation6], 1040  }
 0x14c   :  { %15388 = vsyncadd [#allocation6], 4294966256 }
 0x14d   :  { %15389 = dma.done.wait [#allocation9], 32  }
 0x14e   :  { %15390 = vsyncadd [#allocation9], 4294967264 }
 0x14f   :  { %15391 = dma.done.wait [#allocation12], 1040  }
 0x150   :  { %15392 = vsyncadd [#allocation12], 4294966256 }
 0x151   :  { %15393 = dma.done.wait [#allocation15], 32  }
 0x152   :  { %15394 = vsyncadd [#allocation15], 4294967264 }
 0x153   :  { %15395 = dma.done.wait [#allocation18], 1040  }
 0x154   :  { %15396 = vsyncadd [#allocation18], 4294966256 }
 0x155   :  { %15397 = dma.done.wait [#allocation21], 32  }
 0x156   :  { %15398 = vsyncadd [#allocation21], 4294967264 }
 0x157   :  { %15399 = dma.done.wait [#allocation24], 1040  }
 0x158   :  { %15400 = vsyncadd [#allocation24], 4294966256  ;;  %v18414_v0 = vmov 0.0   ;;  %s18451_s12 = sld [smem:[#allocation54_spill]]  ;;  %s18452_s1 = sld [smem:[#allocation52_spill]]  ;;  %vm317_vm0 = vcmask 523264   ;;  %v307_v33 = vlaneseq }
 0x159   :  { %406 = vmatprep.mubr.f32.mxu0 %v18414_v0  ;;  %13621 = vmatprep.subr.mxu1 %v18414_v0  ;;  %vm15423_vm1 = vmmov 0   ;;  %s18454_s27 = sld [smem:[#allocation55_spill]]  ;;  %s15424_s4 = smov 64   ;;  %vm506_vm2 = vcmask 130048   ;;  %vm1120_vm3 = vcmask 64512   ;;  %vm5874_vm4 = vcmask 392192  }
 0x15a   :  { %v15861_v34 = vshrl.u32 %v307_v33, 7  ;;  %13623 = vmatprep.mubr.msk.f32.mxu1 %vm15423_vm1, %v18414_v0  ;;  %s15425_s16 = smov 48   ;;  %s15426_s30 = smov 112   ;;  %vm5865_vm5 = vcmask 261120   ;;  %vm12865_vm6 = vcmask 1041409   ;;  %vm12868_vm7 = vcmask 1042434  }
 0x15b   :  { %s15427_s29 = smov 32   ;;  %s15428_s11 = smov 96   ;;  %vm12871_vm8 = vcmask 1043459   ;;  %vm12874_vm9 = vcmask 1044484   ;;  %vm12877_vm10 = vcmask 1045509   ;;  %vm12880_vm11 = vcmask 1046534  }
 0x15c   :  { %18453 = vst [vmem:[#allocation36_spill] sm:$0xff] %v15861_v34  ;;  %v18413_v35 = vsub.s32 0, %v15861_v34  ;;  %v18412_v37 = vsub.s32 1, %v15861_v34  ;;  %s15429_s17 = smov 80   ;;  %s18492_s6 = sld [smem:[#allocation65_spill]]  ;;  %vm12883_vm12 = vcmask 1047559  }
 0x15e   :  { %v290_v1 = vld [vmem:[%s18451_s12 + $0x8] sm:$0xff]  ;;  %v292_v2 = vld [vmem:[%s18451_s12 + $0x18] sm:$0xff]  ;;  %v289_v3 = vld [vmem:[%s18451_s12] sm:$0xff] }
 0x15f   :  { %v14480_v4 = vpack.c.bf16 %v292_v2, %v290_v1  ;;  %v291_v5 = vld [vmem:[%s18451_s12 + $0x10] sm:$0xff]  ;;  %v294_v6 = vld [vmem:[%s18451_s12 + $0x28] sm:$0xff]  ;;  %v296_v7 = vld [vmem:[%s18451_s12 + $0x38] sm:$0xff] }
 0x160   :  { %v14482_v8 = vpack.c.bf16 %v291_v5, %v289_v3  ;;  %v14484_v9 = vpack.c.bf16 %v296_v7, %v294_v6  ;;  %v293_v10 = vld [vmem:[%s18451_s12 + $0x20] sm:$0xff]  ;;  %v295_v11 = vld [vmem:[%s18451_s12 + $0x30] sm:$0xff]  ;;  %v298_v12 = vld [vmem:[%s18451_s12 + $0x48] sm:$0xff] }
 0x161   :  { %14481 = vmatprep.subr.bf16.mxu0 %v14480_v4  ;;  %v300_v13 = vld [vmem:[%s18451_s12 + $0x58] sm:$0xff]  ;;  %v14486_v14 = vpack.c.bf16 %v295_v11, %v293_v10  ;;  %v297_v16 = vld [vmem:[%s18451_s12 + $0x40] sm:$0xff]  ;;  %v299_v17 = vld [vmem:[%s18451_s12 + $0x50] sm:$0xff] }
 0x162   :  { %14483 = vmatpush1.bf16.msra.mxu0 %v14482_v8  ;;  %v14488_v15 = vpack.c.bf16 %v300_v13, %v298_v12  ;;  %v302_v18 = vld [vmem:[%s18451_s12 + $0x68] sm:$0xff]  ;;  %v304_v19 = vld [vmem:[%s18451_s12 + $0x78] sm:$0xff]  ;;  %v14490_v20 = vpack.c.bf16 %v299_v17, %v297_v16  ;;  %v301_v22 = vld [vmem:[%s18451_s12 + $0x60] sm:$0xff] }
 0x163   :  { %14485 = vmatprep.subr.bf16.mxu0 %v14484_v9  ;;  %v14492_v21 = vpack.c.bf16 %v304_v19, %v302_v18  ;;  %v303_v23 = vld [vmem:[%s18451_s12 + $0x70] sm:$0xff]  ;;  %v273_v25 = vld [vmem:[%s18452_s1] sm:$0xff]  ;;  %v274_v26 = vld [vmem:[%s18452_s1 + $0x8] sm:$0xff]  ;;  %s18456_s12 = sld [smem:[#allocation62_spill]] }
 0x164   :  { %v14494_v24 = vpack.c.bf16 %v303_v23, %v301_v22  ;;  %v275_v27 = vld [vmem:[%s18452_s1 + $0x10] sm:$0xff]  ;;  %v276_v28 = vld [vmem:[%s18452_s1 + $0x18] sm:$0xff]  ;;  %v277_v29 = vld [vmem:[%s18452_s1 + $0x20] sm:$0xff] }
 0x165   :  { %v278_v30 = vld [vmem:[%s18452_s1 + $0x28] sm:$0xff]  ;;  %v279_v31 = vld [vmem:[%s18452_s1 + $0x30] sm:$0xff]  ;;  %v280_v32 = vld [vmem:[%s18452_s1 + $0x38] sm:$0xff] }
 0x166   :  { %14487 = vmatpush1.bf16.msra.mxu0 %v14486_v14  ;;  %v305_v36 = vld [vmem:[%s18454_s27] sm:$0x3] }
 0x167   :  { %14489 = vmatprep.subr.bf16.mxu0 %v14488_v15  ;;  %v310_v38 = vrot.slane %v305_v36, %v18413_v35  ;;  %v314_v39 = vrot.slane %v305_v36, %v18412_v37  ;;  %v15978_v17 = vld [vmem:[#allocation2] ss:$0 sm:$0xff] }
 0x16a   :  { %14491 = vmatpush1.bf16.msra.mxu0 %v14490_v20 }
 0x16b   :  { %14493 = vmatprep.subr.bf16.mxu0 %v14492_v21  ;;  %v15981_v21 = vld [vmem:[#allocation2 + $0x1] ss:$0 sm:$0xff] }
 0x16e   :  { %14495 = vmatpush1.bf16.msra.mxu0 %v14494_v24 }
 0x16f   :  { %13686 = vmatprep.subr.mxu0 %v18414_v0 }
 0x171   :  { %12980 = vmatmul.mubr.msk.f32.vlgmr.msra.gmra.mrb[0].mxu0 %vm317_vm0, %v273_v25 }
 0x172   :  { %412 = vmatprep.mubr.f32.mxu0 %v18414_v0 }
 0x175   :  { %12981 = vmatmul.mubr.msk.f32.gmra.mrb[2].mxu0 %vm317_vm0, %v274_v26  ;;  %v15985_v26 = vld [vmem:[#allocation2 + $0x2] ss:$0 sm:$0xff] }
 0x176   :  { %418 = vmatprep.mubr.f32.mxu0 %v18414_v0 }
 0x179   :  { %12982 = vmatmul.mubr.msk.f32.gmra.mrb[4].mxu0 %vm317_vm0, %v275_v27 }
 0x17a   :  { %424 = vmatprep.mubr.f32.mxu0 %v18414_v0 }
 0x17d   :  { %12983 = vmatmul.mubr.msk.f32.gmra.mrb[6].mxu0 %vm317_vm0, %v276_v28 }
 0x17e   :  { %430 = vmatprep.mubr.f32.mxu0 %v18414_v0 }
 0x181   :  { %12984 = vmatmul.mubr.msk.f32.gmra.mrb[8].mxu0 %vm317_vm0, %v277_v29 }
 0x182   :  { %436 = vmatprep.mubr.f32.mxu0 %v18414_v0 }
 0x185   :  { %12985 = vmatmul.mubr.msk.f32.gmra.mrb[10].mxu0 %vm317_vm0, %v278_v30 }
 0x186   :  { %442 = vmatprep.mubr.f32.mxu0 %v18414_v0 }
 0x189   :  { %12986 = vmatmul.mubr.msk.f32.gmra.mrb[12].mxu0 %vm317_vm0, %v279_v31  ;;  %v15989_v31 = vld [vmem:[#allocation2 + $0x3] ss:$0 sm:$0xff] }
 0x18a   :  { %448 = vmatprep.mubr.f32.mxu0 %v18414_v0 }
 0x18d   :  { %12987 = vmatmul.mubr.msk.f32.gmra.mrb[14].mxu0 %vm317_vm0, %v280_v32 }
 0x18e   :  { %13688 = vmatprep.mubr.msk.f32.mxu0 %vm15423_vm1, %v18414_v0 }
 0x244   :  { %v408_v40 = vpop.f32.mrb[0].mxu0 }
 0x245   :  { %v15876_v41 = vadd.f32 %v408_v40, %v310_v38  ;;  %v410_v42 = vpop.f32.mrb[1].mxu0 }
 0x246   :  { %v15878_v43 = vadd.f32 %v410_v42, %v314_v39 }
 0x247   :  { %504 = vrot.lane.b32.xlu0 %v15876_v41, %s15424_s4 }
 0x248   :  { %v414_v44 = vpop.f32.mrb[2].mxu0 }
 0x249   :  { %v15882_v45 = vadd.f32 %v414_v44, %v310_v38  ;;  %v416_v46 = vpop.f32.mrb[3].mxu0 }
 0x24a   :  { %v15884_v47 = vadd.f32 %v416_v46, %v314_v39 }
 0x24b   :  { %582 = vrot.lane.b32.xlu0 %v15882_v45, %s15424_s4 }
 0x24c   :  { %v420_v48 = vpop.f32.mrb[4].mxu0 }
 0x24d   :  { %v15888_v49 = vadd.f32 %v420_v48, %v310_v38  ;;  %v422_v50 = vpop.f32.mrb[5].mxu0  ;;  %v15997_v48 = vld [vmem:[#allocation2 + $0x5] ss:$0 sm:$0xff] }
 0x24e   :  { %v15890_v51 = vadd.f32 %v422_v50, %v314_v39 }
 0x24f   :  { %659 = vrot.lane.b32.xlu1 %v15888_v49, %s15424_s4 }
 0x250   :  { %v426_v52 = vpop.f32.mrb[6].mxu0 }
 0x251   :  { %v15894_v53 = vadd.f32 %v426_v52, %v310_v38  ;;  %v428_v54 = vpop.f32.mrb[7].mxu0 }
 0x252   :  { %v15896_v55 = vadd.f32 %v428_v54, %v314_v39 }
 0x253   :  { %736 = vrot.lane.b32.xlu1 %v15894_v53, %s15424_s4 }
 0x254   :  { %v432_v56 = vpop.f32.mrb[8].mxu0 }
 0x255   :  { %v15900_v57 = vadd.f32 %v432_v56, %v310_v38  ;;  %v434_v58 = vpop.f32.mrb[9].mxu0 }
 0x256   :  { %v15902_v59 = vadd.f32 %v434_v58, %v314_v39  ;;  %v16001_v58 = vld [vmem:[#allocation2 + $0x6] ss:$0 sm:$0xff] }
 0x257   :  { %813 = vrot.lane.b32.xlu0 %v15900_v57, %s15424_s4 }
 0x258   :  { %v438_v60 = vpop.f32.mrb[10].mxu0 }
 0x259   :  { %v15906_v61 = vadd.f32 %v438_v60, %v310_v38  ;;  %v440_v62 = vpop.f32.mrb[11].mxu0 }
 0x25a   :  { %v15908_v63 = vadd.f32 %v440_v62, %v314_v39 }
 0x25b   :  { %890 = vrot.lane.b32.xlu1 %v15906_v61, %s15424_s4 }
 0x25c   :  { %v444_v1 = vpop.f32.mrb[12].mxu0  ;;  %13687 = vmatpush3.msra.mxu0 %v15908_v63 }
 0x25d   :  { %v15913_v2 = vadd.f32 %v444_v1, %v310_v38  ;;  %v446_v3 = vpop.f32.mrb[13].mxu0  ;;  %13696 = vmatprep.subr.mxu0 %v18414_v0 }
 0x25e   :  { %v15916_v4 = vadd.f32 %v446_v3, %v314_v39 }
 0x25f   :  { %967 = vrot.lane.b32.xlu0 %v15913_v2, %s15424_s4 }
 0x260   :  { %v450_v5 = vpop.f32.mrb[14].mxu0 }
 0x261   :  { %v15920_v6 = vadd.f32 %v450_v5, %v310_v38  ;;  %v452_v7 = vpop.f32.mrb[15].mxu0  ;;  %v16005_v5 = vld [vmem:[#allocation2 + $0x7] ss:$0 sm:$0xff] }
 0x262   :  { %v15922_v8 = vadd.f32 %v452_v7, %v314_v39  ;;  %v15993_v39 = vld [vmem:[#allocation2 + $0x4] ss:$0 sm:$0xff] }
 0x263   :  { %1044 = vrot.lane.b32.xlu1 %v15920_v6, %s15424_s4 }
 0x267   :  { %1795 = vrot.lane.b32.xlu1 %v15876_v41, %s15425_s16 }
 0x2b9   :  { %v505_v9 = vpop.permute.xlu0 %504 }
 0x2ba   :  { %13622 = vmatpush3.xpose.msk.msra.mxu1 %vm506_vm2, %v505_v9 }
 0x2bb   :  { %13626 = vmatprep.subr.mxu1 %v18414_v0 }
 0x2bd   :  { %13624 = vmatmul.mubr.msk.f32.vlgmr.msra.gmra.mrb[0].mxu1 %vm506_vm2, %v15876_v41  ;;  %v583_v10 = vpop.permute.xlu0 %582 }
 0x2be   :  { %13627 = vmatpush3.xpose.msk.msra.mxu1 %vm506_vm2, %v583_v10  ;;  %13628 = vmatprep.mubr.msk.f32.mxu1 %vm15423_vm1, %v18414_v0 }
 0x2bf   :  { %13631 = vmatprep.subr.mxu1 %v18414_v0 }
 0x2c1   :  { %v660_v11 = vpop.permute.xlu1 %659  ;;  %13629 = vmatmul.mubr.msk.f32.vlgmr.msra.gmra.mrb[2].mxu1 %vm506_vm2, %v15882_v45 }
 0x2c2   :  { %13632 = vmatpush3.xpose.msk.msra.mxu1 %vm506_vm2, %v660_v11  ;;  %13633 = vmatprep.mubr.msk.f32.mxu1 %vm15423_vm1, %v18414_v0 }
 0x2c3   :  { %13636 = vmatprep.subr.mxu1 %v18414_v0 }
 0x2c5   :  { %v737_v12 = vpop.permute.xlu1 %736  ;;  %13634 = vmatmul.mubr.msk.f32.vlgmr.msra.gmra.mrb[4].mxu1 %vm506_vm2, %v15888_v49 }
 0x2c6   :  { %13637 = vmatpush3.xpose.msk.msra.mxu1 %vm506_vm2, %v737_v12  ;;  %13638 = vmatprep.mubr.msk.f32.mxu1 %vm15423_vm1, %v18414_v0 }
 0x2c7   :  { %13641 = vmatprep.subr.mxu1 %v18414_v0 }
 0x2c9   :  { %13639 = vmatmul.mubr.msk.f32.vlgmr.msra.gmra.mrb[6].mxu1 %vm506_vm2, %v15894_v53  ;;  %v814_v13 = vpop.permute.xlu0 %813 }
 0x2ca   :  { %13642 = vmatpush3.xpose.msk.msra.mxu1 %vm506_vm2, %v814_v13  ;;  %13643 = vmatprep.mubr.msk.f32.mxu1 %vm15423_vm1, %v18414_v0 }
 0x2cb   :  { %13646 = vmatprep.subr.mxu1 %v18414_v0 }
 0x2cd   :  { %v891_v14 = vpop.permute.xlu1 %890  ;;  %13644 = vmatmul.mubr.msk.f32.vlgmr.msra.gmra.mrb[8].mxu1 %vm506_vm2, %v15900_v57 }
 0x2ce   :  { %13647 = vmatpush3.xpose.msk.msra.mxu1 %vm506_vm2, %v891_v14  ;;  %13648 = vmatprep.mubr.msk.f32.mxu1 %vm15423_vm1, %v18414_v0 }
 0x2cf   :  { %13651 = vmatprep.subr.mxu1 %v18414_v0 }
 0x2d1   :  { %13649 = vmatmul.mubr.msk.f32.vlgmr.msra.gmra.mrb[10].mxu1 %vm506_vm2, %v15906_v61  ;;  %v968_v15 = vpop.permute.xlu0 %967 }
 0x2d2   :  { %13652 = vmatpush3.xpose.msk.msra.mxu1 %vm506_vm2, %v968_v15  ;;  %13653 = vmatprep.mubr.msk.f32.mxu1 %vm15423_vm1, %v18414_v0 }
 0x2d3   :  { %13656 = vmatprep.subr.mxu1 %v18414_v0 }
 0x2d5   :  { %v1045_v16 = vpop.permute.xlu1 %1044  ;;  %13654 = vmatmul.mubr.msk.f32.vlgmr.msra.gmra.mrb[12].mxu1 %vm506_vm2, %v15913_v2 }
 0x2d6   :  { %13657 = vmatpush3.xpose.msk.msra.mxu1 %vm506_vm2, %v1045_v16  ;;  %13658 = vmatprep.mubr.msk.f32.mxu1 %vm15423_vm1, %v18414_v0 }
 0x2d7   :  { %13661 = vmatprep.subr.mxu1 %v18414_v0 }
 0x2d9   :  { %13659 = vmatmul.mubr.msk.f32.vlgmr.msra.gmra.mrb[14].mxu1 %vm506_vm2, %v15920_v6  ;;  %v16016_v13 = vpop.permute.xlu1 %1795 }
 0x2da   :  { %13662 = vmatpush3.msra.mxu1 %v15878_v43  ;;  %13663 = vmatprep.mubr.msk.f32.mxu1 %vm15423_vm1, %v18414_v0 }
 0x2db   :  { %13666 = vmatprep.subr.mxu1 %v18414_v0 }
 0x390   :  { %v577_v18 = vpop.f32.mrb[0].mxu1 }
 0x391   :  { %v578_v19 = vadd.f32 %v15978_v17, %v577_v18  ;;  %v13625_v20 = vpop.f32.mrb[1].mxu1 }
 0x393   :  { %v1121_v22 = vsel %vm1120_vm3, %v578_v19, -inf }
 0x394   :  { %1122 = vmax.xlane.f32.xlu0 %v1121_v22  ;;  %v654_v23 = vpop.f32.mrb[2].mxu1 }
 0x395   :  { %v655_v24 = vadd.f32 %v15981_v21, %v654_v23  ;;  %v13630_v25 = vpop.f32.mrb[3].mxu1 }
 0x397   :  { %v1124_v27 = vsel %vm1120_vm3, %v655_v24, -inf }
 0x398   :  { %1125 = vmax.xlane.f32.xlu1 %v1124_v27  ;;  %v731_v28 = vpop.f32.mrb[4].mxu1 }
 0x399   :  { %v732_v29 = vadd.f32 %v15985_v26, %v731_v28  ;;  %v13635_v30 = vpop.f32.mrb[5].mxu1 }
 0x39b   :  { %v1127_v32 = vsel %vm1120_vm3, %v732_v29, -inf }
 0x39c   :  { %1128 = vmax.xlane.f32.xlu0 %v1127_v32  ;;  %v808_v33 = vpop.f32.mrb[6].mxu1 }
 0x39d   :  { %v809_v36 = vadd.f32 %v15989_v31, %v808_v33  ;;  %v13640_v38 = vpop.f32.mrb[7].mxu1 }
 0x39f   :  { %v1130_v40 = vsel %vm1120_vm3, %v809_v36, -inf }
 0x3a0   :  { %1131 = vmax.xlane.f32.xlu0 %v1130_v40  ;;  %v885_v42 = vpop.f32.mrb[8].mxu1 }
 0x3a1   :  { %v886_v44 = vadd.f32 %v15993_v39, %v885_v42  ;;  %v13645_v46 = vpop.f32.mrb[9].mxu1 }
 0x3a3   :  { %v1133_v50 = vsel %vm1120_vm3, %v886_v44, -inf }
 0x3a4   :  { %1134 = vmax.xlane.f32.xlu1 %v1133_v50  ;;  %v962_v52 = vpop.f32.mrb[10].mxu1 }
 0x3a5   :  { %v963_v54 = vadd.f32 %v15997_v48, %v962_v52  ;;  %v13650_v56 = vpop.f32.mrb[11].mxu1 }
 0x3a7   :  { %v1136_v60 = vsel %vm1120_vm3, %v963_v54, -inf }
 0x3a8   :  { %1137 = vmax.xlane.f32.xlu0 %v1136_v60  ;;  %v1039_v62 = vpop.f32.mrb[12].mxu1 }
 0x3a9   :  { %v1040_v1 = vadd.f32 %v16001_v58, %v1039_v62  ;;  %v13655_v3 = vpop.f32.mrb[13].mxu1 }
 0x3ab   :  { %v1139_v7 = vsel %vm1120_vm3, %v1040_v1, -inf }
 0x3ac   :  { %1140 = vmax.xlane.f32.xlu1 %v1139_v7  ;;  %v1116_v9 = vpop.f32.mrb[14].mxu1 }
 0x3ad   :  { %v1117_v10 = vadd.f32 %v16005_v5, %v1116_v9  ;;  %v13660_v11 = vpop.f32.mrb[15].mxu1 }
 0x3af   :  { %v1142_v12 = vsel %vm1120_vm3, %v1117_v10, -inf }
 0x3b0   :  { %1143 = vmax.xlane.f32.xlu0 %v1142_v12 }
 0x3bd   :  { %1793 = vrot.lane.b32.xlu1 %v15876_v41, %s15426_s30 }
 0x3c1   :  { %1871 = vrot.lane.b32.xlu1 %v15882_v45, %s15426_s30 }
 0x3c6   :  { %1873 = vrot.lane.b32.xlu0 %v15882_v45, %s15425_s16 }
 0x421   :  { %v1123_v14 = vpop.xlane.xlu0 %1122 }
 0x422   :  { %v1145_v15 = vsub.f32 %v578_v19, %v1123_v14 }
 0x424   :  { %v1153_v16 = vmul.f32 1.442695, %v1145_v15 }
 0x425   :  { %v1126_v18 = vpop.xlane.xlu1 %1125 }
 0x426   :  { %14681 = vpow2.f32 %v1153_v16  ;;  %v1146_v20 = vsub.f32 %v655_v24, %v1126_v18 }
 0x428   :  { %v1155_v22 = vmul.f32 1.442695, %v1146_v20 }
 0x429   :  { %v1129_v19 = vpop.xlane.xlu0 %1128 }
 0x42a   :  { %14683 = vpow2.f32 %v1155_v22  ;;  %v1147_v24 = vsub.f32 %v732_v29, %v1129_v19 }
 0x42c   :  { %v1157_v38 = vmul.f32 1.442695, %v1147_v24 }
 0x42d   :  { %v1132_v30 = vpop.xlane.xlu0 %1131 }
 0x42e   :  { %v1148_v33 = vsub.f32 %v809_v36, %v1132_v30  ;;  %14685 = vpow2.f32 %v1157_v38 }
 0x430   :  { %v16018_v23 = vpop.eup %14681  ;;  %v1159_v50 = vmul.f32 1.442695, %v1148_v33 }
 0x431   :  { %v1169_v25 = vsel %vm1120_vm3, %v16018_v23, 0.0  ;;  %v1135_v32 = vpop.xlane.xlu1 %1134 }
 0x432   :  { %1170 = vadd.xlane.f32.xlu1 %v1169_v25  ;;  %v1149_v40 = vsub.f32 %v886_v44, %v1135_v32  ;;  %14687 = vpow2.f32 %v1159_v50 }
 0x434   :  { %v16022_v27 = vpop.eup %14683  ;;  %v1161_v56 = vmul.f32 1.442695, %v1149_v40 }
 0x435   :  { %v1172_v28 = vsel %vm1120_vm3, %v16022_v27, 0.0  ;;  %v1138_v42 = vpop.xlane.xlu0 %1137 }
 0x436   :  { %1173 = vadd.xlane.f32.xlu0 %v1172_v28  ;;  %v1150_v52 = vsub.f32 %v963_v54, %v1138_v42  ;;  %14689 = vpow2.f32 %v1161_v56 }
 0x438   :  { %v1163_v3 = vmul.f32 1.442695, %v1150_v52  ;;  %v14686_v11 = vpop.eup %14685 }
 0x439   :  { %v1141_v46 = vpop.xlane.xlu1 %1140  ;;  %v1175_v44 = vsel %vm1120_vm3, %v14686_v11, 0.0 }
 0x43a   :  { %v1151_v60 = vsub.f32 %v1040_v1, %v1141_v46  ;;  %14691 = vpow2.f32 %v1163_v3 }
 0x43c   :  { %v1165_v7 = vmul.f32 1.442695, %v1151_v60  ;;  %v16030_v36 = vpop.eup %14687 }
 0x43d   :  { %v1144_v62 = vpop.xlane.xlu0 %1143  ;;  %v16071_v22 = vpop.permute.xlu1 %1793 }
 0x43e   :  { %v1152_v9 = vsub.f32 %v1117_v10, %v1144_v62  ;;  %14693 = vpow2.f32 %v1165_v7  ;;  %v1178_v10 = vsel %vm1120_vm3, %v16030_v36, 0.0 }
 0x440   :  { %v1167_v29 = vmul.f32 1.442695, %v1152_v9  ;;  %v16033_v12 = vpop.eup %14689 }
 0x441   :  { %v1181_v1 = vsel %vm1120_vm3, %v16033_v12, 0.0  ;;  %v16073_v25 = vpop.permute.xlu1 %1871  ;;  %v16075_v28 = vpop.permute.xlu0 %1873 }
 0x442   :  { %14695 = vpow2.f32 %v1167_v29 }
 0x443   :  { %2029 = vrot.lane.b32.xlu1 %v15894_v53, %s15425_s16 }
 0x444   :  { %v16035_v54 = vpop.eup %14691 }
 0x445   :  { %v1184_v16 = vsel %vm1120_vm3, %v16035_v54, 0.0 }
 0x448   :  { %v16041_v14 = vpop.eup %14693 }
 0x449   :  { %v1187_v15 = vsel %vm1120_vm3, %v16041_v14, 0.0 }
 0x44c   :  { %1951 = vrot.lane.b32.xlu0 %v15888_v49, %s15425_s16  ;;  %v16047_v18 = vpop.eup %14695 }
 0x44d   :  { %v1190_v20 = vsel %vm1120_vm3, %v16047_v18, 0.0 }
 0x467   :  { %1176 = vadd.xlane.f32.xlu1 %v1175_v44 }
 0x46b   :  { %1182 = vadd.xlane.f32.xlu1 %v1181_v1  ;;  %1179 = vadd.xlane.f32.xlu0 %v1178_v10 }
 0x46f   :  { %1188 = vadd.xlane.f32.xlu1 %v1187_v15  ;;  %1185 = vadd.xlane.f32.xlu0 %v1184_v16 }
 0x473   :  { %1191 = vadd.xlane.f32.xlu0 %v1190_v20 }
 0x480   :  { %2027 = vrot.lane.b32.xlu1 %v15894_v53, %s15426_s30 }
 0x484   :  { %2185 = vrot.lane.b32.xlu1 %v15906_v61, %s15425_s16 }
 0x488   :  { %2183 = vrot.lane.b32.xlu1 %v15906_v61, %s15426_s30 }
 0x489   :  { %1949 = vrot.lane.b32.xlu0 %v15888_v49, %s15426_s30 }
 0x48c   :  { %2341 = vrot.lane.b32.xlu1 %v15920_v6, %s15425_s16 }
 0x48d   :  { %2107 = vrot.lane.b32.xlu0 %v15900_v57, %s15425_s16 }
 0x490   :  { %2339 = vrot.lane.b32.xlu1 %v15920_v6, %s15426_s30 }
 0x491   :  { %2105 = vrot.lane.b32.xlu0 %v15900_v57, %s15426_s30 }
 0x495   :  { %2263 = vrot.lane.b32.xlu0 %v15913_v2, %s15425_s16 }
 0x499   :  { %2261 = vrot.lane.b32.xlu0 %v15913_v2, %s15426_s30 }
 0x4bf   :  { %v1171_v19 = vpop.xlane.xlu1 %1170 }
 0x4c0   :  { %14697 = vrcp.f32 %v1171_v19 }
 0x4c3   :  { %v1174_v24 = vpop.xlane.xlu0 %1173 }
 0x4c4   :  { %14699 = vrcp.f32 %v1174_v24 }
 0x4c7   :  { %v1952_v40 = vpop.permute.xlu0 %1951 }
 0x4ca   :  { %v14698_v30 = vpop.eup %14697 }
 0x4cb   :  { %v1201_v32 = vmul.f32 %v14698_v30, %v16018_v23  ;;  %v2030_v23 = vpop.permute.xlu1 %2029 }
 0x4cd   :  { %13664 = vmatmul.mubr.msk.f32.vlgmr.msra.gmra.mrb[16].mxu1 %vm1120_vm3, %v1201_v32 }
 0x4ce   :  { %v14700_v33 = vpop.eup %14699  ;;  %13667 = vmatpush3.msra.mxu1 %v15884_v47  ;;  %13668 = vmatprep.mubr.msk.f32.mxu1 %vm15423_vm1, %v18414_v0 }
 0x4cf   :  { %13671 = vmatprep.subr.mxu1 %v18414_v0  ;;  %v1202_v38 = vmul.f32 %v14700_v33, %v16022_v27 }
 0x4d1   :  { %13669 = vmatmul.mubr.msk.f32.vlgmr.msra.gmra.mrb[18].mxu1 %vm1120_vm3, %v1202_v38 }
 0x4d2   :  { %13672 = vmatpush3.msra.mxu1 %v15890_v51  ;;  %13673 = vmatprep.mubr.msk.f32.mxu1 %vm15423_vm1, %v18414_v0 }
 0x4d3   :  { %13676 = vmatprep.subr.mxu1 %v18414_v0 }
 0x4f4   :  { %v1177_v42 = vpop.xlane.xlu1 %1176 }
 0x4f5   :  { %14701 = vrcp.f32 %v1177_v42 }
 0x4f8   :  { %v1183_v46 = vpop.xlane.xlu1 %1182  ;;  %v1180_v50 = vpop.xlane.xlu0 %1179 }
 0x4f9   :  { %14703 = vrcp.f32 %v1180_v50 }
 0x4fa   :  { %14705 = vrcp.f32 %v1183_v46 }
 0x4fc   :  { %v1186_v52 = vpop.xlane.xlu0 %1185  ;;  %v1189_v56 = vpop.xlane.xlu1 %1188 }
 0x4fd   :  { %14707 = vrcp.f32 %v1186_v52 }
 0x4fe   :  { %14709 = vrcp.f32 %v1189_v56 }
 0x4ff   :  { %v14702_v27 = vpop.eup %14701 }
 0x500   :  { %v1192_v60 = vpop.xlane.xlu0 %1191  ;;  %v1203_v62 = vmul.f32 %v14702_v27, %v14686_v11  ;;  %v2028_v44 = vpop.permute.xlu1 %2027 }
 0x501   :  { %14711 = vrcp.f32 %v1192_v60 }
 0x502   :  { %13674 = vmatmul.mubr.msk.f32.vlgmr.msra.gmra.mrb[20].mxu1 %vm1120_vm3, %v1203_v62 }
 0x503   :  { %13677 = vmatpush3.msra.mxu1 %v15896_v55  ;;  %13678 = vmatprep.mubr.msk.f32.mxu1 %vm15423_vm1, %v18414_v0  ;;  %v14704_v3 = vpop.eup %14703 }
 0x504   :  { %13681 = vmatprep.subr.mxu1 %v18414_v0  ;;  %v1204_v7 = vmul.f32 %v14704_v3, %v16030_v36  ;;  %v14706_v9 = vpop.eup %14705  ;;  %v1950_v1 = vpop.permute.xlu0 %1949 }
 0x505   :  { %v1205_v10 = vmul.f32 %v14706_v9, %v16033_v12 }
 0x506   :  { %13679 = vmatmul.mubr.msk.f32.vlgmr.msra.gmra.mrb[22].mxu1 %vm1120_vm3, %v1204_v7 }
 0x507   :  { %v14708_v29 = vpop.eup %14707  ;;  %13682 = vmatpush3.msra.mxu1 %v15902_v59  ;;  %13683 = vmatprep.mubr.msk.f32.mxu1 %vm15423_vm1, %v18414_v0 }
 0x508   :  { %v1206_v11 = vmul.f32 %v14708_v29, %v16035_v54  ;;  %13691 = vmatprep.subr.mxu1 %v18414_v0  ;;  %v14710_v15 = vpop.eup %14709  ;;  %v2186_v54 = vpop.permute.xlu1 %2185 }
 0x509   :  { %v1207_v12 = vmul.f32 %v14710_v15, %v16041_v14  ;;  %v2108_v20 = vpop.permute.xlu0 %2107 }
 0x50a   :  { %13684 = vmatmul.mubr.msk.f32.vlgmr.msra.gmra.mrb[24].mxu1 %vm1120_vm3, %v1205_v10  ;;  %13689 = vmatmul.mubr.msk.f32.vlgmr.msra.gmra.mrb[16].mxu0 %vm1120_vm3, %v1206_v11 }
 0x50b   :  { %v14712_v16 = vpop.eup %14711  ;;  %13692 = vmatpush3.msra.mxu1 %v15916_v4  ;;  %13697 = vmatpush3.msra.mxu0 %v15922_v8 }
 0x50c   :  { %v1208_v36 = vmul.f32 %v14712_v16, %v16047_v18  ;;  %13693 = vmatprep.mubr.msk.f32.mxu1 %vm15423_vm1, %v18414_v0  ;;  %13698 = vmatprep.mubr.msk.f32.mxu0 %vm15423_vm1, %v18414_v0  ;;  %v2184_v14 = vpop.permute.xlu1 %2183 }
 0x50d   :  { %13701 = vmatprep.subr.mxu1 %v18414_v0  ;;  %13706 = vmatprep.subr.mxu0 %v18414_v0  ;;  %v2106_v18 = vpop.permute.xlu0 %2105 }
 0x50e   :  { %13694 = vmatmul.mubr.msk.f32.vlgmr.msra.gmra.mrb[26].mxu1 %vm1120_vm3, %v1207_v12  ;;  %13699 = vmatmul.mubr.msk.f32.vlgmr.msra.gmra.mrb[18].mxu0 %vm1120_vm3, %v1208_v36 }
 0x50f   :  { %13703 = vmatprep.mubr.msk.f32.mxu1 %vm15423_vm1, %v18414_v0  ;;  %13708 = vmatprep.mubr.msk.f32.mxu0 %vm15423_vm1, %v18414_v0 }
 0x512   :  { %13702 = vmatpush3.xpose.msk.msra.mxu1 %vm506_vm2, %v16016_v13  ;;  %13707 = vmatpush3.xpose.msk.msra.mxu0 %vm506_vm2, %v16075_v28  ;;  %v2342_v13 = vpop.permute.xlu1 %2341 }
 0x513   :  { %13711 = vmatprep.subr.mxu1 %v18414_v0  ;;  %13716 = vmatprep.subr.mxu0 %v18414_v0 }
 0x515   :  { %13704 = vmatmul.mubr.msk.f32.vlgmr.msra.gmra.mrb[28].mxu1 %vm506_vm2, %v16071_v22  ;;  %13709 = vmatmul.mubr.msk.f32.vlgmr.msra.gmra.mrb[20].mxu0 %vm506_vm2, %v16073_v25  ;;  %v2264_v22 = vpop.permute.xlu0 %2263 }
 0x516   :  { %13712 = vmatpush3.xpose.msk.msra.mxu1 %vm506_vm2, %v1952_v40  ;;  %13717 = vmatpush3.xpose.msk.msra.mxu0 %vm506_vm2, %v2030_v23  ;;  %v2340_v25 = vpop.permute.xlu1 %2339 }
 0x517   :  { %13713 = vmatprep.mubr.msk.f32.mxu1 %vm15423_vm1, %v18414_v0  ;;  %13718 = vmatprep.mubr.msk.f32.mxu0 %vm15423_vm1, %v18414_v0 }
 0x518   :  { %13721 = vmatprep.subr.mxu1 %v18414_v0  ;;  %13726 = vmatprep.subr.mxu0 %v18414_v0 }
 0x519   :  { %13714 = vmatmul.mubr.msk.f32.vlgmr.msra.gmra.mrb[30].mxu1 %vm506_vm2, %v1950_v1  ;;  %13719 = vmatmul.mubr.msk.f32.vlgmr.msra.gmra.mrb[22].mxu0 %vm506_vm2, %v2028_v44  ;;  %v2262_v28 = vpop.permute.xlu0 %2261 }
 0x51a   :  { %13722 = vmatpush3.xpose.msk.msra.mxu1 %vm506_vm2, %v2108_v20  ;;  %13727 = vmatpush3.xpose.msk.msra.mxu0 %vm506_vm2, %v2186_v54 }
 0x51b   :  { %13723 = vmatprep.mubr.msk.f32.mxu1 %vm15423_vm1, %v18414_v0  ;;  %13728 = vmatprep.mubr.msk.f32.mxu0 %vm15423_vm1, %v18414_v0 }
 0x51c   :  { %13731 = vmatprep.subr.mxu1 %v18414_v0  ;;  %13736 = vmatprep.subr.mxu0 %v18414_v0 }
 0x51d   :  { %13724 = vmatmul.mubr.msk.f32.vlgmr.msra.gmra.mrb[32].mxu1 %vm506_vm2, %v2106_v18  ;;  %13729 = vmatmul.mubr.msk.f32.vlgmr.msra.gmra.mrb[24].mxu0 %vm506_vm2, %v2184_v14 }
 0x51e   :  { %13732 = vmatpush3.xpose.msk.msra.mxu1 %vm506_vm2, %v2264_v22  ;;  %13737 = vmatpush3.xpose.msk.msra.mxu0 %vm506_vm2, %v2342_v13 }
 0x51f   :  { %13733 = vmatprep.mubr.msk.f32.mxu1 %vm15423_vm1, %v18414_v0  ;;  %13738 = vmatprep.mubr.msk.f32.mxu0 %vm15423_vm1, %v18414_v0 }
 0x520   :  { %13741 = vmatprep.subr.mxu1 %v18414_v0  ;;  %13746 = vmatprep.subr.mxu0 %v18414_v0 }
 0x521   :  { %13734 = vmatmul.mubr.msk.f32.vlgmr.msra.gmra.mrb[34].mxu1 %vm506_vm2, %v2262_v28  ;;  %13739 = vmatmul.mubr.msk.f32.vlgmr.msra.gmra.mrb[26].mxu0 %vm506_vm2, %v2340_v25 }
 0x522   :  { %13743 = vmatprep.mubr.msk.f32.mxu1 %vm15423_vm1, %v18414_v0  ;;  %13748 = vmatprep.mubr.msk.f32.mxu0 %vm15423_vm1, %v18414_v0 }
 0x5a0   :  { %v16164_v19 = vpop.f32.mrb[16].mxu1 }
 0x5a1   :  { %v13665_v24 = vpop.f32.mrb[17].mxu1 }
 0x5a4   :  { %v16166_v30 = vpop.f32.mrb[18].mxu1 }
 0x5a5   :  { %v13670_v32 = vpop.f32.mrb[19].mxu1 }
 0x5d5   :  { %v16168_v33 = vpop.f32.mrb[20].mxu1 }
 0x5d6   :  { %v13675_v38 = vpop.f32.mrb[21].mxu1 }
 0x5d9   :  { %v16170_v23 = vpop.f32.mrb[22].mxu1 }
 0x5da   :  { %v13680_v40 = vpop.f32.mrb[23].mxu1 }
 0x5dd   :  { %v16172_v42 = vpop.f32.mrb[24].mxu1  ;;  %v16174_v46 = vpop.f32.mrb[16].mxu0 }
 0x5de   :  { %v13685_v50 = vpop.f32.mrb[25].mxu1  ;;  %v13690_v52 = vpop.f32.mrb[17].mxu0 }
 0x5e1   :  { %v16176_v56 = vpop.f32.mrb[26].mxu1  ;;  %v16178_v27 = vpop.f32.mrb[18].mxu0 }
 0x5e2   :  { %v13695_v60 = vpop.f32.mrb[27].mxu1  ;;  %v13700_v62 = vpop.f32.mrb[19].mxu0 }
 0x5e8   :  { %v1867_v3 = vpop.f32.mrb[28].mxu1  ;;  %v1945_v7 = vpop.f32.mrb[20].mxu0 }
 0x5e9   :  { %v1868_v9 = vadd.f32 %v15978_v17, %v1867_v3  ;;  %v1946_v29 = vadd.f32 %v15981_v21, %v1945_v7  ;;  %v13705_v11 = vpop.f32.mrb[29].mxu1  ;;  %v13710_v44 = vpop.f32.mrb[21].mxu0 }
 0x5eb   :  { %v2417_v1 = vsel %vm1120_vm3, %v1868_v9, -inf  ;;  %v2420_v10 = vsel %vm1120_vm3, %v1946_v29, -inf }
 0x5ec   :  { %2418 = vmax.xlane.f32.xlu0 %v2417_v1  ;;  %2421 = vmax.xlane.f32.xlu1 %v2420_v10  ;;  %v2023_v15 = vpop.f32.mrb[30].mxu1  ;;  %v2101_v16 = vpop.f32.mrb[22].mxu0 }
 0x5ed   :  { %v2024_v36 = vadd.f32 %v15985_v26, %v2023_v15  ;;  %v13715_v12 = vpop.f32.mrb[31].mxu1  ;;  %v13720_v54 = vpop.f32.mrb[23].mxu0  ;;  %v2102_v20 = vadd.f32 %v15989_v31, %v2101_v16 }
 0x5ef   :  { %v2423_v17 = vsel %vm1120_vm3, %v2024_v36, -inf  ;;  %v2426_v24 = vsel %vm1120_vm3, %v2102_v20, -inf }
 0x5f0   :  { %v2257_v14 = vpop.f32.mrb[24].mxu0  ;;  %2424 = vmax.xlane.f32.xlu0 %v2423_v17  ;;  %v2179_v18 = vpop.f32.mrb[32].mxu1 }
 0x5f1   :  { %v2180_v13 = vadd.f32 %v15993_v39, %v2179_v18  ;;  %v13725_v22 = vpop.f32.mrb[33].mxu1  ;;  %v13730_v25 = vpop.f32.mrb[25].mxu0  ;;  %v2258_v28 = vadd.f32 %v15997_v48, %v2257_v14 }
 0x5f3   :  { %v2429_v32 = vsel %vm1120_vm3, %v2180_v13, -inf  ;;  %v2432_v52 = vsel %vm1120_vm3, %v2258_v28, -inf }
 0x5f4   :  { %v2413_v26 = vpop.f32.mrb[26].mxu0  ;;  %2427 = vmax.xlane.f32.xlu0 %v2426_v24  ;;  %2430 = vmax.xlane.f32.xlu1 %v2429_v32  ;;  %v2335_v38 = vpop.f32.mrb[34].mxu1 }
 0x5f5   :  { %v13735_v31 = vpop.f32.mrb[35].mxu1  ;;  %v13740_v40 = vpop.f32.mrb[27].mxu0  ;;  %v2414_v50 = vadd.f32 %v16005_v5, %v2413_v26  ;;  %v16207_v60 = vadd.f32 %v16001_v58, %v2335_v38 }
 0x5f7   :  { %v2438_v39 = vsel %vm1120_vm3, %v2414_v50, -inf  ;;  %v2435_v62 = vsel %vm1120_vm3, %v16207_v60, -inf }
 0x5f8   :  { %2433 = vmax.xlane.f32.xlu0 %v2432_v52 }
 0x5fc   :  { %2439 = vmax.xlane.f32.xlu0 %v2438_v39 }
 0x605   :  { %2506 = vrot.lane.b32.xlu1 %v15878_v43, %s15426_s30 }
 0x612   :  { %2583 = vrot.lane.b32.xlu0 %v15884_v47, %s15426_s30 }
 0x616   :  { %2814 = vrot.lane.b32.xlu0 %v15902_v59, %s15426_s30 }
 0x61a   :  { %2968 = vrot.lane.b32.xlu0 %v15916_v4, %s15426_s30 }
 0x61e   :  { %3123 = vrot.lane.b32.xlu0 %v15876_v41, %s15427_s29 }
 0x622   :  { %3121 = vrot.lane.b32.xlu0 %v15876_v41, %s15428_s11 }
 0x626   :  { %3279 = vrot.lane.b32.xlu0 %v15888_v49, %s15427_s29 }
 0x629   :  { %2436 = vmax.xlane.f32.xlu1 %v2435_v62 }
 0x63a   :  { %2660 = vrot.lane.b32.xlu1 %v15890_v51, %s15426_s30 }
 0x63e   :  { %2737 = vrot.lane.b32.xlu1 %v15896_v55, %s15426_s30 }
 0x642   :  { %2891 = vrot.lane.b32.xlu1 %v15908_v63, %s15426_s30 }
 0x646   :  { %3045 = vrot.lane.b32.xlu1 %v15922_v8, %s15426_s30 }
 0x64a   :  { %3201 = vrot.lane.b32.xlu1 %v15882_v45, %s15427_s29 }
 0x64e   :  { %3199 = vrot.lane.b32.xlu1 %v15882_v45, %s15428_s11 }
 0x652   :  { %3357 = vrot.lane.b32.xlu1 %v15894_v53, %s15427_s29 }
 0x679   :  { %v2422_v3 = vpop.xlane.xlu1 %2421  ;;  %v2419_v7 = vpop.xlane.xlu0 %2418 }
 0x67a   :  { %v2442_v11 = vsub.f32 %v1946_v29, %v2422_v3  ;;  %v2441_v44 = vsub.f32 %v1868_v9, %v2419_v7 }
 0x67c   :  { %v2451_v1 = vmul.f32 1.442695, %v2442_v11  ;;  %v2449_v10 = vmul.f32 1.442695, %v2441_v44 }
 0x67d   :  { %v2425_v15 = vpop.xlane.xlu0 %2424 }
 0x67e   :  { %14713 = vpow2.f32 %v2451_v1  ;;  %v2443_v16 = vsub.f32 %v2024_v36, %v2425_v15 }
 0x67f   :  { %14715 = vpow2.f32 %v2449_v10 }
 0x680   :  { %v2453_v12 = vmul.f32 1.442695, %v2443_v16 }
 0x681   :  { %v2431_v54 = vpop.xlane.xlu1 %2430  ;;  %v2428_v17 = vpop.xlane.xlu0 %2427 }
 0x682   :  { %14717 = vpow2.f32 %v2453_v12  ;;  %v2445_v14 = vsub.f32 %v2180_v13, %v2431_v54  ;;  %v2444_v18 = vsub.f32 %v2102_v20, %v2428_v17 }
 0x684   :  { %v2457_v22 = vmul.f32 1.442695, %v2445_v14  ;;  %v2455_v25 = vmul.f32 1.442695, %v2444_v18 }
 0x685   :  { %v2507_v24 = vpop.permute.xlu1 %2506  ;;  %v2434_v32 = vpop.xlane.xlu0 %2433 }
 0x686   :  { %14719 = vpow2.f32 %v2457_v22  ;;  %v2446_v26 = vsub.f32 %v2258_v28, %v2434_v32  ;;  %13742 = vmatpush3.msra.mxu1 %v2507_v24 }
 0x687   :  { %14721 = vpow2.f32 %v2455_v25  ;;  %13751 = vmatprep.subr.mxu1 %v18414_v0 }
 0x688   :  { %v16228_v9 = vpop.eup %14713  ;;  %v2459_v29 = vmul.f32 1.442695, %v2446_v26 }
 0x689   :  { %v16230_v36 = vpop.eup %14715  ;;  %v2440_v38 = vpop.xlane.xlu0 %2439  ;;  %v2468_v13 = vsel %vm1120_vm3, %v16228_v9, 0.0 }
 0x68a   :  { %14723 = vpow2.f32 %v2459_v29  ;;  %v2448_v20 = vsub.f32 %v2414_v50, %v2440_v38  ;;  %2469 = vadd.xlane.f32.xlu0 %v2468_v13  ;;  %v2465_v31 = vsel %vm1120_vm3, %v16230_v36, 0.0 }
 0x68b   :  { %2466 = vadd.xlane.f32.xlu1 %v2465_v31 }
 0x68c   :  { %v16236_v28 = vpop.eup %14717  ;;  %v2463_v40 = vmul.f32 1.442695, %v2448_v20 }
 0x68d   :  { %v2584_v52 = vpop.permute.xlu0 %2583  ;;  %v2471_v39 = vsel %vm1120_vm3, %v16236_v28, 0.0 }
 0x68e   :  { %14725 = vpow2.f32 %v2463_v40  ;;  %13747 = vmatpush3.msra.mxu0 %v2584_v52 }
 0x68f   :  { %2472 = vadd.xlane.f32.xlu1 %v2471_v39  ;;  %13756 = vmatprep.subr.mxu0 %v18414_v0 }
 0x690   :  { %v16241_v62 = vpop.eup %14719 }
 0x691   :  { %v16243_v50 = vpop.eup %14721  ;;  %v2477_v3 = vsel %vm1120_vm3, %v16241_v62, 0.0  ;;  %v2815_v18 = vpop.permute.xlu0 %2814 }
 0x692   :  { %v2474_v7 = vsel %vm1120_vm3, %v16243_v50, 0.0 }
 0x693   :  { %2478 = vadd.xlane.f32.xlu1 %v2477_v3  ;;  %2475 = vadd.xlane.f32.xlu0 %v2474_v7 }
 0x694   :  { %v16249_v11 = vpop.eup %14723 }
 0x695   :  { %v2480_v44 = vsel %vm1120_vm3, %v16249_v11, 0.0  ;;  %v2969_v25 = vpop.permute.xlu0 %2968 }
 0x697   :  { %2481 = vadd.xlane.f32.xlu0 %v2480_v44 }
 0x698   :  { %v16253_v1 = vpop.eup %14725 }
 0x699   :  { %v2486_v10 = vsel %vm1120_vm3, %v16253_v1, 0.0  ;;  %v16294_v32 = vpop.permute.xlu0 %3123 }
 0x69b   :  { %2487 = vadd.xlane.f32.xlu0 %v2486_v10 }
 0x69d   :  { %v16296_v29 = vpop.permute.xlu0 %3121 }
 0x6a1   :  { %v16298_v13 = vpop.permute.xlu0 %3279 }
 0x6b1   :  { %3277 = vrot.lane.b32.xlu0 %v15888_v49, %s15428_s11 }
 0x6b5   :  { %3435 = vrot.lane.b32.xlu0 %v15900_v57, %s15427_s29 }
 0x6b6   :  { %v2437_v15 = vpop.xlane.xlu1 %2436 }
 0x6b7   :  { %v2447_v16 = vsub.f32 %v16207_v60, %v2437_v15 }
 0x6b9   :  { %v2461_v12 = vmul.f32 1.442695, %v2447_v16  ;;  %3433 = vrot.lane.b32.xlu0 %v15900_v57, %s15428_s11 }
 0x6ba   :  { %v2661_v60 = vpop.permute.xlu1 %2660 }
 0x6bb   :  { %14727 = vpow2.f32 %v2461_v12 }
 0x6bd   :  { %3591 = vrot.lane.b32.xlu0 %v15913_v2, %s15427_s29 }
 0x6be   :  { %v2738_v14 = vpop.permute.xlu1 %2737 }
 0x6c1   :  { %3589 = vrot.lane.b32.xlu0 %v15913_v2, %s15428_s11 }
 0x6c2   :  { %v2892_v22 = vpop.permute.xlu1 %2891 }
 0x6c5   :  { %v16268_v54 = vpop.eup %14727  ;;  %3909 = vrot.lane.b32.xlu0 %v15884_v47, %s15428_s11 }
 0x6c6   :  { %v2483_v17 = vsel %vm1120_vm3, %v16268_v54, 0.0  ;;  %v3046_v24 = vpop.permute.xlu1 %3045 }
 0x6c7   :  { %2484 = vadd.xlane.f32.xlu1 %v2483_v17 }
 0x6c9   :  { %4137 = vrot.lane.b32.xlu0 %v15902_v59, %s15428_s11 }
 0x6ca   :  { %v3202_v26 = vpop.permute.xlu1 %3201 }
 0x6ce   :  { %v3200_v38 = vpop.permute.xlu1 %3199 }
 0x6d2   :  { %v3358_v20 = vpop.permute.xlu1 %3357 }
 0x6d8   :  { %3355 = vrot.lane.b32.xlu1 %v15894_v53, %s15428_s11 }
 0x6dc   :  { %3513 = vrot.lane.b32.xlu1 %v15906_v61, %s15427_s29 }
 0x6e0   :  { %3511 = vrot.lane.b32.xlu1 %v15906_v61, %s15428_s11 }
 0x6e4   :  { %3669 = vrot.lane.b32.xlu1 %v15920_v6, %s15427_s29 }
 0x6e8   :  { %3667 = vrot.lane.b32.xlu1 %v15920_v6, %s15428_s11 }
 0x6ec   :  { %3833 = vrot.lane.b32.xlu1 %v15878_v43, %s15428_s11 }
 0x6f0   :  { %3985 = vrot.lane.b32.xlu1 %v15890_v51, %s15428_s11 }
 0x6f4   :  { %4061 = vrot.lane.b32.xlu1 %v15896_v55, %s15428_s11 }
 0x6f8   :  { %4213 = vrot.lane.b32.xlu1 %v15908_v63, %s15428_s11 }
 0x717   :  { %v2470_v31 = vpop.xlane.xlu0 %2469 }
 0x718   :  { %v2467_v40 = vpop.xlane.xlu1 %2466  ;;  %14729 = vrcp.f32 %v2470_v31 }
 0x719   :  { %14731 = vrcp.f32 %v2467_v40 }
 0x71c   :  { %v2473_v52 = vpop.xlane.xlu1 %2472 }
 0x71d   :  { %14733 = vrcp.f32 %v2473_v52 }
 0x720   :  { %v2479_v39 = vpop.xlane.xlu1 %2478  ;;  %v2476_v3 = vpop.xlane.xlu0 %2475 }
 0x721   :  { %14735 = vrcp.f32 %v2479_v39 }
 0x722   :  { %v14730_v7 = vpop.eup %14729  ;;  %14737 = vrcp.f32 %v2476_v3 }
 0x723   :  { %v14732_v44 = vpop.eup %14731  ;;  %v2498_v10 = vmul.f32 %v14730_v7, %v16228_v9 }
 0x724   :  { %v2482_v15 = vpop.xlane.xlu0 %2481  ;;  %v2497_v16 = vmul.f32 %v14732_v44, %v16230_v36 }
 0x725   :  { %14739 = vrcp.f32 %v2482_v15  ;;  %13749 = vmatmul.mubr.msk.f32.vlgmr.msra.gmra.mrb[28].mxu0 %vm1120_vm3, %v2498_v10 }
 0x726   :  { %13744 = vmatmul.mubr.msk.f32.vlgmr.msra.gmra.mrb[36].mxu1 %vm1120_vm3, %v2497_v16  ;;  %13757 = vmatpush3.msra.mxu0 %v2738_v14 }
 0x727   :  { %v14734_v12 = vpop.eup %14733  ;;  %13752 = vmatpush3.msra.mxu1 %v2661_v60  ;;  %13753 = vmatprep.mubr.msk.f32.mxu1 %vm15423_vm1, %v18414_v0 }
 0x728   :  { %v2488_v17 = vpop.xlane.xlu0 %2487  ;;  %13761 = vmatprep.subr.mxu1 %v18414_v0  ;;  %v2499_v31 = vmul.f32 %v14734_v12, %v16236_v28  ;;  %13758 = vmatprep.mubr.msk.f32.mxu0 %vm15423_vm1, %v18414_v0 }
 0x729   :  { %14741 = vrcp.f32 %v2488_v17  ;;  %13766 = vmatprep.subr.mxu0 %v18414_v0 }
 0x72a   :  { %13754 = vmatmul.mubr.msk.f32.vlgmr.msra.gmra.mrb[38].mxu1 %vm1120_vm3, %v2499_v31 }
 0x72b   :  { %v14736_v9 = vpop.eup %14735  ;;  %13762 = vmatpush3.msra.mxu1 %v2815_v18  ;;  %13763 = vmatprep.mubr.msk.f32.mxu1 %vm15423_vm1, %v18414_v0 }
 0x72c   :  { %v14738_v36 = vpop.eup %14737  ;;  %13771 = vmatprep.subr.mxu1 %v18414_v0  ;;  %v2501_v60 = vmul.f32 %v14736_v9, %v16241_v62 }
 0x72d   :  { %v2500_v28 = vmul.f32 %v14738_v36, %v16243_v50 }
 0x72e   :  { %13764 = vmatmul.mubr.msk.f32.vlgmr.msra.gmra.mrb[40].mxu1 %vm1120_vm3, %v2501_v60 }
 0x72f   :  { %v14740_v14 = vpop.eup %14739  ;;  %13759 = vmatmul.mubr.msk.f32.vlgmr.msra.gmra.mrb[30].mxu0 %vm1120_vm3, %v2500_v28  ;;  %13772 = vmatpush3.msra.mxu1 %v2969_v25 }
 0x730   :  { %13767 = vmatpush3.msra.mxu0 %v2892_v22  ;;  %13768 = vmatprep.mubr.msk.f32.mxu0 %vm15423_vm1, %v18414_v0  ;;  %v2502_v18 = vmul.f32 %v14740_v14, %v16249_v11  ;;  %v3278_v11 = vpop.permute.xlu0 %3277 }
 0x731   :  { %13776 = vmatprep.subr.mxu0 %v18414_v0  ;;  %13773 = vmatprep.mubr.msk.f32.mxu1 %vm15423_vm1, %v18414_v0 }
 0x732   :  { %13781 = vmatprep.subr.mxu1 %v18414_v0 }
 0x733   :  { %v14742_v62 = vpop.eup %14741  ;;  %13769 = vmatmul.mubr.msk.f32.vlgmr.msra.gmra.mrb[32].mxu0 %vm1120_vm3, %v2502_v18 }
 0x734   :  { %13777 = vmatpush3.msra.mxu0 %v3046_v24  ;;  %13778 = vmatprep.mubr.msk.f32.mxu0 %vm15423_vm1, %v18414_v0  ;;  %v2504_v50 = vmul.f32 %v14742_v62, %v16253_v1  ;;  %v3436_v1 = vpop.permute.xlu0 %3435 }
 0x735   :  { %13786 = vmatprep.subr.mxu0 %v18414_v0 }
 0x737   :  { %13779 = vmatmul.mubr.msk.f32.vlgmr.msra.gmra.mrb[34].mxu0 %vm1120_vm3, %v2504_v50 }
 0x738   :  { %13788 = vmatprep.mubr.msk.f32.mxu0 %vm15423_vm1, %v18414_v0  ;;  %v3434_v25 = vpop.permute.xlu0 %3433 }
 0x73b   :  { %13787 = vmatpush3.xpose.msk.msra.mxu0 %vm506_vm2, %v3202_v26 }
 0x73c   :  { %13796 = vmatprep.subr.mxu0 %v18414_v0 }
 0x73e   :  { %13789 = vmatmul.mubr.msk.f32.vlgmr.msra.gmra.mrb[36].mxu0 %vm506_vm2, %v3200_v38  ;;  %v3592_v38 = vpop.permute.xlu0 %3591 }
 0x73f   :  { %13797 = vmatpush3.xpose.msk.msra.mxu0 %vm506_vm2, %v3358_v20  ;;  %13798 = vmatprep.mubr.msk.f32.mxu0 %vm15423_vm1, %v18414_v0 }
 0x740   :  { %13806 = vmatprep.subr.mxu0 %v18414_v0 }
 0x742   :  { %v3590_v39 = vpop.permute.xlu0 %3589 }
 0x754   :  { %v2485_v22 = vpop.xlane.xlu1 %2484 }
 0x755   :  { %14743 = vrcp.f32 %v2485_v22 }
 0x758   :  { %v3356_v24 = vpop.permute.xlu1 %3355 }
 0x759   :  { %13799 = vmatmul.mubr.msk.f32.vlgmr.msra.gmra.mrb[38].mxu0 %vm506_vm2, %v3356_v24 }
 0x75a   :  { %13808 = vmatprep.mubr.msk.f32.mxu0 %vm15423_vm1, %v18414_v0 }
 0x75c   :  { %v3514_v26 = vpop.permute.xlu1 %3513 }
 0x75d   :  { %13807 = vmatpush3.xpose.msk.msra.mxu0 %vm506_vm2, %v3514_v26 }
 0x75e   :  { %13816 = vmatprep.subr.mxu0 %v18414_v0 }
 0x75f   :  { %v14744_v20 = vpop.eup %14743 }
 0x760   :  { %v3512_v40 = vpop.permute.xlu1 %3511  ;;  %v2503_v52 = vmul.f32 %v14744_v20, %v16268_v54 }
 0x761   :  { %13809 = vmatmul.mubr.msk.f32.vlgmr.msra.gmra.mrb[40].mxu0 %vm506_vm2, %v3512_v40  ;;  %v16401_v40 = vld [vmem:[#allocation2] ss:$0 sm:$0xff] }
 0x762   :  { %13774 = vmatmul.mubr.msk.f32.vlgmr.msra.gmra.mrb[42].mxu1 %vm1120_vm3, %v2503_v52  ;;  %13818 = vmatprep.mubr.msk.f32.mxu0 %vm15423_vm1, %v18414_v0 }
 0x763   :  { %13782 = vmatpush3.xpose.msk.msra.mxu1 %vm506_vm2, %v16294_v32  ;;  %13783 = vmatprep.mubr.msk.f32.mxu1 %vm15423_vm1, %v18414_v0  ;;  %v3910_v32 = vpop.permute.xlu0 %3909 }
 0x764   :  { %v3670_v3 = vpop.permute.xlu1 %3669  ;;  %13791 = vmatprep.subr.mxu1 %v18414_v0 }
 0x765   :  { %13817 = vmatpush3.xpose.msk.msra.mxu0 %vm506_vm2, %v3670_v3 }
 0x766   :  { %13784 = vmatmul.mubr.msk.f32.vlgmr.msra.gmra.mrb[44].mxu1 %vm506_vm2, %v16296_v29  ;;  %13826 = vmatprep.subr.mxu0 %v18414_v0 }
 0x767   :  { %13792 = vmatpush3.xpose.msk.msra.mxu1 %vm506_vm2, %v16298_v13  ;;  %13793 = vmatprep.mubr.msk.f32.mxu1 %vm15423_vm1, %v18414_v0 }
 0x768   :  { %v3668_v54 = vpop.permute.xlu1 %3667  ;;  %13801 = vmatprep.subr.mxu1 %v18414_v0 }
 0x769   :  { %13819 = vmatmul.mubr.msk.f32.vlgmr.msra.gmra.mrb[42].mxu0 %vm506_vm2, %v3668_v54 }
 0x76a   :  { %13827 = vmatpush3.msra.mxu0 %v3910_v32  ;;  %13794 = vmatmul.mubr.msk.f32.vlgmr.msra.gmra.mrb[46].mxu1 %vm506_vm2, %v3278_v11 }
 0x76b   :  { %13802 = vmatpush3.xpose.msk.msra.mxu1 %vm506_vm2, %v3436_v1  ;;  %13803 = vmatprep.mubr.msk.f32.mxu1 %vm15423_vm1, %v18414_v0 }
 0x76c   :  { %13811 = vmatprep.subr.mxu1 %v18414_v0  ;;  %13828 = vmatprep.mubr.msk.f32.mxu0 %vm15423_vm1, %v18414_v0  ;;  %v3834_v29 = vpop.permute.xlu1 %3833 }
 0x76d   :  { %13836 = vmatprep.subr.mxu0 %v18414_v0 }
 0x76e   :  { %13804 = vmatmul.mubr.msk.f32.vlgmr.msra.gmra.mrb[48].mxu1 %vm506_vm2, %v3434_v25 }
 0x76f   :  { %13812 = vmatpush3.xpose.msk.msra.mxu1 %vm506_vm2, %v3592_v38  ;;  %13813 = vmatprep.mubr.msk.f32.mxu1 %vm15423_vm1, %v18414_v0 }
 0x770   :  { %13821 = vmatprep.subr.mxu1 %v18414_v0 }
 0x772   :  { %13814 = vmatmul.mubr.msk.f32.vlgmr.msra.gmra.mrb[50].mxu1 %vm506_vm2, %v3590_v39 }
 0x773   :  { %13822 = vmatpush3.msra.mxu1 %v3834_v29  ;;  %13823 = vmatprep.mubr.msk.f32.mxu1 %vm15423_vm1, %v18414_v0  ;;  %v16405_v29 = vld [vmem:[#allocation2 + $0x2] ss:$0 sm:$0xff] }
 0x774   :  { %13831 = vmatprep.subr.mxu1 %v18414_v0 }
 0x7f8   :  { %v16383_v13 = vpop.f32.mrb[28].mxu0 }
 0x7f9   :  { %v16385_v7 = vpop.f32.mrb[36].mxu1  ;;  %v13750_v44 = vpop.f32.mrb[29].mxu0 }
 0x7fa   :  { %v13745_v10 = vpop.f32.mrb[37].mxu1 }
 0x7fd   :  { %v16387_v15 = vpop.f32.mrb[38].mxu1 }
 0x7fe   :  { %v13755_v16 = vpop.f32.mrb[39].mxu1 }
 0x7ff   :  { %v16408_v16 = vld [vmem:[#allocation2 + $0x3] ss:$0 sm:$0xff] }
 0x801   :  { %v16389_v12 = vpop.f32.mrb[40].mxu1 }
 0x802   :  { %v16391_v17 = vpop.f32.mrb[30].mxu0  ;;  %v13765_v31 = vpop.f32.mrb[41].mxu1 }
 0x803   :  { %v13760_v9 = vpop.f32.mrb[31].mxu0 }
 0x806   :  { %v16393_v36 = vpop.f32.mrb[32].mxu0 }
 0x807   :  { %v13770_v60 = vpop.f32.mrb[33].mxu0 }
 0x80a   :  { %v16395_v28 = vpop.f32.mrb[34].mxu0 }
 0x80b   :  { %v13780_v14 = vpop.f32.mrb[35].mxu0 }
 0x80c   :  { %v16412_v14 = vld [vmem:[#allocation2 + $0x4] ss:$0 sm:$0xff] }
 0x811   :  { %v3273_v18 = vpop.f32.mrb[36].mxu0 }
 0x812   :  { %v3274_v62 = vadd.f32 %v15981_v21, %v3273_v18  ;;  %v13790_v50 = vpop.f32.mrb[37].mxu0 }
 0x814   :  { %v3748_v11 = vsel %vm1120_vm3, %v3274_v62, -inf }
 0x815   :  { %3749 = vmax.xlane.f32.xlu1 %v3748_v11 }
 0x82c   :  { %v3429_v1 = vpop.f32.mrb[38].mxu0 }
 0x82d   :  { %v13800_v22 = vpop.f32.mrb[39].mxu0  ;;  %v3430_v31 = vadd.f32 %v16408_v16, %v3429_v1 }
 0x82f   :  { %v3754_v22 = vsel %vm1120_vm3, %v3430_v31, -inf }
 0x834   :  { %v3585_v25 = vpop.f32.mrb[40].mxu0 }
 0x835   :  { %v16399_v24 = vpop.f32.mrb[42].mxu1  ;;  %v13810_v26 = vpop.f32.mrb[41].mxu0  ;;  %v3586_v11 = vadd.f32 %v15997_v48, %v3585_v25 }
 0x836   :  { %v13775_v38 = vpop.f32.mrb[43].mxu1 }
 0x839   :  { %v3195_v20 = vpop.f32.mrb[44].mxu1 }
 0x83a   :  { %v3196_v52 = vadd.f32 %v16401_v40, %v3195_v20  ;;  %v13785_v39 = vpop.f32.mrb[45].mxu1 }
 0x83c   :  { %v3741_v3 = vpop.f32.mrb[42].mxu0  ;;  %v3745_v21 = vsel %vm1120_vm3, %v3196_v52, -inf }
 0x83d   :  { %3746 = vmax.xlane.f32.xlu0 %v3745_v21  ;;  %v3351_v54 = vpop.f32.mrb[46].mxu1  ;;  %v13820_v32 = vpop.f32.mrb[43].mxu0  ;;  %v16420_v39 = vadd.f32 %v16005_v5, %v3741_v3  ;;  %v3760_v21 = vsel %vm1120_vm3, %v3586_v11, -inf }
 0x83e   :  { %v3352_v44 = vadd.f32 %v16405_v29, %v3351_v54  ;;  %v13795_v10 = vpop.f32.mrb[47].mxu1 }
 0x83f   :  { %v3766_v48 = vsel %vm1120_vm3, %v16420_v39, -inf }
 0x840   :  { %v3751_v9 = vsel %vm1120_vm3, %v3352_v44, -inf }
 0x841   :  { %3752 = vmax.xlane.f32.xlu0 %v3751_v9  ;;  %v3507_v60 = vpop.f32.mrb[48].mxu1 }
 0x842   :  { %v3508_v18 = vadd.f32 %v16412_v14, %v3507_v60  ;;  %v13805_v50 = vpop.f32.mrb[49].mxu1 }
 0x843   :  { %v16440_v50 = vpop.permute.xlu0 %4137 }
 0x844   :  { %v3757_v26 = vsel %vm1120_vm3, %v3508_v18, -inf }
 0x845   :  { %3755 = vmax.xlane.f32.xlu0 %v3754_v22  ;;  %3758 = vmax.xlane.f32.xlu1 %v3757_v26  ;;  %v3663_v38 = vpop.f32.mrb[50].mxu1 }
 0x846   :  { %v3664_v1 = vadd.f32 %v16001_v58, %v3663_v38  ;;  %v13815_v20 = vpop.f32.mrb[51].mxu1  ;;  %v16430_v58 = vpop.permute.xlu1 %3985 }
 0x848   :  { %v3763_v54 = vsel %vm1120_vm3, %v3664_v1, -inf }
 0x849   :  { %3761 = vmax.xlane.f32.xlu0 %v3760_v21  ;;  %3764 = vmax.xlane.f32.xlu1 %v3763_v54 }
 0x84a   :  { %v16432_v5 = vpop.permute.xlu1 %4061 }
 0x84d   :  { %3767 = vmax.xlane.f32.xlu0 %v3766_v48 }
 0x84e   :  { %v16434_v25 = vpop.permute.xlu1 %4213 }
 0x85a   :  { %4365 = vrot.lane.b32.xlu1 %v15922_v8, %s15428_s11 }
 0x863   :  { %4289 = vrot.lane.b32.xlu0 %v15916_v4, %s15428_s11 }
 0x8a2   :  { %v3750_v3 = vpop.xlane.xlu1 %3749 }
 0x8a3   :  { %v3770_v32 = vsub.f32 %v3274_v62, %v3750_v3 }
 0x8a5   :  { %v3779_v10 = vmul.f32 1.442695, %v3770_v32 }
 0x8a7   :  { %14745 = vpow2.f32 %v3779_v10 }
 0x8b1   :  { %v16436_v9 = vpop.eup %14745 }
 0x8b2   :  { %v3796_v60 = vsel %vm1120_vm3, %v16436_v9, 0.0 }
 0x8b3   :  { %3797 = vadd.xlane.f32.xlu0 %v3796_v60 }
 0x8ca   :  { %v3747_v22 = vpop.xlane.xlu0 %3746 }
 0x8cb   :  { %v3769_v26 = vsub.f32 %v3196_v52, %v3747_v22 }
 0x8cd   :  { %v3777_v38 = vmul.f32 1.442695, %v3769_v26 }
 0x8ce   :  { %v3753_v20 = vpop.xlane.xlu0 %3752 }
 0x8cf   :  { %14747 = vpow2.f32 %v3777_v38  ;;  %v3771_v21 = vsub.f32 %v3352_v44, %v3753_v20 }
 0x8d1   :  { %v3781_v54 = vmul.f32 1.442695, %v3771_v21 }
 0x8d2   :  { %v3759_v48 = vpop.xlane.xlu1 %3758  ;;  %v3756_v37 = vpop.xlane.xlu0 %3755 }
 0x8d3   :  { %14749 = vpow2.f32 %v3781_v54  ;;  %v3773_v62 = vsub.f32 %v3508_v18, %v3759_v48  ;;  %v3772_v3 = vsub.f32 %v3430_v31, %v3756_v37 }
 0x8d5   :  { %v3785_v32 = vmul.f32 1.442695, %v3773_v62  ;;  %v3783_v10 = vmul.f32 1.442695, %v3772_v3 }
 0x8d6   :  { %v3762_v35 = vpop.xlane.xlu0 %3761  ;;  %v3765_v22 = vpop.xlane.xlu1 %3764 }
 0x8d7   :  { %14751 = vpow2.f32 %v3785_v32  ;;  %v3774_v0 = vsub.f32 %v3586_v11, %v3762_v35  ;;  %v3775_v26 = vsub.f32 %v3664_v1, %v3765_v22 }
 0x8d8   :  { %14753 = vpow2.f32 %v3783_v10 }
 0x8d9   :  { %v16442_v60 = vpop.eup %14747  ;;  %v3787_v34 = vmul.f32 1.442695, %v3774_v0  ;;  %v3789_v20 = vmul.f32 1.442695, %v3775_v26 }
 0x8da   :  { %v3793_v52 = vsel %vm1120_vm3, %v16442_v60, 0.0  ;;  %v3768_v38 = vpop.xlane.xlu0 %3767 }
 0x8db   :  { %3794 = vadd.xlane.f32.xlu1 %v3793_v52  ;;  %14755 = vpow2.f32 %v3787_v34  ;;  %v3776_v21 = vsub.f32 %v16420_v39, %v3768_v38 }
 0x8dc   :  { %14757 = vpow2.f32 %v3789_v20 }
 0x8dd   :  { %v16446_v44 = vpop.eup %14749  ;;  %v3791_v54 = vmul.f32 1.442695, %v3776_v21 }
 0x8de   :  { %v3799_v18 = vsel %vm1120_vm3, %v16446_v44, 0.0 }
 0x8df   :  { %3800 = vadd.xlane.f32.xlu1 %v3799_v18  ;;  %14759 = vpow2.f32 %v3791_v54 }
 0x8e1   :  { %v16450_v37 = vpop.eup %14751 }
 0x8e2   :  { %v16452_v31 = vpop.eup %14753  ;;  %v3805_v35 = vsel %vm1120_vm3, %v16450_v37, 0.0 }
 0x8e3   :  { %3806 = vadd.xlane.f32.xlu1 %v3805_v35  ;;  %v3802_v0 = vsel %vm1120_vm3, %v16452_v31, 0.0 }
 0x8e4   :  { %3803 = vadd.xlane.f32.xlu0 %v3802_v0 }
 0x8e5   :  { %v16458_v11 = vpop.eup %14755 }
 0x8e6   :  { %v3808_v34 = vsel %vm1120_vm3, %v16458_v11, 0.0  ;;  %v16467_v48 = vpop.eup %14757 }
 0x8e7   :  { %v3811_v62 = vsel %vm1120_vm3, %v16467_v48, 0.0 }
 0x8e8   :  { %3809 = vadd.xlane.f32.xlu0 %v3808_v34 }
 0x8e9   :  { %v16471_v3 = vpop.eup %14759 }
 0x8ea   :  { %v3814_v32 = vsel %vm1120_vm3, %v16471_v3, 0.0 }
 0x8f4   :  { %4521 = vrot.lane.b32.xlu1 %v15882_v45, %s15413_s19 }
 0x8fe   :  { %4443 = vrot.lane.b32.xlu0 %v15876_v41, %s15413_s19 }
 0x918   :  { %3812 = vadd.xlane.f32.xlu1 %v3811_v62 }
 0x91d   :  { %3815 = vadd.xlane.f32.xlu0 %v3814_v32 }
 0x929   :  { %4519 = vrot.lane.b32.xlu1 %v15882_v45, %s15429_s17  ;;  %v4290_v45 = vpop.permute.xlu0 %4289 }
 0x92d   :  { %4677 = vrot.lane.b32.xlu1 %v15894_v53, %s15413_s19 }
 0x931   :  { %4675 = vrot.lane.b32.xlu1 %v15894_v53, %s15429_s17 }
 0x933   :  { %4441 = vrot.lane.b32.xlu0 %v15876_v41, %s15429_s17 }
 0x935   :  { %4833 = vrot.lane.b32.xlu1 %v15906_v61, %s15413_s19 }
 0x937   :  { %4599 = vrot.lane.b32.xlu0 %v15888_v49, %s15413_s19 }
 0x939   :  { %4831 = vrot.lane.b32.xlu1 %v15906_v61, %s15429_s17  ;;  %v18455_v61 = vmov 0.0  }
 0x93b   :  { %4597 = vrot.lane.b32.xlu0 %v15888_v49, %s15429_s17 }
 0x93d   :  { %4989 = vrot.lane.b32.xlu1 %v15920_v6, %s15413_s19 }
 0x93f   :  { %4755 = vrot.lane.b32.xlu0 %v15900_v57, %s15413_s19 }
 0x940   :  { %v3798_v41 = vpop.xlane.xlu0 %3797 }
 0x941   :  { %14761 = vrcp.f32 %v3798_v41  ;;  %4987 = vrot.lane.b32.xlu1 %v15920_v6, %s15429_s17 }
 0x943   :  { %4753 = vrot.lane.b32.xlu0 %v15900_v57, %s15429_s17  ;;  %v4366_v57 = vpop.permute.xlu1 %4365 }
 0x945   :  { %5153 = vrot.lane.b32.xlu1 %v15878_v43, %s15429_s17 }
 0x947   :  { %4911 = vrot.lane.b32.xlu0 %v15913_v2, %s15413_s19 }
 0x94b   :  { %v14762_v49 = vpop.eup %14761  ;;  %4909 = vrot.lane.b32.xlu0 %v15913_v2, %s15429_s17 }
 0x94c   :  { %v3826_v53 = vmul.f32 %v14762_v49, %v16436_v9 }
 0x94e   :  { %13829 = vmatmul.mubr.msk.f32.vlgmr.msra.gmra.mrb[44].mxu0 %vm1120_vm3, %v3826_v53 }
 0x94f   :  { %13837 = vmatpush3.msra.mxu0 %v16432_v5  ;;  %13838 = vmatprep.mubr.msk.f32.mxu0 %vm15423_vm1, %v18455_v61 }
 0x950   :  { %13846 = vmatprep.subr.mxu0 %v18455_v61 }
 0x968   :  { %v3795_v43 = vpop.xlane.xlu1 %3794 }
 0x969   :  { %14763 = vrcp.f32 %v3795_v43 }
 0x96c   :  { %v3801_v6 = vpop.xlane.xlu1 %3800 }
 0x96d   :  { %14765 = vrcp.f32 %v3801_v6 }
 0x970   :  { %v3807_v1 = vpop.xlane.xlu1 %3806 }
 0x971   :  { %14767 = vrcp.f32 %v3807_v1  ;;  %v3804_v39 = vpop.xlane.xlu0 %3803 }
 0x972   :  { %14769 = vrcp.f32 %v3804_v39 }
 0x973   :  { %v14764_v2 = vpop.eup %14763 }
 0x974   :  { %v3825_v9 = vmul.f32 %v14764_v2, %v16442_v60 }
 0x975   :  { %v3810_v10 = vpop.xlane.xlu0 %3809 }
 0x976   :  { %14771 = vrcp.f32 %v3810_v10  ;;  %13824 = vmatmul.mubr.msk.f32.vlgmr.msra.gmra.mrb[52].mxu1 %vm1120_vm3, %v3825_v9 }
 0x977   :  { %v14766_v5 = vpop.eup %14765  ;;  %13832 = vmatpush3.msra.mxu1 %v16430_v58  ;;  %13833 = vmatprep.mubr.msk.f32.mxu1 %vm15423_vm1, %v18455_v61 }
 0x978   :  { %13841 = vmatprep.subr.mxu1 %v18455_v61  ;;  %v3827_v52 = vmul.f32 %v14766_v5, %v16446_v44 }
 0x97a   :  { %13834 = vmatmul.mubr.msk.f32.vlgmr.msra.gmra.mrb[54].mxu1 %vm1120_vm3, %v3827_v52 }
 0x97b   :  { %v14768_v18 = vpop.eup %14767  ;;  %13842 = vmatpush3.msra.mxu1 %v16440_v50  ;;  %13843 = vmatprep.mubr.msk.f32.mxu1 %vm15423_vm1, %v18455_v61 }
 0x97c   :  { %v14770_v60 = vpop.eup %14769  ;;  %13851 = vmatprep.subr.mxu1 %v18455_v61  ;;  %v3829_v58 = vmul.f32 %v14768_v18, %v16450_v37 }
 0x97d   :  { %v3828_v35 = vmul.f32 %v14770_v60, %v16452_v31  ;;  %v4444_v31 = vpop.permute.xlu0 %4443 }
 0x97e   :  { %13844 = vmatmul.mubr.msk.f32.vlgmr.msra.gmra.mrb[56].mxu1 %vm1120_vm3, %v3829_v58 }
 0x97f   :  { %13839 = vmatmul.mubr.msk.f32.vlgmr.msra.gmra.mrb[46].mxu0 %vm1120_vm3, %v3828_v35  ;;  %13852 = vmatpush3.msra.mxu1 %v4290_v45 }
 0x980   :  { %v14772_v44 = vpop.eup %14771  ;;  %13847 = vmatpush3.msra.mxu0 %v16434_v25  ;;  %13848 = vmatprep.mubr.msk.f32.mxu0 %vm15423_vm1, %v18455_v61  ;;  %v4522_v25 = vpop.permute.xlu1 %4521 }
 0x981   :  { %13856 = vmatprep.subr.mxu0 %v18455_v61  ;;  %v3830_v50 = vmul.f32 %v14772_v44, %v16458_v11  ;;  %13853 = vmatprep.mubr.msk.f32.mxu1 %vm15423_vm1, %v18455_v61 }
 0x982   :  { %13861 = vmatprep.subr.mxu1 %v18455_v61 }
 0x983   :  { %13849 = vmatmul.mubr.msk.f32.vlgmr.msra.gmra.mrb[48].mxu0 %vm1120_vm3, %v3830_v50 }
 0x984   :  { %13857 = vmatpush3.msra.mxu0 %v4366_v57  ;;  %13858 = vmatprep.mubr.msk.f32.mxu0 %vm15423_vm1, %v18455_v61 }
 0x985   :  { %13866 = vmatprep.subr.mxu0 %v18455_v61 }
 0x9a5   :  { %v3813_v37 = vpop.xlane.xlu1 %3812 }
 0x9a6   :  { %14773 = vrcp.f32 %v3813_v37 }
 0x9a9   :  { %v4520_v0 = vpop.permute.xlu1 %4519 }
 0x9aa   :  { %v3816_v34 = vpop.xlane.xlu0 %3815 }
 0x9ab   :  { %14775 = vrcp.f32 %v3816_v34 }
 0x9ad   :  { %v4678_v11 = vpop.permute.xlu1 %4677 }
 0x9ae   :  { %v4442_v22 = vpop.permute.xlu0 %4441 }
 0x9b0   :  { %v14774_v26 = vpop.eup %14773 }
 0x9b1   :  { %v4676_v38 = vpop.permute.xlu1 %4675  ;;  %v3831_v20 = vmul.f32 %v14774_v26, %v16467_v48 }
 0x9b2   :  { %v4600_v21 = vpop.permute.xlu0 %4599 }
 0x9b3   :  { %13854 = vmatmul.mubr.msk.f32.vlgmr.msra.gmra.mrb[58].mxu1 %vm1120_vm3, %v3831_v20 }
 0x9b4   :  { %13862 = vmatpush3.xpose.msk.msra.mxu1 %vm506_vm2, %v4444_v31  ;;  %13863 = vmatprep.mubr.msk.f32.mxu1 %vm15423_vm1, %v18455_v61 }
 0x9b5   :  { %v14776_v54 = vpop.eup %14775  ;;  %v4834_v62 = vpop.permute.xlu1 %4833  ;;  %13871 = vmatprep.subr.mxu1 %v18455_v61 }
 0x9b6   :  { %v4598_v32 = vpop.permute.xlu0 %4597  ;;  %v3832_v45 = vmul.f32 %v14776_v54, %v16471_v3  ;;  %v15005_v54 = vld [vmem:[#allocation2 + $0x1] ss:$0 sm:$0xff] }
 0x9b7   :  { %13864 = vmatmul.mubr.msk.f32.vlgmr.msra.gmra.mrb[60].mxu1 %vm506_vm2, %v4442_v22 }
 0x9b8   :  { %13859 = vmatmul.mubr.msk.f32.vlgmr.msra.gmra.mrb[50].mxu0 %vm1120_vm3, %v3832_v45  ;;  %13872 = vmatpush3.xpose.msk.msra.mxu1 %vm506_vm2, %v4600_v21 }
 0x9b9   :  { %13867 = vmatpush3.xpose.msk.msra.mxu0 %vm506_vm2, %v4522_v25  ;;  %v4832_v48 = vpop.permute.xlu1 %4831  ;;  %13868 = vmatprep.mubr.msk.f32.mxu0 %vm15423_vm1, %v18455_v61 }
 0x9ba   :  { %v4756_v41 = vpop.permute.xlu0 %4755  ;;  %13873 = vmatprep.mubr.msk.f32.mxu1 %vm15423_vm1, %v18455_v61  ;;  %13876 = vmatprep.subr.mxu0 %v18455_v61 }
 0x9bb   :  { %13881 = vmatprep.subr.mxu1 %v18455_v61  ;;  %13874 = vmatmul.mubr.msk.f32.vlgmr.msra.gmra.mrb[62].mxu1 %vm506_vm2, %v4598_v32 }
 0x9bc   :  { %13869 = vmatmul.mubr.msk.f32.vlgmr.msra.gmra.mrb[52].mxu0 %vm506_vm2, %v4520_v0  ;;  %13882 = vmatpush3.xpose.msk.msra.mxu1 %vm506_vm2, %v4756_v41 }
 0x9bd   :  { %13877 = vmatpush3.xpose.msk.msra.mxu0 %vm506_vm2, %v4678_v11  ;;  %v4990_v3 = vpop.permute.xlu1 %4989  ;;  %13878 = vmatprep.mubr.msk.f32.mxu0 %vm15423_vm1, %v18455_v61 }
 0x9be   :  { %v4754_v49 = vpop.permute.xlu0 %4753  ;;  %13883 = vmatprep.mubr.msk.f32.mxu1 %vm15423_vm1, %v18455_v61  ;;  %13886 = vmatprep.subr.mxu0 %v18455_v61 }
 0x9bf   :  { %13884 = vmatmul.mubr.msk.f32.vlgmr.msra.gmra.mrb[64].mxu1 %vm506_vm2, %v4754_v49  ;;  %13891 = vmatprep.subr.mxu1 %v18455_v61 }
 0x9c0   :  { %13879 = vmatmul.mubr.msk.f32.vlgmr.msra.gmra.mrb[54].mxu0 %vm506_vm2, %v4676_v38  ;;  %13893 = vmatprep.mubr.msk.f32.mxu1 %vm15423_vm1, %v18455_v61 }
 0x9c1   :  { %13887 = vmatpush3.xpose.msk.msra.mxu0 %vm506_vm2, %v4834_v62  ;;  %v4988_v53 = vpop.permute.xlu1 %4987  ;;  %13888 = vmatprep.mubr.msk.f32.mxu0 %vm15423_vm1, %v18455_v61 }
 0x9c2   :  { %v4912_v57 = vpop.permute.xlu0 %4911  ;;  %13896 = vmatprep.subr.mxu0 %v18455_v61 }
 0x9c3   :  { %13892 = vmatpush3.xpose.msk.msra.mxu1 %vm506_vm2, %v4912_v57 }
 0x9c4   :  { %13889 = vmatmul.mubr.msk.f32.vlgmr.msra.gmra.mrb[56].mxu0 %vm506_vm2, %v4832_v48  ;;  %13901 = vmatprep.subr.mxu1 %v18455_v61 }
 0x9c5   :  { %13897 = vmatpush3.xpose.msk.msra.mxu0 %vm506_vm2, %v4990_v3  ;;  %v5154_v43 = vpop.permute.xlu1 %5153  ;;  %13898 = vmatprep.mubr.msk.f32.mxu0 %vm15423_vm1, %v18455_v61 }
 0x9c6   :  { %v4910_v6 = vpop.permute.xlu0 %4909  ;;  %13906 = vmatprep.subr.mxu0 %v18455_v61 }
 0x9c7   :  { %13894 = vmatmul.mubr.msk.f32.vlgmr.msra.gmra.mrb[66].mxu1 %vm506_vm2, %v4910_v6 }
 0x9c8   :  { %13902 = vmatpush3.msra.mxu1 %v5154_v43  ;;  %13899 = vmatmul.mubr.msk.f32.vlgmr.msra.gmra.mrb[58].mxu0 %vm506_vm2, %v4988_v53 }
 0x9c9   :  { %13903 = vmatprep.mubr.msk.f32.mxu1 %vm15423_vm1, %v18455_v61  ;;  %13911 = vmatprep.subr.mxu1 %v18455_v61 }
 0x9ca   :  { %13908 = vmatprep.mubr.msk.f32.mxu0 %vm15423_vm1, %v18455_v61 }
 0xa21   :  { %v16588_v1 = vpop.f32.mrb[44].mxu0 }
 0xa22   :  { %v13830_v39 = vpop.f32.mrb[45].mxu0 }
 0xa23   :  { %v15006_v39 = vld [vmem:[#allocation2 + $0x5] ss:$0 sm:$0xff] }
 0xa49   :  { %v16590_v2 = vpop.f32.mrb[52].mxu1 }
 0xa4a   :  { %v13825_v9 = vpop.f32.mrb[53].mxu1 }
 0xa4d   :  { %v16592_v10 = vpop.f32.mrb[54].mxu1 }
 0xa4e   :  { %v13835_v5 = vpop.f32.mrb[55].mxu1 }
 0xa51   :  { %v16594_v52 = vpop.f32.mrb[56].mxu1 }
 0xa52   :  { %v16596_v18 = vpop.f32.mrb[46].mxu0  ;;  %v13845_v60 = vpop.f32.mrb[57].mxu1 }
 0xa53   :  { %v13840_v58 = vpop.f32.mrb[47].mxu0 }
 0xa56   :  { %v16598_v35 = vpop.f32.mrb[48].mxu0 }
 0xa57   :  { %v13850_v44 = vpop.f32.mrb[49].mxu0 }
 0xa86   :  { %v16600_v50 = vpop.f32.mrb[58].mxu1 }
 0xa87   :  { %v13855_v25 = vpop.f32.mrb[59].mxu1 }
 0xa8a   :  { %v4515_v37 = vpop.f32.mrb[60].mxu1 }
 0xa8b   :  { %v16602_v31 = vpop.f32.mrb[50].mxu0  ;;  %v4516_v0 = vadd.f32 %v16401_v40, %v4515_v37  ;;  %v13865_v34 = vpop.f32.mrb[61].mxu1  ;;  %v15008_v37 = vld [vmem:[#allocation2 + $0x7] ss:$0 sm:$0xff] }
 0xa8c   :  { %v13860_v11 = vpop.f32.mrb[51].mxu0 }
 0xa8d   :  { %v5065_v22 = vsel %vm1120_vm3, %v4516_v0, -inf }
 0xa8e   :  { %5066 = vmax.xlane.f32.xlu0 %v5065_v22  ;;  %v4671_v26 = vpop.f32.mrb[62].mxu1 }
 0xa8f   :  { %v4593_v38 = vpop.f32.mrb[52].mxu0  ;;  %v4672_v20 = vadd.f32 %v16405_v29, %v4671_v26  ;;  %v13875_v21 = vpop.f32.mrb[63].mxu1 }
 0xa90   :  { %v4594_v62 = vadd.f32 %v15005_v54, %v4593_v38  ;;  %v13870_v32 = vpop.f32.mrb[53].mxu0 }
 0xa91   :  { %v5071_v45 = vsel %vm1120_vm3, %v4672_v20, -inf }
 0xa92   :  { %v5068_v48 = vsel %vm1120_vm3, %v4594_v62, -inf  ;;  %5072 = vmax.xlane.f32.xlu0 %v5071_v45  ;;  %v4827_v41 = vpop.f32.mrb[64].mxu1 }
 0xa93   :  { %5069 = vmax.xlane.f32.xlu1 %v5068_v48  ;;  %v4749_v40 = vpop.f32.mrb[54].mxu0  ;;  %v16610_v3 = vadd.f32 %v16412_v14, %v4827_v41  ;;  %v13885_v49 = vpop.f32.mrb[65].mxu1  ;;  %v15007_v14 = vld [vmem:[#allocation2 + $0x6] ss:$0 sm:$0xff] }
 0xa94   :  { %v4750_v53 = vadd.f32 %v16408_v16, %v4749_v40  ;;  %v13880_v57 = vpop.f32.mrb[55].mxu0 }
 0xa95   :  { %v5077_v29 = vsel %vm1120_vm3, %v16610_v3, -inf }
 0xa96   :  { %v5074_v43 = vsel %vm1120_vm3, %v4750_v53, -inf }
 0xa97   :  { %v4905_v6 = vpop.f32.mrb[56].mxu0  ;;  %5075 = vmax.xlane.f32.xlu0 %v5074_v43  ;;  %5078 = vmax.xlane.f32.xlu1 %v5077_v29 }
 0xa98   :  { %v4906_v9 = vadd.f32 %v15006_v39, %v4905_v6  ;;  %v13890_v5 = vpop.f32.mrb[57].mxu0 }
 0xa9a   :  { %v4983_v60 = vpop.f32.mrb[66].mxu1  ;;  %v5080_v58 = vsel %vm1120_vm3, %v4906_v9, -inf }
 0xa9b   :  { %v4984_v44 = vadd.f32 %v15007_v14, %v4983_v60  ;;  %v5061_v25 = vpop.f32.mrb[58].mxu0  ;;  %5081 = vmax.xlane.f32.xlu0 %v5080_v58  ;;  %v13895_v16 = vpop.f32.mrb[67].mxu1 }
 0xa9c   :  { %v5062_v34 = vadd.f32 %v15008_v37, %v5061_v25  ;;  %v13900_v11 = vpop.f32.mrb[59].mxu0 }
 0xa9d   :  { %v5083_v22 = vsel %vm1120_vm3, %v4984_v44, -inf }
 0xa9e   :  { %5084 = vmax.xlane.f32.xlu1 %v5083_v22  ;;  %v5086_v26 = vsel %vm1120_vm3, %v5062_v34, -inf }
 0xa9f   :  { %5087 = vmax.xlane.f32.xlu0 %v5086_v26 }
 0xaaf   :  { %5305 = vrot.lane.b32.xlu1 %v15890_v51, %s15429_s17 }
 0xab3   :  { %5381 = vrot.lane.b32.xlu1 %v15896_v55, %s15429_s17 }
 0xab5   :  { %5229 = vrot.lane.b32.xlu0 %v15884_v47, %s15429_s17 }
 0xb1b   :  { %v5067_v38 = vpop.xlane.xlu0 %5066 }
 0xb1c   :  { %v5089_v21 = vsub.f32 %v4516_v0, %v5067_v38 }
 0xb1e   :  { %v5097_v54 = vmul.f32 1.442695, %v5089_v21 }
 0xb1f   :  { %v5073_v32 = vpop.xlane.xlu0 %5072 }
 0xb20   :  { %14777 = vpow2.f32 %v5097_v54  ;;  %v5070_v45 = vpop.xlane.xlu1 %5069  ;;  %v5091_v48 = vsub.f32 %v4672_v20, %v5073_v32 }
 0xb21   :  { %v5090_v41 = vsub.f32 %v4594_v62, %v5070_v45 }
 0xb22   :  { %v5101_v40 = vmul.f32 1.442695, %v5091_v48 }
 0xb23   :  { %v5099_v49 = vmul.f32 1.442695, %v5090_v41 }
 0xb24   :  { %14779 = vpow2.f32 %v5101_v40  ;;  %v5076_v57 = vpop.xlane.xlu0 %5075  ;;  %v5079_v58 = vpop.xlane.xlu1 %5078 }
 0xb25   :  { %14781 = vpow2.f32 %v5099_v49  ;;  %v5092_v51 = vsub.f32 %v4750_v53, %v5076_v57  ;;  %v5093_v14 = vsub.f32 %v16610_v3, %v5079_v58  ;;  %v5884_v58 = vld [vmem:[#allocation5 + $0x8] sm:$0xff] }
 0xb27   :  { %v5103_v29 = vmul.f32 1.442695, %v5092_v51  ;;  %v5105_v16 = vmul.f32 1.442695, %v5093_v14  ;;  %v5885_v14 = vld [vmem:[#allocation5 + $0x10] sm:$0xff] }
 0xb28   :  { %v5082_v43 = vpop.xlane.xlu0 %5081 }
 0xb29   :  { %14783 = vpow2.f32 %v5103_v29  ;;  %v5094_v11 = vsub.f32 %v4906_v9, %v5082_v43 }
 0xb2a   :  { %v16625_v55 = vpop.eup %14777  ;;  %14785 = vpow2.f32 %v5105_v16  ;;  %v5886_v16 = vld [vmem:[#allocation5 + $0x18] sm:$0xff] }
 0xb2b   :  { %v5113_v47 = vsel %vm1120_vm3, %v16625_v55, 0.0  ;;  %v5085_v25 = vpop.xlane.xlu1 %5084  ;;  %v5107_v26 = vmul.f32 1.442695, %v5094_v11  ;;  %v5887_v11 = vld [vmem:[#allocation5 + $0x20] sm:$0xff] }
 0xb2c   :  { %v5088_v0 = vpop.xlane.xlu0 %5087  ;;  %5114 = vadd.xlane.f32.xlu1 %v5113_v47  ;;  %v5095_v37 = vsub.f32 %v4984_v44, %v5085_v25 }
 0xb2d   :  { %v5096_v38 = vsub.f32 %v5062_v34, %v5088_v0 }
 0xb2e   :  { %v16629_v6 = vpop.eup %14779  ;;  %v5109_v22 = vmul.f32 1.442695, %v5095_v37  ;;  %v14500_v37 = vpack.c.bf16 %v5886_v16, %v5885_v14 }
 0xb2f   :  { %v16631_v20 = vpop.eup %14781  ;;  %v5119_v62 = vsel %vm1120_vm3, %v16629_v6, 0.0  ;;  %v5111_v21 = vmul.f32 1.442695, %v5096_v38  ;;  %v5889_v38 = vld [vmem:[#allocation5 + $0x30] sm:$0xff] }
 0xb30   :  { %v5230_v39 = vpop.permute.xlu0 %5229  ;;  %v5116_v53 = vsel %vm1120_vm3, %v16631_v20, 0.0  ;;  %5120 = vadd.xlane.f32.xlu1 %v5119_v62  ;;  %14787 = vpow2.f32 %v5109_v22  ;;  %v5888_v22 = vld [vmem:[#allocation5 + $0x28] sm:$0xff] }
 0xb31   :  { %5117 = vadd.xlane.f32.xlu0 %v5116_v53  ;;  %13907 = vmatpush3.msra.mxu0 %v5230_v39  ;;  %14789 = vpow2.f32 %v5107_v26  ;;  %v14504_v26 = vpack.c.bf16 %v5888_v22, %v5887_v11 }
 0xb32   :  { %13916 = vmatprep.subr.mxu0 %v18455_v61  ;;  %14791 = vpow2.f32 %v5111_v21  ;;  %v5890_v21 = vld [vmem:[#allocation5 + $0x38] sm:$0xff] }
 0xb33   :  { %v16638_v5 = vpop.eup %14783 }
 0xb34   :  { %v5122_v60 = vsel %vm1120_vm3, %v16638_v5, 0.0  ;;  %v16647_v54 = vpop.eup %14785 }
 0xb35   :  { %5123 = vadd.xlane.f32.xlu0 %v5122_v60  ;;  %v5883_v60 = vld [vmem:[#allocation5] sm:$0xff] }
 0xb36   :  { %v14496_v25 = vpack.c.bf16 %v5884_v58, %v5883_v60 }
 0xb41   :  { %5533 = vrot.lane.b32.xlu1 %v15908_v63, %s15429_s17  ;;  %v5125_v63 = vsel %vm1120_vm3, %v16647_v54, 0.0 }
 0xb4b   :  { %5457 = vrot.lane.b32.xlu0 %v15902_v59, %s15429_s17  ;;  %v16651_v59 = vpop.eup %14787 }
 0xb4c   :  { %v16653_v3 = vpop.eup %14789  ;;  %v5131_v9 = vsel %vm1120_vm3, %v16651_v59, 0.0 }
 0xb4d   :  { %v5128_v44 = vsel %vm1120_vm3, %v16653_v3, 0.0  ;;  %v16659_v34 = vpop.eup %14791 }
 0xb4e   :  { %v5134_v32 = vsel %vm1120_vm3, %v16659_v34, 0.0 }
 0xb65   :  { %5126 = vadd.xlane.f32.xlu1 %v5125_v63 }
 0xb69   :  { %5132 = vadd.xlane.f32.xlu1 %v5131_v9 }
 0xb6a   :  { %5129 = vadd.xlane.f32.xlu0 %v5128_v44 }
 0xb6e   :  { %5135 = vadd.xlane.f32.xlu0 %v5134_v32 }
 0xb7a   :  { %5685 = vrot.lane.b32.xlu1 %v15922_v8, %s15429_s17 }
 0xb7e   :  { %5771 = vrot.lane.b32.xlu1 %v16383_v13, %s15413_s19 }
 0xb82   :  { %5803 = vrot.lane.b32.xlu1 %v16588_v1, %s15427_s29 }
 0xb84   :  { %5609 = vrot.lane.b32.xlu0 %v15916_v4, %s15429_s17  ;;  %v5306_v4 = vpop.permute.xlu1 %5305 }
 0xb86   :  { %5775 = vrot.lane.b32.xlu1 %v16391_v17, %s15413_s19 }
 0xb88   :  { %5769 = vrot.lane.b32.xlu0 %v16385_v7, %s15413_s19  ;;  %v5382_v8 = vpop.permute.xlu1 %5381 }
 0xb8a   :  { %5807 = vrot.lane.b32.xlu1 %v16596_v18, %s15427_s29 }
 0xb8c   :  { %5801 = vrot.lane.b32.xlu0 %v16590_v2, %s15427_s29 }
 0xb8e   :  { %5779 = vrot.lane.b32.xlu1 %v16393_v36, %s15413_s19 }
 0xb90   :  { %5773 = vrot.lane.b32.xlu0 %v16387_v15, %s15413_s19 }
 0xb94   :  { %5805 = vrot.lane.b32.xlu0 %v16592_v10, %s15427_s29 }
 0xb98   :  { %5777 = vrot.lane.b32.xlu0 %v16389_v12, %s15413_s19 }
 0xbb9   :  { %v5115_v13 = vpop.xlane.xlu1 %5114 }
 0xbba   :  { %14793 = vrcp.f32 %v5115_v13 }
 0xbbd   :  { %v5121_v7 = vpop.xlane.xlu1 %5120 }
 0xbbe   :  { %14795 = vrcp.f32 %v5121_v7  ;;  %v5118_v17 = vpop.xlane.xlu0 %5117 }
 0xbbf   :  { %14797 = vrcp.f32 %v5118_v17 }
 0xbc1   :  { %v5534_v40 = vpop.permute.xlu1 %5533 }
 0xbc2   :  { %v5124_v1 = vpop.xlane.xlu0 %5123 }
 0xbc3   :  { %14799 = vrcp.f32 %v5124_v1 }
 0xbc4   :  { %v14794_v2 = vpop.eup %14793 }
 0xbc5   :  { %v5145_v36 = vmul.f32 %v14794_v2, %v16625_v55 }
 0xbc6   :  { %v5458_v45 = vpop.permute.xlu0 %5457 }
 0xbc7   :  { %13904 = vmatmul.mubr.msk.f32.vlgmr.msra.gmra.mrb[68].mxu1 %vm1120_vm3, %v5145_v36 }
 0xbc8   :  { %v14796_v15 = vpop.eup %14795  ;;  %13912 = vmatpush3.msra.mxu1 %v5306_v4  ;;  %13913 = vmatprep.mubr.msk.f32.mxu1 %vm15423_vm1, %v18455_v61 }
 0xbc9   :  { %v14798_v12 = vpop.eup %14797  ;;  %13921 = vmatprep.subr.mxu1 %v18455_v61  ;;  %v5147_v10 = vmul.f32 %v14796_v15, %v16629_v6 }
 0xbca   :  { %v5146_v18 = vmul.f32 %v14798_v12, %v16631_v20 }
 0xbcb   :  { %13914 = vmatmul.mubr.msk.f32.vlgmr.msra.gmra.mrb[70].mxu1 %vm1120_vm3, %v5147_v10 }
 0xbcc   :  { %13909 = vmatmul.mubr.msk.f32.vlgmr.msra.gmra.mrb[60].mxu0 %vm1120_vm3, %v5146_v18  ;;  %13922 = vmatpush3.msra.mxu1 %v5458_v45 }
 0xbcd   :  { %13917 = vmatpush3.msra.mxu0 %v5382_v8  ;;  %13918 = vmatprep.mubr.msk.f32.mxu0 %vm15423_vm1, %v18455_v61  ;;  %v14800_v48 = vpop.eup %14799 }
 0xbce   :  { %13926 = vmatprep.subr.mxu0 %v18455_v61  ;;  %13923 = vmatprep.mubr.msk.f32.mxu1 %vm15423_vm1, %v18455_v61  ;;  %v5148_v41 = vmul.f32 %v14800_v48, %v16638_v5 }
 0xbcf   :  { %13931 = vmatprep.subr.mxu1 %v18455_v61 }
 0xbd0   :  { %13919 = vmatmul.mubr.msk.f32.vlgmr.msra.gmra.mrb[62].mxu0 %vm1120_vm3, %v5148_v41 }
 0xbd1   :  { %13927 = vmatpush3.msra.mxu0 %v5534_v40  ;;  %13928 = vmatprep.mubr.msk.f32.mxu0 %vm15423_vm1, %v18455_v61 }
 0xbd2   :  { %13936 = vmatprep.subr.mxu0 %v18455_v61 }
 0xbf2   :  { %v5127_v49 = vpop.xlane.xlu1 %5126 }
 0xbf3   :  { %14801 = vrcp.f32 %v5127_v49 }
 0xbf6   :  { %v5133_v57 = vpop.xlane.xlu1 %5132 }
 0xbf7   :  { %14803 = vrcp.f32 %v5133_v57  ;;  %v5130_v51 = vpop.xlane.xlu0 %5129 }
 0xbf8   :  { %14805 = vrcp.f32 %v5130_v51 }
 0xbfa   :  { %v5686_v39 = vpop.permute.xlu1 %5685 }
 0xbfb   :  { %v5136_v29 = vpop.xlane.xlu0 %5135 }
 0xbfc   :  { %14807 = vrcp.f32 %v5136_v29 }
 0xbfd   :  { %v14802_v43 = vpop.eup %14801 }
 0xbfe   :  { %v5149_v55 = vmul.f32 %v14802_v43, %v16647_v54  ;;  %v14508_v54 = vpack.c.bf16 %v5890_v21, %v5889_v38  ;;  %v5772_v2 = vpop.permute.xlu1 %5771 }
 0xbff   :  { %v5610_v47 = vpop.permute.xlu0 %5609  ;;  %v5858_v57 = vsel %vm506_vm2, %v16166_v30, %v5772_v2 }
 0xc00   :  { %13924 = vmatmul.mubr.msk.f32.vlgmr.msra.gmra.mrb[72].mxu1 %vm1120_vm3, %v5149_v55 }
 0xc01   :  { %v14804_v0 = vpop.eup %14803  ;;  %13932 = vmatpush3.msra.mxu1 %v5610_v47  ;;  %13933 = vmatprep.mubr.msk.f32.mxu1 %vm15423_vm1, %v18455_v61 }
 0xc02   :  { %v5151_v6 = vmul.f32 %v14804_v0, %v16651_v59  ;;  %v14806_v20 = vpop.eup %14805  ;;  %v5804_v15 = vpop.permute.xlu1 %5803 }
 0xc03   :  { %v5150_v62 = vmul.f32 %v14806_v20, %v16653_v3  ;;  %v5770_v1 = vpop.permute.xlu0 %5769  ;;  %v5867_v29 = vsel %vm5865_vm5, %v5858_v57, %v5804_v15 }
 0xc04   :  { %13934 = vmatmul.mubr.msk.f32.vlgmr.msra.gmra.mrb[74].mxu1 %vm1120_vm3, %v5151_v6  ;;  %v5857_v48 = vsel %vm506_vm2, %v16164_v19, %v5770_v1  ;;  %v15011_v1 = vld [vmem:[%s18452_s1 + $0x10] sm:$0xff] }
 0xc05   :  { %13929 = vmatmul.mubr.msk.f32.vlgmr.msra.gmra.mrb[64].mxu0 %vm1120_vm3, %v5150_v62 }
 0xc06   :  { %v14808_v53 = vpop.eup %14807  ;;  %13937 = vmatpush3.msra.mxu0 %v5686_v39  ;;  %13938 = vmatprep.mubr.msk.f32.mxu0 %vm15423_vm1, %v18455_v61 }
 0xc07   :  { %v5152_v5 = vmul.f32 %v14808_v53, %v16659_v34  ;;  %14497 = vmatprep.subr.bf16.mxu0 %v14496_v25  ;;  %v5802_v36 = vpop.permute.xlu0 %5801 }
 0xc08   :  { %v5866_v41 = vsel %vm5865_vm5, %v5857_v48, %v5802_v36  ;;  %v15012_v36 = vld [vmem:[%s18452_s1 + $0x18] sm:$0xff] }
 0xc09   :  { %13939 = vmatmul.mubr.msk.f32.vlgmr.msra.gmra.mrb[66].mxu0 %vm1120_vm3, %v5152_v5 }
 0xc0a   :  { %14499 = vmatpush3.bf16.msra.mxu0 %v14496_v25 }
 0xc0b   :  { %14501 = vmatprep.subr.bf16.mxu0 %v14500_v37  ;;  %v5774_v12 = vpop.permute.xlu0 %5773 }
 0xc0c   :  { %v5859_v19 = vsel %vm506_vm2, %v16168_v33, %v5774_v12 }
 0xc0e   :  { %14503 = vmatpush3.bf16.msra.mxu0 %v14500_v37 }
 0xc0f   :  { %14505 = vmatprep.subr.bf16.mxu0 %v14504_v26  ;;  %v5806_v10 = vpop.permute.xlu0 %5805 }
 0xc10   :  { %v5868_v47 = vsel %vm5865_vm5, %v5859_v19, %v5806_v10 }
 0xc12   :  { %14507 = vmatpush3.bf16.msra.mxu0 %v14504_v26 }
 0xc13   :  { %14509 = vmatprep.subr.bf16.mxu0 %v14508_v54  ;;  %v5778_v45 = vpop.permute.xlu0 %5777 }
 0xc14   :  { %v5861_v5 = vsel %vm506_vm2, %v16172_v42, %v5778_v45 }
 0xc16   :  { %14511 = vmatpush3.bf16.msra.mxu0 %v14508_v54 }
 0xc9a   :  { %v5225_v63 = vpop.f32.mrb[68].mxu1 }
 0xc9b   :  { %v13905_v59 = vpop.f32.mrb[69].mxu1  ;;  %5833 = vrot.lane.b32.xlu0 %v5225_v63, %s15425_s16 }
 0xc9e   :  { %v5377_v3 = vpop.f32.mrb[70].mxu1 }
 0xc9f   :  { %v5301_v9 = vpop.f32.mrb[60].mxu0  ;;  %v13915_v44 = vpop.f32.mrb[71].mxu1  ;;  %5809 = vrot.lane.b32.xlu0 %v16594_v52, %s15427_s29 }
 0xca0   :  { %5835 = vrot.lane.b32.xlu1 %v5301_v9, %s15425_s16  ;;  %v13910_v34 = vpop.f32.mrb[61].mxu0 }
 0xca3   :  { %5837 = vrot.lane.b32.xlu0 %v5377_v3, %s15425_s16  ;;  %v5453_v32 = vpop.f32.mrb[62].mxu0  ;;  %v13092_v3 = vld [vmem:[#allocation7] ss:$0 sm:$0xff] }
 0xca4   :  { %5811 = vrot.lane.b32.xlu1 %v16598_v35, %s15427_s29  ;;  %v13920_v4 = vpop.f32.mrb[63].mxu0 }
 0xca5   :  { %v15009_v4 = vld [vmem:[%s18452_s1 + $0x8] sm:$0xff] }
 0xca7   :  { %5781 = vrot.lane.b32.xlu0 %v16399_v24, %s15413_s19 }
 0xca8   :  { %5839 = vrot.lane.b32.xlu1 %v5453_v32, %s15425_s16 }
 0xcac   :  { %5783 = vrot.lane.b32.xlu1 %v16395_v28, %s15413_s19 }
 0xcd3   :  { %v5529_v8 = vpop.f32.mrb[72].mxu1 }
 0xcd4   :  { %5841 = vrot.lane.b32.xlu0 %v5529_v8, %s15425_s16  ;;  %v13925_v52 = vpop.f32.mrb[73].mxu1 }
 0xcd7   :  { %v5681_v13 = vpop.f32.mrb[74].mxu1 }
 0xcd8   :  { %5813 = vrot.lane.b32.xlu0 %v16600_v50, %s15427_s29  ;;  %v13935_v7 = vpop.f32.mrb[75].mxu1  ;;  %v5605_v17 = vpop.f32.mrb[64].mxu0 }
 0xcd9   :  { %5843 = vrot.lane.b32.xlu1 %v5605_v17, %s15425_s16  ;;  %v13930_v35 = vpop.f32.mrb[65].mxu0  ;;  %v5776_v50 = vpop.permute.xlu1 %5775 }
 0xcda   :  { %v5860_v30 = vsel %vm506_vm2, %v16170_v23, %v5776_v50 }
 0xcdc   :  { %5845 = vrot.lane.b32.xlu0 %v5681_v13, %s15425_s16  ;;  %v5757_v24 = vpop.f32.mrb[66].mxu0 }
 0xcdd   :  { %5815 = vrot.lane.b32.xlu1 %v16602_v31, %s15427_s29  ;;  %v13940_v28 = vpop.f32.mrb[67].mxu0  ;;  %v5808_v18 = vpop.permute.xlu1 %5807 }
 0xcde   :  { %v5869_v62 = vsel %vm5865_vm5, %v5860_v30, %v5808_v18 }
 0xce1   :  { %5847 = vrot.lane.b32.xlu1 %v5757_v24, %s15425_s16  ;;  %v5780_v40 = vpop.permute.xlu1 %5779 }
 0xce2   :  { %v5862_v16 = vsel %vm506_vm2, %v16174_v46, %v5780_v40  ;;  %v15014_v40 = vld [vmem:[%s18452_s1 + $0x20] sm:$0xff] }
 0xd0d   :  { %v5834_v31 = vpop.permute.xlu0 %5833 }
 0xd0e   :  { %v5875_v49 = vsel %vm5874_vm4, %v5866_v41, %v5834_v31  ;;  %v15013_v41 = vld [vmem:[%s18452_s1 + $0x28] sm:$0xff] }
 0xd0f   :  { %13957 = vmatprep.mubr.msk.f32.mxu0 %vm317_vm0, %v5875_v49 }
 0xd11   :  { %v5810_v51 = vpop.permute.xlu0 %5809 }
 0xd12   :  { %v5836_v43 = vpop.permute.xlu1 %5835  ;;  %v5870_v60 = vsel %vm5865_vm5, %v5861_v5, %v5810_v51 }
 0xd13   :  { %v5876_v55 = vsel %vm5874_vm4, %v5867_v29, %v5836_v43 }
 0xd14   :  { %13958 = vmatmul.mubr.msk.f32.vlgmr.msra.gmra.mrb[68].mxu0 %vm317_vm0, %v5876_v55 }
 0xd15   :  { %v5838_v0 = vpop.permute.xlu0 %5837 }
 0xd16   :  { %v5812_v6 = vpop.permute.xlu1 %5811  ;;  %v5877_v20 = vsel %vm5874_vm4, %v5868_v47, %v5838_v0  ;;  %v15015_v47 = vld [vmem:[%s18452_s1 + $0x38] sm:$0xff] }
 0xd17   :  { %13960 = vmatprep.mubr.msk.f32.mxu0 %vm317_vm0, %v5877_v20  ;;  %v5871_v37 = vsel %vm5865_vm5, %v5862_v16, %v5812_v6  ;;  %v15016_v6 = vld [vmem:[%s18452_s1 + $0x30] sm:$0xff] }
 0xd19   :  { %v5782_v33 = vpop.permute.xlu0 %5781 }
 0xd1a   :  { %v5840_v39 = vpop.permute.xlu1 %5839  ;;  %v5863_v22 = vsel %vm506_vm2, %v16176_v56, %v5782_v33 }
 0xd1b   :  { %v5878_v53 = vsel %vm5874_vm4, %v5869_v62, %v5840_v39 }
 0xd1c   :  { %13961 = vmatmul.mubr.msk.f32.gmra.mrb[70].mxu0 %vm317_vm0, %v5878_v53 }
 0xd1e   :  { %v5784_v25 = vpop.permute.xlu1 %5783 }
 0xd1f   :  { %v5864_v46 = vsel %vm506_vm2, %v16178_v27, %v5784_v25  ;;  %v15010_v27 = vld [vmem:[%s18452_s1] sm:$0xff] }
 0xd46   :  { %v5842_v58 = vpop.permute.xlu0 %5841 }
 0xd47   :  { %v5879_v14 = vsel %vm5874_vm4, %v5870_v60, %v5842_v58 }
 0xd48   :  { %13963 = vmatprep.mubr.msk.f32.mxu0 %vm317_vm0, %v5879_v14 }
 0xd4a   :  { %v5814_v23 = vpop.permute.xlu0 %5813 }
 0xd4b   :  { %v5844_v11 = vpop.permute.xlu1 %5843  ;;  %v5872_v26 = vsel %vm5865_vm5, %v5863_v22, %v5814_v23 }
 0xd4c   :  { %v5880_v42 = vsel %vm5874_vm4, %v5871_v37, %v5844_v11 }
 0xd4d   :  { %13964 = vmatmul.mubr.msk.f32.gmra.mrb[72].mxu0 %vm317_vm0, %v5880_v42 }
 0xd4e   :  { %v5846_v38 = vpop.permute.xlu0 %5845 }
 0xd4f   :  { %v5881_v21 = vsel %vm5874_vm4, %v5872_v26, %v5846_v38  ;;  %v5816_v54 = vpop.permute.xlu1 %5815 }
 0xd50   :  { %13966 = vmatprep.mubr.msk.f32.mxu0 %vm317_vm0, %v5881_v21  ;;  %v5873_v63 = vsel %vm5865_vm5, %v5864_v46, %v5816_v54 }
 0xd53   :  { %v5848_v59 = vpop.permute.xlu1 %5847 }
 0xd54   :  { %v5882_v56 = vsel %vm5874_vm4, %v5873_v63, %v5848_v59  ;;  %v6170_v59 = vld [vmem:[#allocation11] sm:$0xff] }
 0xd55   :  { %13967 = vmatmul.mubr.msk.f32.gmra.mrb[74].mxu0 %vm317_vm0, %v5882_v56  ;;  %v6171_v56 = vld [vmem:[#allocation11 + $0x8] sm:$0xff] }
 0xde7   :  { %v13959_v9 = vpop.f32.mrb[68].mxu0 }
 0xde8   :  { %v5994_v44 = vadd.f32 %v13959_v9, %v13092_v3  ;;  %v5988_v34 = vpop.f32.mrb[69].mxu0  ;;  %v6172_v9 = vld [vmem:[#allocation11 + $0x10] sm:$0xff] }
 0xde9   :  { %v5989_v32 = vadd.f32 %v13092_v3, %v5988_v34 }
 0xdea   :  { %v6028_v8 = vadd.f32 %v15009_v4, %v5994_v44  ;;  %v6173_v44 = vld [vmem:[#allocation11 + $0x18] sm:$0xff]  ;;  %v6175_v4 = vld [vmem:[#allocation11 + $0x28] sm:$0xff] }
 0xdeb   :  { %v6027_v52 = vadd.f32 %v15010_v27, %v5989_v32  ;;  %v14516_v34 = vpack.c.bf16 %v6173_v44, %v6172_v9  ;;  %v6174_v32 = vld [vmem:[#allocation11 + $0x20] sm:$0xff]  ;;  %v6176_v27 = vld [vmem:[#allocation11 + $0x30] sm:$0xff] }
 0xdec   :  { %v6040_v13 = vsel %vm317_vm0, %v6028_v8, 0.0 }
 0xded   :  { %6041 = vadd.xlane.f32.xlu1 %v6040_v13  ;;  %v6037_v7 = vsel %vm317_vm0, %v6027_v52, 0.0 }
 0xdee   :  { %6038 = vadd.xlane.f32.xlu0 %v6037_v7 }
 0xdef   :  { %v13962_v17 = vpop.f32.mrb[70].mxu0 }
 0xdf0   :  { %v5998_v35 = vpop.f32.mrb[71].mxu0  ;;  %v6004_v24 = vadd.f32 %v13962_v17, %v13092_v3 }
 0xdf1   :  { %v5999_v28 = vadd.f32 %v13092_v3, %v5998_v35 }
 0xdf2   :  { %v6030_v15 = vadd.f32 %v15012_v36, %v6004_v24 }
 0xdf3   :  { %v6029_v2 = vadd.f32 %v15011_v1, %v5999_v28 }
 0xdf4   :  { %v6046_v50 = vsel %vm317_vm0, %v6030_v15, 0.0 }
 0xdf5   :  { %v6043_v12 = vsel %vm317_vm0, %v6029_v2, 0.0 }
 0xdf6   :  { %6044 = vadd.xlane.f32.xlu0 %v6043_v12 }
 0xdfa   :  { %6047 = vadd.xlane.f32.xlu0 %v6046_v50 }
 0xe20   :  { %v13965_v10 = vpop.f32.mrb[72].mxu0 }
 0xe21   :  { %v6014_v18 = vadd.f32 %v13965_v10, %v13092_v3  ;;  %v6008_v45 = vpop.f32.mrb[73].mxu0 }
 0xe22   :  { %v6009_v48 = vadd.f32 %v13092_v3, %v6008_v45 }
 0xe23   :  { %v16798_v31 = vadd.f32 %v15013_v41, %v6014_v18 }
 0xe24   :  { %v16803_v49 = vadd.f32 %v15014_v40, %v6009_v48 }
 0xe25   :  { %v6052_v57 = vsel %vm317_vm0, %v16798_v31, 0.0 }
 0xe26   :  { %6053 = vadd.xlane.f32.xlu0 %v6052_v57  ;;  %v6049_v51 = vsel %vm317_vm0, %v16803_v49, 0.0 }
 0xe27   :  { %6050 = vadd.xlane.f32.xlu1 %v6049_v51  ;;  %v6322_v51 = vld [vmem:[%s18456_s12] sm:$0xff] }
 0xe28   :  { %v13968_v29 = vpop.f32.mrb[74].mxu0 }
 0xe29   :  { %v6024_v43 = vadd.f32 %v13968_v29, %v13092_v3  ;;  %v6018_v55 = vpop.f32.mrb[75].mxu0  ;;  %v6323_v29 = vld [vmem:[%s18456_s12 + $0x8] sm:$0xff] }
 0xe2a   :  { %v6019_v19 = vadd.f32 %v13092_v3, %v6018_v55  ;;  %v14512_v3 = vpack.c.bf16 %v6171_v56, %v6170_v59  ;;  %v14528_v55 = vpack.c.bf16 %v6323_v29, %v6322_v51 }
 0xe2b   :  { %v16812_v0 = vadd.f32 %v15015_v47, %v6024_v43  ;;  %v6324_v43 = vld [vmem:[%s18456_s12 + $0x10] sm:$0xff] }
 0xe2c   :  { %v16817_v20 = vadd.f32 %v15016_v6, %v6019_v19  ;;  %14513 = vmatprep.subr.bf16.mxu0 %v14512_v3  ;;  %v6325_v19 = vld [vmem:[%s18456_s12 + $0x18] sm:$0xff]  ;;  %v6327_v6 = vld [vmem:[%s18456_s12 + $0x28] sm:$0xff]  ;;  %14529 = vmatprep.subr.bf16.mxu1 %v14528_v55 }
 0xe2d   :  { %v6058_v30 = vsel %vm317_vm0, %v16812_v0, 0.0  ;;  %14515 = vmatpush3.bf16.msra.mxu0 %v14512_v3  ;;  %v14532_v47 = vpack.c.bf16 %v6325_v19, %v6324_v43  ;;  %14531 = vmatpush3.bf16.msra.mxu1 %v14528_v55 }
 0xe2e   :  { %6059 = vadd.xlane.f32.xlu0 %v6058_v30  ;;  %v6055_v62 = vsel %vm317_vm0, %v16817_v20, 0.0  ;;  %14517 = vmatprep.subr.bf16.mxu0 %v14516_v34  ;;  %v6328_v30 = vld [vmem:[%s18456_s12 + $0x30] sm:$0xff] }
 0xe2f   :  { %6056 = vadd.xlane.f32.xlu1 %v6055_v62  ;;  %14533 = vmatprep.subr.bf16.mxu1 %v14532_v47  ;;  %v6329_v62 = vld [vmem:[%s18456_s12 + $0x38] sm:$0xff] }
 0xe31   :  { %14519 = vmatpush3.bf16.msra.mxu0 %v14516_v34  ;;  %14535 = vmatpush3.bf16.msra.mxu1 %v14532_v47 }
 0xe7a   :  { %v6042_v39 = vpop.xlane.xlu1 %6041 }
 0xe7b   :  { %v6063_v53 = vmul.f32 0.015625, %v6042_v39  ;;  %v6039_v33 = vpop.xlane.xlu0 %6038  ;;  %v14540_v39 = vpack.c.bf16 %v6329_v62, %v6328_v30 }
 0xe7c   :  { %v6062_v5 = vmul.f32 0.015625, %v6039_v33  ;;  %v6331_v33 = vld [vmem:[%s18456_s12 + $0x48] sm:$0xff] }
 0xe7d   :  { %v16823_v60 = vsub.f32 %v6028_v8, %v6063_v53  ;;  %v14520_v8 = vpack.c.bf16 %v6175_v4, %v6174_v32  ;;  %v6330_v53 = vld [vmem:[%s18456_s12 + $0x40] sm:$0xff]  ;;  %v13101_v32 = vld [vmem:[#allocation8] ss:$0 sm:$0xff] }
 0xe7e   :  { %v16825_v58 = vsub.f32 %v6027_v52, %v6062_v5  ;;  %v6177_v52 = vld [vmem:[#allocation11 + $0x38] sm:$0xff]  ;;  %v14544_v5 = vpack.c.bf16 %v6331_v33, %v6330_v53 }
 0xe7f   :  { %v6079_v14 = vmul.f32 %v16823_v60, %v16823_v60  ;;  %14521 = vmatprep.subr.bf16.mxu0 %v14520_v8  ;;  %v14524_v13 = vpack.c.bf16 %v6177_v52, %v6176_v27 }
 0xe80   :  { %v6078_v25 = vmul.f32 %v16825_v58, %v16825_v58  ;;  %14523 = vmatpush3.bf16.msra.mxu0 %v14520_v8 }
 0xe81   :  { %v6089_v23 = vsel %vm317_vm0, %v6079_v14, 0.0  ;;  %14525 = vmatprep.subr.bf16.mxu0 %v14524_v13  ;;  %v6332_v14 = vld [vmem:[%s18456_s12 + $0x50] sm:$0xff] }
 0xe82   :  { %6090 = vadd.xlane.f32.xlu0 %v6089_v23  ;;  %v6086_v16 = vsel %vm317_vm0, %v6078_v25, 0.0  ;;  %v6333_v25 = vld [vmem:[%s18456_s12 + $0x58] sm:$0xff] }
 0xe83   :  { %6087 = vadd.xlane.f32.xlu1 %v6086_v16  ;;  %v6045_v37 = vpop.xlane.xlu0 %6044  ;;  %v14548_v23 = vpack.c.bf16 %v6333_v25, %v6332_v14  ;;  %v6334_v16 = vld [vmem:[%s18456_s12 + $0x60] sm:$0xff] }
 0xe84   :  { %v6064_v11 = vmul.f32 0.015625, %v6045_v37  ;;  %14527 = vmatpush3.bf16.msra.mxu0 %v14524_v13  ;;  %v6335_v37 = vld [vmem:[%s18456_s12 + $0x68] sm:$0xff] }
 0xe86   :  { %v16833_v22 = vsub.f32 %v6029_v2, %v6064_v11  ;;  %v14552_v11 = vpack.c.bf16 %v6335_v37, %v6334_v16  ;;  %v13103_v37 = vld [vmem:[#allocation13] ss:$0 sm:$0xff] }
 0xe87   :  { %v6048_v42 = vpop.xlane.xlu0 %6047 }
 0xe88   :  { %v6065_v26 = vmul.f32 0.015625, %v6048_v42  ;;  %v6080_v38 = vmul.f32 %v16833_v22, %v16833_v22 }
 0xe8a   :  { %v16837_v21 = vsub.f32 %v6030_v15, %v6065_v26  ;;  %v6092_v54 = vsel %vm317_vm0, %v6080_v38, 0.0 }
 0xe8b   :  { %6093 = vadd.xlane.f32.xlu1 %v6092_v54 }
 0xe8c   :  { %v6081_v46 = vmul.f32 %v16837_v21, %v16837_v21 }
 0xe8e   :  { %v6095_v63 = vsel %vm317_vm0, %v6081_v46, 0.0 }
 0xe8f   :  { %6096 = vadd.xlane.f32.xlu0 %v6095_v63 }
 0xeb3   :  { %v6054_v7 = vpop.xlane.xlu0 %6053 }
 0xeb4   :  { %v6067_v17 = vmul.f32 0.015625, %v6054_v7  ;;  %v6051_v35 = vpop.xlane.xlu1 %6050  ;;  %v13102_v7 = vld [vmem:[#allocation10] ss:$0 sm:$0xff] }
 0xeb5   :  { %v6066_v24 = vmul.f32 0.015625, %v6051_v35 }
 0xeb6   :  { %v16844_v28 = vsub.f32 %v16798_v31, %v6067_v17 }
 0xeb7   :  { %v16847_v1 = vsub.f32 %v16803_v49, %v6066_v24 }
 0xeb8   :  { %v6083_v2 = vmul.f32 %v16844_v28, %v16844_v28 }
 0xeb9   :  { %v6082_v36 = vmul.f32 %v16847_v1, %v16847_v1 }
 0xeba   :  { %v6101_v15 = vsel %vm317_vm0, %v6083_v2, 0.0 }
 0xebb   :  { %6102 = vadd.xlane.f32.xlu0 %v6101_v15  ;;  %v6060_v12 = vpop.xlane.xlu0 %6059  ;;  %v6098_v50 = vsel %vm317_vm0, %v6082_v36, 0.0 }
 0xebc   :  { %v6069_v10 = vmul.f32 0.015625, %v6060_v12  ;;  %v6057_v18 = vpop.xlane.xlu1 %6056  ;;  %6099 = vadd.xlane.f32.xlu1 %v6098_v50 }
 0xebd   :  { %v6068_v45 = vmul.f32 0.015625, %v6057_v18 }
 0xebe   :  { %v16856_v48 = vsub.f32 %v16812_v0, %v6069_v10  ;;  %v6326_v0 = vld [vmem:[%s18456_s12 + $0x20] sm:$0xff] }
 0xebf   :  { %v16859_v41 = vsub.f32 %v16817_v20, %v6068_v45  ;;  %v14536_v20 = vpack.c.bf16 %v6327_v6, %v6326_v0 }
 0xec0   :  { %v6085_v31 = vmul.f32 %v16856_v48, %v16856_v48 }
 0xec1   :  { %v6084_v40 = vmul.f32 %v16859_v41, %v16859_v41  ;;  %14537 = vmatprep.subr.bf16.mxu1 %v14536_v20 }
 0xec2   :  { %v6107_v49 = vsel %vm317_vm0, %v6085_v31, 0.0  ;;  %14539 = vmatpush3.bf16.msra.mxu1 %v14536_v20 }
 0xec3   :  { %6108 = vadd.xlane.f32.xlu0 %v6107_v49  ;;  %v6104_v57 = vsel %vm317_vm0, %v6084_v40, 0.0  ;;  %14541 = vmatprep.subr.bf16.mxu1 %v14540_v39 }
 0xec4   :  { %6105 = vadd.xlane.f32.xlu1 %v6104_v57 }
 0xec6   :  { %14543 = vmatpush3.bf16.msra.mxu1 %v14540_v39 }
 0xec7   :  { %14545 = vmatprep.subr.bf16.mxu1 %v14544_v5 }
 0xeca   :  { %14547 = vmatpush3.bf16.msra.mxu1 %v14544_v5 }
 0xecb   :  { %14549 = vmatprep.subr.bf16.mxu1 %v14548_v23 }
 0xece   :  { %14551 = vmatpush3.bf16.msra.mxu1 %v14548_v23 }
 0xecf   :  { %14553 = vmatprep.subr.bf16.mxu1 %v14552_v11 }
 0xed2   :  { %14555 = vmatpush3.bf16.msra.mxu1 %v14552_v11 }
 0xf0f   :  { %v6091_v42 = vpop.xlane.xlu0 %6090 }
 0xf10   :  { %v6111_v26 = vmul.f32 0.015625, %v6091_v42  ;;  %v6088_v38 = vpop.xlane.xlu1 %6087 }
 0xf11   :  { %v6110_v54 = vmul.f32 0.015625, %v6088_v38 }
 0xf12   :  { %v6119_v46 = vadd.f32 1e-05, %v6111_v26 }
 0xf13   :  { %v6118_v63 = vadd.f32 1e-05, %v6110_v54 }
 0xf14   :  { %14809 = vrsqrt.f32 %v6119_v46 }
 0xf15   :  { %14811 = vrsqrt.f32 %v6118_v63 }
 0xf18   :  { %v6094_v59 = vpop.xlane.xlu1 %6093 }
 0xf19   :  { %v6112_v56 = vmul.f32 0.015625, %v6094_v59 }
 0xf1b   :  { %v6120_v3 = vadd.f32 1e-05, %v6112_v56 }
 0xf1c   :  { %v6097_v9 = vpop.xlane.xlu0 %6096 }
 0xf1d   :  { %14813 = vrsqrt.f32 %v6120_v3  ;;  %v6113_v44 = vmul.f32 0.015625, %v6097_v9 }
 0xf1e   :  { %v14810_v34 = vpop.eup %14809 }
 0xf1f   :  { %v14812_v4 = vpop.eup %14811  ;;  %v6135_v8 = vmul.f32 %v14810_v34, %v16823_v60  ;;  %v6121_v27 = vadd.f32 1e-05, %v6113_v44 }
 0xf20   :  { %v6134_v52 = vmul.f32 %v14812_v4, %v16825_v58 }
 0xf21   :  { %v6149_v13 = vmul.f32 %v13101_v32, %v6135_v8  ;;  %14815 = vrsqrt.f32 %v6121_v27 }
 0xf22   :  { %v6148_v17 = vmul.f32 %v13101_v32, %v6134_v52 }
 0xf23   :  { %v16913_v24 = vadd.f32 %v13102_v7, %v6149_v13 }
 0xf24   :  { %v16911_v35 = vadd.f32 %v13102_v7, %v6148_v17 }
 0xf26   :  { %13985 = vmatprep.mubr.msk.f32.mxu0 %vm317_vm0, %v16911_v35 }
 0xf27   :  { %v14814_v2 = vpop.eup %14813  ;;  %13986 = vmatmul.mubr.msk.f32.vlgmr.msra.gmra.mrb[76].mxu0 %vm317_vm0, %v16913_v24 }
 0xf28   :  { %v6136_v60 = vmul.f32 %v14814_v2, %v16833_v22 }
 0xf2a   :  { %v6150_v36 = vmul.f32 %v13101_v32, %v6136_v60 }
 0xf2b   :  { %v14816_v15 = vpop.eup %14815 }
 0xf2c   :  { %v16920_v58 = vadd.f32 %v13102_v7, %v6150_v36  ;;  %v6137_v12 = vmul.f32 %v14816_v15, %v16837_v21  ;;  %v13112_v15 = vld [vmem:[#allocation14] ss:$0 sm:$0xff] }
 0xf2e   :  { %13988 = vmatprep.mubr.msk.f32.mxu0 %vm317_vm0, %v16920_v58  ;;  %v6151_v50 = vmul.f32 %v13101_v32, %v6137_v12 }
 0xf30   :  { %v16925_v10 = vadd.f32 %v13102_v7, %v6151_v50 }
 0xf32   :  { %13989 = vmatmul.mubr.msk.f32.gmra.mrb[78].mxu0 %vm317_vm0, %v16925_v10 }
 0xf48   :  { %v6103_v18 = vpop.xlane.xlu0 %6102 }
 0xf49   :  { %v6115_v45 = vmul.f32 0.015625, %v6103_v18  ;;  %v6100_v31 = vpop.xlane.xlu1 %6099 }
 0xf4a   :  { %v6114_v40 = vmul.f32 0.015625, %v6100_v31 }
 0xf4b   :  { %v6123_v22 = vadd.f32 1e-05, %v6115_v45 }
 0xf4c   :  { %v6122_v49 = vadd.f32 1e-05, %v6114_v40 }
 0xf4d   :  { %14817 = vrsqrt.f32 %v6123_v22 }
 0xf4e   :  { %14819 = vrsqrt.f32 %v6122_v49 }
 0xf50   :  { %v6109_v57 = vpop.xlane.xlu0 %6108 }
 0xf51   :  { %v6117_v51 = vmul.f32 0.015625, %v6109_v57  ;;  %v6106_v21 = vpop.xlane.xlu1 %6105 }
 0xf52   :  { %v6116_v29 = vmul.f32 0.015625, %v6106_v21 }
 0xf53   :  { %v6125_v43 = vadd.f32 1e-05, %v6117_v51 }
 0xf54   :  { %v6124_v55 = vadd.f32 1e-05, %v6116_v29 }
 0xf55   :  { %14821 = vrsqrt.f32 %v6125_v43 }
 0xf56   :  { %14823 = vrsqrt.f32 %v6124_v55 }
 0xf57   :  { %v14818_v19 = vpop.eup %14817 }
 0xf58   :  { %v14820_v47 = vpop.eup %14819  ;;  %v6139_v0 = vmul.f32 %v14818_v19, %v16844_v28 }
 0xf59   :  { %v6138_v6 = vmul.f32 %v14820_v47, %v16847_v1 }
 0xf5a   :  { %v6153_v20 = vmul.f32 %v13101_v32, %v6139_v0 }
 0xf5b   :  { %v6152_v30 = vmul.f32 %v13101_v32, %v6138_v6 }
 0xf5c   :  { %v16933_v39 = vadd.f32 %v13102_v7, %v6153_v20 }
 0xf5d   :  { %v16931_v62 = vadd.f32 %v13102_v7, %v6152_v30 }
 0xf5f   :  { %v14822_v53 = vpop.eup %14821  ;;  %13991 = vmatprep.mubr.msk.f32.mxu0 %vm317_vm0, %v16931_v62 }
 0xf60   :  { %v14824_v33 = vpop.eup %14823  ;;  %13992 = vmatmul.mubr.msk.f32.gmra.mrb[80].mxu0 %vm317_vm0, %v16933_v39  ;;  %v6141_v5 = vmul.f32 %v14822_v53, %v16856_v48  ;;  %v6336_v48 = vld [vmem:[%s18456_s12 + $0x70] sm:$0xff] }
 0xf61   :  { %v6140_v28 = vmul.f32 %v14824_v33, %v16859_v41  ;;  %v6337_v41 = vld [vmem:[%s18456_s12 + $0x78] sm:$0xff] }
 0xf62   :  { %v6155_v14 = vmul.f32 %v13101_v32, %v6141_v5  ;;  %v14556_v16 = vpack.c.bf16 %v6337_v41, %v6336_v48 }
 0xf63   :  { %v6154_v1 = vmul.f32 %v13101_v32, %v6140_v28 }
 0xf64   :  { %v16943_v23 = vadd.f32 %v13102_v7, %v6155_v14  ;;  %14557 = vmatprep.subr.bf16.mxu1 %v14556_v16 }
 0xf65   :  { %v16941_v25 = vadd.f32 %v13102_v7, %v6154_v1  ;;  %14559 = vmatpush3.bf16.msra.mxu1 %v14556_v16 }
 0xf66   :  { %14041 = vmatprep.subr.mxu1 %v18455_v61 }
 0xf67   :  { %13994 = vmatprep.mubr.msk.f32.mxu0 %vm317_vm0, %v16941_v25 }
 0xf68   :  { %13995 = vmatmul.mubr.msk.f32.gmra.mrb[82].mxu0 %vm317_vm0, %v16943_v23 }
 0xf69   :  { %6708 = vmatprep.mubr.f32.mxu0 %v18455_v61 }
 0xffa   :  { %v13987_v11 = vpop.f32.mrb[76].mxu0 }
 0xffb   :  { %v6281_v42 = vadd.f32 %v13987_v11, %v13103_v37  ;;  %v6275_v26 = vpop.f32.mrb[77].mxu0 }
 0xffc   :  { %v6276_v38 = vadd.f32 %v13103_v37, %v6275_v26 }
 0xffd   :  { %v6315_v46 = vmax.f32 %v6281_v42, 0.0 }
 0xffe   :  { %v6314_v54 = vmax.f32 %v6276_v38, 0.0 }
0x1000   :  { %14029 = vmatprep.mubr.f32.mxu1 %v6314_v54 }
0x1001   :  { %14030 = vmatmul.mubr.f32.vlgmr.msra.gmra.mrb[76].mxu1 %v6315_v46 }
0x1005   :  { %v13990_v63 = vpop.f32.mrb[78].mxu0 }
0x1006   :  { %v6291_v59 = vadd.f32 %v13990_v63, %v13103_v37  ;;  %v6285_v56 = vpop.f32.mrb[79].mxu0 }
0x1007   :  { %v6286_v3 = vadd.f32 %v13103_v37, %v6285_v56 }
0x1008   :  { %v6317_v44 = vmax.f32 %v6291_v59, 0.0 }
0x1009   :  { %v6316_v9 = vmax.f32 %v6286_v3, 0.0 }
0x100b   :  { %14032 = vmatprep.mubr.f32.mxu1 %v6316_v9 }
0x100c   :  { %14033 = vmatmul.mubr.f32.gmra.mrb[78].mxu1 %v6317_v44 }
0x1033   :  { %v13993_v34 = vpop.f32.mrb[80].mxu0 }
0x1034   :  { %v6301_v32 = vadd.f32 %v13993_v34, %v13103_v37  ;;  %v6295_v4 = vpop.f32.mrb[81].mxu0 }
0x1035   :  { %v6296_v8 = vadd.f32 %v13103_v37, %v6295_v4  ;;  %v6593_v4 = vld [vmem:[%s18384_s14 + $0x8] sm:$0xff] }
0x1036   :  { %v6319_v52 = vmax.f32 %v6301_v32, 0.0 }
0x1037   :  { %v6318_v27 = vmax.f32 %v6296_v8, 0.0  ;;  %v6595_v8 = vld [vmem:[%s18384_s14 + $0x18] sm:$0xff] }
0x1039   :  { %14035 = vmatprep.mubr.f32.mxu1 %v6318_v27  ;;  %v14560_v27 = vpack.c.bf16 %v6595_v8, %v6593_v4 }
0x103a   :  { %14036 = vmatmul.mubr.f32.gmra.mrb[80].mxu1 %v6319_v52  ;;  %v6592_v52 = vld [vmem:[%s18384_s14] sm:$0xff] }
0x103b   :  { %v13996_v13 = vpop.f32.mrb[82].mxu0  ;;  %14561 = vmatprep.subr.bf16.mxu0 %v14560_v27  ;;  %v13114_v27 = vld [vmem:[#allocation17] ss:$0 sm:$0xff] }
0x103c   :  { %v6311_v7 = vadd.f32 %v13996_v13, %v13103_v37  ;;  %v6305_v17 = vpop.f32.mrb[83].mxu0  ;;  %v6594_v13 = vld [vmem:[%s18384_s14 + $0x10] sm:$0xff] }
0x103d   :  { %v6306_v2 = vadd.f32 %v13103_v37, %v6305_v17  ;;  %v6597_v17 = vld [vmem:[%s18384_s14 + $0x28] sm:$0xff] }
0x103e   :  { %v6321_v36 = vmax.f32 %v6311_v7, 0.0  ;;  %v14562_v7 = vpack.c.bf16 %v6594_v13, %v6592_v52 }
0x103f   :  { %v6320_v60 = vmax.f32 %v6306_v2, 0.0  ;;  %v6599_v2 = vld [vmem:[%s18384_s14 + $0x38] sm:$0xff] }
0x1040   :  { %14563 = vmatpush1.bf16.msra.mxu0 %v14562_v7 }
0x1041   :  { %14038 = vmatprep.mubr.f32.mxu1 %v6320_v60  ;;  %v14564_v60 = vpack.c.bf16 %v6599_v2, %v6597_v17 }
0x1042   :  { %14039 = vmatmul.mubr.f32.gmra.mrb[82].mxu1 %v6321_v36  ;;  %v6596_v36 = vld [vmem:[%s18384_s14 + $0x20] sm:$0xff] }
0x1043   :  { %14043 = vmatprep.mubr.msk.f32.mxu1 %vm15423_vm1, %v18455_v61  ;;  %14565 = vmatprep.subr.bf16.mxu0 %v14564_v60 }
0x10d4   :  { %v14031_v12 = vpop.f32.mrb[76].mxu1 }
0x10d5   :  { %v6417_v50 = vadd.f32 %v14031_v12, %v13112_v15  ;;  %v6411_v18 = vpop.f32.mrb[77].mxu1 }
0x10d6   :  { %v6412_v45 = vadd.f32 %v13112_v15, %v6411_v18  ;;  %v6603_v18 = vld [vmem:[%s18384_s14 + $0x58] sm:$0xff] }
0x10d7   :  { %v6451_v31 = vadd.f32 %v6417_v50, %v16913_v24  ;;  %v6601_v50 = vld [vmem:[%s18384_s14 + $0x48] sm:$0xff] }
0x10d8   :  { %v6450_v40 = vadd.f32 %v6412_v45, %v16911_v35  ;;  %v14568_v45 = vpack.c.bf16 %v6603_v18, %v6601_v50 }
0x10d9   :  { %v6463_v22 = vsel %vm317_vm0, %v6451_v31, 0.0 }
0x10da   :  { %6464 = vadd.xlane.f32.xlu0 %v6463_v22  ;;  %v6460_v49 = vsel %vm317_vm0, %v6450_v40, 0.0 }
0x10db   :  { %6461 = vadd.xlane.f32.xlu1 %v6460_v49  ;;  %v6605_v49 = vld [vmem:[%s18384_s14 + $0x68] sm:$0xff] }
0x10df   :  { %v14034_v57 = vpop.f32.mrb[78].mxu1 }
0x10e0   :  { %v6427_v51 = vadd.f32 %v14034_v57, %v13112_v15  ;;  %v6421_v21 = vpop.f32.mrb[79].mxu1  ;;  %v6607_v57 = vld [vmem:[%s18384_s14 + $0x78] sm:$0xff] }
0x10e1   :  { %v6422_v29 = vadd.f32 %v13112_v15, %v6421_v21  ;;  %v14572_v21 = vpack.c.bf16 %v6607_v57, %v6605_v49 }
0x10e2   :  { %v6453_v43 = vadd.f32 %v6427_v51, %v16925_v10  ;;  %v6604_v51 = vld [vmem:[%s18384_s14 + $0x60] sm:$0xff] }
0x10e3   :  { %v6452_v55 = vadd.f32 %v6422_v29, %v16920_v58  ;;  %v6606_v29 = vld [vmem:[%s18384_s14 + $0x70] sm:$0xff] }
0x10e4   :  { %v6469_v19 = vsel %vm317_vm0, %v6453_v43, 0.0 }
0x10e5   :  { %6470 = vadd.xlane.f32.xlu0 %v6469_v19  ;;  %v6466_v24 = vsel %vm317_vm0, %v6452_v55, 0.0 }
0x10e6   :  { %6467 = vadd.xlane.f32.xlu1 %v6466_v24 }
0x110d   :  { %v14037_v35 = vpop.f32.mrb[80].mxu1 }
0x110e   :  { %v6437_v47 = vadd.f32 %v14037_v35, %v13112_v15  ;;  %v6431_v0 = vpop.f32.mrb[81].mxu1 }
0x110f   :  { %v6432_v6 = vadd.f32 %v13112_v15, %v6431_v0 }
0x1110   :  { %v16968_v20 = vadd.f32 %v6437_v47, %v16933_v39 }
0x1111   :  { %v16971_v30 = vadd.f32 %v6432_v6, %v16931_v62 }
0x1112   :  { %v6475_v10 = vsel %vm317_vm0, %v16968_v20, 0.0 }
0x1113   :  { %6476 = vadd.xlane.f32.xlu0 %v6475_v10  ;;  %v6472_v58 = vsel %vm317_vm0, %v16971_v30, 0.0 }
0x1114   :  { %6473 = vadd.xlane.f32.xlu1 %v6472_v58 }
0x1115   :  { %v14040_v53 = vpop.f32.mrb[82].mxu1 }
0x1116   :  { %v6447_v33 = vadd.f32 %v14040_v53, %v13112_v15  ;;  %v6441_v5 = vpop.f32.mrb[83].mxu1 }
0x1117   :  { %v6442_v28 = vadd.f32 %v13112_v15, %v6441_v5  ;;  %v6598_v15 = vld [vmem:[%s18384_s14 + $0x30] sm:$0xff] }
0x1118   :  { %v16978_v14 = vadd.f32 %v6447_v33, %v16943_v23  ;;  %v14566_v12 = vpack.c.bf16 %v6598_v15, %v6596_v36 }
0x1119   :  { %v16981_v39 = vadd.f32 %v6442_v28, %v16941_v25 }
0x111a   :  { %v6481_v62 = vsel %vm317_vm0, %v16978_v14, 0.0  ;;  %14567 = vmatpush1.bf16.msra.mxu0 %v14566_v12 }
0x111b   :  { %6482 = vadd.xlane.f32.xlu0 %v6481_v62  ;;  %v6478_v1 = vsel %vm317_vm0, %v16981_v39, 0.0  ;;  %14569 = vmatprep.subr.bf16.mxu0 %v14568_v45 }
0x111c   :  { %6479 = vadd.xlane.f32.xlu1 %v6478_v1 }
0x1167   :  { %v6465_v48 = vpop.xlane.xlu0 %6464 }
0x1168   :  { %v6485_v41 = vmul.f32 0.015625, %v6465_v48  ;;  %v6462_v16 = vpop.xlane.xlu1 %6461 }
0x1169   :  { %v6484_v37 = vmul.f32 0.015625, %v6462_v16 }
0x116a   :  { %v16987_v11 = vsub.f32 %v6451_v31, %v6485_v41  ;;  %v6600_v31 = vld [vmem:[%s18384_s14 + $0x40] sm:$0xff] }
0x116b   :  { %v16989_v42 = vsub.f32 %v6450_v40, %v6484_v37  ;;  %v6602_v40 = vld [vmem:[%s18384_s14 + $0x50] sm:$0xff] }
0x116c   :  { %v6501_v25 = vmul.f32 %v16987_v11, %v16987_v11  ;;  %v14570_v22 = vpack.c.bf16 %v6602_v40, %v6600_v31 }
0x116d   :  { %v6500_v23 = vmul.f32 %v16989_v42, %v16989_v42 }
0x116e   :  { %v6511_v26 = vsel %vm317_vm0, %v6501_v25, 0.0  ;;  %14571 = vmatpush1.bf16.msra.mxu0 %v14570_v22 }
0x116f   :  { %6512 = vadd.xlane.f32.xlu0 %v6511_v26  ;;  %v6508_v38 = vsel %vm317_vm0, %v6500_v23, 0.0  ;;  %14573 = vmatprep.subr.bf16.mxu0 %v14572_v21 }
0x1170   :  { %6509 = vadd.xlane.f32.xlu1 %v6508_v38 }
0x1172   :  { %v6471_v54 = vpop.xlane.xlu0 %6470 }
0x1173   :  { %v6487_v46 = vmul.f32 0.015625, %v6471_v54  ;;  %v6468_v63 = vpop.xlane.xlu1 %6467 }
0x1174   :  { %v6486_v59 = vmul.f32 0.015625, %v6468_v63 }
0x1175   :  { %v16997_v56 = vsub.f32 %v6453_v43, %v6487_v46  ;;  %v14574_v43 = vpack.c.bf16 %v6606_v29, %v6604_v51 }
0x1176   :  { %v16999_v3 = vsub.f32 %v6452_v55, %v6486_v59 }
0x1177   :  { %v6503_v9 = vmul.f32 %v16997_v56, %v16997_v56  ;;  %14575 = vmatpush1.bf16.msra.mxu0 %v14574_v43 }
0x1178   :  { %v6502_v44 = vmul.f32 %v16999_v3, %v16999_v3  ;;  %14046 = vmatprep.subr.mxu0 %v18455_v61 }
0x1179   :  { %v6517_v34 = vsel %vm317_vm0, %v6503_v9, 0.0 }
0x117a   :  { %6518 = vadd.xlane.f32.xlu0 %v6517_v34  ;;  %v6514_v32 = vsel %vm317_vm0, %v6502_v44, 0.0 }
0x117b   :  { %6515 = vadd.xlane.f32.xlu1 %v6514_v32  ;;  %v13113_v32 = vld [vmem:[#allocation16] ss:$0 sm:$0xff] }
0x11a0   :  { %v6477_v55 = vpop.xlane.xlu0 %6476 }
0x11a1   :  { %v6489_v19 = vmul.f32 0.015625, %v6477_v55  ;;  %v6474_v24 = vpop.xlane.xlu1 %6473 }
0x11a2   :  { %v6488_v35 = vmul.f32 0.015625, %v6474_v24 }
0x11a3   :  { %v17057_v47 = vsub.f32 %v16968_v20, %v6489_v19 }
0x11a4   :  { %v17060_v0 = vsub.f32 %v16971_v30, %v6488_v35 }
0x11a5   :  { %v6505_v6 = vmul.f32 %v17057_v47, %v17057_v47 }
0x11a6   :  { %v6504_v10 = vmul.f32 %v17060_v0, %v17060_v0 }
0x11a7   :  { %v6523_v58 = vsel %vm317_vm0, %v6505_v6, 0.0 }
0x11a8   :  { %6524 = vadd.xlane.f32.xlu0 %v6523_v58  ;;  %v6483_v53 = vpop.xlane.xlu0 %6482  ;;  %v6520_v33 = vsel %vm317_vm0, %v6504_v10, 0.0 }
0x11a9   :  { %v6491_v5 = vmul.f32 0.015625, %v6483_v53  ;;  %6521 = vadd.xlane.f32.xlu1 %v6520_v33  ;;  %v6480_v28 = vpop.xlane.xlu1 %6479 }
0x11aa   :  { %v6490_v20 = vmul.f32 0.015625, %v6480_v28 }
0x11ab   :  { %v17069_v62 = vsub.f32 %v16978_v14, %v6491_v5 }
0x11ac   :  { %v17072_v30 = vsub.f32 %v16981_v39, %v6490_v20 }
0x11ad   :  { %v6507_v1 = vmul.f32 %v17069_v62, %v17069_v62 }
0x11ae   :  { %v6506_v48 = vmul.f32 %v17072_v30, %v17072_v30 }
0x11af   :  { %v6529_v41 = vsel %vm317_vm0, %v6507_v1, 0.0 }
0x11b0   :  { %6530 = vadd.xlane.f32.xlu0 %v6529_v41  ;;  %v6526_v16 = vsel %vm317_vm0, %v6506_v48, 0.0 }
0x11b1   :  { %6527 = vadd.xlane.f32.xlu1 %v6526_v16 }
0x11fc   :  { %v6513_v37 = vpop.xlane.xlu0 %6512 }
0x11fd   :  { %v6533_v25 = vmul.f32 0.015625, %v6513_v37  ;;  %v6510_v23 = vpop.xlane.xlu1 %6509 }
0x11fe   :  { %v6532_v14 = vmul.f32 0.015625, %v6510_v23 }
0x11ff   :  { %v6541_v26 = vadd.f32 1e-05, %v6533_v25 }
0x1200   :  { %v6540_v38 = vadd.f32 1e-05, %v6532_v14 }
0x1201   :  { %14825 = vrsqrt.f32 %v6541_v26 }
0x1202   :  { %14827 = vrsqrt.f32 %v6540_v38 }
0x1207   :  { %v6519_v39 = vpop.xlane.xlu0 %6518 }
0x1208   :  { %v6535_v54 = vmul.f32 0.015625, %v6519_v39  ;;  %v6516_v46 = vpop.xlane.xlu1 %6515 }
0x1209   :  { %v6534_v63 = vmul.f32 0.015625, %v6516_v46 }
0x120a   :  { %v6543_v59 = vadd.f32 1e-05, %v6535_v54 }
0x120b   :  { %v14826_v9 = vpop.eup %14825  ;;  %v6542_v44 = vadd.f32 1e-05, %v6534_v63 }
0x120c   :  { %v14828_v34 = vpop.eup %14827  ;;  %14829 = vrsqrt.f32 %v6543_v59  ;;  %v6557_v8 = vmul.f32 %v14826_v9, %v16987_v11 }
0x120d   :  { %v6556_v4 = vmul.f32 %v14828_v34, %v16989_v42  ;;  %14831 = vrsqrt.f32 %v6542_v44 }
0x120e   :  { %v6571_v7 = vmul.f32 %v13113_v32, %v6557_v8 }
0x120f   :  { %v6570_v52 = vmul.f32 %v13113_v32, %v6556_v4 }
0x1210   :  { %v17087_v17 = vadd.f32 %v13114_v27, %v6571_v7 }
0x1211   :  { %v17082_v13 = vadd.f32 %v13114_v27, %v6570_v52 }
0x1212   :  { %18458 = vst [vmem:[#allocation38_spill] sm:$0xff] %v17087_v17 }
0x1213   :  { %18457 = vst [vmem:[#allocation37_spill] sm:$0xff] %v17082_v13  ;;  %13115 = vmatmul.mubr.msk.f32.vlgmr.msra.gmra.mrb[84].mxu0 %vm317_vm0, %v17082_v13 }
0x1214   :  { %6714 = vmatprep.mubr.f32.mxu0 %v18455_v61 }
0x1216   :  { %v14830_v2 = vpop.eup %14829 }
0x1217   :  { %v14832_v60 = vpop.eup %14831  ;;  %13116 = vmatmul.mubr.msk.f32.gmra.mrb[86].mxu0 %vm317_vm0, %v17087_v17  ;;  %v6559_v42 = vmul.f32 %v14830_v2, %v16997_v56 }
0x1218   :  { %6720 = vmatprep.mubr.f32.mxu0 %v18455_v61  ;;  %v6558_v11 = vmul.f32 %v14832_v60, %v16999_v3 }
0x1219   :  { %v6573_v12 = vmul.f32 %v13113_v32, %v6559_v42 }
0x121a   :  { %v6572_v36 = vmul.f32 %v13113_v32, %v6558_v11 }
0x121b   :  { %v17099_v50 = vadd.f32 %v13114_v27, %v6573_v12 }
0x121c   :  { %v17094_v15 = vadd.f32 %v13114_v27, %v6572_v36 }
0x121d   :  { %18460 = vst [vmem:[#allocation40_spill] sm:$0xff] %v17099_v50 }
0x121e   :  { %18459 = vst [vmem:[#allocation39_spill] sm:$0xff] %v17094_v15  ;;  %13117 = vmatmul.mubr.msk.f32.gmra.mrb[88].mxu0 %vm317_vm0, %v17094_v15 }
0x121f   :  { %6726 = vmatprep.mubr.f32.mxu0 %v18455_v61 }
0x1222   :  { %13118 = vmatmul.mubr.msk.f32.gmra.mrb[90].mxu0 %vm317_vm0, %v17099_v50 }
0x1223   :  { %6732 = vmatprep.mubr.f32.mxu0 %v18455_v61 }
0x1235   :  { %v6525_v18 = vpop.xlane.xlu0 %6524 }
0x1236   :  { %v6537_v3 = vmul.f32 0.015625, %v6525_v18  ;;  %v6522_v45 = vpop.xlane.xlu1 %6521 }
0x1237   :  { %v6536_v56 = vmul.f32 0.015625, %v6522_v45 }
0x1238   :  { %v6545_v31 = vadd.f32 1e-05, %v6537_v3 }
0x1239   :  { %v6544_v40 = vadd.f32 1e-05, %v6536_v56 }
0x123a   :  { %14833 = vrsqrt.f32 %v6545_v31 }
0x123b   :  { %14835 = vrsqrt.f32 %v6544_v40 }
0x123d   :  { %v6531_v22 = vpop.xlane.xlu0 %6530 }
0x123e   :  { %v6539_v49 = vmul.f32 0.015625, %v6531_v22  ;;  %v6528_v57 = vpop.xlane.xlu1 %6527 }
0x123f   :  { %v6538_v51 = vmul.f32 0.015625, %v6528_v57 }
0x1240   :  { %v6547_v21 = vadd.f32 1e-05, %v6539_v49 }
0x1241   :  { %v6546_v29 = vadd.f32 1e-05, %v6538_v51 }
0x1242   :  { %14837 = vrsqrt.f32 %v6547_v21  ;;  %v17246_v21 = vld [vmem:[#allocation2] ss:$0 sm:$0xff] }
0x1243   :  { %14839 = vrsqrt.f32 %v6546_v29 }
0x1244   :  { %v14834_v43 = vpop.eup %14833 }
0x1245   :  { %v14836_v55 = vpop.eup %14835  ;;  %v6561_v24 = vmul.f32 %v14834_v43, %v17057_v47 }
0x1246   :  { %v6560_v19 = vmul.f32 %v14836_v55, %v17060_v0 }
0x1247   :  { %v6575_v10 = vmul.f32 %v13113_v32, %v6561_v24  ;;  %v17250_v24 = vld [vmem:[#allocation2 + $0x1] ss:$0 sm:$0xff] }
0x1248   :  { %v6574_v35 = vmul.f32 %v13113_v32, %v6560_v19 }
0x1249   :  { %v17111_v33 = vadd.f32 %v13114_v27, %v6575_v10 }
0x124a   :  { %v17106_v6 = vadd.f32 %v13114_v27, %v6574_v35 }
0x124b   :  { %18462 = vst [vmem:[#allocation42_spill] sm:$0xff] %v17111_v33 }
0x124c   :  { %18461 = vst [vmem:[#allocation41_spill] sm:$0xff] %v17106_v6  ;;  %v14838_v58 = vpop.eup %14837  ;;  %13119 = vmatmul.mubr.msk.f32.gmra.mrb[92].mxu0 %vm317_vm0, %v17106_v6 }
0x124d   :  { %v14840_v53 = vpop.eup %14839  ;;  %6738 = vmatprep.mubr.f32.mxu0 %v18455_v61  ;;  %v6563_v28 = vmul.f32 %v14838_v58, %v17069_v62  ;;  %v6608_v62 = vld [vmem:[%s18385_s15] sm:$0x3] }
0x124e   :  { %v6562_v5 = vmul.f32 %v14840_v53, %v17072_v30  ;;  %v18465_v30 = vld [vmem:[#allocation36_spill] sm:$0xff] }
0x124f   :  { %v6577_v20 = vmul.f32 %v13113_v32, %v6563_v28  ;;  %v18466_v48 = vsub.s32 0, %v18465_v30  ;;  %v18467_v56 = vsub.s32 1, %v18465_v30  ;;  %v17258_v30 = vld [vmem:[#allocation2 + $0x3] ss:$0 sm:$0xff] }
0x1250   :  { %13120 = vmatmul.mubr.msk.f32.gmra.mrb[94].mxu0 %vm317_vm0, %v17111_v33  ;;  %v6576_v47 = vmul.f32 %v13113_v32, %v6562_v5  ;;  %v17254_v5 = vld [vmem:[#allocation2 + $0x2] ss:$0 sm:$0xff] }
0x1251   :  { %6744 = vmatprep.mubr.f32.mxu0 %v18455_v61  ;;  %v17123_v1 = vadd.f32 %v13114_v27, %v6577_v20  ;;  %v6613_v41 = vrot.slane %v6608_v62, %v18466_v48  ;;  %v17216_v31 = vrot.slane %v6608_v62, %v18467_v56 }
0x1252   :  { %v17118_v0 = vadd.f32 %v13114_v27, %v6576_v47 }
0x1253   :  { %18464 = vst [vmem:[#allocation44_spill] sm:$0xff] %v17123_v1 }
0x1254   :  { %18463 = vst [vmem:[#allocation43_spill] sm:$0xff] %v17118_v0  ;;  %13121 = vmatmul.mubr.msk.f32.gmra.mrb[96].mxu0 %vm317_vm0, %v17118_v0 }
0x1255   :  { %6750 = vmatprep.mubr.f32.mxu0 %v18455_v61 }
0x1258   :  { %13122 = vmatmul.mubr.msk.f32.gmra.mrb[98].mxu0 %vm317_vm0, %v17123_v1 }
0x1259   :  { %14048 = vmatprep.mubr.msk.f32.mxu0 %vm15423_vm1, %v18455_v61 }
0x12e6   :  { %v6710_v16 = vpop.f32.mrb[84].mxu0 }
0x12e7   :  { %v17134_v37 = vadd.f32 %v6710_v16, %v6613_v41  ;;  %v17136_v25 = vpop.f32.mrb[85].mxu0 }
0x12e8   :  { %v17226_v22 = vadd.f32 %v17136_v25, %v17216_v31 }
0x12e9   :  { %6758 = vrot.lane.b32.xlu1 %v17134_v37, %s15424_s4 }
0x12ea   :  { %v6716_v23 = vpop.f32.mrb[86].mxu0 }
0x12eb   :  { %v17140_v14 = vadd.f32 %v6716_v23, %v6613_v41  ;;  %v17142_v26 = vpop.f32.mrb[87].mxu0  ;;  %v17262_v23 = vld [vmem:[#allocation2 + $0x4] ss:$0 sm:$0xff] }
0x12ec   :  { %v17237_v57 = vadd.f32 %v17142_v26, %v17216_v31 }
0x12ed   :  { %6835 = vrot.lane.b32.xlu0 %v17140_v14, %s15424_s4 }
0x12f1   :  { %v6722_v38 = vpop.f32.mrb[88].mxu0 }
0x12f2   :  { %v17146_v39 = vadd.f32 %v6722_v38, %v6613_v41  ;;  %v17148_v54 = vpop.f32.mrb[89].mxu0 }
0x12f4   :  { %6912 = vrot.lane.b32.xlu1 %v17146_v39, %s15424_s4 }
0x12f5   :  { %v6728_v46 = vpop.f32.mrb[90].mxu0 }
0x12f6   :  { %v17152_v63 = vadd.f32 %v6728_v46, %v6613_v41  ;;  %v17154_v59 = vpop.f32.mrb[91].mxu0 }
0x12f8   :  { %6989 = vrot.lane.b32.xlu1 %v17152_v63, %s15424_s4 }
0x131f   :  { %v6734_v9 = vpop.f32.mrb[92].mxu0 }
0x1320   :  { %v17158_v44 = vadd.f32 %v6734_v9, %v6613_v41  ;;  %v17160_v34 = vpop.f32.mrb[93].mxu0 }
0x1322   :  { %7066 = vrot.lane.b32.xlu0 %v17158_v44, %s15424_s4 }
0x1323   :  { %v6740_v32 = vpop.f32.mrb[94].mxu0 }
0x1324   :  { %v17164_v4 = vadd.f32 %v6740_v32, %v6613_v41  ;;  %v17166_v8 = vpop.f32.mrb[95].mxu0  ;;  %v17266_v32 = vld [vmem:[#allocation2 + $0x5] ss:$0 sm:$0xff] }
0x1326   :  { %7143 = vrot.lane.b32.xlu1 %v17164_v4, %s15424_s4 }
0x1327   :  { %v6746_v27 = vpop.f32.mrb[96].mxu0 }
0x1328   :  { %v17170_v52 = vadd.f32 %v6746_v27, %v6613_v41  ;;  %v17172_v7 = vpop.f32.mrb[97].mxu0 }
0x132a   :  { %7220 = vrot.lane.b32.xlu0 %v17170_v52, %s15424_s4 }
0x132b   :  { %v6752_v2 = vpop.f32.mrb[98].mxu0 }
0x132c   :  { %v17176_v60 = vadd.f32 %v6752_v2, %v6613_v41  ;;  %v17178_v11 = vpop.f32.mrb[99].mxu0 }
0x132e   :  { %7297 = vrot.lane.b32.xlu1 %v17176_v60, %s15424_s4  ;;  %s15431_s4 = smov [#allocation26]  }
0x135b   :  { %v6759_v42 = vpop.permute.xlu1 %6758 }
0x135c   :  { %14042 = vmatpush3.xpose.msk.msra.mxu1 %vm506_vm2, %v6759_v42 }
0x135d   :  { %14051 = vmatprep.subr.mxu1 %v18455_v61 }
0x135f   :  { %14044 = vmatmul.mubr.msk.f32.vlgmr.msra.gmra.mrb[84].mxu1 %vm506_vm2, %v17134_v37  ;;  %v6836_v36 = vpop.permute.xlu0 %6835 }
0x1360   :  { %14047 = vmatpush3.xpose.msk.msra.mxu0 %vm506_vm2, %v6836_v36  ;;  %14053 = vmatprep.mubr.msk.f32.mxu1 %vm15423_vm1, %v18455_v61 }
0x1361   :  { %14056 = vmatprep.subr.mxu0 %v18455_v61 }
0x1363   :  { %14049 = vmatmul.mubr.msk.f32.vlgmr.msra.gmra.mrb[100].mxu0 %vm506_vm2, %v17140_v14 }
0x1364   :  { %14058 = vmatprep.mubr.msk.f32.mxu0 %vm15423_vm1, %v18455_v61 }
0x1366   :  { %v6913_v12 = vpop.permute.xlu1 %6912 }
0x1367   :  { %14052 = vmatpush3.xpose.msk.msra.mxu1 %vm506_vm2, %v6913_v12  ;;  %v17270_v12 = vld [vmem:[#allocation2 + $0x6] ss:$0 sm:$0xff] }
0x1368   :  { %14061 = vmatprep.subr.mxu1 %v18455_v61 }
0x136a   :  { %14054 = vmatmul.mubr.msk.f32.vlgmr.msra.gmra.mrb[86].mxu1 %vm506_vm2, %v17146_v39  ;;  %v6990_v18 = vpop.permute.xlu1 %6989 }
0x136b   :  { %14057 = vmatpush3.xpose.msk.msra.mxu0 %vm506_vm2, %v6990_v18  ;;  %14063 = vmatprep.mubr.msk.f32.mxu1 %vm15423_vm1, %v18455_v61 }
0x136c   :  { %14066 = vmatprep.subr.mxu0 %v18455_v61 }
0x136e   :  { %14059 = vmatmul.mubr.msk.f32.vlgmr.msra.gmra.mrb[102].mxu0 %vm506_vm2, %v17152_v63 }
0x136f   :  { %14068 = vmatprep.mubr.msk.f32.mxu0 %vm15423_vm1, %v18455_v61 }
0x1394   :  { %v7067_v3 = vpop.permute.xlu0 %7066 }
0x1395   :  { %14062 = vmatpush3.xpose.msk.msra.mxu1 %vm506_vm2, %v7067_v3 }
0x1396   :  { %14071 = vmatprep.subr.mxu1 %v18455_v61 }
0x1398   :  { %v7144_v45 = vpop.permute.xlu1 %7143  ;;  %14064 = vmatmul.mubr.msk.f32.vlgmr.msra.gmra.mrb[88].mxu1 %vm506_vm2, %v17158_v44 }
0x1399   :  { %14067 = vmatpush3.xpose.msk.msra.mxu0 %vm506_vm2, %v7144_v45  ;;  %14073 = vmatprep.mubr.msk.f32.mxu1 %vm15423_vm1, %v18455_v61 }
0x139a   :  { %14076 = vmatprep.subr.mxu0 %v18455_v61 }
0x139c   :  { %14069 = vmatmul.mubr.msk.f32.vlgmr.msra.gmra.mrb[104].mxu0 %vm506_vm2, %v17164_v4  ;;  %v7221_v40 = vpop.permute.xlu0 %7220 }
0x139d   :  { %14072 = vmatpush3.xpose.msk.msra.mxu1 %vm506_vm2, %v7221_v40  ;;  %14078 = vmatprep.mubr.msk.f32.mxu0 %vm15423_vm1, %v18455_v61  ;;  %v17274_v40 = vld [vmem:[#allocation2 + $0x7] ss:$0 sm:$0xff] }
0x139e   :  { %14081 = vmatprep.subr.mxu1 %v18455_v61 }
0x13a0   :  { %v7298_v49 = vpop.permute.xlu1 %7297  ;;  %14074 = vmatmul.mubr.msk.f32.vlgmr.msra.gmra.mrb[90].mxu1 %vm506_vm2, %v17170_v52 }
0x13a1   :  { %14077 = vmatpush3.xpose.msk.msra.mxu0 %vm506_vm2, %v7298_v49  ;;  %14082 = vmatpush3.msra.mxu1 %v17226_v22 }
0x13a2   :  { %14086 = vmatprep.subr.mxu0 %v18455_v61  ;;  %14083 = vmatprep.mubr.msk.f32.mxu1 %vm15423_vm1, %v18455_v61 }
0x13a3   :  { %14091 = vmatprep.subr.mxu1 %v18455_v61 }
0x13a4   :  { %14079 = vmatmul.mubr.msk.f32.vlgmr.msra.gmra.mrb[106].mxu0 %vm506_vm2, %v17176_v60 }
0x13a5   :  { %14087 = vmatpush3.msra.mxu0 %v17237_v57  ;;  %14088 = vmatprep.mubr.msk.f32.mxu0 %vm15423_vm1, %v18455_v61 }
0x13a6   :  { %14096 = vmatprep.subr.mxu0 %v18455_v61 }
0x1432   :  { %v6830_v51 = vpop.f32.mrb[84].mxu1 }
0x1433   :  { %v6831_v29 = vadd.f32 %v17246_v21, %v6830_v51  ;;  %v14045_v43 = vpop.f32.mrb[85].mxu1 }
0x1435   :  { %v7373_v55 = vsel %vm1120_vm3, %v6831_v29, -inf }
0x1436   :  { %7374 = vmax.xlane.f32.xlu0 %v7373_v55  ;;  %v6907_v19 = vpop.f32.mrb[100].mxu0 }
0x1437   :  { %v6908_v35 = vadd.f32 %v17250_v24, %v6907_v19  ;;  %v14050_v10 = vpop.f32.mrb[101].mxu0 }
0x1439   :  { %v7376_v58 = vsel %vm1120_vm3, %v6908_v35, -inf }
0x143a   :  { %7377 = vmax.xlane.f32.xlu1 %v7376_v58 }
0x143d   :  { %v6984_v53 = vpop.f32.mrb[86].mxu1 }
0x143e   :  { %v6985_v28 = vadd.f32 %v17254_v5, %v6984_v53  ;;  %v14055_v47 = vpop.f32.mrb[87].mxu1 }
0x1440   :  { %v7379_v20 = vsel %vm1120_vm3, %v6985_v28, -inf }
0x1441   :  { %7380 = vmax.xlane.f32.xlu0 %v7379_v20  ;;  %v7061_v62 = vpop.f32.mrb[102].mxu0 }
0x1442   :  { %v7062_v48 = vadd.f32 %v17258_v30, %v7061_v62  ;;  %v14060_v41 = vpop.f32.mrb[103].mxu0 }
0x1444   :  { %v7382_v16 = vsel %vm1120_vm3, %v7062_v48, -inf }
0x1445   :  { %7383 = vmax.xlane.f32.xlu0 %v7382_v16 }
0x146b   :  { %v7138_v25 = vpop.f32.mrb[88].mxu1 }
0x146c   :  { %v7139_v26 = vadd.f32 %v17262_v23, %v7138_v25  ;;  %v14065_v38 = vpop.f32.mrb[89].mxu1 }
0x146e   :  { %v7385_v46 = vsel %vm1120_vm3, %v7139_v26, -inf }
0x146f   :  { %v7215_v9 = vpop.f32.mrb[104].mxu0  ;;  %7386 = vmax.xlane.f32.xlu1 %v7385_v46 }
0x1470   :  { %v7216_v27 = vadd.f32 %v17266_v32, %v7215_v9  ;;  %v14070_v2 = vpop.f32.mrb[105].mxu0 }
0x1472   :  { %v7388_v42 = vsel %vm1120_vm3, %v7216_v27, -inf }
0x1473   :  { %7389 = vmax.xlane.f32.xlu0 %v7388_v42  ;;  %v7292_v36 = vpop.f32.mrb[90].mxu1 }
0x1474   :  { %v7293_v18 = vadd.f32 %v17270_v12, %v7292_v36  ;;  %v14075_v3 = vpop.f32.mrb[91].mxu1 }
0x1476   :  { %v7391_v45 = vsel %vm1120_vm3, %v7293_v18, -inf }
0x1477   :  { %v7369_v56 = vpop.f32.mrb[106].mxu0  ;;  %7392 = vmax.xlane.f32.xlu1 %v7391_v45 }
0x1478   :  { %v7370_v49 = vadd.f32 %v17274_v40, %v7369_v56  ;;  %v14080_v51 = vpop.f32.mrb[107].mxu0 }
0x147a   :  { %v7394_v43 = vsel %vm1120_vm3, %v7370_v49, -inf }
0x147b   :  { %7395 = vmax.xlane.f32.xlu0 %v7394_v43 }
0x1488   :  { %8047 = vrot.lane.b32.xlu1 %v17134_v37, %s15425_s16 }
0x148c   :  { %8045 = vrot.lane.b32.xlu1 %v17134_v37, %s15426_s30 }
0x1490   :  { %8123 = vrot.lane.b32.xlu1 %v17140_v14, %s15426_s30 }
0x1491   :  { %8125 = vrot.lane.b32.xlu0 %v17140_v14, %s15425_s16 }
0x1494   :  { %8281 = vrot.lane.b32.xlu1 %v17152_v63, %s15425_s16 }
0x1495   :  { %8203 = vrot.lane.b32.xlu0 %v17146_v39, %s15425_s16 }
0x14c3   :  { %v7375_v55 = vpop.xlane.xlu0 %7374 }
0x14c4   :  { %v7397_v19 = vsub.f32 %v6831_v29, %v7375_v55 }
0x14c6   :  { %v7405_v10 = vmul.f32 1.442695, %v7397_v19 }
0x14c7   :  { %v7378_v58 = vpop.xlane.xlu1 %7377 }
0x14c8   :  { %14841 = vpow2.f32 %v7405_v10  ;;  %v7398_v53 = vsub.f32 %v6908_v35, %v7378_v58 }
0x14ca   :  { %v7407_v47 = vmul.f32 1.442695, %v7398_v53 }
0x14cc   :  { %14843 = vpow2.f32 %v7407_v47 }
0x14ce   :  { %v7381_v20 = vpop.xlane.xlu0 %7380 }
0x14cf   :  { %v7399_v62 = vsub.f32 %v6985_v28, %v7381_v20 }
0x14d1   :  { %v7409_v41 = vmul.f32 1.442695, %v7399_v62 }
0x14d2   :  { %v17290_v16 = vpop.eup %14841  ;;  %v7384_v25 = vpop.xlane.xlu0 %7383 }
0x14d3   :  { %14845 = vpow2.f32 %v7409_v41  ;;  %v7400_v38 = vsub.f32 %v7062_v48, %v7384_v25  ;;  %v7421_v46 = vsel %vm1120_vm3, %v17290_v16, 0.0 }
0x14d4   :  { %7422 = vadd.xlane.f32.xlu1 %v7421_v46 }
0x14d5   :  { %v7411_v9 = vmul.f32 1.442695, %v7400_v38 }
0x14d6   :  { %v17294_v29 = vpop.eup %14843 }
0x14d7   :  { %14847 = vpow2.f32 %v7411_v9  ;;  %v7424_v35 = vsel %vm1120_vm3, %v17294_v29, 0.0 }
0x14d8   :  { %7425 = vadd.xlane.f32.xlu0 %v7424_v35 }
0x14dd   :  { %v17298_v2 = vpop.eup %14845 }
0x14de   :  { %v7427_v28 = vsel %vm1120_vm3, %v17298_v2, 0.0 }
0x14df   :  { %7428 = vadd.xlane.f32.xlu1 %v7427_v28 }
0x14e1   :  { %v17302_v42 = vpop.eup %14847 }
0x14e2   :  { %v7430_v48 = vsel %vm1120_vm3, %v17302_v42, 0.0 }
0x14e3   :  { %7431 = vadd.xlane.f32.xlu0 %v7430_v48 }
0x14fc   :  { %v7387_v36 = vpop.xlane.xlu1 %7386 }
0x14fd   :  { %v7401_v3 = vsub.f32 %v7139_v26, %v7387_v36 }
0x14ff   :  { %v7413_v45 = vmul.f32 1.442695, %v7401_v3 }
0x1500   :  { %v7390_v56 = vpop.xlane.xlu0 %7389 }
0x1501   :  { %14849 = vpow2.f32 %v7413_v45  ;;  %v7402_v51 = vsub.f32 %v7216_v27, %v7390_v56 }
0x1503   :  { %v7415_v43 = vmul.f32 1.442695, %v7402_v51 }
0x1504   :  { %v7393_v55 = vpop.xlane.xlu1 %7392 }
0x1505   :  { %14851 = vpow2.f32 %v7415_v43  ;;  %v7403_v19 = vsub.f32 %v7293_v18, %v7393_v55  ;;  %v17357_v43 = vadd.f32 %v17148_v54, %v17216_v31 }
0x1507   :  { %v7417_v10 = vmul.f32 1.442695, %v7403_v19 }
0x1508   :  { %v7396_v58 = vpop.xlane.xlu0 %7395  ;;  %v17342_v38 = vpop.permute.xlu1 %8047 }
0x1509   :  { %14853 = vpow2.f32 %v7417_v10  ;;  %v7404_v53 = vsub.f32 %v7370_v49, %v7396_v58 }
0x150b   :  { %v17306_v47 = vpop.eup %14849  ;;  %v7419_v20 = vmul.f32 1.442695, %v7404_v53 }
0x150c   :  { %v7433_v62 = vsel %vm1120_vm3, %v17306_v47, 0.0  ;;  %v17344_v46 = vpop.permute.xlu1 %8045  ;;  %v17348_v35 = vpop.permute.xlu0 %8125 }
0x150d   :  { %14855 = vpow2.f32 %v7419_v20  ;;  %7434 = vadd.xlane.f32.xlu1 %v7433_v62  ;;  %v17387_v20 = vadd.f32 %v17166_v8, %v17216_v31 }
0x150f   :  { %v17310_v26 = vpop.eup %14851 }
0x1510   :  { %v7436_v27 = vsel %vm1120_vm3, %v17310_v26, 0.0  ;;  %v17346_v9 = vpop.permute.xlu1 %8123  ;;  %v17352_v48 = vpop.permute.xlu0 %8203 }
0x1511   :  { %7437 = vadd.xlane.f32.xlu0 %v7436_v27 }
0x1513   :  { %v17314_v41 = vpop.eup %14853 }
0x1514   :  { %v7439_v18 = vsel %vm1120_vm3, %v17314_v41, 0.0  ;;  %v17350_v28 = vpop.permute.xlu1 %8281 }
0x1515   :  { %7440 = vadd.xlane.f32.xlu1 %v7439_v18  ;;  %v17397_v18 = vadd.f32 %v17172_v7, %v17216_v31 }
0x1517   :  { %v17318_v49 = vpop.eup %14855 }
0x1518   :  { %v7442_v25 = vsel %vm1120_vm3, %v17318_v49, 0.0 }
0x1519   :  { %7443 = vadd.xlane.f32.xlu0 %v7442_v25 }
0x1526   :  { %8279 = vrot.lane.b32.xlu1 %v17152_v63, %s15426_s30 }
0x152a   :  { %8437 = vrot.lane.b32.xlu1 %v17164_v4, %s15425_s16 }
0x152e   :  { %8435 = vrot.lane.b32.xlu1 %v17164_v4, %s15426_s30 }
0x152f   :  { %8201 = vrot.lane.b32.xlu0 %v17146_v39, %s15426_s30 }
0x1532   :  { %8593 = vrot.lane.b32.xlu1 %v17176_v60, %s15425_s16 }
0x1533   :  { %8359 = vrot.lane.b32.xlu0 %v17158_v44, %s15425_s16 }
0x1536   :  { %8591 = vrot.lane.b32.xlu1 %v17176_v60, %s15426_s30 }
0x1537   :  { %8357 = vrot.lane.b32.xlu0 %v17158_v44, %s15426_s30 }
0x153b   :  { %8515 = vrot.lane.b32.xlu0 %v17170_v52, %s15425_s16 }
0x153f   :  { %8513 = vrot.lane.b32.xlu0 %v17170_v52, %s15426_s30 }
0x1561   :  { %v7423_v36 = vpop.xlane.xlu1 %7422 }
0x1562   :  { %14857 = vrcp.f32 %v7423_v36 }
0x1565   :  { %v7426_v3 = vpop.xlane.xlu0 %7425 }
0x1566   :  { %14859 = vrcp.f32 %v7426_v3 }
0x156c   :  { %v14858_v45 = vpop.eup %14857  ;;  %v7429_v56 = vpop.xlane.xlu1 %7428 }
0x156d   :  { %14861 = vrcp.f32 %v7429_v56  ;;  %v7453_v51 = vmul.f32 %v14858_v45, %v17290_v16  ;;  %v17367_v16 = vadd.f32 %v17154_v59, %v17216_v31 }
0x156f   :  { %14084 = vmatmul.mubr.msk.f32.vlgmr.msra.gmra.mrb[92].mxu1 %vm1120_vm3, %v7453_v51 }
0x1570   :  { %v14860_v55 = vpop.eup %14859  ;;  %14092 = vmatpush3.msra.mxu1 %v17357_v43  ;;  %v7432_v19 = vpop.xlane.xlu0 %7431  ;;  %14093 = vmatprep.mubr.msk.f32.mxu1 %vm15423_vm1, %v18455_v61 }
0x1571   :  { %14863 = vrcp.f32 %v7432_v19  ;;  %v7454_v10 = vmul.f32 %v14860_v55, %v17294_v29  ;;  %14101 = vmatprep.subr.mxu1 %v18455_v61  ;;  %v17377_v29 = vadd.f32 %v17160_v34, %v17216_v31 }
0x1573   :  { %14089 = vmatmul.mubr.msk.f32.vlgmr.msra.gmra.mrb[108].mxu0 %vm1120_vm3, %v7454_v10 }
0x1574   :  { %14097 = vmatpush3.msra.mxu0 %v17367_v16  ;;  %14098 = vmatprep.mubr.msk.f32.mxu0 %vm15423_vm1, %v18455_v61 }
0x1575   :  { %14106 = vmatprep.subr.mxu0 %v18455_v61 }
0x1577   :  { %v14862_v54 = vpop.eup %14861 }
0x1578   :  { %v7455_v58 = vmul.f32 %v14862_v54, %v17298_v2 }
0x157a   :  { %14094 = vmatmul.mubr.msk.f32.vlgmr.msra.gmra.mrb[94].mxu1 %vm1120_vm3, %v7455_v58 }
0x157b   :  { %v14864_v59 = vpop.eup %14863  ;;  %14102 = vmatpush3.msra.mxu1 %v17377_v29  ;;  %14103 = vmatprep.mubr.msk.f32.mxu1 %vm15423_vm1, %v18455_v61 }
0x157c   :  { %v7456_v53 = vmul.f32 %v14864_v59, %v17302_v42  ;;  %14111 = vmatprep.subr.mxu1 %v18455_v61 }
0x157e   :  { %14099 = vmatmul.mubr.msk.f32.vlgmr.msra.gmra.mrb[110].mxu0 %vm1120_vm3, %v7456_v53 }
0x157f   :  { %14107 = vmatpush3.msra.mxu0 %v17387_v20  ;;  %14108 = vmatprep.mubr.msk.f32.mxu0 %vm15423_vm1, %v18455_v61 }
0x1580   :  { %14116 = vmatprep.subr.mxu0 %v18455_v61 }
0x159a   :  { %v7435_v34 = vpop.xlane.xlu1 %7434 }
0x159b   :  { %14865 = vrcp.f32 %v7435_v34 }
0x159e   :  { %v7438_v2 = vpop.xlane.xlu0 %7437 }
0x159f   :  { %14867 = vrcp.f32 %v7438_v2 }
0x15a2   :  { %v7441_v42 = vpop.xlane.xlu1 %7440 }
0x15a3   :  { %14869 = vrcp.f32 %v7441_v42 }
0x15a5   :  { %v14866_v62 = vpop.eup %14865 }
0x15a6   :  { %v7444_v27 = vpop.xlane.xlu0 %7443  ;;  %v7457_v8 = vmul.f32 %v14866_v62, %v17306_v47  ;;  %v17407_v47 = vadd.f32 %v17178_v11, %v17216_v31  ;;  %v8280_v7 = vpop.permute.xlu1 %8279 }
0x15a7   :  { %14871 = vrcp.f32 %v7444_v27 }
0x15a8   :  { %14104 = vmatmul.mubr.msk.f32.vlgmr.msra.gmra.mrb[96].mxu1 %vm1120_vm3, %v7457_v8 }
0x15a9   :  { %v14868_v25 = vpop.eup %14867  ;;  %14112 = vmatpush3.msra.mxu1 %v17397_v18  ;;  %14113 = vmatprep.mubr.msk.f32.mxu1 %vm15423_vm1, %v18455_v61 }
0x15aa   :  { %v8202_v36 = vpop.permute.xlu0 %8201  ;;  %v7458_v3 = vmul.f32 %v14868_v25, %v17310_v26  ;;  %14121 = vmatprep.subr.mxu1 %v18455_v61  ;;  %v8438_v55 = vpop.permute.xlu1 %8437 }
0x15ac   :  { %14109 = vmatmul.mubr.msk.f32.vlgmr.msra.gmra.mrb[112].mxu0 %vm1120_vm3, %v7458_v3 }
0x15ad   :  { %v14870_v45 = vpop.eup %14869  ;;  %14117 = vmatpush3.msra.mxu0 %v17407_v47  ;;  %14118 = vmatprep.mubr.msk.f32.mxu0 %vm15423_vm1, %v18455_v61 }
0x15ae   :  { %v8360_v56 = vpop.permute.xlu0 %8359  ;;  %v7459_v51 = vmul.f32 %v14870_v45, %v17314_v41  ;;  %14126 = vmatprep.subr.mxu0 %v18455_v61  ;;  %v8436_v41 = vpop.permute.xlu1 %8435 }
0x15b0   :  { %14114 = vmatmul.mubr.msk.f32.vlgmr.msra.gmra.mrb[98].mxu1 %vm1120_vm3, %v7459_v51 }
0x15b1   :  { %v14872_v26 = vpop.eup %14871  ;;  %14122 = vmatpush3.xpose.msk.msra.mxu1 %vm506_vm2, %v17342_v38  ;;  %14123 = vmatprep.mubr.msk.f32.mxu1 %vm15423_vm1, %v18455_v61 }
0x15b2   :  { %14131 = vmatprep.subr.mxu1 %v18455_v61  ;;  %v7460_v11 = vmul.f32 %v14872_v26, %v17318_v49  ;;  %v8358_v31 = vpop.permute.xlu0 %8357  ;;  %v8594_v38 = vpop.permute.xlu1 %8593 }
0x15b4   :  { %14119 = vmatmul.mubr.msk.f32.vlgmr.msra.gmra.mrb[114].mxu0 %vm1120_vm3, %v7460_v11  ;;  %14124 = vmatmul.mubr.msk.f32.vlgmr.msra.gmra.mrb[100].mxu1 %vm506_vm2, %v17344_v46 }
0x15b5   :  { %14127 = vmatpush3.xpose.msk.msra.mxu0 %vm506_vm2, %v17348_v35  ;;  %14132 = vmatpush3.xpose.msk.msra.mxu1 %vm506_vm2, %v17352_v48 }
0x15b6   :  { %14128 = vmatprep.mubr.msk.f32.mxu0 %vm15423_vm1, %v18455_v61  ;;  %14133 = vmatprep.mubr.msk.f32.mxu1 %vm15423_vm1, %v18455_v61  ;;  %v8516_v49 = vpop.permute.xlu0 %8515 }
0x15b7   :  { %14136 = vmatprep.subr.mxu0 %v18455_v61  ;;  %14141 = vmatprep.subr.mxu1 %v18455_v61 }
0x15b8   :  { %14129 = vmatmul.mubr.msk.f32.vlgmr.msra.gmra.mrb[116].mxu0 %vm506_vm2, %v17346_v9  ;;  %14134 = vmatmul.mubr.msk.f32.vlgmr.msra.gmra.mrb[102].mxu1 %vm506_vm2, %v8202_v36  ;;  %v8592_v9 = vpop.permute.xlu1 %8591 }
0x15b9   :  { %14137 = vmatpush3.xpose.msk.msra.mxu0 %vm506_vm2, %v17350_v28  ;;  %14142 = vmatpush3.xpose.msk.msra.mxu1 %vm506_vm2, %v8360_v56 }
0x15ba   :  { %14138 = vmatprep.mubr.msk.f32.mxu0 %vm15423_vm1, %v18455_v61  ;;  %14143 = vmatprep.mubr.msk.f32.mxu1 %vm15423_vm1, %v18455_v61  ;;  %v8514_v46 = vpop.permute.xlu0 %8513 }
0x15bb   :  { %14146 = vmatprep.subr.mxu0 %v18455_v61  ;;  %14151 = vmatprep.subr.mxu1 %v18455_v61 }
0x15bc   :  { %14139 = vmatmul.mubr.msk.f32.vlgmr.msra.gmra.mrb[118].mxu0 %vm506_vm2, %v8280_v7  ;;  %14144 = vmatmul.mubr.msk.f32.vlgmr.msra.gmra.mrb[104].mxu1 %vm506_vm2, %v8358_v31 }
0x15bd   :  { %14147 = vmatpush3.xpose.msk.msra.mxu0 %vm506_vm2, %v8438_v55  ;;  %14152 = vmatpush3.xpose.msk.msra.mxu1 %vm506_vm2, %v8516_v49 }
0x15be   :  { %14148 = vmatprep.mubr.msk.f32.mxu0 %vm15423_vm1, %v18455_v61  ;;  %14153 = vmatprep.mubr.msk.f32.mxu1 %vm15423_vm1, %v18455_v61 }
0x15bf   :  { %14156 = vmatprep.subr.mxu0 %v18455_v61  ;;  %14161 = vmatprep.subr.mxu1 %v18455_v61 }
0x15c0   :  { %14149 = vmatmul.mubr.msk.f32.vlgmr.msra.gmra.mrb[120].mxu0 %vm506_vm2, %v8436_v41  ;;  %14154 = vmatmul.mubr.msk.f32.vlgmr.msra.gmra.mrb[106].mxu1 %vm506_vm2, %v8514_v46 }
0x15c1   :  { %14157 = vmatpush3.xpose.msk.msra.mxu0 %vm506_vm2, %v8594_v38  ;;  %14158 = vmatprep.mubr.msk.f32.mxu0 %vm15423_vm1, %v18455_v61 }
0x15c2   :  { %14166 = vmatprep.subr.mxu0 %v18455_v61  ;;  %14163 = vmatprep.mubr.msk.f32.mxu1 %vm15423_vm1, %v18455_v61 }
0x15c4   :  { %14159 = vmatmul.mubr.msk.f32.vlgmr.msra.gmra.mrb[122].mxu0 %vm506_vm2, %v8592_v9 }
0x15c5   :  { %14168 = vmatprep.mubr.msk.f32.mxu0 %vm15423_vm1, %v18455_v61 }
0x1642   :  { %v17468_v35 = vpop.f32.mrb[92].mxu1 }
0x1643   :  { %18468 = vst [vmem:[#allocation36_spill] sm:$0xff] %v17468_v35  ;;  %v14085_v28 = vpop.f32.mrb[93].mxu1 }
0x1646   :  { %v17470_v48 = vpop.f32.mrb[108].mxu0 }
0x1647   :  { %18469 = vst [vmem:[#allocation45_spill] sm:$0xff] %v17470_v48  ;;  %v14090_v19 = vpop.f32.mrb[109].mxu0 }
0x164d   :  { %v17472_v10 = vpop.f32.mrb[94].mxu1 }
0x164e   :  { %18470 = vst [vmem:[#allocation46_spill] sm:$0xff] %v17472_v10  ;;  %v14095_v54 = vpop.f32.mrb[95].mxu1 }
0x1651   :  { %v17474_v58 = vpop.f32.mrb[110].mxu0 }
0x1652   :  { %18471 = vst [vmem:[#allocation47_spill] sm:$0xff] %v17474_v58  ;;  %v14100_v59 = vpop.f32.mrb[111].mxu0 }
0x167b   :  { %v17476_v53 = vpop.f32.mrb[96].mxu1 }
0x167c   :  { %18472 = vst [vmem:[#allocation48_spill] sm:$0xff] %v17476_v53  ;;  %v14105_v34 = vpop.f32.mrb[97].mxu1 }
0x167f   :  { %v17478_v2 = vpop.f32.mrb[112].mxu0 }
0x1680   :  { %18473 = vst [vmem:[#allocation49_spill] sm:$0xff] %v17478_v2  ;;  %v14110_v42 = vpop.f32.mrb[113].mxu0 }
0x1683   :  { %v17480_v62 = vpop.f32.mrb[98].mxu1 }
0x1684   :  { %18474 = vst [vmem:[#allocation50_spill] sm:$0xff] %v17480_v62  ;;  %v14115_v27 = vpop.f32.mrb[99].mxu1 }
0x1687   :  { %v17482_v8 = vpop.f32.mrb[114].mxu0  ;;  %v8119_v25 = vpop.f32.mrb[100].mxu1 }
0x1688   :  { %18475 = vst [vmem:[#allocation51_spill] sm:$0xff] %v17482_v8  ;;  %v8120_v36 = vadd.f32 %v17246_v21, %v8119_v25  ;;  %v14120_v3 = vpop.f32.mrb[115].mxu0  ;;  %v14125_v7 = vpop.f32.mrb[101].mxu1 }
0x168a   :  { %v8669_v45 = vsel %vm1120_vm3, %v8120_v36, -inf }
0x168b   :  { %8670 = vmax.xlane.f32.xlu0 %v8669_v45  ;;  %v8197_v56 = vpop.f32.mrb[116].mxu0  ;;  %v8275_v51 = vpop.f32.mrb[102].mxu1 }
0x168c   :  { %v8198_v26 = vadd.f32 %v17250_v24, %v8197_v56  ;;  %v8276_v55 = vadd.f32 %v17254_v5, %v8275_v51  ;;  %v14130_v11 = vpop.f32.mrb[117].mxu0  ;;  %v14135_v31 = vpop.f32.mrb[103].mxu1 }
0x168e   :  { %v8672_v41 = vsel %vm1120_vm3, %v8198_v26, -inf  ;;  %v8675_v49 = vsel %vm1120_vm3, %v8276_v55, -inf }
0x168f   :  { %8673 = vmax.xlane.f32.xlu1 %v8672_v41  ;;  %v8353_v38 = vpop.f32.mrb[118].mxu0  ;;  %8676 = vmax.xlane.f32.xlu0 %v8675_v49  ;;  %v8431_v21 = vpop.f32.mrb[104].mxu1 }
0x1690   :  { %v8354_v46 = vadd.f32 %v17258_v30, %v8353_v38  ;;  %v8432_v9 = vadd.f32 %v17262_v23, %v8431_v21  ;;  %v14140_v28 = vpop.f32.mrb[119].mxu0  ;;  %v14145_v19 = vpop.f32.mrb[105].mxu1 }
0x1692   :  { %v8678_v54 = vsel %vm1120_vm3, %v8354_v46, -inf  ;;  %v8681_v5 = vsel %vm1120_vm3, %v8432_v9, -inf }
0x1693   :  { %v8509_v59 = vpop.f32.mrb[120].mxu0  ;;  %8679 = vmax.xlane.f32.xlu0 %v8678_v54  ;;  %8682 = vmax.xlane.f32.xlu1 %v8681_v5  ;;  %v8587_v34 = vpop.f32.mrb[106].mxu1 }
0x1694   :  { %v8510_v42 = vadd.f32 %v17266_v32, %v8509_v59  ;;  %v14150_v27 = vpop.f32.mrb[121].mxu0  ;;  %v14155_v25 = vpop.f32.mrb[107].mxu1  ;;  %v17511_v32 = vadd.f32 %v17270_v12, %v8587_v34 }
0x1696   :  { %v8684_v3 = vsel %vm1120_vm3, %v8510_v42, -inf }
0x1697   :  { %v8665_v7 = vpop.f32.mrb[122].mxu0  ;;  %8685 = vmax.xlane.f32.xlu0 %v8684_v3 }
0x1698   :  { %v8666_v30 = vadd.f32 %v17274_v40, %v8665_v7  ;;  %v14160_v23 = vpop.f32.mrb[123].mxu0  ;;  %v8687_v40 = vsel %vm1120_vm3, %v17511_v32, -inf }
0x169a   :  { %v8690_v45 = vsel %vm1120_vm3, %v8666_v30, -inf }
0x169b   :  { %8691 = vmax.xlane.f32.xlu0 %v8690_v45 }
0x16a4   :  { %8758 = vrot.lane.b32.xlu1 %v17226_v22, %s15426_s30 }
0x16b1   :  { %8835 = vrot.lane.b32.xlu0 %v17237_v57, %s15426_s30 }
0x16b5   :  { %9066 = vrot.lane.b32.xlu0 %v17377_v29, %s15426_s30 }
0x16b9   :  { %9220 = vrot.lane.b32.xlu0 %v17397_v18, %s15426_s30 }
0x16bd   :  { %9375 = vrot.lane.b32.xlu0 %v17134_v37, %s15427_s29 }
0x16c1   :  { %9373 = vrot.lane.b32.xlu0 %v17134_v37, %s15428_s11 }
0x16c5   :  { %9531 = vrot.lane.b32.xlu0 %v17146_v39, %s15427_s29 }
0x16c8   :  { %8688 = vmax.xlane.f32.xlu1 %v8687_v40 }
0x16d9   :  { %8912 = vrot.lane.b32.xlu1 %v17357_v43, %s15426_s30 }
0x16dd   :  { %8989 = vrot.lane.b32.xlu1 %v17367_v16, %s15426_s30 }
0x16e1   :  { %9143 = vrot.lane.b32.xlu1 %v17387_v20, %s15426_s30 }
0x16e5   :  { %9297 = vrot.lane.b32.xlu1 %v17407_v47, %s15426_s30 }
0x16e9   :  { %9453 = vrot.lane.b32.xlu1 %v17140_v14, %s15427_s29 }
0x16ed   :  { %9451 = vrot.lane.b32.xlu1 %v17140_v14, %s15428_s11 }
0x16f1   :  { %9609 = vrot.lane.b32.xlu1 %v17152_v63, %s15427_s29 }
0x1718   :  { %v8671_v12 = vpop.xlane.xlu0 %8670 }
0x1719   :  { %v8693_v56 = vsub.f32 %v8120_v36, %v8671_v12 }
0x171b   :  { %v8701_v51 = vmul.f32 1.442695, %v8693_v56 }
0x171c   :  { %v8674_v11 = vpop.xlane.xlu1 %8673  ;;  %v8677_v31 = vpop.xlane.xlu0 %8676 }
0x171d   :  { %14873 = vpow2.f32 %v8701_v51  ;;  %v8694_v41 = vsub.f32 %v8198_v26, %v8674_v11  ;;  %v8695_v49 = vsub.f32 %v8276_v55, %v8677_v31 }
0x171f   :  { %v8703_v38 = vmul.f32 1.442695, %v8694_v41  ;;  %v8705_v21 = vmul.f32 1.442695, %v8695_v49 }
0x1720   :  { %v8683_v28 = vpop.xlane.xlu1 %8682  ;;  %v8680_v19 = vpop.xlane.xlu0 %8679 }
0x1721   :  { %14875 = vpow2.f32 %v8703_v38  ;;  %v8697_v54 = vsub.f32 %v8432_v9, %v8683_v28  ;;  %v8696_v5 = vsub.f32 %v8354_v46, %v8680_v19 }
0x1722   :  { %14877 = vpow2.f32 %v8705_v21 }
0x1723   :  { %v8709_v59 = vmul.f32 1.442695, %v8697_v54  ;;  %v8707_v34 = vmul.f32 1.442695, %v8696_v5 }
0x1724   :  { %v8759_v27 = vpop.permute.xlu1 %8758  ;;  %v8686_v25 = vpop.xlane.xlu0 %8685 }
0x1725   :  { %14879 = vpow2.f32 %v8709_v59  ;;  %v8698_v36 = vsub.f32 %v8510_v42, %v8686_v25  ;;  %14162 = vmatpush3.msra.mxu1 %v8759_v27 }
0x1726   :  { %14881 = vpow2.f32 %v8707_v34  ;;  %14171 = vmatprep.subr.mxu1 %v18455_v61 }
0x1727   :  { %v17532_v26 = vpop.eup %14873  ;;  %v8711_v55 = vmul.f32 1.442695, %v8698_v36 }
0x1728   :  { %v8692_v3 = vpop.xlane.xlu0 %8691  ;;  %v8717_v7 = vsel %vm1120_vm3, %v17532_v26, 0.0 }
0x1729   :  { %14883 = vpow2.f32 %v8711_v55  ;;  %v8700_v46 = vsub.f32 %v8666_v30, %v8692_v3  ;;  %8718 = vadd.xlane.f32.xlu1 %v8717_v7 }
0x172b   :  { %v17536_v9 = vpop.eup %14875  ;;  %v8715_v23 = vmul.f32 1.442695, %v8700_v46 }
0x172c   :  { %v17538_v45 = vpop.eup %14877  ;;  %v8836_v42 = vpop.permute.xlu0 %8835  ;;  %v8720_v40 = vsel %vm1120_vm3, %v17536_v9, 0.0 }
0x172d   :  { %14885 = vpow2.f32 %v8715_v23  ;;  %8721 = vadd.xlane.f32.xlu0 %v8720_v40  ;;  %v8723_v12 = vsel %vm1120_vm3, %v17538_v45, 0.0  ;;  %14167 = vmatpush3.msra.mxu0 %v8836_v42 }
0x172e   :  { %8724 = vadd.xlane.f32.xlu1 %v8723_v12  ;;  %14176 = vmatprep.subr.mxu0 %v18455_v61 }
0x172f   :  { %v17545_v30 = vpop.eup %14879 }
0x1730   :  { %v17547_v56 = vpop.eup %14881  ;;  %v8729_v51 = vsel %vm1120_vm3, %v17545_v30, 0.0  ;;  %v9067_v34 = vpop.permute.xlu0 %9066 }
0x1731   :  { %v8726_v11 = vsel %vm1120_vm3, %v17547_v56, 0.0 }
0x1732   :  { %8730 = vadd.xlane.f32.xlu1 %v8729_v51  ;;  %8727 = vadd.xlane.f32.xlu0 %v8726_v11 }
0x1733   :  { %v17553_v31 = vpop.eup %14883 }
0x1734   :  { %v8732_v41 = vsel %vm1120_vm3, %v17553_v31, 0.0  ;;  %v9221_v25 = vpop.permute.xlu0 %9220 }
0x1736   :  { %8733 = vadd.xlane.f32.xlu0 %v8732_v41 }
0x1737   :  { %v17557_v49 = vpop.eup %14885 }
0x1738   :  { %v8738_v38 = vsel %vm1120_vm3, %v17557_v49, 0.0  ;;  %v17610_v55 = vpop.permute.xlu0 %9375 }
0x173a   :  { %8739 = vadd.xlane.f32.xlu0 %v8738_v38 }
0x173c   :  { %v17612_v7 = vpop.permute.xlu0 %9373 }
0x1740   :  { %v17614_v23 = vpop.permute.xlu0 %9531 }
0x1750   :  { %9529 = vrot.lane.b32.xlu0 %v17146_v39, %s15428_s11 }
0x1754   :  { %9687 = vrot.lane.b32.xlu0 %v17158_v44, %s15427_s29 }
0x1755   :  { %v8689_v21 = vpop.xlane.xlu1 %8688 }
0x1756   :  { %v8699_v28 = vsub.f32 %v17511_v32, %v8689_v21 }
0x1758   :  { %v8713_v19 = vmul.f32 1.442695, %v8699_v28  ;;  %9685 = vrot.lane.b32.xlu0 %v17158_v44, %s15428_s11 }
0x1759   :  { %v8913_v32 = vpop.permute.xlu1 %8912 }
0x175a   :  { %14887 = vpow2.f32 %v8713_v19 }
0x175c   :  { %9843 = vrot.lane.b32.xlu0 %v17170_v52, %s15427_s29 }
0x1760   :  { %9841 = vrot.lane.b32.xlu0 %v17170_v52, %s15428_s11 }
0x1764   :  { %v17572_v54 = vpop.eup %14887  ;;  %10161 = vrot.lane.b32.xlu0 %v17237_v57, %s15428_s11 }
0x1765   :  { %v8735_v5 = vsel %vm1120_vm3, %v17572_v54, 0.0 }
0x1766   :  { %8736 = vadd.xlane.f32.xlu1 %v8735_v5 }
0x1768   :  { %10389 = vrot.lane.b32.xlu0 %v17377_v29, %s15428_s11 }
0x176c   :  { %10541 = vrot.lane.b32.xlu0 %v17397_v18, %s15428_s11 }
0x1770   :  { %10695 = vrot.lane.b32.xlu0 %v17134_v37, %s15413_s19 }
0x1774   :  { %10693 = vrot.lane.b32.xlu0 %v17134_v37, %s15429_s17  ;;  %v8990_v37 = vpop.permute.xlu1 %8989 }
0x1777   :  { %9607 = vrot.lane.b32.xlu1 %v17152_v63, %s15428_s11 }
0x1778   :  { %v9144_v59 = vpop.permute.xlu1 %9143 }
0x177b   :  { %9765 = vrot.lane.b32.xlu1 %v17164_v4, %s15427_s29 }
0x177c   :  { %v9298_v27 = vpop.permute.xlu1 %9297 }
0x177f   :  { %9763 = vrot.lane.b32.xlu1 %v17164_v4, %s15428_s11 }
0x1780   :  { %v9454_v36 = vpop.permute.xlu1 %9453 }
0x1783   :  { %9921 = vrot.lane.b32.xlu1 %v17176_v60, %s15427_s29 }
0x1784   :  { %v9452_v3 = vpop.permute.xlu1 %9451 }
0x1787   :  { %9919 = vrot.lane.b32.xlu1 %v17176_v60, %s15428_s11 }
0x1788   :  { %v9610_v46 = vpop.permute.xlu1 %9609 }
0x178b   :  { %10085 = vrot.lane.b32.xlu1 %v17226_v22, %s15428_s11 }
0x178f   :  { %10237 = vrot.lane.b32.xlu1 %v17357_v43, %s15428_s11 }
0x1793   :  { %10313 = vrot.lane.b32.xlu1 %v17367_v16, %s15428_s11 }
0x1797   :  { %10465 = vrot.lane.b32.xlu1 %v17387_v20, %s15428_s11 }
0x179b   :  { %10617 = vrot.lane.b32.xlu1 %v17407_v47, %s15428_s11 }
0x179f   :  { %10773 = vrot.lane.b32.xlu1 %v17140_v14, %s15413_s19 }
0x17a3   :  { %10771 = vrot.lane.b32.xlu1 %v17140_v14, %s15429_s17 }
0x17b6   :  { %v8719_v42 = vpop.xlane.xlu1 %8718 }
0x17b7   :  { %14889 = vrcp.f32 %v8719_v42 }
0x17ba   :  { %v8722_v40 = vpop.xlane.xlu0 %8721 }
0x17bb   :  { %v8725_v12 = vpop.xlane.xlu1 %8724  ;;  %14891 = vrcp.f32 %v8722_v40 }
0x17bc   :  { %14893 = vrcp.f32 %v8725_v12 }
0x17bf   :  { %v8731_v51 = vpop.xlane.xlu1 %8730  ;;  %v8728_v11 = vpop.xlane.xlu0 %8727 }
0x17c0   :  { %14895 = vrcp.f32 %v8731_v51 }
0x17c1   :  { %v14890_v14 = vpop.eup %14889  ;;  %14897 = vrcp.f32 %v8728_v11 }
0x17c2   :  { %v8749_v41 = vmul.f32 %v14890_v14, %v17532_v26 }
0x17c3   :  { %v8734_v38 = vpop.xlane.xlu0 %8733 }
0x17c4   :  { %14899 = vrcp.f32 %v8734_v38  ;;  %14164 = vmatmul.mubr.msk.f32.vlgmr.msra.gmra.mrb[108].mxu1 %vm1120_vm3, %v8749_v41 }
0x17c5   :  { %v14892_v21 = vpop.eup %14891  ;;  %14172 = vmatpush3.msra.mxu1 %v8913_v32  ;;  %14173 = vmatprep.mubr.msk.f32.mxu1 %vm15423_vm1, %v18455_v61 }
0x17c6   :  { %v14894_v28 = vpop.eup %14893  ;;  %14181 = vmatprep.subr.mxu1 %v18455_v61  ;;  %v8750_v19 = vmul.f32 %v14892_v21, %v17536_v9 }
0x17c7   :  { %v8740_v5 = vpop.xlane.xlu0 %8739  ;;  %v8751_v42 = vmul.f32 %v14894_v28, %v17538_v45 }
0x17c8   :  { %14901 = vrcp.f32 %v8740_v5  ;;  %14169 = vmatmul.mubr.msk.f32.vlgmr.msra.gmra.mrb[124].mxu0 %vm1120_vm3, %v8750_v19 }
0x17c9   :  { %14174 = vmatmul.mubr.msk.f32.vlgmr.msra.gmra.mrb[110].mxu1 %vm1120_vm3, %v8751_v42  ;;  %14177 = vmatpush3.msra.mxu0 %v8990_v37 }
0x17ca   :  { %v14896_v26 = vpop.eup %14895  ;;  %14182 = vmatpush3.msra.mxu1 %v9067_v34  ;;  %14178 = vmatprep.mubr.msk.f32.mxu0 %vm15423_vm1, %v18455_v61 }
0x17cb   :  { %v14898_v32 = vpop.eup %14897  ;;  %14183 = vmatprep.mubr.msk.f32.mxu1 %vm15423_vm1, %v18455_v61  ;;  %14186 = vmatprep.subr.mxu0 %v18455_v61  ;;  %v8753_v9 = vmul.f32 %v14896_v26, %v17545_v30 }
0x17cc   :  { %14191 = vmatprep.subr.mxu1 %v18455_v61  ;;  %v8752_v45 = vmul.f32 %v14898_v32, %v17547_v56 }
0x17cd   :  { %14184 = vmatmul.mubr.msk.f32.vlgmr.msra.gmra.mrb[112].mxu1 %vm1120_vm3, %v8753_v9 }
0x17ce   :  { %v14900_v37 = vpop.eup %14899  ;;  %14179 = vmatmul.mubr.msk.f32.vlgmr.msra.gmra.mrb[126].mxu0 %vm1120_vm3, %v8752_v45  ;;  %14192 = vmatpush3.msra.mxu1 %v9221_v25 }
0x17cf   :  { %14187 = vmatpush3.msra.mxu0 %v9144_v59  ;;  %14188 = vmatprep.mubr.msk.f32.mxu0 %vm15423_vm1, %v18455_v61  ;;  %v8754_v34 = vmul.f32 %v14900_v37, %v17553_v31  ;;  %v9530_v31 = vpop.permute.xlu0 %9529 }
0x17d0   :  { %14196 = vmatprep.subr.mxu0 %v18455_v61  ;;  %14193 = vmatprep.mubr.msk.f32.mxu1 %vm15423_vm1, %v18455_v61 }
0x17d1   :  { %14201 = vmatprep.subr.mxu1 %v18455_v61 }
0x17d2   :  { %v14902_v30 = vpop.eup %14901  ;;  %14189 = vmatmul.mubr.msk.f32.vlgmr.msra.gmra.mrb[128].mxu0 %vm1120_vm3, %v8754_v34 }
0x17d3   :  { %14197 = vmatpush3.msra.mxu0 %v9298_v27  ;;  %14198 = vmatprep.mubr.msk.f32.mxu0 %vm15423_vm1, %v18455_v61  ;;  %v8756_v56 = vmul.f32 %v14902_v30, %v17557_v49  ;;  %v9688_v49 = vpop.permute.xlu0 %9687 }
0x17d4   :  { %14206 = vmatprep.subr.mxu0 %v18455_v61 }
0x17d6   :  { %14199 = vmatmul.mubr.msk.f32.vlgmr.msra.gmra.mrb[130].mxu0 %vm1120_vm3, %v8756_v56 }
0x17d7   :  { %14208 = vmatprep.mubr.msk.f32.mxu0 %vm15423_vm1, %v18455_v61  ;;  %v9686_v27 = vpop.permute.xlu0 %9685 }
0x17da   :  { %14207 = vmatpush3.xpose.msk.msra.mxu0 %vm506_vm2, %v9454_v36 }
0x17db   :  { %14216 = vmatprep.subr.mxu0 %v18455_v61 }
0x17dd   :  { %14209 = vmatmul.mubr.msk.f32.vlgmr.msra.gmra.mrb[132].mxu0 %vm506_vm2, %v9452_v3  ;;  %v9844_v3 = vpop.permute.xlu0 %9843 }
0x17de   :  { %14217 = vmatpush3.xpose.msk.msra.mxu0 %vm506_vm2, %v9610_v46  ;;  %14218 = vmatprep.mubr.msk.f32.mxu0 %vm15423_vm1, %v18455_v61 }
0x17df   :  { %14226 = vmatprep.subr.mxu0 %v18455_v61 }
0x17e1   :  { %v9842_v51 = vpop.permute.xlu0 %9841 }
0x17f3   :  { %v8737_v59 = vpop.xlane.xlu1 %8736 }
0x17f4   :  { %14903 = vrcp.f32 %v8737_v59 }
0x17f7   :  { %v9608_v25 = vpop.permute.xlu1 %9607 }
0x17f8   :  { %14219 = vmatmul.mubr.msk.f32.vlgmr.msra.gmra.mrb[134].mxu0 %vm506_vm2, %v9608_v25 }
0x17f9   :  { %14228 = vmatprep.mubr.msk.f32.mxu0 %vm15423_vm1, %v18455_v61 }
0x17fb   :  { %v9766_v36 = vpop.permute.xlu1 %9765 }
0x17fc   :  { %14227 = vmatpush3.xpose.msk.msra.mxu0 %vm506_vm2, %v9766_v36 }
0x17fd   :  { %14236 = vmatprep.subr.mxu0 %v18455_v61 }
0x17fe   :  { %v14904_v46 = vpop.eup %14903 }
0x17ff   :  { %v9764_v40 = vpop.permute.xlu1 %9763  ;;  %v8755_v12 = vmul.f32 %v14904_v46, %v17572_v54 }
0x1800   :  { %14229 = vmatmul.mubr.msk.f32.vlgmr.msra.gmra.mrb[136].mxu0 %vm506_vm2, %v9764_v40  ;;  %v17717_v40 = vld [vmem:[#allocation2] ss:$0 sm:$0xff] }
0x1801   :  { %14194 = vmatmul.mubr.msk.f32.vlgmr.msra.gmra.mrb[114].mxu1 %vm1120_vm3, %v8755_v12  ;;  %14238 = vmatprep.mubr.msk.f32.mxu0 %vm15423_vm1, %v18455_v61 }
0x1802   :  { %14202 = vmatpush3.xpose.msk.msra.mxu1 %vm506_vm2, %v17610_v55  ;;  %14203 = vmatprep.mubr.msk.f32.mxu1 %vm15423_vm1, %v18455_v61  ;;  %v10162_v55 = vpop.permute.xlu0 %10161 }
0x1803   :  { %v9922_v11 = vpop.permute.xlu1 %9921  ;;  %14211 = vmatprep.subr.mxu1 %v18455_v61 }
0x1804   :  { %14237 = vmatpush3.xpose.msk.msra.mxu0 %vm506_vm2, %v9922_v11 }
0x1805   :  { %14204 = vmatmul.mubr.msk.f32.vlgmr.msra.gmra.mrb[116].mxu1 %vm506_vm2, %v17612_v7  ;;  %14246 = vmatprep.subr.mxu0 %v18455_v61 }
0x1806   :  { %14212 = vmatpush3.xpose.msk.msra.mxu1 %vm506_vm2, %v17614_v23  ;;  %14213 = vmatprep.mubr.msk.f32.mxu1 %vm15423_vm1, %v18455_v61  ;;  %v17771_v0 = vpop.permute.xlu0 %10389 }
0x1807   :  { %v9920_v54 = vpop.permute.xlu1 %9919  ;;  %14221 = vmatprep.subr.mxu1 %v18455_v61 }
0x1808   :  { %14239 = vmatmul.mubr.msk.f32.vlgmr.msra.gmra.mrb[138].mxu0 %vm506_vm2, %v9920_v54 }
0x1809   :  { %14247 = vmatpush3.msra.mxu0 %v10162_v55  ;;  %14214 = vmatmul.mubr.msk.f32.vlgmr.msra.gmra.mrb[118].mxu1 %vm506_vm2, %v9530_v31 }
0x180a   :  { %14222 = vmatpush3.xpose.msk.msra.mxu1 %vm506_vm2, %v9688_v49  ;;  %14223 = vmatprep.mubr.msk.f32.mxu1 %vm15423_vm1, %v18455_v61  ;;  %v17773_v33 = vpop.permute.xlu0 %10541 }
0x180b   :  { %14231 = vmatprep.subr.mxu1 %v18455_v61  ;;  %14248 = vmatprep.mubr.msk.f32.mxu0 %vm15423_vm1, %v18455_v61  ;;  %v10086_v7 = vpop.permute.xlu1 %10085 }
0x180c   :  { %14256 = vmatprep.subr.mxu0 %v18455_v61 }
0x180d   :  { %14224 = vmatmul.mubr.msk.f32.vlgmr.msra.gmra.mrb[120].mxu1 %vm506_vm2, %v9686_v27 }
0x180e   :  { %14232 = vmatpush3.xpose.msk.msra.mxu1 %vm506_vm2, %v9844_v3  ;;  %14233 = vmatprep.mubr.msk.f32.mxu1 %vm15423_vm1, %v18455_v61  ;;  %v17775_v6 = vpop.permute.xlu0 %10695 }
0x180f   :  { %14241 = vmatprep.subr.mxu1 %v18455_v61 }
0x1811   :  { %14234 = vmatmul.mubr.msk.f32.vlgmr.msra.gmra.mrb[122].mxu1 %vm506_vm2, %v9842_v51 }
0x1812   :  { %14242 = vmatpush3.msra.mxu1 %v10086_v7  ;;  %14243 = vmatprep.mubr.msk.f32.mxu1 %vm15423_vm1, %v18455_v61  ;;  %v17721_v7 = vld [vmem:[#allocation2 + $0x2] ss:$0 sm:$0xff]  ;;  %v17777_v50 = vpop.permute.xlu0 %10693 }
0x1813   :  { %14251 = vmatprep.subr.mxu1 %v18455_v61 }
0x1897   :  { %v17699_v23 = vpop.f32.mrb[108].mxu1 }
0x1898   :  { %v14165_v14 = vpop.f32.mrb[109].mxu1 }
0x189b   :  { %v17701_v41 = vpop.f32.mrb[124].mxu0 }
0x189c   :  { %v17703_v38 = vpop.f32.mrb[110].mxu1  ;;  %v14170_v21 = vpop.f32.mrb[125].mxu0 }
0x189d   :  { %v14175_v28 = vpop.f32.mrb[111].mxu1 }
0x189e   :  { %v17724_v28 = vld [vmem:[#allocation2 + $0x3] ss:$0 sm:$0xff] }
0x18a0   :  { %v17705_v19 = vpop.f32.mrb[112].mxu1 }
0x18a1   :  { %v17707_v5 = vpop.f32.mrb[126].mxu0  ;;  %v14185_v42 = vpop.f32.mrb[113].mxu1 }
0x18a2   :  { %v14180_v26 = vpop.f32.mrb[127].mxu0 }
0x18a5   :  { %v17709_v32 = vpop.f32.mrb[128].mxu0 }
0x18a6   :  { %v14190_v9 = vpop.f32.mrb[129].mxu0 }
0x18a9   :  { %v17711_v45 = vpop.f32.mrb[130].mxu0 }
0x18aa   :  { %v14200_v37 = vpop.f32.mrb[131].mxu0 }
0x18ab   :  { %v17728_v37 = vld [vmem:[#allocation2 + $0x4] ss:$0 sm:$0xff] }
0x18b0   :  { %v9525_v34 = vpop.f32.mrb[132].mxu0 }
0x18b1   :  { %v9526_v30 = vadd.f32 %v17250_v24, %v9525_v34  ;;  %v14210_v56 = vpop.f32.mrb[133].mxu0 }
0x18b3   :  { %v10000_v31 = vsel %vm1120_vm3, %v9526_v30, -inf }
0x18b4   :  { %10001 = vmax.xlane.f32.xlu1 %v10000_v31  ;;  %v17731_v31 = vld [vmem:[#allocation2 + $0x5] ss:$0 sm:$0xff] }
0x18cb   :  { %v9681_v49 = vpop.f32.mrb[134].mxu0 }
0x18cc   :  { %v14220_v59 = vpop.f32.mrb[135].mxu0  ;;  %v9682_v42 = vadd.f32 %v17724_v28, %v9681_v49 }
0x18d3   :  { %v9837_v27 = vpop.f32.mrb[136].mxu0 }
0x18d4   :  { %v17715_v25 = vpop.f32.mrb[114].mxu1  ;;  %v14230_v36 = vpop.f32.mrb[137].mxu0  ;;  %v9838_v59 = vadd.f32 %v17731_v31, %v9837_v27 }
0x18d5   :  { %v14195_v3 = vpop.f32.mrb[115].mxu1  ;;  %v10006_v36 = vsel %vm1120_vm3, %v9682_v42, -inf }
0x18d6   :  { %v10012_v27 = vsel %vm1120_vm3, %v9838_v59, -inf }
0x18d8   :  { %v9447_v46 = vpop.f32.mrb[116].mxu1 }
0x18d9   :  { %v9448_v12 = vadd.f32 %v17717_v40, %v9447_v46  ;;  %v14205_v51 = vpop.f32.mrb[117].mxu1  ;;  %v17736_v46 = vld [vmem:[#allocation2 + $0x6] ss:$0 sm:$0xff] }
0x18db   :  { %v9993_v11 = vpop.f32.mrb[138].mxu0  ;;  %v9997_v24 = vsel %vm1120_vm3, %v9448_v12, -inf }
0x18dc   :  { %9998 = vmax.xlane.f32.xlu0 %v9997_v24  ;;  %v9603_v54 = vpop.f32.mrb[118].mxu1  ;;  %v14240_v55 = vpop.f32.mrb[139].mxu0 }
0x18dd   :  { %v9604_v14 = vadd.f32 %v17721_v7, %v9603_v54  ;;  %v14215_v21 = vpop.f32.mrb[119].mxu1  ;;  %v17741_v54 = vld [vmem:[#allocation2 + $0x7] ss:$0 sm:$0xff] }
0x18de   :  { %v17744_v55 = vadd.f32 %v17741_v54, %v9993_v11 }
0x18df   :  { %v10003_v26 = vsel %vm1120_vm3, %v9604_v14, -inf }
0x18e0   :  { %10004 = vmax.xlane.f32.xlu0 %v10003_v26  ;;  %v9759_v9 = vpop.f32.mrb[120].mxu1  ;;  %v10018_v26 = vsel %vm1120_vm3, %v17744_v55, -inf }
0x18e1   :  { %v9760_v34 = vadd.f32 %v17728_v37, %v9759_v9  ;;  %v14225_v56 = vpop.f32.mrb[121].mxu1  ;;  %v17755_v9 = vpop.permute.xlu1 %10237 }
0x18e3   :  { %v10009_v3 = vsel %vm1120_vm3, %v9760_v34, -inf }
0x18e4   :  { %10007 = vmax.xlane.f32.xlu0 %v10006_v36  ;;  %10010 = vmax.xlane.f32.xlu1 %v10009_v3  ;;  %v9915_v49 = vpop.f32.mrb[122].mxu1 }
0x18e5   :  { %v17739_v51 = vadd.f32 %v17736_v46, %v9915_v49  ;;  %v14235_v24 = vpop.f32.mrb[123].mxu1  ;;  %v17757_v11 = vpop.permute.xlu1 %10313 }
0x18e7   :  { %v10015_v21 = vsel %vm1120_vm3, %v17739_v51, -inf }
0x18e8   :  { %10013 = vmax.xlane.f32.xlu0 %v10012_v27  ;;  %10016 = vmax.xlane.f32.xlu1 %v10015_v21 }
0x18e9   :  { %v17759_v56 = vpop.permute.xlu1 %10465 }
0x18ec   :  { %10019 = vmax.xlane.f32.xlu0 %v10018_v26 }
0x18ed   :  { %v17761_v36 = vpop.permute.xlu1 %10617 }
0x18f1   :  { %v17763_v3 = vpop.permute.xlu1 %10773 }
0x18f5   :  { %v17765_v49 = vpop.permute.xlu1 %10771 }
0x18f9   :  { %10929 = vrot.lane.b32.xlu1 %v17152_v63, %s15413_s19 }
0x1902   :  { %10851 = vrot.lane.b32.xlu0 %v17146_v39, %s15413_s19 }
0x1941   :  { %v10002_v24 = vpop.xlane.xlu1 %10001 }
0x1942   :  { %v10022_v27 = vsub.f32 %v9526_v30, %v10002_v24 }
0x1944   :  { %v10031_v21 = vmul.f32 1.442695, %v10022_v27 }
0x1946   :  { %14905 = vpow2.f32 %v10031_v21 }
0x1950   :  { %v17767_v26 = vpop.eup %14905 }
0x1951   :  { %v10048_v1 = vsel %vm1120_vm3, %v17767_v26, 0.0 }
0x1952   :  { %10049 = vadd.xlane.f32.xlu0 %v10048_v1 }
0x1969   :  { %v9999_v15 = vpop.xlane.xlu0 %9998 }
0x196a   :  { %v10021_v13 = vsub.f32 %v9448_v12, %v9999_v15 }
0x196c   :  { %v10029_v17 = vmul.f32 1.442695, %v10021_v13 }
0x196d   :  { %v10005_v30 = vpop.xlane.xlu0 %10004 }
0x196e   :  { %14907 = vpow2.f32 %v10029_v17  ;;  %v10023_v24 = vsub.f32 %v9604_v14, %v10005_v30 }
0x1970   :  { %v10033_v27 = vmul.f32 1.442695, %v10023_v24 }
0x1971   :  { %v10011_v21 = vpop.xlane.xlu1 %10010  ;;  %v10008_v8 = vpop.xlane.xlu0 %10007 }
0x1972   :  { %14909 = vpow2.f32 %v10033_v27  ;;  %v10025_v2 = vsub.f32 %v9760_v34, %v10011_v21  ;;  %v10024_v1 = vsub.f32 %v9682_v42, %v10008_v8 }
0x1974   :  { %v10037_v62 = vmul.f32 1.442695, %v10025_v2  ;;  %v10035_v58 = vmul.f32 1.442695, %v10024_v1 }
0x1975   :  { %v10014_v53 = vpop.xlane.xlu0 %10013 }
0x1976   :  { %14911 = vpow2.f32 %v10037_v62  ;;  %v10026_v48 = vsub.f32 %v9838_v59, %v10014_v53  ;;  %v10017_v53 = vpop.xlane.xlu1 %10016 }
0x1977   :  { %14913 = vpow2.f32 %v10035_v58  ;;  %v10027_v62 = vsub.f32 %v17739_v51, %v10017_v53 }
0x1978   :  { %v14908_v10 = vpop.eup %14907  ;;  %v10039_v35 = vmul.f32 1.442695, %v10026_v48 }
0x1979   :  { %v10045_v15 = vsel %vm1120_vm3, %v14908_v10, 0.0  ;;  %v10020_v8 = vpop.xlane.xlu0 %10019  ;;  %v10041_v42 = vmul.f32 1.442695, %v10027_v62 }
0x197a   :  { %10046 = vadd.xlane.f32.xlu1 %v10045_v15  ;;  %14915 = vpow2.f32 %v10039_v35  ;;  %v10028_v34 = vsub.f32 %v17744_v55, %v10020_v8 }
0x197b   :  { %14917 = vpow2.f32 %v10041_v42 }
0x197c   :  { %v14910_v13 = vpop.eup %14909  ;;  %v10043_v59 = vmul.f32 1.442695, %v10028_v34 }
0x197d   :  { %v10051_v17 = vsel %vm1120_vm3, %v14910_v13, 0.0  ;;  %v17821_v51 = vpop.permute.xlu0 %10851 }
0x197e   :  { %10052 = vadd.xlane.f32.xlu1 %v10051_v17  ;;  %14919 = vpow2.f32 %v10043_v59 }
0x1980   :  { %v17781_v12 = vpop.eup %14911 }
0x1981   :  { %v17783_v14 = vpop.eup %14913  ;;  %v10057_v2 = vsel %vm1120_vm3, %v17781_v12, 0.0 }
0x1982   :  { %10058 = vadd.xlane.f32.xlu1 %v10057_v2  ;;  %v10054_v58 = vsel %vm1120_vm3, %v17783_v14, 0.0 }
0x1983   :  { %10055 = vadd.xlane.f32.xlu0 %v10054_v58 }
0x1984   :  { %v17789_v48 = vpop.eup %14915 }
0x1985   :  { %v10060_v35 = vsel %vm1120_vm3, %v17789_v48, 0.0  ;;  %v17799_v30 = vpop.eup %14917 }
0x1986   :  { %v10063_v24 = vsel %vm1120_vm3, %v17799_v30, 0.0 }
0x1987   :  { %10061 = vadd.xlane.f32.xlu0 %v10060_v35 }
0x1993   :  { %10927 = vrot.lane.b32.xlu1 %v17152_v63, %s15429_s17  ;;  %v17803_v63 = vpop.eup %14919 }
0x199d   :  { %10849 = vrot.lane.b32.xlu0 %v17146_v39, %s15429_s17  ;;  %v10066_v39 = vsel %vm1120_vm3, %v17803_v63, 0.0 }
0x19b7   :  { %10064 = vadd.xlane.f32.xlu1 %v10063_v24 }
0x19bc   :  { %10067 = vadd.xlane.f32.xlu0 %v10066_v39 }
0x19c8   :  { %11085 = vrot.lane.b32.xlu1 %v17164_v4, %s15413_s19 }
0x19cc   :  { %11083 = vrot.lane.b32.xlu1 %v17164_v4, %s15429_s17 }
0x19d0   :  { %11241 = vrot.lane.b32.xlu1 %v17176_v60, %s15413_s19 }
0x19d2   :  { %11007 = vrot.lane.b32.xlu0 %v17158_v44, %s15413_s19 }
0x19d4   :  { %11239 = vrot.lane.b32.xlu1 %v17176_v60, %s15429_s17 }
0x19d6   :  { %11005 = vrot.lane.b32.xlu0 %v17158_v44, %s15429_s17  ;;  %v17831_v44 = vpop.permute.xlu1 %10929 }
0x19da   :  { %11163 = vrot.lane.b32.xlu0 %v17170_v52, %s15413_s19 }
0x19de   :  { %11161 = vrot.lane.b32.xlu0 %v17170_v52, %s15429_s17 }
0x19df   :  { %v10050_v4 = vpop.xlane.xlu0 %10049 }
0x19e0   :  { %14921 = vrcp.f32 %v10050_v4 }
0x19ea   :  { %v14922_v55 = vpop.eup %14921 }
0x19eb   :  { %v10078_v27 = vmul.f32 %v14922_v55, %v17767_v26 }
0x19ed   :  { %14249 = vmatmul.mubr.msk.f32.vlgmr.msra.gmra.mrb[140].mxu0 %vm1120_vm3, %v10078_v27 }
0x19ee   :  { %14257 = vmatpush3.msra.mxu0 %v17757_v11  ;;  %14258 = vmatprep.mubr.msk.f32.mxu0 %vm15423_vm1, %v18455_v61 }
0x19ef   :  { %14266 = vmatprep.subr.mxu0 %v18455_v61 }
0x1a07   :  { %v10047_v60 = vpop.xlane.xlu1 %10046 }
0x1a08   :  { %14923 = vrcp.f32 %v10047_v60 }
0x1a0b   :  { %v10053_v21 = vpop.xlane.xlu1 %10052 }
0x1a0c   :  { %14925 = vrcp.f32 %v10053_v21 }
0x1a0f   :  { %v10059_v52 = vpop.xlane.xlu1 %10058 }
0x1a10   :  { %14927 = vrcp.f32 %v10059_v52  ;;  %v10056_v1 = vpop.xlane.xlu0 %10055 }
0x1a11   :  { %14929 = vrcp.f32 %v10056_v1 }
0x1a12   :  { %v14924_v26 = vpop.eup %14923 }
0x1a13   :  { %v10077_v15 = vmul.f32 %v14924_v26, %v14908_v10 }
0x1a14   :  { %v10062_v17 = vpop.xlane.xlu0 %10061 }
0x1a15   :  { %14931 = vrcp.f32 %v10062_v17  ;;  %14244 = vmatmul.mubr.msk.f32.vlgmr.msra.gmra.mrb[124].mxu1 %vm1120_vm3, %v10077_v15 }
0x1a16   :  { %v14926_v11 = vpop.eup %14925  ;;  %14252 = vmatpush3.msra.mxu1 %v17755_v9  ;;  %14253 = vmatprep.mubr.msk.f32.mxu1 %vm15423_vm1, %v18455_v61 }
0x1a17   :  { %v10079_v2 = vmul.f32 %v14926_v11, %v14910_v13  ;;  %14261 = vmatprep.subr.mxu1 %v18455_v61 }
0x1a19   :  { %14254 = vmatmul.mubr.msk.f32.vlgmr.msra.gmra.mrb[126].mxu1 %vm1120_vm3, %v10079_v2 }
0x1a1a   :  { %v14928_v58 = vpop.eup %14927  ;;  %14262 = vmatpush3.msra.mxu1 %v17771_v0  ;;  %14263 = vmatprep.mubr.msk.f32.mxu1 %vm15423_vm1, %v18455_v61 }
0x1a1b   :  { %v14930_v10 = vpop.eup %14929  ;;  %v10081_v35 = vmul.f32 %v14928_v58, %v17781_v12  ;;  %14271 = vmatprep.subr.mxu1 %v18455_v61  ;;  %v10850_v12 = vpop.permute.xlu0 %10849 }
0x1a1c   :  { %v10080_v9 = vmul.f32 %v14930_v10, %v17783_v14 }
0x1a1d   :  { %14264 = vmatmul.mubr.msk.f32.vlgmr.msra.gmra.mrb[128].mxu1 %vm1120_vm3, %v10081_v35 }
0x1a1e   :  { %14259 = vmatmul.mubr.msk.f32.vlgmr.msra.gmra.mrb[142].mxu0 %vm1120_vm3, %v10080_v9  ;;  %14272 = vmatpush3.msra.mxu1 %v17773_v33  ;;  %v10928_v33 = vpop.permute.xlu1 %10927 }
0x1a1f   :  { %v14932_v13 = vpop.eup %14931  ;;  %14267 = vmatpush3.msra.mxu0 %v17759_v56  ;;  %14268 = vmatprep.mubr.msk.f32.mxu0 %vm15423_vm1, %v18455_v61 }
0x1a20   :  { %v10082_v0 = vmul.f32 %v14932_v13, %v17789_v48  ;;  %14276 = vmatprep.subr.mxu0 %v18455_v61  ;;  %14273 = vmatprep.mubr.msk.f32.mxu1 %vm15423_vm1, %v18455_v61 }
0x1a21   :  { %14281 = vmatprep.subr.mxu1 %v18455_v61 }
0x1a22   :  { %14269 = vmatmul.mubr.msk.f32.vlgmr.msra.gmra.mrb[144].mxu0 %vm1120_vm3, %v10082_v0 }
0x1a23   :  { %14277 = vmatpush3.msra.mxu0 %v17761_v36  ;;  %14278 = vmatprep.mubr.msk.f32.mxu0 %vm15423_vm1, %v18455_v61 }
0x1a24   :  { %14286 = vmatprep.subr.mxu0 %v18455_v61 }
0x1a44   :  { %v10065_v56 = vpop.xlane.xlu1 %10064 }
0x1a45   :  { %14933 = vrcp.f32 %v10065_v56 }
0x1a48   :  { %v11086_v8 = vpop.permute.xlu1 %11085 }
0x1a49   :  { %v10068_v14 = vpop.xlane.xlu0 %10067 }
0x1a4a   :  { %14935 = vrcp.f32 %v10068_v14 }
0x1a4d   :  { %v11008_v53 = vpop.permute.xlu0 %11007 }
0x1a4f   :  { %v14934_v48 = vpop.eup %14933 }
0x1a50   :  { %v10083_v62 = vmul.f32 %v14934_v48, %v17799_v30 }
0x1a51   :  { %v11006_v34 = vpop.permute.xlu0 %11005 }
0x1a52   :  { %14274 = vmatmul.mubr.msk.f32.vlgmr.msra.gmra.mrb[130].mxu1 %vm1120_vm3, %v10083_v62 }
0x1a53   :  { %14282 = vmatpush3.xpose.msk.msra.mxu1 %vm506_vm2, %v17775_v6  ;;  %14283 = vmatprep.mubr.msk.f32.mxu1 %vm15423_vm1, %v18455_v61  ;;  %v11084_v6 = vpop.permute.xlu1 %11083 }
0x1a54   :  { %v14936_v36 = vpop.eup %14935  ;;  %14291 = vmatprep.subr.mxu1 %v18455_v61 }
0x1a55   :  { %v10084_v42 = vmul.f32 %v14936_v36, %v17803_v63 }
0x1a56   :  { %14284 = vmatmul.mubr.msk.f32.vlgmr.msra.gmra.mrb[132].mxu1 %vm506_vm2, %v17777_v50  ;;  %v11164_v50 = vpop.permute.xlu0 %11163 }
0x1a57   :  { %14279 = vmatmul.mubr.msk.f32.vlgmr.msra.gmra.mrb[146].mxu0 %vm1120_vm3, %v10084_v42  ;;  %14292 = vmatpush3.xpose.msk.msra.mxu1 %vm506_vm2, %v17821_v51 }
0x1a58   :  { %14287 = vmatpush3.xpose.msk.msra.mxu0 %vm506_vm2, %v17763_v3  ;;  %14288 = vmatprep.mubr.msk.f32.mxu0 %vm15423_vm1, %v18455_v61  ;;  %v11242_v3 = vpop.permute.xlu1 %11241 }
0x1a59   :  { %14293 = vmatprep.mubr.msk.f32.mxu1 %vm15423_vm1, %v18455_v61  ;;  %14296 = vmatprep.subr.mxu0 %v18455_v61 }
0x1a5a   :  { %14301 = vmatprep.subr.mxu1 %v18455_v61  ;;  %14294 = vmatmul.mubr.msk.f32.vlgmr.msra.gmra.mrb[134].mxu1 %vm506_vm2, %v10850_v12 }
0x1a5b   :  { %14289 = vmatmul.mubr.msk.f32.vlgmr.msra.gmra.mrb[148].mxu0 %vm506_vm2, %v17765_v49  ;;  %14302 = vmatpush3.xpose.msk.msra.mxu1 %vm506_vm2, %v11008_v53  ;;  %v11162_v49 = vpop.permute.xlu0 %11161 }
0x1a5c   :  { %14297 = vmatpush3.xpose.msk.msra.mxu0 %vm506_vm2, %v17831_v44  ;;  %14298 = vmatprep.mubr.msk.f32.mxu0 %vm15423_vm1, %v18455_v61  ;;  %v11240_v59 = vpop.permute.xlu1 %11239 }
0x1a5d   :  { %14303 = vmatprep.mubr.msk.f32.mxu1 %vm15423_vm1, %v18455_v61  ;;  %14306 = vmatprep.subr.mxu0 %v18455_v61 }
0x1a5e   :  { %14311 = vmatprep.subr.mxu1 %v18455_v61  ;;  %14304 = vmatmul.mubr.msk.f32.vlgmr.msra.gmra.mrb[136].mxu1 %vm506_vm2, %v11006_v34 }
0x1a5f   :  { %14299 = vmatmul.mubr.msk.f32.vlgmr.msra.gmra.mrb[150].mxu0 %vm506_vm2, %v10928_v33  ;;  %14312 = vmatpush3.xpose.msk.msra.mxu1 %vm506_vm2, %v11164_v50  ;;  %v15032_v33 = vld [vmem:[#allocation2 + $0x1] ss:$0 sm:$0xff] }
0x1a60   :  { %14307 = vmatpush3.xpose.msk.msra.mxu0 %vm506_vm2, %v11086_v8  ;;  %14308 = vmatprep.mubr.msk.f32.mxu0 %vm15423_vm1, %v18455_v61 }
0x1a61   :  { %14313 = vmatprep.mubr.msk.f32.mxu1 %vm15423_vm1, %v18455_v61  ;;  %14316 = vmatprep.subr.mxu0 %v18455_v61 }
0x1a62   :  { %14314 = vmatmul.mubr.msk.f32.vlgmr.msra.gmra.mrb[138].mxu1 %vm506_vm2, %v11162_v49  ;;  %14321 = vmatprep.subr.mxu1 %v18455_v61 }
0x1a63   :  { %14309 = vmatmul.mubr.msk.f32.vlgmr.msra.gmra.mrb[152].mxu0 %vm506_vm2, %v11084_v6  ;;  %14323 = vmatprep.mubr.msk.f32.mxu1 %vm15423_vm1, %v18455_v61 }
0x1a64   :  { %14317 = vmatpush3.xpose.msk.msra.mxu0 %vm506_vm2, %v11242_v3  ;;  %14318 = vmatprep.mubr.msk.f32.mxu0 %vm15423_vm1, %v18455_v61 }
0x1a65   :  { %14326 = vmatprep.subr.mxu0 %v18455_v61 }
0x1a67   :  { %14319 = vmatmul.mubr.msk.f32.vlgmr.msra.gmra.mrb[154].mxu0 %vm506_vm2, %v11240_v59 }
0x1a68   :  { %14328 = vmatprep.mubr.msk.f32.mxu0 %vm15423_vm1, %v18455_v61 }
0x1ac0   :  { %v17915_v30 = vpop.f32.mrb[140].mxu0 }
0x1ac1   :  { %v14250_v24 = vpop.f32.mrb[141].mxu0 }
0x1ae8   :  { %v17917_v63 = vpop.f32.mrb[124].mxu1 }
0x1ae9   :  { %v14245_v39 = vpop.f32.mrb[125].mxu1 }
0x1aec   :  { %v17919_v51 = vpop.f32.mrb[126].mxu1 }
0x1aed   :  { %v14255_v4 = vpop.f32.mrb[127].mxu1 }
0x1af0   :  { %v17921_v55 = vpop.f32.mrb[128].mxu1 }
0x1af1   :  { %v17923_v27 = vpop.f32.mrb[142].mxu0  ;;  %v14265_v44 = vpop.f32.mrb[129].mxu1 }
0x1af2   :  { %v14260_v60 = vpop.f32.mrb[143].mxu0 }
0x1af5   :  { %v17925_v21 = vpop.f32.mrb[144].mxu0 }
0x1af6   :  { %v14270_v52 = vpop.f32.mrb[145].mxu0 }
0x1b25   :  { %v17927_v1 = vpop.f32.mrb[130].mxu1 }
0x1b26   :  { %v14275_v26 = vpop.f32.mrb[131].mxu1 }
0x1b29   :  { %v10767_v15 = vpop.f32.mrb[132].mxu1 }
0x1b2a   :  { %v17929_v17 = vpop.f32.mrb[146].mxu0  ;;  %v10768_v11 = vadd.f32 %v17717_v40, %v10767_v15  ;;  %v14285_v2 = vpop.f32.mrb[133].mxu1 }
0x1b2b   :  { %v14280_v58 = vpop.f32.mrb[147].mxu0 }
0x1b2c   :  { %v11317_v10 = vsel %vm1120_vm3, %v10768_v11, -inf }
0x1b2d   :  { %11318 = vmax.xlane.f32.xlu0 %v11317_v10  ;;  %v10923_v35 = vpop.f32.mrb[134].mxu1 }
0x1b2e   :  { %v10845_v9 = vpop.f32.mrb[148].mxu0  ;;  %v10924_v13 = vadd.f32 %v17721_v7, %v10923_v35  ;;  %v14295_v0 = vpop.f32.mrb[135].mxu1 }
0x1b2f   :  { %v10846_v56 = vadd.f32 %v15032_v33, %v10845_v9  ;;  %v14290_v12 = vpop.f32.mrb[149].mxu0 }
0x1b30   :  { %v11323_v14 = vsel %vm1120_vm3, %v10924_v13, -inf }
0x1b31   :  { %11324 = vmax.xlane.f32.xlu0 %v11323_v14  ;;  %v11320_v48 = vsel %vm1120_vm3, %v10846_v56, -inf  ;;  %v11079_v53 = vpop.f32.mrb[136].mxu1 }
0x1b32   :  { %11321 = vmax.xlane.f32.xlu1 %v11320_v48  ;;  %v11001_v40 = vpop.f32.mrb[150].mxu0  ;;  %v11080_v62 = vadd.f32 %v17728_v37, %v11079_v53  ;;  %v14305_v36 = vpop.f32.mrb[137].mxu1 }
0x1b33   :  { %v11002_v8 = vadd.f32 %v17724_v28, %v11001_v40  ;;  %v14300_v42 = vpop.f32.mrb[151].mxu0 }
0x1b34   :  { %v11329_v7 = vsel %vm1120_vm3, %v11080_v62, -inf }
0x1b35   :  { %v11326_v34 = vsel %vm1120_vm3, %v11002_v8, -inf  ;;  %v11235_v6 = vpop.f32.mrb[138].mxu1 }
0x1b36   :  { %11327 = vmax.xlane.f32.xlu0 %v11326_v34  ;;  %v11157_v50 = vpop.f32.mrb[152].mxu0  ;;  %11330 = vmax.xlane.f32.xlu1 %v11329_v7  ;;  %v11236_v3 = vadd.f32 %v17736_v46, %v11235_v6  ;;  %v14315_v49 = vpop.f32.mrb[139].mxu1 }
0x1b37   :  { %v11158_v59 = vadd.f32 %v17731_v31, %v11157_v50  ;;  %v14310_v24 = vpop.f32.mrb[153].mxu0 }
0x1b38   :  { %v11335_v37 = vsel %vm1120_vm3, %v11236_v3, -inf }
0x1b39   :  { %v11332_v39 = vsel %vm1120_vm3, %v11158_v59, -inf }
0x1b3a   :  { %11333 = vmax.xlane.f32.xlu0 %v11332_v39  ;;  %v11313_v28 = vpop.f32.mrb[154].mxu0  ;;  %11336 = vmax.xlane.f32.xlu1 %v11335_v37 }
0x1b3b   :  { %v11314_v4 = vadd.f32 %v17741_v54, %v11313_v28  ;;  %v14320_v44 = vpop.f32.mrb[155].mxu0 }
0x1b3d   :  { %v11338_v60 = vsel %vm1120_vm3, %v11314_v4, -inf }
0x1b3e   :  { %11339 = vmax.xlane.f32.xlu0 %v11338_v60 }
0x1b4b   :  { %11405 = vrot.lane.b32.xlu1 %v17226_v22, %s15429_s17 }
0x1b4f   :  { %11557 = vrot.lane.b32.xlu1 %v17357_v43, %s15429_s17 }
0x1b53   :  { %11633 = vrot.lane.b32.xlu1 %v17367_v16, %s15429_s17 }
0x1b54   :  { %11481 = vrot.lane.b32.xlu0 %v17237_v57, %s15429_s17 }
0x1b57   :  { %11785 = vrot.lane.b32.xlu1 %v17387_v20, %s15429_s17 }
0x1b58   :  { %11709 = vrot.lane.b32.xlu0 %v17377_v29, %s15429_s17 }
0x1bba   :  { %v11319_v31 = vpop.xlane.xlu0 %11318 }
0x1bbb   :  { %v11341_v46 = vsub.f32 %v10768_v11, %v11319_v31 }
0x1bbd   :  { %v11349_v54 = vmul.f32 1.442695, %v11341_v46 }
0x1bbe   :  { %v11325_v52 = vpop.xlane.xlu0 %11324 }
0x1bbf   :  { %14937 = vpow2.f32 %v11349_v54  ;;  %v11322_v22 = vpop.xlane.xlu1 %11321  ;;  %v11343_v26 = vsub.f32 %v10924_v13, %v11325_v52 }
0x1bc0   :  { %v11342_v43 = vsub.f32 %v10846_v56, %v11322_v22 }
0x1bc1   :  { %v11353_v15 = vmul.f32 1.442695, %v11343_v26 }
0x1bc2   :  { %v11351_v2 = vmul.f32 1.442695, %v11342_v43 }
0x1bc3   :  { %14939 = vpow2.f32 %v11353_v15  ;;  %v11331_v16 = vpop.xlane.xlu1 %11330  ;;  %v11328_v58 = vpop.xlane.xlu0 %11327 }
0x1bc4   :  { %14941 = vpow2.f32 %v11351_v2  ;;  %v11345_v57 = vsub.f32 %v11080_v62, %v11331_v16  ;;  %v11344_v10 = vsub.f32 %v11002_v8, %v11328_v58  ;;  %v12133_v16 = vld [vmem:[#allocation19] sm:$0xff]  ;;  %v12134_v58 = vld [vmem:[#allocation19 + $0x8] sm:$0xff] }
0x1bc6   :  { %v11357_v20 = vmul.f32 1.442695, %v11345_v57  ;;  %v11355_v35 = vmul.f32 1.442695, %v11344_v10  ;;  %v12135_v57 = vld [vmem:[#allocation19 + $0x10] sm:$0xff]  ;;  %v14576_v10 = vpack.c.bf16 %v12134_v58, %v12133_v16 }
0x1bc7   :  { %v11337_v9 = vpop.xlane.xlu1 %11336  ;;  %v11334_v29 = vpop.xlane.xlu0 %11333 }
0x1bc8   :  { %14943 = vpow2.f32 %v11357_v20  ;;  %v11347_v11 = vsub.f32 %v11236_v3, %v11337_v9  ;;  %v11346_v0 = vsub.f32 %v11158_v59, %v11334_v29  ;;  %v12136_v20 = vld [vmem:[#allocation19 + $0x18] sm:$0xff]  ;;  %v12137_v9 = vld [vmem:[#allocation19 + $0x20] sm:$0xff]  ;;  %v12138_v29 = vld [vmem:[#allocation19 + $0x28] sm:$0xff] }
0x1bc9   :  { %v17958_v33 = vpop.eup %14937  ;;  %14945 = vpow2.f32 %v11355_v35  ;;  %v14580_v35 = vpack.c.bf16 %v12136_v20, %v12135_v57 }
0x1bca   :  { %v11361_v13 = vmul.f32 1.442695, %v11347_v11  ;;  %v11359_v56 = vmul.f32 1.442695, %v11346_v0  ;;  %v11365_v12 = vsel %vm1120_vm3, %v17958_v33, 0.0  ;;  %v14584_v11 = vpack.c.bf16 %v12138_v29, %v12137_v9  ;;  %v12139_v0 = vld [vmem:[#allocation19 + $0x30] sm:$0xff] }
0x1bcb   :  { %v11406_v14 = vpop.permute.xlu1 %11405  ;;  %v11340_v48 = vpop.xlane.xlu0 %11339  ;;  %11366 = vadd.xlane.f32.xlu1 %v11365_v12  ;;  %v18481_v9 = vld [vmem:[#allocation50_spill] sm:$0xff] }
0x1bcc   :  { %14947 = vpow2.f32 %v11361_v13  ;;  %v11348_v53 = vsub.f32 %v11314_v4, %v11340_v48  ;;  %14322 = vmatpush3.msra.mxu1 %v11406_v14 }
0x1bcd   :  { %v17962_v40 = vpop.eup %14939  ;;  %14949 = vpow2.f32 %v11359_v56  ;;  %14331 = vmatprep.subr.mxu1 %v18455_v61 }
0x1bce   :  { %v17965_v62 = vpop.eup %14941  ;;  %v11363_v36 = vmul.f32 1.442695, %v11348_v53  ;;  %v11371_v8 = vsel %vm1120_vm3, %v17962_v40, 0.0 }
0x1bcf   :  { %v11482_v42 = vpop.permute.xlu0 %11481  ;;  %v11368_v7 = vsel %vm1120_vm3, %v17965_v62, 0.0  ;;  %11372 = vadd.xlane.f32.xlu1 %v11371_v8 }
0x1bd0   :  { %14951 = vpow2.f32 %v11363_v36  ;;  %11369 = vadd.xlane.f32.xlu0 %v11368_v7  ;;  %14327 = vmatpush3.msra.mxu0 %v11482_v42 }
0x1bd1   :  { %14336 = vmatprep.subr.mxu0 %v18455_v61 }
0x1bd2   :  { %v17972_v34 = vpop.eup %14943 }
0x1bd3   :  { %v17974_v6 = vpop.eup %14945  ;;  %v11377_v50 = vsel %vm1120_vm3, %v17972_v34, 0.0 }
0x1bd4   :  { %11378 = vadd.xlane.f32.xlu1 %v11377_v50  ;;  %v11374_v3 = vsel %vm1120_vm3, %v17974_v6, 0.0 }
0x1bd5   :  { %11375 = vadd.xlane.f32.xlu0 %v11374_v3 }
0x1bd6   :  { %v17980_v49 = vpop.eup %14947 }
0x1bd7   :  { %v17982_v59 = vpop.eup %14949  ;;  %v11383_v24 = vsel %vm1120_vm3, %v17980_v49, 0.0 }
0x1bd8   :  { %11384 = vadd.xlane.f32.xlu1 %v11383_v24  ;;  %v11380_v37 = vsel %vm1120_vm3, %v17982_v59, 0.0 }
0x1bd9   :  { %11381 = vadd.xlane.f32.xlu0 %v11380_v37 }
0x1bda   :  { %v17988_v39 = vpop.eup %14951 }
0x1bdb   :  { %v11386_v28 = vsel %vm1120_vm3, %v17988_v39, 0.0 }
0x1bdd   :  { %11387 = vadd.xlane.f32.xlu0 %v11386_v28 }
0x1be9   :  { %11937 = vrot.lane.b32.xlu1 %v17407_v47, %s15429_s17 }
0x1bed   :  { %12023 = vrot.lane.b32.xlu1 %v17701_v41, %s15413_s19 }
0x1bf1   :  { %12055 = vrot.lane.b32.xlu1 %v17915_v30, %s15427_s29 }
0x1bf3   :  { %11861 = vrot.lane.b32.xlu0 %v17397_v18, %s15429_s17  ;;  %v11558_v18 = vpop.permute.xlu1 %11557 }
0x1bf5   :  { %12027 = vrot.lane.b32.xlu1 %v17707_v5, %s15413_s19 }
0x1bf7   :  { %12021 = vrot.lane.b32.xlu0 %v17699_v23, %s15413_s19  ;;  %v11634_v47 = vpop.permute.xlu1 %11633 }
0x1bf9   :  { %12059 = vrot.lane.b32.xlu1 %v17923_v27, %s15427_s29 }
0x1bfb   :  { %12053 = vrot.lane.b32.xlu0 %v17917_v63, %s15427_s29  ;;  %v11786_v23 = vpop.permute.xlu1 %11785 }
0x1bfd   :  { %12031 = vrot.lane.b32.xlu1 %v17709_v32, %s15413_s19 }
0x1bff   :  { %12025 = vrot.lane.b32.xlu0 %v17703_v38, %s15413_s19  ;;  %v11710_v38 = vpop.permute.xlu0 %11709 }
0x1c01   :  { %12063 = vrot.lane.b32.xlu1 %v17925_v21, %s15427_s29 }
0x1c03   :  { %12057 = vrot.lane.b32.xlu0 %v17919_v51, %s15427_s29 }
0x1c05   :  { %12035 = vrot.lane.b32.xlu1 %v17711_v45, %s15413_s19 }
0x1c07   :  { %12029 = vrot.lane.b32.xlu0 %v17705_v19, %s15413_s19 }
0x1c09   :  { %12067 = vrot.lane.b32.xlu1 %v17929_v17, %s15427_s29 }
0x1c0b   :  { %12061 = vrot.lane.b32.xlu0 %v17921_v55, %s15427_s29 }
0x1c0f   :  { %12033 = vrot.lane.b32.xlu0 %v17715_v25, %s15413_s19  ;;  %s18493_s19 = sld [smem:[#allocation66_spill]] }
0x1c13   :  { %12065 = vrot.lane.b32.xlu0 %v17927_v1, %s15427_s29 }
0x1c58   :  { %v11367_v41 = vpop.xlane.xlu1 %11366 }
0x1c59   :  { %14953 = vrcp.f32 %v11367_v41 }
0x1c5c   :  { %v11373_v5 = vpop.xlane.xlu1 %11372 }
0x1c5d   :  { %14955 = vrcp.f32 %v11373_v5  ;;  %v11370_v19 = vpop.xlane.xlu0 %11369 }
0x1c5e   :  { %14957 = vrcp.f32 %v11370_v19 }
0x1c61   :  { %v11379_v32 = vpop.xlane.xlu1 %11378 }
0x1c62   :  { %14959 = vrcp.f32 %v11379_v32  ;;  %v11376_v45 = vpop.xlane.xlu0 %11375 }
0x1c63   :  { %v14954_v30 = vpop.eup %14953  ;;  %14961 = vrcp.f32 %v11376_v45 }
0x1c64   :  { %v11397_v25 = vmul.f32 %v14954_v30, %v17958_v33  ;;  %v12140_v33 = vld [vmem:[#allocation19 + $0x38] sm:$0xff] }
0x1c65   :  { %v11385_v63 = vpop.xlane.xlu1 %11384  ;;  %v14588_v13 = vpack.c.bf16 %v12140_v33, %v12139_v0 }
0x1c66   :  { %14963 = vrcp.f32 %v11385_v63  ;;  %v11382_v51 = vpop.xlane.xlu0 %11381  ;;  %14324 = vmatmul.mubr.msk.f32.vlgmr.msra.gmra.mrb[140].mxu1 %vm1120_vm3, %v11397_v25  ;;  %v18476_v25 = vld [vmem:[#allocation36_spill] sm:$0xff] }
0x1c67   :  { %v14956_v55 = vpop.eup %14955  ;;  %14965 = vrcp.f32 %v11382_v51  ;;  %14332 = vmatpush3.msra.mxu1 %v11558_v18  ;;  %14333 = vmatprep.mubr.msk.f32.mxu1 %vm15423_vm1, %v18455_v61 }
0x1c68   :  { %v14958_v27 = vpop.eup %14957  ;;  %v11399_v21 = vmul.f32 %v14956_v55, %v17962_v40  ;;  %14341 = vmatprep.subr.mxu1 %v18455_v61 }
0x1c69   :  { %v11398_v1 = vmul.f32 %v14958_v27, %v17965_v62  ;;  %v11938_v43 = vpop.permute.xlu1 %11937 }
0x1c6a   :  { %v11388_v17 = vpop.xlane.xlu0 %11387  ;;  %14334 = vmatmul.mubr.msk.f32.vlgmr.msra.gmra.mrb[142].mxu1 %vm1120_vm3, %v11399_v21 }
0x1c6b   :  { %14967 = vrcp.f32 %v11388_v17  ;;  %14329 = vmatmul.mubr.msk.f32.vlgmr.msra.gmra.mrb[156].mxu0 %vm1120_vm3, %v11398_v1  ;;  %14342 = vmatpush3.msra.mxu1 %v11710_v38  ;;  %v18477_v1 = vld [vmem:[#allocation46_spill] sm:$0xff] }
0x1c6c   :  { %v14960_v4 = vpop.eup %14959  ;;  %14337 = vmatpush3.msra.mxu0 %v11634_v47  ;;  %14338 = vmatprep.mubr.msk.f32.mxu0 %vm15423_vm1, %v18455_v61 }
0x1c6d   :  { %v14962_v44 = vpop.eup %14961  ;;  %v11401_v60 = vmul.f32 %v14960_v4, %v17972_v34  ;;  %14343 = vmatprep.mubr.msk.f32.mxu1 %vm15423_vm1, %v18455_v61  ;;  %14346 = vmatprep.subr.mxu0 %v18455_v61  ;;  %v12024_v24 = vpop.permute.xlu1 %12023  ;;  %v18478_v4 = vld [vmem:[#allocation45_spill] sm:$0xff] }
0x1c6e   :  { %v11400_v31 = vmul.f32 %v14962_v44, %v17974_v6  ;;  %v11862_v46 = vpop.permute.xlu0 %11861  ;;  %14351 = vmatprep.subr.mxu1 %v18455_v61  ;;  %v12110_v44 = vsel %vm506_vm2, %v18478_v4, %v12024_v24 }
0x1c6f   :  { %14344 = vmatmul.mubr.msk.f32.vlgmr.msra.gmra.mrb[144].mxu1 %vm1120_vm3, %v11401_v60 }
0x1c70   :  { %v14964_v54 = vpop.eup %14963  ;;  %14339 = vmatmul.mubr.msk.f32.vlgmr.msra.gmra.mrb[158].mxu0 %vm1120_vm3, %v11400_v31  ;;  %14352 = vmatpush3.msra.mxu1 %v11862_v46 }
0x1c71   :  { %v14966_v52 = vpop.eup %14965  ;;  %v11403_v22 = vmul.f32 %v14964_v54, %v17980_v49  ;;  %14347 = vmatpush3.msra.mxu0 %v11786_v23  ;;  %14348 = vmatprep.mubr.msk.f32.mxu0 %vm15423_vm1, %v18455_v61 }
0x1c72   :  { %v11402_v26 = vmul.f32 %v14966_v52, %v17982_v59  ;;  %14353 = vmatprep.mubr.msk.f32.mxu1 %vm15423_vm1, %v18455_v61  ;;  %14356 = vmatprep.subr.mxu0 %v18455_v61  ;;  %v12022_v59 = vpop.permute.xlu0 %12021 }
0x1c73   :  { %14354 = vmatmul.mubr.msk.f32.vlgmr.msra.gmra.mrb[146].mxu1 %vm1120_vm3, %v11403_v22  ;;  %14577 = vmatprep.subr.bf16.mxu1 %v14576_v10  ;;  %v12109_v63 = vsel %vm506_vm2, %v18476_v25, %v12022_v59  ;;  %v18485_v59 = vld [vmem:[#allocation37_spill] sm:$0xff] }
0x1c74   :  { %14349 = vmatmul.mubr.msk.f32.vlgmr.msra.gmra.mrb[160].mxu0 %vm1120_vm3, %v11402_v26  ;;  %14579 = vmatpush3.bf16.msra.mxu1 %v14576_v10  ;;  %v18479_v26 = vld [vmem:[#allocation48_spill] sm:$0xff] }
0x1c75   :  { %v14968_v15 = vpop.eup %14967  ;;  %14357 = vmatpush3.msra.mxu0 %v11938_v43  ;;  %14358 = vmatprep.mubr.msk.f32.mxu0 %vm15423_vm1, %v18455_v61 }
0x1c76   :  { %v11404_v2 = vmul.f32 %v14968_v15, %v17988_v39  ;;  %14581 = vmatprep.subr.bf16.mxu1 %v14580_v35  ;;  %v12054_v37 = vpop.permute.xlu0 %12053  ;;  %v12056_v39 = vpop.permute.xlu1 %12055  ;;  %v18480_v15 = vld [vmem:[#allocation47_spill] sm:$0xff] }
0x1c77   :  { %v12117_v51 = vsel %vm5865_vm5, %v12109_v63, %v12054_v37  ;;  %v12118_v46 = vsel %vm5865_vm5, %v12110_v44, %v12056_v39 }
0x1c78   :  { %14359 = vmatmul.mubr.msk.f32.vlgmr.msra.gmra.mrb[162].mxu0 %vm1120_vm3, %v11404_v2  ;;  %14583 = vmatpush3.bf16.msra.mxu1 %v14580_v35 }
0x1c79   :  { %14585 = vmatprep.subr.bf16.mxu1 %v14584_v11 }
0x1c7a   :  { %v12026_v28 = vpop.permute.xlu0 %12025  ;;  %v12028_v18 = vpop.permute.xlu1 %12027 }
0x1c7b   :  { %v12111_v17 = vsel %vm506_vm2, %v18477_v1, %v12026_v28  ;;  %v12112_v2 = vsel %vm506_vm2, %v18480_v15, %v12028_v18 }
0x1c7c   :  { %14587 = vmatpush3.bf16.msra.mxu1 %v14584_v11  ;;  %v18482_v11 = vld [vmem:[#allocation49_spill] sm:$0xff] }
0x1c7d   :  { %14589 = vmatprep.subr.bf16.mxu1 %v14588_v13 }
0x1c7e   :  { %v12058_v47 = vpop.permute.xlu0 %12057  ;;  %v12060_v23 = vpop.permute.xlu1 %12059 }
0x1c7f   :  { %v12119_v60 = vsel %vm5865_vm5, %v12111_v17, %v12058_v47  ;;  %v12120_v57 = vsel %vm5865_vm5, %v12112_v2, %v12060_v23  ;;  %v18489_v17 = vld [vmem:[#allocation42_spill] sm:$0xff] }
0x1c80   :  { %14591 = vmatpush3.bf16.msra.mxu1 %v14588_v13 }
0x1c82   :  { %v12030_v41 = vpop.permute.xlu0 %12029  ;;  %v12032_v38 = vpop.permute.xlu1 %12031 }
0x1c83   :  { %v12113_v43 = vsel %vm506_vm2, %v18479_v26, %v12030_v41  ;;  %v12114_v0 = vsel %vm506_vm2, %v18482_v11, %v12032_v38  ;;  %v18486_v41 = vld [vmem:[#allocation39_spill] sm:$0xff] }
0x1c86   :  { %v12062_v5 = vpop.permute.xlu0 %12061  ;;  %v12064_v19 = vpop.permute.xlu1 %12063 }
0x1c87   :  { %v12121_v16 = vsel %vm5865_vm5, %v12113_v43, %v12062_v5 }
0x1c8a   :  { %v12034_v32 = vpop.permute.xlu0 %12033  ;;  %v12036_v45 = vpop.permute.xlu1 %12035 }
0x1c8b   :  { %v12115_v29 = vsel %vm506_vm2, %v18481_v9, %v12034_v32 }
0x1c8e   :  { %v12066_v30 = vpop.permute.xlu0 %12065  ;;  %v12068_v27 = vpop.permute.xlu1 %12067 }
0x1c8f   :  { %v12123_v33 = vsel %vm5865_vm5, %v12115_v29, %v12066_v30 }
0x1d39   :  { %v11477_v56 = vpop.f32.mrb[140].mxu1 }
0x1d3a   :  { %v14325_v12 = vpop.f32.mrb[141].mxu1  ;;  %12085 = vrot.lane.b32.xlu0 %v11477_v56, %s15425_s16  ;;  %v12122_v56 = vsel %vm5865_vm5, %v12114_v0, %v12064_v19  ;;  %v18487_v19 = vld [vmem:[#allocation40_spill] sm:$0xff] }
0x1d3d   :  { %v11629_v14 = vpop.f32.mrb[142].mxu1 }
0x1d3e   :  { %v11553_v48 = vpop.f32.mrb[156].mxu0  ;;  %v14335_v53 = vpop.f32.mrb[143].mxu1  ;;  %12089 = vrot.lane.b32.xlu0 %v11629_v14, %s15425_s16 }
0x1d3f   :  { %12087 = vrot.lane.b32.xlu1 %v11553_v48, %s15425_s16  ;;  %v14330_v40 = vpop.f32.mrb[157].mxu0  ;;  %v18483_v53 = vld [vmem:[#allocation51_spill] sm:$0xff] }
0x1d40   :  { %v12116_v40 = vsel %vm506_vm2, %v18483_v53, %v12036_v45 }
0x1d42   :  { %v11781_v62 = vpop.f32.mrb[144].mxu1 }
0x1d43   :  { %v11705_v36 = vpop.f32.mrb[158].mxu0  ;;  %12093 = vrot.lane.b32.xlu0 %v11781_v62, %s15425_s16  ;;  %v14345_v8 = vpop.f32.mrb[145].mxu1  ;;  %v12124_v62 = vsel %vm5865_vm5, %v12116_v40, %v12068_v27 }
0x1d44   :  { %12091 = vrot.lane.b32.xlu1 %v11705_v36, %s15425_s16  ;;  %v14340_v42 = vpop.f32.mrb[159].mxu0 }
0x1d45   :  { %v13219_v42 = vld [vmem:[#allocation20] ss:$0 sm:$0xff] }
0x1d46   :  { %v11933_v7 = vpop.f32.mrb[146].mxu1 }
0x1d47   :  { %v11857_v34 = vpop.f32.mrb[160].mxu0  ;;  %12097 = vrot.lane.b32.xlu0 %v11933_v7, %s15425_s16  ;;  %v14355_v6 = vpop.f32.mrb[147].mxu1 }
0x1d48   :  { %12095 = vrot.lane.b32.xlu1 %v11857_v34, %s15425_s16  ;;  %v14350_v50 = vpop.f32.mrb[161].mxu0 }
0x1d4b   :  { %v12009_v3 = vpop.f32.mrb[162].mxu0 }
0x1d4c   :  { %12099 = vrot.lane.b32.xlu1 %v12009_v3, %s15425_s16  ;;  %v14360_v49 = vpop.f32.mrb[163].mxu0  ;;  %v18484_v3 = vld [vmem:[#allocation38_spill] sm:$0xff]  ;;  %s12964_s16 = sshll.u32 %s15431_s4, 4  ;;  %s12965_s16 = int_to_ptr.vmem [resolvable:$true] %s12964_s16 }
0x1d4d   :  { %s15363_s30 = scalar_lea.vmem %s12965_s16, 128  ;;  %p15368_p9 = scmp.lt.s32.totalorder %s12965_s16, %s12965_s16 }
0x1d4e   :  { %p15364_p8 = scmp.ne.s32.totalorder %s12965_s16, %s15363_s30  ;;  %p15369_p10 = scmp.lt.s32.totalorder %s15363_s30, %s15363_s30 }
0x1d50   :  { %p15370_p11 = por %p15369_p10, %p15368_p9 }
0x1d52   :  { %p15371_p12 = pnand %p15370_p11, %p15364_p8 }
0x1dac   :  { %v12086_v55 = vpop.permute.xlu0 %12085 }
0x1dad   :  { %v12125_v21 = vsel %vm5874_vm4, %v12117_v51, %v12086_v55  ;;  %v18488_v51 = vld [vmem:[#allocation41_spill] sm:$0xff] }
0x1dae   :  { %14377 = vmatprep.mubr.msk.f32.mxu1 %vm317_vm0, %v12125_v21 }
0x1db0   :  { %v12090_v31 = vpop.permute.xlu0 %12089 }
0x1db1   :  { %v12088_v54 = vpop.permute.xlu1 %12087  ;;  %v12127_v52 = vsel %vm5874_vm4, %v12119_v60, %v12090_v31 }
0x1db2   :  { %v12126_v22 = vsel %vm5874_vm4, %v12118_v46, %v12088_v54  ;;  %v18490_v46 = vld [vmem:[#allocation43_spill] sm:$0xff] }
0x1db3   :  { %14378 = vmatmul.mubr.msk.f32.vlgmr.msra.gmra.mrb[148].mxu1 %vm317_vm0, %v12126_v22 }
0x1db4   :  { %14380 = vmatprep.mubr.msk.f32.mxu1 %vm317_vm0, %v12127_v52  ;;  %v18491_v52 = vld [vmem:[#allocation44_spill] sm:$0xff] }
0x1db5   :  { %v12094_v58 = vpop.permute.xlu0 %12093 }
0x1db6   :  { %v12092_v10 = vpop.permute.xlu1 %12091  ;;  %v12129_v20 = vsel %vm5874_vm4, %v12121_v16, %v12094_v58 }
0x1db7   :  { %v12128_v35 = vsel %vm5874_vm4, %v12120_v57, %v12092_v10 }
0x1db8   :  { %14381 = vmatmul.mubr.msk.f32.gmra.mrb[150].mxu1 %vm317_vm0, %v12128_v35 }
0x1db9   :  { %14383 = vmatprep.mubr.msk.f32.mxu1 %vm317_vm0, %v12129_v20  ;;  %v12098_v13 = vpop.permute.xlu0 %12097 }
0x1dba   :  { %v12096_v12 = vpop.permute.xlu1 %12095  ;;  %v12131_v14 = vsel %vm5874_vm4, %v12123_v33, %v12098_v13 }
0x1dbb   :  { %v12130_v48 = vsel %vm5874_vm4, %v12122_v56, %v12096_v12 }
0x1dbc   :  { %14384 = vmatmul.mubr.msk.f32.gmra.mrb[152].mxu1 %vm317_vm0, %v12130_v48 }
0x1dbd   :  { %14386 = vmatprep.mubr.msk.f32.mxu1 %vm317_vm0, %v12131_v14 }
0x1dbe   :  { %v12100_v36 = vpop.permute.xlu1 %12099 }
0x1dbf   :  { %v12132_v8 = vsel %vm5874_vm4, %v12124_v62, %v12100_v36 }
0x1dc0   :  { %14387 = vmatmul.mubr.msk.f32.gmra.mrb[154].mxu1 %vm317_vm0, %v12132_v8 }
0x1e86   :  { %v14379_v7 = vpop.f32.mrb[148].mxu1 }
0x1e87   :  { %v12244_v34 = vadd.f32 %v14379_v7, %v13219_v42  ;;  %v12238_v6 = vpop.f32.mrb[149].mxu1 }
0x1e88   :  { %v12239_v50 = vadd.f32 %v13219_v42, %v12238_v6 }
0x1e89   :  { %v12278_v49 = vadd.f32 %v12244_v34, %v18484_v3 }
0x1e8a   :  { %v12277_v24 = vadd.f32 %v12239_v50, %v18485_v59 }
0x1e8b   :  { %v14382_v37 = vpop.f32.mrb[150].mxu1  ;;  %v12290_v39 = vsel %vm317_vm0, %v12278_v49, 0.0 }
0x1e8c   :  { %v12254_v28 = vadd.f32 %v14382_v37, %v13219_v42  ;;  %v12248_v18 = vpop.f32.mrb[151].mxu1  ;;  %12291 = vadd.xlane.f32.xlu1 %v12290_v39  ;;  %v12287_v47 = vsel %vm317_vm0, %v12277_v24, 0.0 }
0x1e8d   :  { %v12249_v23 = vadd.f32 %v13219_v42, %v12248_v18  ;;  %12288 = vadd.xlane.f32.xlu0 %v12287_v47 }
0x1e8e   :  { %v12280_v32 = vadd.f32 %v12254_v28, %v18487_v19  ;;  %v12419_v19 = vld [vmem:[%s18390_s20] sm:$0xff] }
0x1e8f   :  { %v12279_v38 = vadd.f32 %v12249_v23, %v18486_v41  ;;  %v14385_v5 = vpop.f32.mrb[152].mxu1 }
0x1e90   :  { %v12258_v45 = vpop.f32.mrb[153].mxu1  ;;  %v12264_v30 = vadd.f32 %v14385_v5, %v13219_v42  ;;  %v12296_v1 = vsel %vm317_vm0, %v12280_v32, 0.0 }
0x1e91   :  { %v12259_v25 = vadd.f32 %v13219_v42, %v12258_v45  ;;  %v12293_v63 = vsel %vm317_vm0, %v12279_v38, 0.0 }
0x1e92   :  { %12294 = vadd.xlane.f32.xlu0 %v12293_v63  ;;  %v12282_v4 = vadd.f32 %v12264_v30, %v18489_v17  ;;  %v12421_v30 = vld [vmem:[%s18390_s20 + $0x10] sm:$0xff] }
0x1e93   :  { %v12281_v55 = vadd.f32 %v12259_v25, %v18488_v51  ;;  %v14388_v27 = vpop.f32.mrb[154].mxu1  ;;  %v12422_v25 = vld [vmem:[%s18390_s20 + $0x18] sm:$0xff]  ;;  %v12423_v51 = vld [vmem:[%s18390_s20 + $0x20] sm:$0xff] }
0x1e94   :  { %v12268_v21 = vpop.f32.mrb[155].mxu1  ;;  %v12274_v44 = vadd.f32 %v14388_v27, %v13219_v42  ;;  %v12302_v26 = vsel %vm317_vm0, %v12282_v4, 0.0  ;;  %v14596_v63 = vpack.c.bf16 %v12422_v25, %v12421_v30 }
0x1e95   :  { %v12269_v60 = vadd.f32 %v13219_v42, %v12268_v21  ;;  %v12299_v31 = vsel %vm317_vm0, %v12281_v55, 0.0  ;;  %v12425_v21 = vld [vmem:[%s18390_s20 + $0x30] sm:$0xff] }
0x1e96   :  { %12297 = vadd.xlane.f32.xlu0 %v12296_v1  ;;  %12300 = vadd.xlane.f32.xlu1 %v12299_v31  ;;  %v12284_v22 = vadd.f32 %v12274_v44, %v18491_v52  ;;  %v12426_v1 = vld [vmem:[%s18390_s20 + $0x38] sm:$0xff]  ;;  %v12572_v44 = vld [vmem:[%s18392_s22 + $0x8] sm:$0xff]  ;;  %v12575_v52 = vld [vmem:[%s18392_s22 + $0x20] sm:$0xff] }
0x1e97   :  { %v12283_v54 = vadd.f32 %v12269_v60, %v18490_v46  ;;  %v14604_v17 = vpack.c.bf16 %v12426_v1, %v12425_v21  ;;  %v12573_v60 = vld [vmem:[%s18392_s22 + $0x10] sm:$0xff]  ;;  %v12574_v46 = vld [vmem:[%s18392_s22 + $0x18] sm:$0xff] }
0x1e98   :  { %v12308_v15 = vsel %vm317_vm0, %v12284_v22, 0.0 }
0x1e99   :  { %v12305_v43 = vsel %vm317_vm0, %v12283_v54, 0.0 }
0x1e9a   :  { %12303 = vadd.xlane.f32.xlu0 %v12302_v26  ;;  %12306 = vadd.xlane.f32.xlu1 %v12305_v43  ;;  %v12577_v43 = vld [vmem:[%s18392_s22 + $0x30] sm:$0xff] }
0x1e9e   :  { %12309 = vadd.xlane.f32.xlu0 %v12308_v15  ;;  %v12578_v15 = vld [vmem:[%s18392_s22 + $0x38] sm:$0xff] }
0x1f19   :  { %v12292_v2 = vpop.xlane.xlu1 %12291 }
0x1f1a   :  { %v12312_v16 = vmul.f32 0.015625, %v12292_v2  ;;  %v12289_v58 = vpop.xlane.xlu0 %12288  ;;  %v14620_v2 = vpack.c.bf16 %v12578_v15, %v12577_v43 }
0x1f1b   :  { %v12311_v57 = vmul.f32 0.015625, %v12289_v58  ;;  %v12580_v58 = vld [vmem:[%s18392_s22 + $0x48] sm:$0xff] }
0x1f1c   :  { %v18124_v10 = vsub.f32 %v12278_v49, %v12312_v16  ;;  %v12579_v16 = vld [vmem:[%s18392_s22 + $0x40] sm:$0xff] }
0x1f1d   :  { %v18126_v20 = vsub.f32 %v12277_v24, %v12311_v57  ;;  %v14624_v57 = vpack.c.bf16 %v12580_v58, %v12579_v16 }
0x1f1e   :  { %v12328_v35 = vmul.f32 %v18124_v10, %v18124_v10 }
0x1f1f   :  { %v12295_v9 = vpop.xlane.xlu0 %12294  ;;  %v12327_v29 = vmul.f32 %v18126_v20, %v18126_v20 }
0x1f20   :  { %v12313_v11 = vmul.f32 0.015625, %v12295_v9  ;;  %v12338_v0 = vsel %vm317_vm0, %v12328_v35, 0.0  ;;  %v12581_v35 = vld [vmem:[%s18392_s22 + $0x50] sm:$0xff]  ;;  %v12582_v9 = vld [vmem:[%s18392_s22 + $0x58] sm:$0xff] }
0x1f21   :  { %12339 = vadd.xlane.f32.xlu0 %v12338_v0  ;;  %v12335_v33 = vsel %vm317_vm0, %v12327_v29, 0.0  ;;  %v14628_v29 = vpack.c.bf16 %v12582_v9, %v12581_v35  ;;  %v12584_v0 = vld [vmem:[%s18392_s22 + $0x68] sm:$0xff] }
0x1f22   :  { %v18134_v13 = vsub.f32 %v12279_v38, %v12313_v11  ;;  %12336 = vadd.xlane.f32.xlu1 %v12335_v33  ;;  %v12583_v11 = vld [vmem:[%s18392_s22 + $0x60] sm:$0xff] }
0x1f23   :  { %v12301_v56 = vpop.xlane.xlu1 %12300  ;;  %v12298_v12 = vpop.xlane.xlu0 %12297  ;;  %v14632_v33 = vpack.c.bf16 %v12584_v0, %v12583_v11  ;;  %v13230_v0 = vld [vmem:[%s18391_s21] ss:$0 sm:$0xff] }
0x1f24   :  { %v12315_v14 = vmul.f32 0.015625, %v12301_v56  ;;  %v12314_v48 = vmul.f32 0.015625, %v12298_v12  ;;  %v12329_v53 = vmul.f32 %v18134_v13, %v18134_v13 }
0x1f26   :  { %v18138_v40 = vsub.f32 %v12281_v55, %v12315_v14  ;;  %v18140_v62 = vsub.f32 %v12280_v32, %v12314_v48  ;;  %v12341_v36 = vsel %vm317_vm0, %v12329_v53, 0.0  ;;  %v12420_v32 = vld [vmem:[%s18390_s20 + $0x8] sm:$0xff] }
0x1f27   :  { %v12307_v8 = vpop.xlane.xlu1 %12306  ;;  %12342 = vadd.xlane.f32.xlu1 %v12341_v36  ;;  %v12304_v42 = vpop.xlane.xlu0 %12303  ;;  %v14592_v45 = vpack.c.bf16 %v12420_v32, %v12419_v19  ;;  %v12424_v55 = vld [vmem:[%s18390_s20 + $0x28] sm:$0xff] }
0x1f28   :  { %v12317_v7 = vmul.f32 0.015625, %v12307_v8  ;;  %v12316_v34 = vmul.f32 0.015625, %v12304_v42  ;;  %v12331_v6 = vmul.f32 %v18138_v40, %v18138_v40  ;;  %v12330_v50 = vmul.f32 %v18140_v62, %v18140_v62 }
0x1f29   :  { %14593 = vmatprep.subr.bf16.mxu0 %v14592_v45  ;;  %v14600_v27 = vpack.c.bf16 %v12424_v55, %v12423_v51 }
0x1f2a   :  { %v18147_v3 = vsub.f32 %v12283_v54, %v12317_v7  ;;  %v18149_v49 = vsub.f32 %v12282_v4, %v12316_v34  ;;  %v12347_v59 = vsel %vm317_vm0, %v12331_v6, 0.0  ;;  %v12344_v24 = vsel %vm317_vm0, %v12330_v50, 0.0  ;;  %14595 = vmatpush3.bf16.msra.mxu0 %v14592_v45  ;;  %v12571_v4 = vld [vmem:[%s18392_s22] sm:$0xff] }
0x1f2b   :  { %12348 = vadd.xlane.f32.xlu1 %v12347_v59  ;;  %12345 = vadd.xlane.f32.xlu0 %v12344_v24  ;;  %v12310_v37 = vpop.xlane.xlu0 %12309  ;;  %v14608_v31 = vpack.c.bf16 %v12572_v44, %v12571_v4  ;;  %v14612_v54 = vpack.c.bf16 %v12574_v46, %v12573_v60 }
0x1f2c   :  { %v12318_v39 = vmul.f32 0.015625, %v12310_v37  ;;  %v12333_v28 = vmul.f32 %v18147_v3, %v18147_v3  ;;  %v12332_v18 = vmul.f32 %v18149_v49, %v18149_v49  ;;  %14597 = vmatprep.subr.bf16.mxu0 %v14596_v63 }
0x1f2d   :  { %14609 = vmatprep.subr.bf16.mxu1 %v14608_v31 }
0x1f2e   :  { %v18157_v47 = vsub.f32 %v12284_v22, %v12318_v39  ;;  %v12353_v23 = vsel %vm317_vm0, %v12333_v28, 0.0  ;;  %v12350_v41 = vsel %vm317_vm0, %v12332_v18, 0.0  ;;  %14599 = vmatpush3.bf16.msra.mxu0 %v14596_v63  ;;  %v12576_v22 = vld [vmem:[%s18392_s22 + $0x28] sm:$0xff]  ;;  %14611 = vmatpush3.bf16.msra.mxu1 %v14608_v31  ;;  %v13229_v63 = vld [vmem:[#allocation23] ss:$0 sm:$0xff] }
0x1f2f   :  { %12354 = vadd.xlane.f32.xlu1 %v12353_v23  ;;  %12351 = vadd.xlane.f32.xlu0 %v12350_v41  ;;  %v14616_v26 = vpack.c.bf16 %v12576_v22, %v12575_v52 }
0x1f30   :  { %v12334_v38 = vmul.f32 %v18157_v47, %v18157_v47  ;;  %14601 = vmatprep.subr.bf16.mxu0 %v14600_v27  ;;  %14613 = vmatprep.subr.bf16.mxu1 %v14612_v54 }
0x1f32   :  { %v12356_v5 = vsel %vm317_vm0, %v12334_v38, 0.0  ;;  %14603 = vmatpush3.bf16.msra.mxu0 %v14600_v27  ;;  %14615 = vmatpush3.bf16.msra.mxu1 %v14612_v54  ;;  %v13228_v38 = vld [vmem:[#allocation22] ss:$0 sm:$0xff] }
0x1f33   :  { %12357 = vadd.xlane.f32.xlu0 %v12356_v5  ;;  %14605 = vmatprep.subr.bf16.mxu0 %v14604_v17 }
0x1f34   :  { %14617 = vmatprep.subr.bf16.mxu1 %v14616_v26 }
0x1f36   :  { %14607 = vmatpush3.bf16.msra.mxu0 %v14604_v17  ;;  %14619 = vmatpush3.bf16.msra.mxu1 %v14616_v26 }
0x1f37   :  { %14621 = vmatprep.subr.bf16.mxu1 %v14620_v2 }
0x1f3a   :  { %14623 = vmatpush3.bf16.msra.mxu1 %v14620_v2 }
0x1f3b   :  { %14625 = vmatprep.subr.bf16.mxu1 %v14624_v57 }
0x1f3e   :  { %14627 = vmatpush3.bf16.msra.mxu1 %v14624_v57 }
0x1f3f   :  { %14629 = vmatprep.subr.bf16.mxu1 %v14628_v29 }
0x1f42   :  { %14631 = vmatpush3.bf16.msra.mxu1 %v14628_v29  ;;  %v12586_v29 = vld [vmem:[%s18392_s22 + $0x78] sm:$0xff] }
0x1f43   :  { %14633 = vmatprep.subr.bf16.mxu1 %v14632_v33 }
0x1f46   :  { %14635 = vmatpush3.bf16.msra.mxu1 %v14632_v33 }
0x1fae   :  { %v12340_v56 = vpop.xlane.xlu0 %12339 }
0x1faf   :  { %v12360_v12 = vmul.f32 0.015625, %v12340_v56  ;;  %v12337_v14 = vpop.xlane.xlu1 %12336 }
0x1fb0   :  { %v12359_v48 = vmul.f32 0.015625, %v12337_v14 }
0x1fb1   :  { %v12368_v53 = vadd.f32 1e-05, %v12360_v12 }
0x1fb2   :  { %v12367_v36 = vadd.f32 1e-05, %v12359_v48 }
0x1fb3   :  { %14969 = vrsqrt.f32 %v12368_v53 }
0x1fb4   :  { %14971 = vrsqrt.f32 %v12367_v36  ;;  %v12343_v8 = vpop.xlane.xlu1 %12342 }
0x1fb5   :  { %v12361_v42 = vmul.f32 0.015625, %v12343_v8 }
0x1fb7   :  { %v12369_v7 = vadd.f32 1e-05, %v12361_v42 }
0x1fb8   :  { %v12349_v34 = vpop.xlane.xlu1 %12348  ;;  %v12346_v6 = vpop.xlane.xlu0 %12345 }
0x1fb9   :  { %14973 = vrsqrt.f32 %v12369_v7  ;;  %v12363_v50 = vmul.f32 0.015625, %v12349_v34  ;;  %v12362_v59 = vmul.f32 0.015625, %v12346_v6 }
0x1fbb   :  { %v12371_v24 = vadd.f32 1e-05, %v12363_v50  ;;  %v12370_v37 = vadd.f32 1e-05, %v12362_v59 }
0x1fbc   :  { %v12355_v39 = vpop.xlane.xlu1 %12354  ;;  %v12352_v28 = vpop.xlane.xlu0 %12351 }
0x1fbd   :  { %v14970_v18 = vpop.eup %14969  ;;  %14975 = vrsqrt.f32 %v12371_v24  ;;  %v12365_v23 = vmul.f32 0.015625, %v12355_v39  ;;  %v12364_v41 = vmul.f32 0.015625, %v12352_v28 }
0x1fbe   :  { %v14972_v5 = vpop.eup %14971  ;;  %v12384_v19 = vmul.f32 %v14970_v18, %v18124_v10  ;;  %14977 = vrsqrt.f32 %v12370_v37 }
0x1fbf   :  { %v12373_v32 = vadd.f32 1e-05, %v12365_v23  ;;  %v12372_v45 = vadd.f32 1e-05, %v12364_v41  ;;  %v12383_v30 = vmul.f32 %v14972_v5, %v18126_v20 }
0x1fc0   :  { %v12358_v25 = vpop.xlane.xlu0 %12357  ;;  %v12398_v51 = vmul.f32 %v13228_v38, %v12384_v19  ;;  %v13239_v19 = vld [vmem:[%s18393_s23] ss:$0 sm:$0xff] }
0x1fc1   :  { %14979 = vrsqrt.f32 %v12373_v32  ;;  %v12366_v55 = vmul.f32 0.015625, %v12358_v25  ;;  %v12397_v27 = vmul.f32 %v13228_v38, %v12383_v30 }
0x1fc2   :  { %14981 = vrsqrt.f32 %v12372_v45  ;;  %v18234_v4 = vadd.f32 %v13229_v63, %v12398_v51 }
0x1fc3   :  { %v14974_v21 = vpop.eup %14973  ;;  %v12374_v1 = vadd.f32 1e-05, %v12366_v55  ;;  %v18232_v17 = vadd.f32 %v13229_v63, %v12397_v27 }
0x1fc4   :  { %v12385_v10 = vmul.f32 %v14974_v21, %v18134_v13 }
0x1fc5   :  { %14983 = vrsqrt.f32 %v12374_v1  ;;  %14405 = vmatprep.mubr.msk.f32.mxu0 %vm317_vm0, %v18232_v17 }
0x1fc6   :  { %14406 = vmatmul.mubr.msk.f32.vlgmr.msra.gmra.mrb[164].mxu0 %vm317_vm0, %v18234_v4  ;;  %v12399_v20 = vmul.f32 %v13228_v38, %v12385_v10 }
0x1fc7   :  { %v14976_v44 = vpop.eup %14975 }
0x1fc8   :  { %v14978_v60 = vpop.eup %14977  ;;  %v18241_v31 = vadd.f32 %v13229_v63, %v12399_v20  ;;  %v12387_v46 = vmul.f32 %v14976_v44, %v18138_v40 }
0x1fc9   :  { %v12386_v54 = vmul.f32 %v14978_v60, %v18140_v62 }
0x1fca   :  { %14408 = vmatprep.mubr.msk.f32.mxu0 %vm317_vm0, %v18241_v31  ;;  %v12401_v13 = vmul.f32 %v13228_v38, %v12387_v46 }
0x1fcb   :  { %v14980_v52 = vpop.eup %14979  ;;  %v12400_v22 = vmul.f32 %v13228_v38, %v12386_v54 }
0x1fcc   :  { %v14982_v26 = vpop.eup %14981  ;;  %v18247_v43 = vadd.f32 %v13229_v63, %v12401_v13  ;;  %v12389_v15 = vmul.f32 %v14980_v52, %v18147_v3 }
0x1fcd   :  { %v18250_v2 = vadd.f32 %v13229_v63, %v12400_v22  ;;  %v12388_v16 = vmul.f32 %v14982_v26, %v18149_v49 }
0x1fce   :  { %v12403_v58 = vmul.f32 %v13228_v38, %v12389_v15 }
0x1fcf   :  { %v14984_v57 = vpop.eup %14983  ;;  %14409 = vmatmul.mubr.msk.f32.gmra.mrb[166].mxu0 %vm317_vm0, %v18250_v2  ;;  %v12402_v40 = vmul.f32 %v13228_v38, %v12388_v16 }
0x1fd0   :  { %14411 = vmatprep.mubr.msk.f32.mxu0 %vm317_vm0, %v18247_v43  ;;  %v18257_v62 = vadd.f32 %v13229_v63, %v12403_v58  ;;  %v12390_v35 = vmul.f32 %v14984_v57, %v18157_v47  ;;  %v12585_v47 = vld [vmem:[%s18392_s22 + $0x70] sm:$0xff] }
0x1fd1   :  { %v18260_v9 = vadd.f32 %v13229_v63, %v12402_v40  ;;  %v14636_v11 = vpack.c.bf16 %v12586_v29, %v12585_v47 }
0x1fd2   :  { %v12404_v3 = vmul.f32 %v13228_v38, %v12390_v35 }
0x1fd3   :  { %14412 = vmatmul.mubr.msk.f32.gmra.mrb[168].mxu0 %vm317_vm0, %v18260_v9  ;;  %14637 = vmatprep.subr.bf16.mxu1 %v14636_v11 }
0x1fd4   :  { %14414 = vmatprep.mubr.msk.f32.mxu0 %vm317_vm0, %v18257_v62  ;;  %v18266_v49 = vadd.f32 %v13229_v63, %v12404_v3  ;;  %14639 = vmatpush3.bf16.msra.mxu1 %v14636_v11 }
0x1fd7   :  { %14415 = vmatmul.mubr.msk.f32.gmra.mrb[170].mxu0 %vm317_vm0, %v18266_v49 }
0x1fd8   :  { %14477 = vmatprep.mubr.msk.f32.mxu0 %vm15423_vm1, %v18455_v61 }
0x2099   :  { %v14407_v33 = vpop.f32.mrb[164].mxu0 }
0x209a   :  { %v12530_v56 = vadd.f32 %v14407_v33, %v13230_v0  ;;  %v12524_v12 = vpop.f32.mrb[165].mxu0 }
0x209b   :  { %v12525_v14 = vadd.f32 %v13230_v0, %v12524_v12 }
0x209c   :  { %v12564_v48 = vmax.f32 %v12530_v56, 0.0 }
0x209d   :  { %v12563_v61 = vmax.f32 %v12525_v14, 0.0 }
0x209f   :  { %14449 = vmatprep.mubr.f32.mxu1 %v12563_v61 }
0x20a0   :  { %14450 = vmatmul.mubr.f32.vlgmr.msra.gmra.mrb[156].mxu1 %v12564_v48 }
0x20a2   :  { %v14410_v53 = vpop.f32.mrb[166].mxu0 }
0x20a3   :  { %v12540_v36 = vadd.f32 %v14410_v53, %v13230_v0  ;;  %v12534_v8 = vpop.f32.mrb[167].mxu0 }
0x20a4   :  { %v12535_v42 = vadd.f32 %v13230_v0, %v12534_v8 }
0x20a5   :  { %v12566_v6 = vmax.f32 %v12540_v36, 0.0 }
0x20a6   :  { %v12565_v7 = vmax.f32 %v12535_v42, 0.0  ;;  %v14413_v34 = vpop.f32.mrb[168].mxu0 }
0x20a7   :  { %v12550_v50 = vadd.f32 %v14413_v34, %v13230_v0  ;;  %v12544_v59 = vpop.f32.mrb[169].mxu0 }
0x20a8   :  { %v12545_v24 = vadd.f32 %v13230_v0, %v12544_v59  ;;  %14452 = vmatprep.mubr.f32.mxu1 %v12565_v7 }
0x20a9   :  { %14453 = vmatmul.mubr.f32.gmra.mrb[158].mxu1 %v12566_v6  ;;  %v12568_v28 = vmax.f32 %v12550_v50, 0.0 }
0x20aa   :  { %v12567_v37 = vmax.f32 %v12545_v24, 0.0  ;;  %v14416_v39 = vpop.f32.mrb[170].mxu0 }
0x20ab   :  { %v12560_v18 = vadd.f32 %v14416_v39, %v13230_v0  ;;  %v12554_v23 = vpop.f32.mrb[171].mxu0 }
0x20ac   :  { %v12555_v41 = vadd.f32 %v13230_v0, %v12554_v23  ;;  %14455 = vmatprep.mubr.f32.mxu1 %v12567_v37 }
0x20ad   :  { %14456 = vmatmul.mubr.f32.gmra.mrb[160].mxu1 %v12568_v28  ;;  %v12570_v5 = vmax.f32 %v12560_v18, 0.0 }
0x20ae   :  { %v12569_v38 = vmax.f32 %v12555_v41, 0.0 }
0x20b0   :  { %14458 = vmatprep.mubr.f32.mxu1 %v12569_v38 }
0x20b1   :  { %14459 = vmatmul.mubr.f32.gmra.mrb[162].mxu1 %v12570_v5 }
0x2173   :  { %v14451_v32 = vpop.f32.mrb[156].mxu1 }
0x2174   :  { %v12666_v45 = vadd.f32 %v14451_v32, %v13239_v19  ;;  %v12660_v30 = vpop.f32.mrb[157].mxu1 }
0x2175   :  { %v12661_v25 = vadd.f32 %v13239_v19, %v12660_v30 }
0x2176   :  { %v12700_v63 = vadd.f32 %v12666_v45, %v18234_v4 }
0x2177   :  { %v12699_v51 = vadd.f32 %v12661_v25, %v18232_v17 }
0x2178   :  { %v12712_v55 = vsel %vm317_vm0, %v12700_v63, 0.0 }
0x2179   :  { %12713 = vadd.xlane.f32.xlu1 %v12712_v55  ;;  %v12709_v21 = vsel %vm317_vm0, %v12699_v51, 0.0 }
0x217c   :  { %v14454_v27 = vpop.f32.mrb[158].mxu1 }
0x217d   :  { %v12676_v1 = vadd.f32 %v14454_v27, %v13239_v19  ;;  %v12670_v10 = vpop.f32.mrb[159].mxu1  ;;  %12710 = vadd.xlane.f32.xlu1 %v12709_v21  ;;  %v12841_v21 = vld [vmem:[#allocation25] sm:$0xff] }
0x217e   :  { %v12671_v20 = vadd.f32 %v13239_v19, %v12670_v10 }
0x217f   :  { %v12702_v44 = vadd.f32 %v12676_v1, %v18250_v2  ;;  %v12842_v1 = vld [vmem:[#allocation25 + $0x8] sm:$0xff] }
0x2180   :  { %v14457_v60 = vpop.f32.mrb[160].mxu1  ;;  %v12701_v46 = vadd.f32 %v12671_v20, %v18241_v31  ;;  %v14641_v10 = vpack.c.bf16 %v12842_v1, %v12841_v21  ;;  %v15430_v20 = vmov 0.0|0.0  }
0x2181   :  { %v12686_v54 = vadd.f32 %v14457_v60, %v13239_v19  ;;  %v12680_v13 = vpop.f32.mrb[161].mxu1  ;;  %v12718_v4 = vsel %vm317_vm0, %v12702_v44, 0.0  ;;  %14640 = vmatprep.subr.bf16.mxu0 %v15430_v20  ;;  %v12844_v60 = vld [vmem:[#allocation25 + $0x18] sm:$0xff] }
0x2182   :  { %v12681_v17 = vadd.f32 %v13239_v19, %v12680_v13  ;;  %12719 = vadd.xlane.f32.xlu0 %v12718_v4  ;;  %v12715_v58 = vsel %vm317_vm0, %v12701_v46, 0.0  ;;  %14642 = vmatpush3.bf16.msra.mxu0 %v14641_v10  ;;  %v12846_v13 = vld [vmem:[#allocation25 + $0x28] sm:$0xff] }
0x2183   :  { %v12704_v26 = vadd.f32 %v12686_v54, %v18260_v9  ;;  %14643 = vmatprep.subr.bf16.mxu0 %v15430_v20  ;;  %v12845_v54 = vld [vmem:[#allocation25 + $0x20] sm:$0xff] }
0x2184   :  { %v12703_v52 = vadd.f32 %v12681_v17, %v18247_v43  ;;  %v14460_v22 = vpop.f32.mrb[162].mxu1  ;;  %v14647_v4 = vpack.c.bf16 %v12846_v13, %v12845_v54  ;;  %v12847_v17 = vld [vmem:[#allocation25 + $0x30] sm:$0xff] }
0x2185   :  { %v12696_v15 = vadd.f32 %v14460_v22, %v13239_v19  ;;  %v12690_v16 = vpop.f32.mrb[163].mxu1  ;;  %v12724_v35 = vsel %vm317_vm0, %v12704_v26, 0.0 }
0x2186   :  { %v12691_v57 = vadd.f32 %v13239_v19, %v12690_v16  ;;  %12716 = vadd.xlane.f32.xlu0 %v12715_v58  ;;  %v12721_v2 = vsel %vm317_vm0, %v12703_v52, 0.0 }
0x2187   :  { %12722 = vadd.xlane.f32.xlu1 %v12721_v2  ;;  %v12706_v40 = vadd.f32 %v12696_v15, %v18266_v49 }
0x2188   :  { %v12705_v31 = vadd.f32 %v12691_v57, %v18257_v62 }
0x2189   :  { %v12730_v9 = vsel %vm317_vm0, %v12706_v40, 0.0 }
0x218a   :  { %12725 = vadd.xlane.f32.xlu0 %v12724_v35  ;;  %v12727_v43 = vsel %vm317_vm0, %v12705_v31, 0.0 }
0x218b   :  { %12728 = vadd.xlane.f32.xlu1 %v12727_v43 }
0x218e   :  { %12731 = vadd.xlane.f32.xlu0 %v12730_v9 }
0x2206   :  { %v12714_v3 = vpop.xlane.xlu1 %12713 }
0x2207   :  { %v12734_v47 = vmul.f32 0.015625, %v12714_v3 }
0x2209   :  { %v18300_v29 = vsub.f32 %v12700_v63, %v12734_v47 }
0x220a   :  { %v12711_v11 = vpop.xlane.xlu1 %12710 }
0x220b   :  { %v12733_v0 = vmul.f32 0.015625, %v12711_v11  ;;  %v12750_v62 = vmul.f32 %v18300_v29, %v18300_v29 }
0x220d   :  { %v18304_v33 = vsub.f32 %v12699_v51, %v12733_v0  ;;  %v12760_v49 = vsel %vm317_vm0, %v12750_v62, 0.0 }
0x220e   :  { %12761 = vadd.xlane.f32.xlu1 %v12760_v49 }
0x220f   :  { %v12720_v56 = vpop.xlane.xlu0 %12719  ;;  %v12749_v12 = vmul.f32 %v18304_v33, %v18304_v33 }
0x2210   :  { %v12736_v14 = vmul.f32 0.015625, %v12720_v56 }
0x2211   :  { %v12757_v61 = vsel %vm317_vm0, %v12749_v12, 0.0 }
0x2212   :  { %v18310_v48 = vsub.f32 %v12702_v44, %v12736_v14  ;;  %12758 = vadd.xlane.f32.xlu1 %v12757_v61  ;;  %v12843_v44 = vld [vmem:[#allocation25 + $0x10] sm:$0xff] }
0x2213   :  { %v12717_v53 = vpop.xlane.xlu0 %12716 }
0x2214   :  { %v12735_v36 = vmul.f32 0.015625, %v12717_v53  ;;  %v12723_v8 = vpop.xlane.xlu1 %12722  ;;  %v12752_v42 = vmul.f32 %v18310_v48, %v18310_v48 }
0x2215   :  { %v12737_v7 = vmul.f32 0.015625, %v12723_v8 }
0x2216   :  { %v18314_v34 = vsub.f32 %v12701_v46, %v12735_v36  ;;  %v12766_v6 = vsel %vm317_vm0, %v12752_v42, 0.0  ;;  %v14644_v46 = vpack.c.bf16 %v12844_v60, %v12843_v44 }
0x2217   :  { %v18317_v50 = vsub.f32 %v12703_v52, %v12737_v7  ;;  %12767 = vadd.xlane.f32.xlu0 %v12766_v6  ;;  %v12726_v59 = vpop.xlane.xlu0 %12725  ;;  %v12848_v52 = vld [vmem:[#allocation25 + $0x38] sm:$0xff]  ;;  %v13240_v6 = vld [vmem:[%s18394_s24] ss:$0 sm:$0xff] }
0x2218   :  { %v12738_v24 = vmul.f32 0.015625, %v12726_v59  ;;  %v12729_v37 = vpop.xlane.xlu1 %12728  ;;  %v12751_v39 = vmul.f32 %v18314_v34, %v18314_v34  ;;  %14645 = vmatpush3.bf16.msra.mxu0 %v14644_v46  ;;  %v14650_v22 = vpack.c.bf16 %v12848_v52, %v12847_v17 }
0x2219   :  { %v12739_v28 = vmul.f32 0.015625, %v12729_v37  ;;  %v12753_v18 = vmul.f32 %v18317_v50, %v18317_v50  ;;  %14646 = vmatprep.subr.bf16.mxu0 %v15430_v20 }
0x221a   :  { %v18323_v23 = vsub.f32 %v12704_v26, %v12738_v24  ;;  %v12763_v41 = vsel %vm317_vm0, %v12751_v39, 0.0 }
0x221b   :  { %v18326_v38 = vsub.f32 %v12705_v31, %v12739_v28  ;;  %12764 = vadd.xlane.f32.xlu0 %v12763_v41  ;;  %v12732_v5 = vpop.xlane.xlu0 %12731  ;;  %v12769_v19 = vsel %vm317_vm0, %v12753_v18, 0.0  ;;  %v13241_v18 = vld [vmem:[%s18492_s6] ss:$0 sm:$0xff] }
0x221c   :  { %v12740_v32 = vmul.f32 0.015625, %v12732_v5  ;;  %12770 = vadd.xlane.f32.xlu1 %v12769_v19  ;;  %v12754_v45 = vmul.f32 %v18323_v23, %v18323_v23  ;;  %14648 = vmatpush3.bf16.msra.mxu0 %v14647_v4 }
0x221d   :  { %v12755_v30 = vmul.f32 %v18326_v38, %v18326_v38  ;;  %14649 = vmatprep.subr.bf16.mxu0 %v15430_v20 }
0x221e   :  { %v18333_v25 = vsub.f32 %v12706_v40, %v12740_v32  ;;  %v12772_v63 = vsel %vm317_vm0, %v12754_v45, 0.0 }
0x221f   :  { %12773 = vadd.xlane.f32.xlu0 %v12772_v63  ;;  %v12775_v51 = vsel %vm317_vm0, %v12755_v30, 0.0 }
0x2220   :  { %12776 = vadd.xlane.f32.xlu1 %v12775_v51  ;;  %v12756_v55 = vmul.f32 %v18333_v25, %v18333_v25  ;;  %14651 = vmatpush3.bf16.msra.mxu0 %v14650_v22 }
0x2222   :  { %v12778_v27 = vsel %vm317_vm0, %v12756_v55, 0.0 }
0x2223   :  { %12779 = vadd.xlane.f32.xlu0 %v12778_v27 }
0x229b   :  { %v12762_v26 = vpop.xlane.xlu1 %12761 }
0x229c   :  { %v12782_v15 = vmul.f32 0.015625, %v12762_v26 }
0x229e   :  { %v12790_v58 = vadd.f32 1e-05, %v12782_v15 }
0x229f   :  { %v12759_v16 = vpop.xlane.xlu1 %12758 }
0x22a0   :  { %v12781_v57 = vmul.f32 0.015625, %v12759_v16  ;;  %14985 = vrsqrt.f32 %v12790_v58 }
0x22a2   :  { %v12789_v2 = vadd.f32 1e-05, %v12781_v57 }
0x22a4   :  { %v12768_v31 = vpop.xlane.xlu0 %12767  ;;  %14987 = vrsqrt.f32 %v12789_v2 }
0x22a5   :  { %v12784_v40 = vmul.f32 0.015625, %v12768_v31 }
0x22a7   :  { %v12792_v35 = vadd.f32 1e-05, %v12784_v40 }
0x22a8   :  { %v12765_v43 = vpop.xlane.xlu0 %12764 }
0x22a9   :  { %14989 = vrsqrt.f32 %v12792_v35  ;;  %v12783_v9 = vmul.f32 0.015625, %v12765_v43  ;;  %v12771_v3 = vpop.xlane.xlu1 %12770 }
0x22aa   :  { %v12785_v47 = vmul.f32 0.015625, %v12771_v3  ;;  %v14986_v12 = vpop.eup %14985 }
0x22ab   :  { %v12791_v11 = vadd.f32 1e-05, %v12783_v9  ;;  %v12806_v42 = vmul.f32 %v14986_v12, %v18300_v29 }
0x22ac   :  { %v12793_v0 = vadd.f32 1e-05, %v12785_v47  ;;  %v12774_v62 = vpop.xlane.xlu0 %12773 }
0x22ad   :  { %14991 = vrsqrt.f32 %v12791_v11  ;;  %v12786_v49 = vmul.f32 0.015625, %v12774_v62  ;;  %v12777_v56 = vpop.xlane.xlu1 %12776  ;;  %v12820_v28 = vmul.f32 %v13240_v6, %v12806_v42 }
0x22ae   :  { %14993 = vrsqrt.f32 %v12793_v0  ;;  %v12787_v14 = vmul.f32 0.015625, %v12777_v56  ;;  %v14988_v53 = vpop.eup %14987 }
0x22af   :  { %v12794_v61 = vadd.f32 1e-05, %v12786_v49  ;;  %v12805_v24 = vmul.f32 %v14988_v53, %v18304_v33  ;;  %v12834_v45 = vadd.f32 %v13241_v18, %v12820_v28 }
0x22b0   :  { %v12795_v36 = vadd.f32 1e-05, %v12787_v14  ;;  %v12780_v8 = vpop.xlane.xlu0 %12779 }
0x22b1   :  { %14995 = vrsqrt.f32 %v12794_v61  ;;  %v12788_v7 = vmul.f32 0.015625, %v12780_v8  ;;  %v12819_v41 = vmul.f32 %v13240_v6, %v12805_v24  ;;  %v12864_v10 = vrot.slane %v12834_v45, 7 }
0x22b2   :  { %14997 = vrsqrt.f32 %v12795_v36 }
0x22b3   :  { %v14990_v59 = vpop.eup %14989  ;;  %v12796_v37 = vadd.f32 1e-05, %v12788_v7  ;;  %v12833_v51 = vadd.f32 %v13241_v18, %v12819_v41 }
0x22b4   :  { %v12808_v39 = vmul.f32 %v14990_v59, %v18310_v48 }
0x22b5   :  { %14999 = vrsqrt.f32 %v12796_v37  ;;  %v12866_v46 = vsel %vm12865_vm6, %v12864_v10, %v12833_v51 }
0x22b6   :  { %v12822_v5 = vmul.f32 %v13240_v6, %v12808_v39 }
0x22b7   :  { %v14992_v29 = vpop.eup %14991 }
0x22b8   :  { %v14994_v19 = vpop.eup %14993  ;;  %v12807_v32 = vmul.f32 %v14992_v29, %v18314_v34  ;;  %v12836_v55 = vadd.f32 %v13241_v18, %v12822_v5 }
0x22b9   :  { %v12809_v30 = vmul.f32 %v14994_v19, %v18317_v50 }
0x22ba   :  { %v12821_v63 = vmul.f32 %v13240_v6, %v12807_v32  ;;  %v12870_v54 = vrot.slane %v12836_v55, 5 }
0x22bb   :  { %v14996_v33 = vpop.eup %14995  ;;  %v12823_v48 = vmul.f32 %v13240_v6, %v12809_v30 }
0x22bc   :  { %v14998_v27 = vpop.eup %14997  ;;  %v12835_v21 = vadd.f32 %v13241_v18, %v12821_v63  ;;  %v12810_v1 = vmul.f32 %v14996_v33, %v18323_v23 }
0x22bd   :  { %v12837_v20 = vadd.f32 %v13241_v18, %v12823_v48  ;;  %v12811_v44 = vmul.f32 %v14998_v27, %v18326_v38 }
0x22be   :  { %v12867_v60 = vrot.slane %v12835_v21, 6  ;;  %v12824_v34 = vmul.f32 %v13240_v6, %v12810_v1 }
0x22bf   :  { %v15000_v50 = vpop.eup %14999  ;;  %v12873_v13 = vrot.slane %v12837_v20, 4  ;;  %v12825_v4 = vmul.f32 %v13240_v6, %v12811_v44 }
0x22c0   :  { %v12838_v17 = vadd.f32 %v13241_v18, %v12824_v34  ;;  %v12812_v52 = vmul.f32 %v15000_v50, %v18333_v25  ;;  %v12869_v22 = vsel %vm12868_vm7, %v12867_v60, %v12866_v46  ;;  %v13242_v25 = vld [vmem:[%s18493_s19] ss:$0 sm:$0xff] }
0x22c1   :  { %v12839_v26 = vadd.f32 %v13241_v18, %v12825_v4  ;;  %v12872_v23 = vsel %vm12871_vm8, %v12870_v54, %v12869_v22 }
0x22c2   :  { %v12876_v15 = vrot.slane %v12838_v17, 3  ;;  %v12826_v16 = vmul.f32 %v13240_v6, %v12812_v52  ;;  %v12875_v38 = vsel %vm12874_vm9, %v12873_v13, %v12872_v23 }
0x22c3   :  { %v12879_v58 = vrot.slane %v12839_v26, 2 }
0x22c4   :  { %v12840_v57 = vadd.f32 %v13241_v18, %v12826_v16  ;;  %v12878_v2 = vsel %vm12877_vm10, %v12876_v15, %v12875_v38 }
0x22c5   :  { %v12881_v40 = vsel %vm12880_vm11, %v12879_v58, %v12878_v2 }
0x22c6   :  { %v12882_v31 = vrot.slane %v12840_v57, 1 }
0x22c8   :  { %v12884_v35 = vsel %vm12883_vm12, %v12882_v31, %v12881_v40 }
0x22c9   :  { %14478 = vmatmul.mubr.msk.f32.vlgmr.msra.gmra.mrb[172].mxu0 %vm317_vm0, %v12884_v35 }
0x239c   :  { %v12953_v43 = vpop.f32.mrb[172].mxu0 }
0x239d   :  { %v12954_v9 = vadd.f32 %v13242_v25, %v12953_v43  ;;  %v14479_v3 = vpop.f32.mrb[173].mxu0 }
0x239f   :  { %12957 = vst [vmem:[#allocation26] sm:$0xff] %v12954_v9 }
0x23a0   :  { %15374 = shalt.err (!%p15371_p12)
}
0x23a1   :  { %s18494_s17 = sld [smem:[#allocation67_spill]] }
0x23a7   :  { %s15375_s27 = scalar_lea.hbm %s18494_s17, 128 }
0x23a8   :  { %p15376_p13 = scmp.ne.s32.totalorder %s18494_s17, %s15375_s27  ;;  %p15379_p0 = scmp.lt.u32.totalorder %s15375_s27, %s18494_s17 }
0x23aa   :  { %p15381_p1 = pnand %p15379_p0, %p15376_p13 }
0x23ac   :  { %15384 = shalt.err (!%p15381_p1)
}
0x23ad   :  { %12967 = dma.vmem_to_hbm [thread:$0]  %s12965_s16, 128, %s18494_s17, [#allocation4]  }
0x23ae   :  { %15401 = dma.done.wait [#allocation4], 128  }
0x23af   :  { %15402 = vsyncadd [#allocation4], 4294967168 }
0x23b0   :  { %12971 = vsyncpa [#allocation3], 1 }
0x23b1   :  { %12972 = vsyncpa [#allocation6], 1 }
0x23b2   :  { %12973 = vsyncpa [#allocation9], 1 }
0x23b3   :  { %12974 = vsyncpa [#allocation12], 1 }
0x23b4   :  { %12975 = vsyncpa [#allocation15], 1 }
0x23b5   :  { %12976 = vsyncpa [#allocation18], 1 }
0x23b6   :  { %12977 = vsyncpa [#allocation21], 1 }
0x23b7   :  { %12978 = vsyncpa [#allocation24], 1 }
0x23b8   :  { %12979 = vsyncpa [#allocation4], 1 }

</bundles_post_ra>
